<compile_context>
chip_gen: v5e
topology: v5e:2x2
jax: 0.10.0
libtpu: 0.0.40
codegen_flags: <defaults>
</compile_context>

<pallas_src>
import functools

import jax
import jax.numpy as jnp
from jax import lax
from jax.experimental import pallas as pl
from jax.experimental.pallas import tpu as pltpu


# Groups of original 3x3 taps that collapse onto the same original-resolution
# offset, per output parity: GRP[(parity, d)] for d in {0, 1}.
_GRP = {(0, 0): (0,), (0, 1): (1, 2), (1, 0): (0, 1), (1, 1): (2,)}


def _widx(pr, pc, dy, dx):
    return ((pr * 2 + pc) * 2 + dy) * 2 + dx


def _collapse_conv1_weights(w1):
    """(Cout, Cin, 3, 3) -> (16, Cout, Cin) parity-collapsed 2x2 taps.

    conv1(nearest_upsample_x2(x)) at output parity (pr, pc) is a 2x2 conv over
    the original-resolution x whose (dy, dx) tap is the sum of the original 3x3
    taps in _GRP[(pr, dy)] x _GRP[(pc, dx)].
    """
    mats = []
    for pr in (0, 1):
        for pc in (0, 1):
            for dy in (0, 1):
                for dx in (0, 1):
                    acc = None
                    for ky in _GRP[(pr, dy)]:
                        for kx in _GRP[(pc, dx)]:
                            term = w1[:, :, ky, kx]
                            acc = term if acc is None else acc + term
                    mats.append(acc)
    return jnp.stack(mats, axis=0)


def _make_kernel(cin, cout, tr, w, n_row_tiles, hb, cdt):
    tr_out = 2 * tr          # output rows produced per grid step
    w_out = 2 * w            # output width
    wpad = w_out + 2         # padded conv_1-output row width
    mw = (tr_out + 2) * wpad + 2   # flat mid width (+2 slack lanes for kx shifts)

    def kernel(xm_ref, xt_ref, xb_ref, wc1_ref, b1_ref, w2_ref, b2_ref,
               o_ref, xep_ref, mid_ref):
        i = pl.program_id(1)

        # ---- stage 0: stage the input tile (+1-row halo, +1-col zero pad) ----
        xep_ref[...] = jnp.zeros(xep_ref.shape, xep_ref.dtype)
        xep_ref[:, 1:tr + 1, 1:w + 1] = xm_ref[0].astype(cdt)
        top = xt_ref[0, :, hb - 1, :].astype(cdt)   # last row of previous block
        bot = xb_ref[0, :, 0, :].astype(cdt)        # first row of next block
        xep_ref[:, 0, 1:w + 1] = top * (i > 0).astype(cdt)
        xep_ref[:, tr + 1, 1:w + 1] = bot * (i < n_row_tiles - 1).astype(cdt)

        # one-hot interleave matrices: scatter even/odd columns into 2W lanes.
        rr = lax.broadcasted_iota(jnp.int32, (w, w_out), 0)
        cc = lax.broadcasted_iota(jnp.int32, (w, w_out), 1)
        i_even = (cc == 2 * rr).astype(jnp.float32)
        i_odd = (cc == 2 * rr + 1).astype(jnp.float32)

        b1 = b1_ref[...].astype(jnp.float32)        # (Cout, 1)
        b2 = b2_ref[...].astype(jnp.float32)

        def lrelu_pixnorm(y):                       # y: (Cout, n) float32
            y = jnp.where(y >= 0.0, y, 0.2 * y)     # LeakyReLU(0.2)
            inv = lax.rsqrt(jnp.mean(y * y, axis=0, keepdims=True) + 1e-8)
            return y * inv                          # PixelwiseNorm

        # ---- stage 1: conv_1 on the (virtual) 2x-upsampled tile --------------
        # mid row s <-> conv_1 output row (2*i*tr - 1 + s); rows 0 and 2*tr+1
        # double as conv_2's zero padding at the global image borders.
        # mid is kept flat: row s occupies lanes [s*wpad, (s+1)*wpad), with one
        # zero-pad lane on each side of the w_out valid columns.
        mid_ref[...] = jnp.zeros(mid_ref.shape, mid_ref.dtype)
        for s in range(tr_out + 2):
            pr = (s + 1) % 2                  # parity of the global conv_1 row
            l0 = s // 2                       # xep row for dy = 0
            acc_e = jnp.zeros((cout, w), jnp.float32)
            acc_o = jnp.zeros((cout, w), jnp.float32)
            for dy in (0, 1):
                xl = xep_ref[:, l0 + dy, 0:w]         # original col c-1
                xc = xep_ref[:, l0 + dy, 1:w + 1]     # original col c
                xr = xep_ref[:, l0 + dy, 2:w + 2]     # original col c+1
                acc_e += jnp.dot(wc1_ref[_widx(pr, 0, dy, 0)], xl,
                                 preferred_element_type=jnp.float32)
                acc_e += jnp.dot(wc1_ref[_widx(pr, 0, dy, 1)], xc,
                                 preferred_element_type=jnp.float32)
                acc_o += jnp.dot(wc1_ref[_widx(pr, 1, dy, 0)], xc,
                                 preferred_element_type=jnp.float32)
                acc_o += jnp.dot(wc1_ref[_widx(pr, 1, dy, 1)], xr,
                                 preferred_element_type=jnp.float32)
            y = (jnp.dot(acc_e, i_even, preferred_element_type=jnp.float32) +
                 jnp.dot(acc_o, i_odd, preferred_element_type=jnp.float32))
            y = lrelu_pixnorm(y + b1)
            mid_ref[:, s * wpad + 1:s * wpad + 1 + w_out] = y.astype(cdt)

        # conv_2's zero-padding rows at the global top / bottom of the image.
        @pl.when(i == 0)
        def _():
            mid_ref[:, 0:wpad] = jnp.zeros((cout, wpad), cdt)

        @pl.when(i == n_row_tiles - 1)
        def _():
            mid_ref[:, (tr_out + 1) * wpad:(tr_out + 2) * wpad] = (
                jnp.zeros((cout, wpad), cdt))

        # ---- stage 2: conv_2 (3x3, pad 1) + LeakyReLU + PixelwiseNorm --------
        # 9 whole-tile channel-mixing matmuls (N = mw lanes per call) followed
        # by lane-shifted adds; the two pad lanes per row absorb the kx shifts
        # so each tap contributes one contiguous slice.
        midv = mid_ref[...]
        acc = jnp.zeros((cout, tr_out * wpad), jnp.float32)
        for k in range(9):
            ky, kx = divmod(k, 3)
            z = jnp.dot(w2_ref[k], midv, preferred_element_type=jnp.float32)
            off = ky * wpad + kx
            acc = acc + z[:, off:off + tr_out * wpad]
        y2 = lrelu_pixnorm(acc + b2)
        # drop the two junk lanes per row and emit one lane-dense store.
        rows = [y2[:, t * wpad:t * wpad + w_out] for t in range(tr_out)]
        o_ref[0, :, :] = jnp.concatenate(rows, axis=1).astype(o_ref.dtype)

    return kernel


def _vmem_bytes_estimate(cin, cout, tr, w, hb, x_isize, c_isize):
    tr_out, w_out = 2 * tr, 2 * w
    wpad = w_out + 2
    mw = (tr_out + 2) * wpad + 2
    blocks = 2 * ((tr + 2 * hb) * cin * w * x_isize          # x + 2 halo views
                  + cout * tr_out * w_out * x_isize)         # output block
    blocks += 2 * (16 * cout * cin + 9 * cout * cout + 2 * cout) * c_isize
    scratch = cin * (tr + 2) * (w + 2) * c_isize + cout * mw * c_isize
    temps = (3 * cout * mw + 2 * cout * tr_out * wpad) * 4   # conv_2 f32 values
    return int(1.25 * (blocks + scratch + temps))


def _pick_row_tile(h, w, cin, cout, x_isize, c_isize,
                   budget=28 * 1024 * 1024, cap=32):
    # cap bounds the unrolled conv_1 loop; (4*t*w) % 128 == 0 keeps the
    # flattened output block a multiple of 128 lanes (lane-dense stores).
    cands = [t for t in range(8, min(h, cap) + 1, 8)
             if h % t == 0 and (4 * t * w) % 128 == 0]
    if not cands:
        return h                                 # tiny / odd H: single row tile
    fits = [t for t in cands
            if _vmem_bytes_estimate(cin, cout, t, w, 8, x_isize, c_isize)
            <= budget]
    if not fits:
        return cands[0]
    multi = [t for t in fits if h // t >= 2]     # prefer >=2 row tiles so the
    return max(multi) if multi else max(fits)    # pipeline / megacore have work


def gen_general_conv_block(x, w1, b1, w2, b2, use_eql=True,
                           row_tile=None, mxu_dtype=None):
    """Forward of GenGeneralConvBlock. x: (N, Cin, H, W) -> (N, Cout, 2H, 2W)."""
    n, cin, h, wdim = x.shape
    cout, cin1, kh, kw = w1.shape
    assert (cin1, kh, kw) == (cin, 3, 3) and w2.shape == (cout, cout, 3, 3)

    if use_eql:  # EqualizedConv2d: weight * sqrt(2 / fan_in) at call time
        w1 = w1 * jnp.sqrt(2.0 / (cin * 9)).astype(w1.dtype)
        w2 = w2 * jnp.sqrt(2.0 / (cout * 9)).astype(w2.dtype)

    cdt = jnp.dtype(mxu_dtype) if mxu_dtype is not None else jnp.dtype(x.dtype)
    x_isize = jnp.dtype(x.dtype).itemsize
    c_isize = cdt.itemsize

    tr = row_tile if row_tile is not None else _pick_row_tile(
        h, wdim, cin, cout, x_isize, c_isize)
    assert h % tr == 0 and (tr % 8 == 0 or tr == h), (h, tr)
    assert (4 * tr * wdim) % 128 == 0 or tr == h, (tr, wdim)
    n_rt = h // tr
    hb = 8 if (tr % 8 == 0 and h % 8 == 0) else tr   # halo-view block rows
    nrb = h // hb
    rpb = tr // hb
    tr_out, w_out = 2 * tr, 2 * wdim

    wc1 = _collapse_conv1_weights(w1).astype(cdt)                  # (16, Cout, Cin)
    w2t = jnp.transpose(w2, (2, 3, 0, 1)).reshape(9, cout, cout).astype(cdt)
    b1c = b1.reshape(cout, 1).astype(jnp.float32)
    b2c = b2.reshape(cout, 1).astype(jnp.float32)

    kernel = _make_kernel(cin, cout, tr, wdim, n_rt, hb, cdt)

    in_specs = [
        pl.BlockSpec((1, cin, tr, wdim), lambda b, r: (b, 0, r, 0)),
        pl.BlockSpec((1, cin, hb, wdim),
                     lambda b, r: (b, 0, jnp.maximum(r * rpb - 1, 0), 0)),
        pl.BlockSpec((1, cin, hb, wdim),
                     lambda b, r: (b, 0, jnp.minimum((r + 1) * rpb, nrb - 1), 0)),
        pl.BlockSpec((16, cout, cin), lambda b, r: (0, 0, 0)),
        pl.BlockSpec((cout, 1), lambda b, r: (0, 0)),
        pl.BlockSpec((9, cout, cout), lambda b, r: (0, 0, 0)),
        pl.BlockSpec((cout, 1), lambda b, r: (0, 0)),
    ]
    # Flattened output: one large lane-dense store per grid step; the trailing
    # reshape back to (N, Cout, 2H, 2W) in XLA is a free metadata reshape.
    out_spec = pl.BlockSpec((1, cout, tr_out * w_out), lambda b, r: (b, 0, r))

    wpad = w_out + 2
    mw = (tr_out + 2) * wpad + 2
    scratch = [
        pltpu.VMEM((cin, tr + 2, wdim + 2), cdt),    # staged input tile (+halo)
        pltpu.VMEM((cout, mw), cdt),                 # conv_1 output (flat rows)
    ]

    est = _vmem_bytes_estimate(cin, cout, tr, wdim, hb, x_isize, c_isize)
    vmem_limit = int(min(max(est, 32 * 1024 * 1024), 128 * 1024 * 1024))

    cost = pl.CostEstimate(
        flops=int(2 * n * 4 * h * wdim
                  * (4 * cin * cout + 9 * cout * cout + 2 * w_out * cout)),
        transcendentals=int(2 * n * 4 * h * wdim),
        bytes_accessed=int(n * cin * h * wdim * x_isize * (1 + 2 * hb / tr)
                           + n * cout * 4 * h * wdim * x_isize
                           + (16 * cout * cin + 9 * cout * cout) * c_isize),
    )

    out_flat = pl.pallas_call(
        kernel,
        out_shape=jax.ShapeDtypeStruct((n, cout, 4 * h * wdim), x.dtype),
        grid_spec=pltpu.PrefetchScalarGridSpec(
            num_scalar_prefetch=0,
            grid=(n, n_rt),
            in_specs=in_specs,
            out_specs=out_spec,
            scratch_shapes=scratch,
        ),
        compiler_params=pltpu.CompilerParams(
            dimension_semantics=("parallel", "parallel"),
            vmem_limit_bytes=vmem_limit,
        ),
        cost_estimate=cost,
    )(x, x, x, wc1, b1c, w2t, b2c)
    return out_flat.reshape(n, cout, 2 * h, 2 * wdim)


def _reference_forward(x, w1, b1, w2, b2, use_eql=True):
    """Pure-JAX/XLA reference of the PyTorch module, used for validation."""
    cout, cin = w1.shape[0], w1.shape[1]
    if use_eql:
        w1 = w1 * jnp.sqrt(2.0 / (cin * 9)).astype(w1.dtype)
        w2 = w2 * jnp.sqrt(2.0 / (cout * 9)).astype(w2.dtype)

    def conv(z, w, b):
        out = lax.conv_general_dilated(
            z, w, window_strides=(1, 1), padding=((1, 1), (1, 1)),
            dimension_numbers=("NCHW", "OIHW", "NCHW"),
            precision=lax.Precision.HIGHEST)
        return out + b.reshape(1, -1, 1, 1)

    def act_norm(z):
        z = jnp.where(z >= 0, z, 0.2 * z)
        return z * lax.rsqrt(jnp.mean(z * z, axis=1, keepdims=True) + 1e-8)

    y = jnp.repeat(jnp.repeat(x, 2, axis=2), 2, axis=3)   # nearest x2 upsample
    y = act_norm(conv(y, w1, b1))
    y = act_norm(conv(y, w2, b2))
    return y


if __name__ == "__main__":
    key = jax.random.PRNGKey(0)
    k_x, k_w1, k_b1, k_w2, k_b2 = jax.random.split(key, 5)

    N, Cin, H, W = 2, 4, 16, 16
    Cout = 4

    x = jax.random.normal(k_x, (N, Cin, H, W), dtype=jnp.float32)
    w1 = jax.random.normal(k_w1, (Cout, Cin, 3, 3), dtype=jnp.float32)
    b1 = 0.1 * jax.random.normal(k_b1, (Cout,), dtype=jnp.float32)
    w2 = jax.random.normal(k_w2, (Cout, Cout, 3, 3), dtype=jnp.float32)
    b2 = 0.1 * jax.random.normal(k_b2, (Cout,), dtype=jnp.float32)

    fwd = jax.jit(functools.partial(gen_general_conv_block, use_eql=True))
    out = fwd(x, w1, b1, w2, b2)
    jax.block_until_ready(out)

    assert out.shape == (N, Cout, 2 * H, 2 * W), out.shape
    assert bool(jnp.all(jnp.isfinite(out)))

    # numerical sanity check against a pure-XLA reference of the module
    ref = _reference_forward(x, w1, b1, w2, b2, use_eql=True)
    max_err = float(jnp.max(jnp.abs(out - ref)))
    assert max_err < 5e-2, f"max abs error vs reference = {max_err}"

    print("KERNEL_OK")
</pallas_src>

<mosaic_0001>
module attributes {stable_mosaic.version = 11 : i64} {
  func.func @kernel(%arg0: i32, %arg1: i32, %arg2: memref<1x4x8x16xf32, #tpu.memory_space<vmem>>, %arg3: memref<1x4x8x16xf32, #tpu.memory_space<vmem>>, %arg4: memref<1x4x8x16xf32, #tpu.memory_space<vmem>>, %arg5: memref<16x4x4xf32, #tpu.memory_space<vmem>>, %arg6: memref<4x1xf32, #tpu.memory_space<vmem>>, %arg7: memref<9x4x4xf32, #tpu.memory_space<vmem>>, %arg8: memref<4x1xf32, #tpu.memory_space<vmem>>, %arg9: memref<1x4x512xf32, #tpu.memory_space<vmem>>, %arg10: memref<4x10x18xf32, #tpu.memory_space<vmem>>, %arg11: memref<4x614xf32, #tpu.memory_space<vmem>>) attributes {dimension_semantics = [#tpu.dimension_semantics<parallel>, #tpu.dimension_semantics<parallel>], iteration_bounds = array<i64: 2, 2>, scalar_prefetch = 0 : i64, scratch_operands = 2 : i64, tpu.core_type = #tpu.core_type<tc>, window_params = [{transform_indices = @transform_0, window_bounds = array<i64: 1, 4, 8, 16>}, {transform_indices = @transform_1, window_bounds = array<i64: 1, 4, 8, 16>}, {transform_indices = @transform_2, window_bounds = array<i64: 1, 4, 8, 16>}, {pipeline_mode = #tpu.pipeline_mode<synchronous>, transform_indices = @transform_3, window_bounds = array<i64: 16, 4, 4>}, {pipeline_mode = #tpu.pipeline_mode<synchronous>, transform_indices = @transform_4, window_bounds = array<i64: 4, 1>}, {pipeline_mode = #tpu.pipeline_mode<synchronous>, transform_indices = @transform_5, window_bounds = array<i64: 9, 4, 4>}, {pipeline_mode = #tpu.pipeline_mode<synchronous>, transform_indices = @transform_6, window_bounds = array<i64: 4, 1>}, {transform_indices = @transform_7, window_bounds = array<i64: 1, 4, 512>}]} {
    %cst = arith.constant 0.000000e+00 : f32
    %0 = vector.broadcast %cst : f32 to vector<4x10x18xf32>
    %c0 = arith.constant 0 : index
    %c0_0 = arith.constant 0 : index
    %c0_1 = arith.constant 0 : index
    %1 = vector.load %arg10[%c0, %c0_0, %c0_1] : memref<4x10x18xf32, #tpu.memory_space<vmem>>, vector<4x10x18xf32>
    tpu.vector_store %arg10[%c0, %c0_0, %c0_1], %0 {strides = array<i32>} : memref<4x10x18xf32, #tpu.memory_space<vmem>>, vector<4x10x18xf32>,
    %c0_2 = arith.constant 0 : index
    %c0_3 = arith.constant 0 : index
    %c0_4 = arith.constant 0 : index
    %c0_5 = arith.constant 0 : index
    %2 = vector.load %arg2[%c0_2, %c0_3, %c0_4, %c0_5] : memref<1x4x8x16xf32, #tpu.memory_space<vmem>>, vector<1x4x8x16xf32>
    %3 = vector.shape_cast %2 : vector<1x4x8x16xf32> to vector<4x8x16xf32>
    %c0_6 = arith.constant 0 : index
    %c1 = arith.constant 1 : index
    %c1_7 = arith.constant 1 : index
    %4 = vector.load %arg10[%c0_6, %c1, %c1_7] : memref<4x10x18xf32, #tpu.memory_space<vmem>>, vector<4x8x16xf32>
    tpu.vector_store %arg10[%c0_6, %c1, %c1_7], %3 {strides = array<i32>} : memref<4x10x18xf32, #tpu.memory_space<vmem>>, vector<4x8x16xf32>,
    %c0_8 = arith.constant 0 : index
    %c0_9 = arith.constant 0 : index
    %c7 = arith.constant 7 : index
    %c0_10 = arith.constant 0 : index
    %5 = vector.load %arg3[%c0_8, %c0_9, %c7, %c0_10] : memref<1x4x8x16xf32, #tpu.memory_space<vmem>>, vector<1x4x1x16xf32>
    %6 = vector.shape_cast %5 : vector<1x4x1x16xf32> to vector<4x16xf32>
    %c0_11 = arith.constant 0 : index
    %c0_12 = arith.constant 0 : index
    %c0_13 = arith.constant 0 : index
    %c0_14 = arith.constant 0 : index
    %7 = vector.load %arg4[%c0_11, %c0_12, %c0_13, %c0_14] : memref<1x4x8x16xf32, #tpu.memory_space<vmem>>, vector<1x4x1x16xf32>
    %8 = vector.shape_cast %7 : vector<1x4x1x16xf32> to vector<4x16xf32>
    %c0_i32 = arith.constant 0 : i32
    %9 = arith.cmpi sgt, %arg1, %c0_i32 : i32
    %10 = arith.extui %9 : i1 to i32
    %11 = arith.sitofp %10 : i32 to f32
    %12 = vector.broadcast %11 : f32 to vector<4x16xf32>
    %13 = arith.mulf %6, %12 : vector<4x16xf32>
    %c0_15 = arith.constant 0 : index
    %c0_16 = arith.constant 0 : index
    %c1_17 = arith.constant 1 : index
    %14 = vector.load %arg10[%c0_15, %c0_16, %c1_17] : memref<4x10x18xf32, #tpu.memory_space<vmem>>, vector<4x1x16xf32>
    %15 = vector.shape_cast %14 : vector<4x1x16xf32> to vector<4x16xf32>
    %16 = vector.shape_cast %13 : vector<4x16xf32> to vector<4x1x16xf32>
    tpu.vector_store %arg10[%c0_15, %c0_16, %c1_17], %16 {strides = array<i32>} : memref<4x10x18xf32, #tpu.memory_space<vmem>>, vector<4x1x16xf32>,
    %c1_i32 = arith.constant 1 : i32
    %17 = arith.cmpi slt, %arg1, %c1_i32 : i32
    %18 = arith.extui %17 : i1 to i32
    %19 = arith.sitofp %18 : i32 to f32
    %20 = vector.broadcast %19 : f32 to vector<4x16xf32>
    %21 = arith.mulf %8, %20 : vector<4x16xf32>
    %c0_18 = arith.constant 0 : index
    %c9 = arith.constant 9 : index
    %c1_19 = arith.constant 1 : index
    %22 = vector.load %arg10[%c0_18, %c9, %c1_19] : memref<4x10x18xf32, #tpu.memory_space<vmem>>, vector<4x1x16xf32>
    %23 = vector.shape_cast %22 : vector<4x1x16xf32> to vector<4x16xf32>
    %24 = vector.shape_cast %21 : vector<4x16xf32> to vector<4x1x16xf32>
    tpu.vector_store %arg10[%c0_18, %c9, %c1_19], %24 {strides = array<i32>} : memref<4x10x18xf32, #tpu.memory_space<vmem>>, vector<4x1x16xf32>,
    %25 = tpu.iota {dimensions = array<i32: 0>} : vector<16x32xi32>
    %26 = tpu.iota {dimensions = array<i32: 1>} : vector<16x32xi32>
    %c2_i32 = arith.constant 2 : i32
    %27 = vector.broadcast %c2_i32 : i32 to vector<16x32xi32>
    %28 = arith.muli %27, %25 : vector<16x32xi32>
    %29 = arith.cmpi eq, %26, %28 : vector<16x32xi32>
    %30 = arith.extui %29 : vector<16x32xi1> to vector<16x32xi32>
    %31 = arith.sitofp %30 : vector<16x32xi32> to vector<16x32xf32>
    %c2_i32_20 = arith.constant 2 : i32
    %32 = vector.broadcast %c2_i32_20 : i32 to vector<16x32xi32>
    %33 = arith.muli %32, %25 : vector<16x32xi32>
    %c1_i32_21 = arith.constant 1 : i32
    %34 = vector.broadcast %c1_i32_21 : i32 to vector<16x32xi32>
    %35 = arith.addi %33, %34 : vector<16x32xi32>
    %36 = arith.cmpi eq, %26, %35 : vector<16x32xi32>
    %37 = arith.extui %36 : vector<16x32xi1> to vector<16x32xi32>
    %38 = arith.sitofp %37 : vector<16x32xi32> to vector<16x32xf32>
    %c0_22 = arith.constant 0 : index
    %c0_23 = arith.constant 0 : index
    %39 = vector.load %arg6[%c0_22, %c0_23] : memref<4x1xf32, #tpu.memory_space<vmem>>, vector<4x1xf32>
    %c0_24 = arith.constant 0 : index
    %c0_25 = arith.constant 0 : index
    %40 = vector.load %arg8[%c0_24, %c0_25] : memref<4x1xf32, #tpu.memory_space<vmem>>, vector<4x1xf32>
    %cst_26 = arith.constant 0.000000e+00 : f32
    %41 = vector.broadcast %cst_26 : f32 to vector<4x614xf32>
    %c0_27 = arith.constant 0 : index
    %c0_28 = arith.constant 0 : index
    %42 = vector.load %arg11[%c0_27, %c0_28] : memref<4x614xf32, #tpu.memory_space<vmem>>, vector<4x614xf32>
    tpu.vector_store %arg11[%c0_27, %c0_28], %41 {strides = array<i32>} : memref<4x614xf32, #tpu.memory_space<vmem>>, vector<4x614xf32>,
    %cst_29 = arith.constant 0.000000e+00 : f32
    %43 = vector.broadcast %cst_29 : f32 to vector<4x16xf32>
    %cst_30 = arith.constant 0.000000e+00 : f32
    %44 = vector.broadcast %cst_30 : f32 to vector<4x16xf32>
    %c0_31 = arith.constant 0 : index
    %c0_32 = arith.constant 0 : index
    %c0_33 = arith.constant 0 : index
    %45 = vector.load %arg10[%c0_31, %c0_32, %c0_33] : memref<4x10x18xf32, #tpu.memory_space<vmem>>, vector<4x1x16xf32>
    %46 = vector.shape_cast %45 : vector<4x1x16xf32> to vector<4x16xf32>
    %c0_34 = arith.constant 0 : index
    %c0_35 = arith.constant 0 : index
    %c1_36 = arith.constant 1 : index
    %47 = vector.load %arg10[%c0_34, %c0_35, %c1_36] : memref<4x10x18xf32, #tpu.memory_space<vmem>>, vector<4x1x16xf32>
    %48 = vector.shape_cast %47 : vector<4x1x16xf32> to vector<4x16xf32>
    %c0_37 = arith.constant 0 : index
    %c0_38 = arith.constant 0 : index
    %c2 = arith.constant 2 : index
    %49 = vector.load %arg10[%c0_37, %c0_38, %c2] : memref<4x10x18xf32, #tpu.memory_space<vmem>>, vector<4x1x16xf32>
    %50 = vector.shape_cast %49 : vector<4x1x16xf32> to vector<4x16xf32>
    %c8 = arith.constant 8 : index
    %c0_39 = arith.constant 0 : index
    %c0_40 = arith.constant 0 : index
    %51 = vector.load %arg5[%c8, %c0_39, %c0_40] : memref<16x4x4xf32, #tpu.memory_space<vmem>>, vector<1x4x4xf32>
    %52 = vector.shape_cast %51 : vector<1x4x4xf32> to vector<4x4xf32>
    %cst_41 = arith.constant dense<0.000000e+00> : vector<4x16xf32>
    %53 = tpu.matmul %52, %46, %cst_41 {dimension_numbers = #tpu.dot_dimension_numbers<[1], [0], [0], [1], [0, 0, 1, 1], [], []>} : vector<4x4xf32>, vector<4x16xf32>, vector<4x16xf32> -> vector<4x16xf32>
    %54 = arith.addf %43, %53 : vector<4x16xf32>
    %c9_42 = arith.constant 9 : index
    %c0_43 = arith.constant 0 : index
    %c0_44 = arith.constant 0 : index
    %55 = vector.load %arg5[%c9_42, %c0_43, %c0_44] : memref<16x4x4xf32, #tpu.memory_space<vmem>>, vector<1x4x4xf32>
    %56 = vector.shape_cast %55 : vector<1x4x4xf32> to vector<4x4xf32>
    %cst_45 = arith.constant dense<0.000000e+00> : vector<4x16xf32>
    %57 = tpu.matmul %56, %48, %cst_45 {dimension_numbers = #tpu.dot_dimension_numbers<[1], [0], [0], [1], [0, 0, 1, 1], [], []>} : vector<4x4xf32>, vector<4x16xf32>, vector<4x16xf32> -> vector<4x16xf32>
    %58 = arith.addf %54, %57 : vector<4x16xf32>
    %c12 = arith.constant 12 : index
    %c0_46 = arith.constant 0 : index
    %c0_47 = arith.constant 0 : index
    %59 = vector.load %arg5[%c12, %c0_46, %c0_47] : memref<16x4x4xf32, #tpu.memory_space<vmem>>, vector<1x4x4xf32>
    %60 = vector.shape_cast %59 : vector<1x4x4xf32> to vector<4x4xf32>
    %cst_48 = arith.constant dense<0.000000e+00> : vector<4x16xf32>
    %61 = tpu.matmul %60, %48, %cst_48 {dimension_numbers = #tpu.dot_dimension_numbers<[1], [0], [0], [1], [0, 0, 1, 1], [], []>} : vector<4x4xf32>, vector<4x16xf32>, vector<4x16xf32> -> vector<4x16xf32>
    %62 = arith.addf %44, %61 : vector<4x16xf32>
    %c13 = arith.constant 13 : index
    %c0_49 = arith.constant 0 : index
    %c0_50 = arith.constant 0 : index
    %63 = vector.load %arg5[%c13, %c0_49, %c0_50] : memref<16x4x4xf32, #tpu.memory_space<vmem>>, vector<1x4x4xf32>
    %64 = vector.shape_cast %63 : vector<1x4x4xf32> to vector<4x4xf32>
    %cst_51 = arith.constant dense<0.000000e+00> : vector<4x16xf32>
    %65 = tpu.matmul %64, %50, %cst_51 {dimension_numbers = #tpu.dot_dimension_numbers<[1], [0], [0], [1], [0, 0, 1, 1], [], []>} : vector<4x4xf32>, vector<4x16xf32>, vector<4x16xf32> -> vector<4x16xf32>
    %66 = arith.addf %62, %65 : vector<4x16xf32>
    %c0_52 = arith.constant 0 : index
    %c1_53 = arith.constant 1 : index
    %c0_54 = arith.constant 0 : index
    %67 = vector.load %arg10[%c0_52, %c1_53, %c0_54] : memref<4x10x18xf32, #tpu.memory_space<vmem>>, vector<4x1x16xf32>
    %68 = vector.shape_cast %67 : vector<4x1x16xf32> to vector<4x16xf32>
    %c0_55 = arith.constant 0 : index
    %c1_56 = arith.constant 1 : index
    %c1_57 = arith.constant 1 : index
    %69 = vector.load %arg10[%c0_55, %c1_56, %c1_57] : memref<4x10x18xf32, #tpu.memory_space<vmem>>, vector<4x1x16xf32>
    %70 = vector.shape_cast %69 : vector<4x1x16xf32> to vector<4x16xf32>
    %c0_58 = arith.constant 0 : index
    %c1_59 = arith.constant 1 : index
    %c2_60 = arith.constant 2 : index
    %71 = vector.load %arg10[%c0_58, %c1_59, %c2_60] : memref<4x10x18xf32, #tpu.memory_space<vmem>>, vector<4x1x16xf32>
    %72 = vector.shape_cast %71 : vector<4x1x16xf32> to vector<4x16xf32>
    %c10 = arith.constant 10 : index
    %c0_61 = arith.constant 0 : index
    %c0_62 = arith.constant 0 : index
    %73 = vector.load %arg5[%c10, %c0_61, %c0_62] : memref<16x4x4xf32, #tpu.memory_space<vmem>>, vector<1x4x4xf32>
    %74 = vector.shape_cast %73 : vector<1x4x4xf32> to vector<4x4xf32>
    %cst_63 = arith.constant dense<0.000000e+00> : vector<4x16xf32>
    %75 = tpu.matmul %74, %68, %cst_63 {dimension_numbers = #tpu.dot_dimension_numbers<[1], [0], [0], [1], [0, 0, 1, 1], [], []>} : vector<4x4xf32>, vector<4x16xf32>, vector<4x16xf32> -> vector<4x16xf32>
    %76 = arith.addf %58, %75 : vector<4x16xf32>
    %c11 = arith.constant 11 : index
    %c0_64 = arith.constant 0 : index
    %c0_65 = arith.constant 0 : index
    %77 = vector.load %arg5[%c11, %c0_64, %c0_65] : memref<16x4x4xf32, #tpu.memory_space<vmem>>, vector<1x4x4xf32>
    %78 = vector.shape_cast %77 : vector<1x4x4xf32> to vector<4x4xf32>
    %cst_66 = arith.constant dense<0.000000e+00> : vector<4x16xf32>
    %79 = tpu.matmul %78, %70, %cst_66 {dimension_numbers = #tpu.dot_dimension_numbers<[1], [0], [0], [1], [0, 0, 1, 1], [], []>} : vector<4x4xf32>, vector<4x16xf32>, vector<4x16xf32> -> vector<4x16xf32>
    %80 = arith.addf %76, %79 : vector<4x16xf32>
    %c14 = arith.constant 14 : index
    %c0_67 = arith.constant 0 : index
    %c0_68 = arith.constant 0 : index
    %81 = vector.load %arg5[%c14, %c0_67, %c0_68] : memref<16x4x4xf32, #tpu.memory_space<vmem>>, vector<1x4x4xf32>
    %82 = vector.shape_cast %81 : vector<1x4x4xf32> to vector<4x4xf32>
    %cst_69 = arith.constant dense<0.000000e+00> : vector<4x16xf32>
    %83 = tpu.matmul %82, %70, %cst_69 {dimension_numbers = #tpu.dot_dimension_numbers<[1], [0], [0], [1], [0, 0, 1, 1], [], []>} : vector<4x4xf32>, vector<4x16xf32>, vector<4x16xf32> -> vector<4x16xf32>
    %84 = arith.addf %66, %83 : vector<4x16xf32>
    %c15 = arith.constant 15 : index
    %c0_70 = arith.constant 0 : index
    %c0_71 = arith.constant 0 : index
    %85 = vector.load %arg5[%c15, %c0_70, %c0_71] : memref<16x4x4xf32, #tpu.memory_space<vmem>>, vector<1x4x4xf32>
    %86 = vector.shape_cast %85 : vector<1x4x4xf32> to vector<4x4xf32>
    %cst_72 = arith.constant dense<0.000000e+00> : vector<4x16xf32>
    %87 = tpu.matmul %86, %72, %cst_72 {dimension_numbers = #tpu.dot_dimension_numbers<[1], [0], [0], [1], [0, 0, 1, 1], [], []>} : vector<4x4xf32>, vector<4x16xf32>, vector<4x16xf32> -> vector<4x16xf32>
    %88 = arith.addf %84, %87 : vector<4x16xf32>
    %cst_73 = arith.constant dense<0.000000e+00> : vector<4x32xf32>
    %89 = tpu.matmul %80, %31, %cst_73 {dimension_numbers = #tpu.dot_dimension_numbers<[1], [0], [0], [1], [0, 0, 1, 1], [], []>} : vector<4x16xf32>, vector<16x32xf32>, vector<4x32xf32> -> vector<4x32xf32>
    %cst_74 = arith.constant dense<0.000000e+00> : vector<4x32xf32>
    %90 = tpu.matmul %88, %38, %cst_74 {dimension_numbers = #tpu.dot_dimension_numbers<[1], [0], [0], [1], [0, 0, 1, 1], [], []>} : vector<4x16xf32>, vector<16x32xf32>, vector<4x32xf32> -> vector<4x32xf32>
    %91 = arith.addf %89, %90 : vector<4x32xf32>
    %92 = vector.broadcast %39 : vector<4x1xf32> to vector<4x32xf32>
    %93 = arith.addf %91, %92 : vector<4x32xf32>
    %cst_75 = arith.constant 0.000000e+00 : f32
    %94 = vector.broadcast %cst_75 : f32 to vector<4x32xf32>
    %95 = arith.cmpf oge, %93, %94 : vector<4x32xf32>
    %cst_76 = arith.constant 2.000000e-01 : f32
    %96 = vector.broadcast %cst_76 : f32 to vector<4x32xf32>
    %97 = arith.mulf %96, %93 : vector<4x32xf32>
    %98 = arith.select %95, %93, %97 : vector<4x32xi1>, vector<4x32xf32>
    %99 = arith.mulf %98, %98 : vector<4x32xf32>
    %cst_77 = arith.constant dense<0.000000e+00> : vector<32xf32>
    %100 = vector.multi_reduction <add>, %99, %cst_77 [0] : vector<4x32xf32> to vector<32xf32>
    %101 = vector.shape_cast %100 : vector<32xf32> to vector<1x32xf32>
    %cst_78 = arith.constant 4.000000e+00 : f32
    %102 = vector.broadcast %cst_78 : f32 to vector<1x32xf32>
    %103 = arith.divf %101, %102 : vector<1x32xf32>
    %cst_79 = arith.constant 9.99999993E-9 : f32
    %104 = vector.broadcast %cst_79 : f32 to vector<1x32xf32>
    %105 = arith.addf %103, %104 : vector<1x32xf32>
    %106 = math.rsqrt %105 : vector<1x32xf32>
    %107 = vector.broadcast %106 : vector<1x32xf32> to vector<4x32xf32>
    %108 = arith.mulf %98, %107 : vector<4x32xf32>
    %c0_80 = arith.constant 0 : index
    %c1_81 = arith.constant 1 : index
    %109 = vector.load %arg11[%c0_80, %c1_81] : memref<4x614xf32, #tpu.memory_space<vmem>>, vector<4x32xf32>
    tpu.vector_store %arg11[%c0_80, %c1_81], %108 {strides = array<i32>} : memref<4x614xf32, #tpu.memory_space<vmem>>, vector<4x32xf32>,
    %cst_82 = arith.constant 0.000000e+00 : f32
    %110 = vector.broadcast %cst_82 : f32 to vector<4x16xf32>
    %cst_83 = arith.constant 0.000000e+00 : f32
    %111 = vector.broadcast %cst_83 : f32 to vector<4x16xf32>
    %c0_84 = arith.constant 0 : index
    %c0_85 = arith.constant 0 : index
    %c0_86 = arith.constant 0 : index
    %112 = vector.load %arg10[%c0_84, %c0_85, %c0_86] : memref<4x10x18xf32, #tpu.memory_space<vmem>>, vector<4x1x16xf32>
    %113 = vector.shape_cast %112 : vector<4x1x16xf32> to vector<4x16xf32>
    %c0_87 = arith.constant 0 : index
    %c0_88 = arith.constant 0 : index
    %c1_89 = arith.constant 1 : index
    %114 = vector.load %arg10[%c0_87, %c0_88, %c1_89] : memref<4x10x18xf32, #tpu.memory_space<vmem>>, vector<4x1x16xf32>
    %115 = vector.shape_cast %114 : vector<4x1x16xf32> to vector<4x16xf32>
    %c0_90 = arith.constant 0 : index
    %c0_91 = arith.constant 0 : index
    %c2_92 = arith.constant 2 : index
    %116 = vector.load %arg10[%c0_90, %c0_91, %c2_92] : memref<4x10x18xf32, #tpu.memory_space<vmem>>, vector<4x1x16xf32>
    %117 = vector.shape_cast %116 : vector<4x1x16xf32> to vector<4x16xf32>
    %c0_93 = arith.constant 0 : index
    %c0_94 = arith.constant 0 : index
    %c0_95 = arith.constant 0 : index
    %118 = vector.load %arg5[%c0_93, %c0_94, %c0_95] : memref<16x4x4xf32, #tpu.memory_space<vmem>>, vector<1x4x4xf32>
    %119 = vector.shape_cast %118 : vector<1x4x4xf32> to vector<4x4xf32>
    %cst_96 = arith.constant dense<0.000000e+00> : vector<4x16xf32>
    %120 = tpu.matmul %119, %113, %cst_96 {dimension_numbers = #tpu.dot_dimension_numbers<[1], [0], [0], [1], [0, 0, 1, 1], [], []>} : vector<4x4xf32>, vector<4x16xf32>, vector<4x16xf32> -> vector<4x16xf32>
    %121 = arith.addf %110, %120 : vector<4x16xf32>
    %c1_97 = arith.constant 1 : index
    %c0_98 = arith.constant 0 : index
    %c0_99 = arith.constant 0 : index
    %122 = vector.load %arg5[%c1_97, %c0_98, %c0_99] : memref<16x4x4xf32, #tpu.memory_space<vmem>>, vector<1x4x4xf32>
    %123 = vector.shape_cast %122 : vector<1x4x4xf32> to vector<4x4xf32>
    %cst_100 = arith.constant dense<0.000000e+00> : vector<4x16xf32>
    %124 = tpu.matmul %123, %115, %cst_100 {dimension_numbers = #tpu.dot_dimension_numbers<[1], [0], [0], [1], [0, 0, 1, 1], [], []>} : vector<4x4xf32>, vector<4x16xf32>, vector<4x16xf32> -> vector<4x16xf32>
    %125 = arith.addf %121, %124 : vector<4x16xf32>
    %c4 = arith.constant 4 : index
    %c0_101 = arith.constant 0 : index
    %c0_102 = arith.constant 0 : index
    %126 = vector.load %arg5[%c4, %c0_101, %c0_102] : memref<16x4x4xf32, #tpu.memory_space<vmem>>, vector<1x4x4xf32>
    %127 = vector.shape_cast %126 : vector<1x4x4xf32> to vector<4x4xf32>
    %cst_103 = arith.constant dense<0.000000e+00> : vector<4x16xf32>
    %128 = tpu.matmul %127, %115, %cst_103 {dimension_numbers = #tpu.dot_dimension_numbers<[1], [0], [0], [1], [0, 0, 1, 1], [], []>} : vector<4x4xf32>, vector<4x16xf32>, vector<4x16xf32> -> vector<4x16xf32>
    %129 = arith.addf %111, %128 : vector<4x16xf32>
    %c5 = arith.constant 5 : index
    %c0_104 = arith.constant 0 : index
    %c0_105 = arith.constant 0 : index
    %130 = vector.load %arg5[%c5, %c0_104, %c0_105] : memref<16x4x4xf32, #tpu.memory_space<vmem>>, vector<1x4x4xf32>
    %131 = vector.shape_cast %130 : vector<1x4x4xf32> to vector<4x4xf32>
    %cst_106 = arith.constant dense<0.000000e+00> : vector<4x16xf32>
    %132 = tpu.matmul %131, %117, %cst_106 {dimension_numbers = #tpu.dot_dimension_numbers<[1], [0], [0], [1], [0, 0, 1, 1], [], []>} : vector<4x4xf32>, vector<4x16xf32>, vector<4x16xf32> -> vector<4x16xf32>
    %133 = arith.addf %129, %132 : vector<4x16xf32>
    %c0_107 = arith.constant 0 : index
    %c1_108 = arith.constant 1 : index
    %c0_109 = arith.constant 0 : index
    %134 = vector.load %arg10[%c0_107, %c1_108, %c0_109] : memref<4x10x18xf32, #tpu.memory_space<vmem>>, vector<4x1x16xf32>
    %135 = vector.shape_cast %134 : vector<4x1x16xf32> to vector<4x16xf32>
    %c0_110 = arith.constant 0 : index
    %c1_111 = arith.constant 1 : index
    %c1_112 = arith.constant 1 : index
    %136 = vector.load %arg10[%c0_110, %c1_111, %c1_112] : memref<4x10x18xf32, #tpu.memory_space<vmem>>, vector<4x1x16xf32>
    %137 = vector.shape_cast %136 : vector<4x1x16xf32> to vector<4x16xf32>
    %c0_113 = arith.constant 0 : index
    %c1_114 = arith.constant 1 : index
    %c2_115 = arith.constant 2 : index
    %138 = vector.load %arg10[%c0_113, %c1_114, %c2_115] : memref<4x10x18xf32, #tpu.memory_space<vmem>>, vector<4x1x16xf32>
    %139 = vector.shape_cast %138 : vector<4x1x16xf32> to vector<4x16xf32>
    %c2_116 = arith.constant 2 : index
    %c0_117 = arith.constant 0 : index
    %c0_118 = arith.constant 0 : index
    %140 = vector.load %arg5[%c2_116, %c0_117, %c0_118] : memref<16x4x4xf32, #tpu.memory_space<vmem>>, vector<1x4x4xf32>
    %141 = vector.shape_cast %140 : vector<1x4x4xf32> to vector<4x4xf32>
    %cst_119 = arith.constant dense<0.000000e+00> : vector<4x16xf32>
    %142 = tpu.matmul %141, %135, %cst_119 {dimension_numbers = #tpu.dot_dimension_numbers<[1], [0], [0], [1], [0, 0, 1, 1], [], []>} : vector<4x4xf32>, vector<4x16xf32>, vector<4x16xf32> -> vector<4x16xf32>
    %143 = arith.addf %125, %142 : vector<4x16xf32>
    %c3 = arith.constant 3 : index
    %c0_120 = arith.constant 0 : index
    %c0_121 = arith.constant 0 : index
    %144 = vector.load %arg5[%c3, %c0_120, %c0_121] : memref<16x4x4xf32, #tpu.memory_space<vmem>>, vector<1x4x4xf32>
    %145 = vector.shape_cast %144 : vector<1x4x4xf32> to vector<4x4xf32>
    %cst_122 = arith.constant dense<0.000000e+00> : vector<4x16xf32>
    %146 = tpu.matmul %145, %137, %cst_122 {dimension_numbers = #tpu.dot_dimension_numbers<[1], [0], [0], [1], [0, 0, 1, 1], [], []>} : vector<4x4xf32>, vector<4x16xf32>, vector<4x16xf32> -> vector<4x16xf32>
    %147 = arith.addf %143, %146 : vector<4x16xf32>
    %c6 = arith.constant 6 : index
    %c0_123 = arith.constant 0 : index
    %c0_124 = arith.constant 0 : index
    %148 = vector.load %arg5[%c6, %c0_123, %c0_124] : memref<16x4x4xf32, #tpu.memory_space<vmem>>, vector<1x4x4xf32>
    %149 = vector.shape_cast %148 : vector<1x4x4xf32> to vector<4x4xf32>
    %cst_125 = arith.constant dense<0.000000e+00> : vector<4x16xf32>
    %150 = tpu.matmul %149, %137, %cst_125 {dimension_numbers = #tpu.dot_dimension_numbers<[1], [0], [0], [1], [0, 0, 1, 1], [], []>} : vector<4x4xf32>, vector<4x16xf32>, vector<4x16xf32> -> vector<4x16xf32>
    %151 = arith.addf %133, %150 : vector<4x16xf32>
    %c7_126 = arith.constant 7 : index
    %c0_127 = arith.constant 0 : index
    %c0_128 = arith.constant 0 : index
    %152 = vector.load %arg5[%c7_126, %c0_127, %c0_128] : memref<16x4x4xf32, #tpu.memory_space<vmem>>, vector<1x4x4xf32>
    %153 = vector.shape_cast %152 : vector<1x4x4xf32> to vector<4x4xf32>
    %cst_129 = arith.constant dense<0.000000e+00> : vector<4x16xf32>
    %154 = tpu.matmul %153, %139, %cst_129 {dimension_numbers = #tpu.dot_dimension_numbers<[1], [0], [0], [1], [0, 0, 1, 1], [], []>} : vector<4x4xf32>, vector<4x16xf32>, vector<4x16xf32> -> vector<4x16xf32>
    %155 = arith.addf %151, %154 : vector<4x16xf32>
    %cst_130 = arith.constant dense<0.000000e+00> : vector<4x32xf32>
    %156 = tpu.matmul %147, %31, %cst_130 {dimension_numbers = #tpu.dot_dimension_numbers<[1], [0], [0], [1], [0, 0, 1, 1], [], []>} : vector<4x16xf32>, vector<16x32xf32>, vector<4x32xf32> -> vector<4x32xf32>
    %cst_131 = arith.constant dense<0.000000e+00> : vector<4x32xf32>
    %157 = tpu.matmul %155, %38, %cst_131 {dimension_numbers = #tpu.dot_dimension_numbers<[1], [0], [0], [1], [0, 0, 1, 1], [], []>} : vector<4x16xf32>, vector<16x32xf32>, vector<4x32xf32> -> vector<4x32xf32>
    %158 = arith.addf %156, %157 : vector<4x32xf32>
    %159 = vector.broadcast %39 : vector<4x1xf32> to vector<4x32xf32>
    %160 = arith.addf %158, %159 : vector<4x32xf32>
    %cst_132 = arith.constant 0.000000e+00 : f32
    %161 = vector.broadcast %cst_132 : f32 to vector<4x32xf32>
    %162 = arith.cmpf oge, %160, %161 : vector<4x32xf32>
    %cst_133 = arith.constant 2.000000e-01 : f32
    %163 = vector.broadcast %cst_133 : f32 to vector<4x32xf32>
    %164 = arith.mulf %163, %160 : vector<4x32xf32>
    %165 = arith.select %162, %160, %164 : vector<4x32xi1>, vector<4x32xf32>
    %166 = arith.mulf %165, %165 : vector<4x32xf32>
    %cst_134 = arith.constant dense<0.000000e+00> : vector<32xf32>
    %167 = vector.multi_reduction <add>, %166, %cst_134 [0] : vector<4x32xf32> to vector<32xf32>
    %168 = vector.shape_cast %167 : vector<32xf32> to vector<1x32xf32>
    %cst_135 = arith.constant 4.000000e+00 : f32
    %169 = vector.broadcast %cst_135 : f32 to vector<1x32xf32>
    %170 = arith.divf %168, %169 : vector<1x32xf32>
    %cst_136 = arith.constant 9.99999993E-9 : f32
    %171 = vector.broadcast %cst_136 : f32 to vector<1x32xf32>
    %172 = arith.addf %170, %171 : vector<1x32xf32>
    %173 = math.rsqrt %172 : vector<1x32xf32>
    %174 = vector.broadcast %173 : vector<1x32xf32> to vector<4x32xf32>
    %175 = arith.mulf %165, %174 : vector<4x32xf32>
    %c0_137 = arith.constant 0 : index
    %c35 = arith.constant 35 : index
    %176 = vector.load %arg11[%c0_137, %c35] : memref<4x614xf32, #tpu.memory_space<vmem>>, vector<4x32xf32>
    tpu.vector_store %arg11[%c0_137, %c35], %175 {strides = array<i32>} : memref<4x614xf32, #tpu.memory_space<vmem>>, vector<4x32xf32>,
    %cst_138 = arith.constant 0.000000e+00 : f32
    %177 = vector.broadcast %cst_138 : f32 to vector<4x16xf32>
    %cst_139 = arith.constant 0.000000e+00 : f32
    %178 = vector.broadcast %cst_139 : f32 to vector<4x16xf32>
    %c0_140 = arith.constant 0 : index
    %c1_141 = arith.constant 1 : index
    %c0_142 = arith.constant 0 : index
    %179 = vector.load %arg10[%c0_140, %c1_141, %c0_142] : memref<4x10x18xf32, #tpu.memory_space<vmem>>, vector<4x1x16xf32>
    %180 = vector.shape_cast %179 : vector<4x1x16xf32> to vector<4x16xf32>
    %c0_143 = arith.constant 0 : index
    %c1_144 = arith.constant 1 : index
    %c1_145 = arith.constant 1 : index
    %181 = vector.load %arg10[%c0_143, %c1_144, %c1_145] : memref<4x10x18xf32, #tpu.memory_space<vmem>>, vector<4x1x16xf32>
    %182 = vector.shape_cast %181 : vector<4x1x16xf32> to vector<4x16xf32>
    %c0_146 = arith.constant 0 : index
    %c1_147 = arith.constant 1 : index
    %c2_148 = arith.constant 2 : index
    %183 = vector.load %arg10[%c0_146, %c1_147, %c2_148] : memref<4x10x18xf32, #tpu.memory_space<vmem>>, vector<4x1x16xf32>
    %184 = vector.shape_cast %183 : vector<4x1x16xf32> to vector<4x16xf32>
    %c8_149 = arith.constant 8 : index
    %c0_150 = arith.constant 0 : index
    %c0_151 = arith.constant 0 : index
    %185 = vector.load %arg5[%c8_149, %c0_150, %c0_151] : memref<16x4x4xf32, #tpu.memory_space<vmem>>, vector<1x4x4xf32>
    %186 = vector.shape_cast %185 : vector<1x4x4xf32> to vector<4x4xf32>
    %cst_152 = arith.constant dense<0.000000e+00> : vector<4x16xf32>
    %187 = tpu.matmul %186, %180, %cst_152 {dimension_numbers = #tpu.dot_dimension_numbers<[1], [0], [0], [1], [0, 0, 1, 1], [], []>} : vector<4x4xf32>, vector<4x16xf32>, vector<4x16xf32> -> vector<4x16xf32>
    %188 = arith.addf %177, %187 : vector<4x16xf32>
    %c9_153 = arith.constant 9 : index
    %c0_154 = arith.constant 0 : index
    %c0_155 = arith.constant 0 : index
    %189 = vector.load %arg5[%c9_153, %c0_154, %c0_155] : memref<16x4x4xf32, #tpu.memory_space<vmem>>, vector<1x4x4xf32>
    %190 = vector.shape_cast %189 : vector<1x4x4xf32> to vector<4x4xf32>
    %cst_156 = arith.constant dense<0.000000e+00> : vector<4x16xf32>
    %191 = tpu.matmul %190, %182, %cst_156 {dimension_numbers = #tpu.dot_dimension_numbers<[1], [0], [0], [1], [0, 0, 1, 1], [], []>} : vector<4x4xf32>, vector<4x16xf32>, vector<4x16xf32> -> vector<4x16xf32>
    %192 = arith.addf %188, %191 : vector<4x16xf32>
    %c12_157 = arith.constant 12 : index
    %c0_158 = arith.constant 0 : index
    %c0_159 = arith.constant 0 : index
    %193 = vector.load %arg5[%c12_157, %c0_158, %c0_159] : memref<16x4x4xf32, #tpu.memory_space<vmem>>, vector<1x4x4xf32>
    %194 = vector.shape_cast %193 : vector<1x4x4xf32> to vector<4x4xf32>
    %cst_160 = arith.constant dense<0.000000e+00> : vector<4x16xf32>
    %195 = tpu.matmul %194, %182, %cst_160 {dimension_numbers = #tpu.dot_dimension_numbers<[1], [0], [0], [1], [0, 0, 1, 1], [], []>} : vector<4x4xf32>, vector<4x16xf32>, vector<4x16xf32> -> vector<4x16xf32>
    %196 = arith.addf %178, %195 : vector<4x16xf32>
    %c13_161 = arith.constant 13 : index
    %c0_162 = arith.constant 0 : index
    %c0_163 = arith.constant 0 : index
    %197 = vector.load %arg5[%c13_161, %c0_162, %c0_163] : memref<16x4x4xf32, #tpu.memory_space<vmem>>, vector<1x4x4xf32>
    %198 = vector.shape_cast %197 : vector<1x4x4xf32> to vector<4x4xf32>
    %cst_164 = arith.constant dense<0.000000e+00> : vector<4x16xf32>
    %199 = tpu.matmul %198, %184, %cst_164 {dimension_numbers = #tpu.dot_dimension_numbers<[1], [0], [0], [1], [0, 0, 1, 1], [], []>} : vector<4x4xf32>, vector<4x16xf32>, vector<4x16xf32> -> vector<4x16xf32>
    %200 = arith.addf %196, %199 : vector<4x16xf32>
    %c0_165 = arith.constant 0 : index
    %c2_166 = arith.constant 2 : index
    %c0_167 = arith.constant 0 : index
    %201 = vector.load %arg10[%c0_165, %c2_166, %c0_167] : memref<4x10x18xf32, #tpu.memory_space<vmem>>, vector<4x1x16xf32>
    %202 = vector.shape_cast %201 : vector<4x1x16xf32> to vector<4x16xf32>
    %c0_168 = arith.constant 0 : index
    %c2_169 = arith.constant 2 : index
    %c1_170 = arith.constant 1 : index
    %203 = vector.load %arg10[%c0_168, %c2_169, %c1_170] : memref<4x10x18xf32, #tpu.memory_space<vmem>>, vector<4x1x16xf32>
    %204 = vector.shape_cast %203 : vector<4x1x16xf32> to vector<4x16xf32>
    %c0_171 = arith.constant 0 : index
    %c2_172 = arith.constant 2 : index
    %c2_173 = arith.constant 2 : index
    %205 = vector.load %arg10[%c0_171, %c2_172, %c2_173] : memref<4x10x18xf32, #tpu.memory_space<vmem>>, vector<4x1x16xf32>
    %206 = vector.shape_cast %205 : vector<4x1x16xf32> to vector<4x16xf32>
    %c10_174 = arith.constant 10 : index
    %c0_175 = arith.constant 0 : index
    %c0_176 = arith.constant 0 : index
    %207 = vector.load %arg5[%c10_174, %c0_175, %c0_176] : memref<16x4x4xf32, #tpu.memory_space<vmem>>, vector<1x4x4xf32>
    %208 = vector.shape_cast %207 : vector<1x4x4xf32> to vector<4x4xf32>
    %cst_177 = arith.constant dense<0.000000e+00> : vector<4x16xf32>
    %209 = tpu.matmul %208, %202, %cst_177 {dimension_numbers = #tpu.dot_dimension_numbers<[1], [0], [0], [1], [0, 0, 1, 1], [], []>} : vector<4x4xf32>, vector<4x16xf32>, vector<4x16xf32> -> vector<4x16xf32>
    %210 = arith.addf %192, %209 : vector<4x16xf32>
    %c11_178 = arith.constant 11 : index
    %c0_179 = arith.constant 0 : index
    %c0_180 = arith.constant 0 : index
    %211 = vector.load %arg5[%c11_178, %c0_179, %c0_180] : memref<16x4x4xf32, #tpu.memory_space<vmem>>, vector<1x4x4xf32>
    %212 = vector.shape_cast %211 : vector<1x4x4xf32> to vector<4x4xf32>
    %cst_181 = arith.constant dense<0.000000e+00> : vector<4x16xf32>
    %213 = tpu.matmul %212, %204, %cst_181 {dimension_numbers = #tpu.dot_dimension_numbers<[1], [0], [0], [1], [0, 0, 1, 1], [], []>} : vector<4x4xf32>, vector<4x16xf32>, vector<4x16xf32> -> vector<4x16xf32>
    %214 = arith.addf %210, %213 : vector<4x16xf32>
    %c14_182 = arith.constant 14 : index
    %c0_183 = arith.constant 0 : index
    %c0_184 = arith.constant 0 : index
    %215 = vector.load %arg5[%c14_182, %c0_183, %c0_184] : memref<16x4x4xf32, #tpu.memory_space<vmem>>, vector<1x4x4xf32>
    %216 = vector.shape_cast %215 : vector<1x4x4xf32> to vector<4x4xf32>
    %cst_185 = arith.constant dense<0.000000e+00> : vector<4x16xf32>
    %217 = tpu.matmul %216, %204, %cst_185 {dimension_numbers = #tpu.dot_dimension_numbers<[1], [0], [0], [1], [0, 0, 1, 1], [], []>} : vector<4x4xf32>, vector<4x16xf32>, vector<4x16xf32> -> vector<4x16xf32>
    %218 = arith.addf %200, %217 : vector<4x16xf32>
    %c15_186 = arith.constant 15 : index
    %c0_187 = arith.constant 0 : index
    %c0_188 = arith.constant 0 : index
    %219 = vector.load %arg5[%c15_186, %c0_187, %c0_188] : memref<16x4x4xf32, #tpu.memory_space<vmem>>, vector<1x4x4xf32>
    %220 = vector.shape_cast %219 : vector<1x4x4xf32> to vector<4x4xf32>
    %cst_189 = arith.constant dense<0.000000e+00> : vector<4x16xf32>
    %221 = tpu.matmul %220, %206, %cst_189 {dimension_numbers = #tpu.dot_dimension_numbers<[1], [0], [0], [1], [0, 0, 1, 1], [], []>} : vector<4x4xf32>, vector<4x16xf32>, vector<4x16xf32> -> vector<4x16xf32>
    %222 = arith.addf %218, %221 : vector<4x16xf32>
    %cst_190 = arith.constant dense<0.000000e+00> : vector<4x32xf32>
    %223 = tpu.matmul %214, %31, %cst_190 {dimension_numbers = #tpu.dot_dimension_numbers<[1], [0], [0], [1], [0, 0, 1, 1], [], []>} : vector<4x16xf32>, vector<16x32xf32>, vector<4x32xf32> -> vector<4x32xf32>
    %cst_191 = arith.constant dense<0.000000e+00> : vector<4x32xf32>
    %224 = tpu.matmul %222, %38, %cst_191 {dimension_numbers = #tpu.dot_dimension_numbers<[1], [0], [0], [1], [0, 0, 1, 1], [], []>} : vector<4x16xf32>, vector<16x32xf32>, vector<4x32xf32> -> vector<4x32xf32>
    %225 = arith.addf %223, %224 : vector<4x32xf32>
    %226 = vector.broadcast %39 : vector<4x1xf32> to vector<4x32xf32>
    %227 = arith.addf %225, %226 : vector<4x32xf32>
    %cst_192 = arith.constant 0.000000e+00 : f32
    %228 = vector.broadcast %cst_192 : f32 to vector<4x32xf32>
    %229 = arith.cmpf oge, %227, %228 : vector<4x32xf32>
    %cst_193 = arith.constant 2.000000e-01 : f32
    %230 = vector.broadcast %cst_193 : f32 to vector<4x32xf32>
    %231 = arith.mulf %230, %227 : vector<4x32xf32>
    %232 = arith.select %229, %227, %231 : vector<4x32xi1>, vector<4x32xf32>
    %233 = arith.mulf %232, %232 : vector<4x32xf32>
    %cst_194 = arith.constant dense<0.000000e+00> : vector<32xf32>
    %234 = vector.multi_reduction <add>, %233, %cst_194 [0] : vector<4x32xf32> to vector<32xf32>
    %235 = vector.shape_cast %234 : vector<32xf32> to vector<1x32xf32>
    %cst_195 = arith.constant 4.000000e+00 : f32
    %236 = vector.broadcast %cst_195 : f32 to vector<1x32xf32>
    %237 = arith.divf %235, %236 : vector<1x32xf32>
    %cst_196 = arith.constant 9.99999993E-9 : f32
    %238 = vector.broadcast %cst_196 : f32 to vector<1x32xf32>
    %239 = arith.addf %237, %238 : vector<1x32xf32>
    %240 = math.rsqrt %239 : vector<1x32xf32>
    %241 = vector.broadcast %240 : vector<1x32xf32> to vector<4x32xf32>
    %242 = arith.mulf %232, %241 : vector<4x32xf32>
    %c0_197 = arith.constant 0 : index
    %c69 = arith.constant 69 : index
    %243 = vector.load %arg11[%c0_197, %c69] : memref<4x614xf32, #tpu.memory_space<vmem>>, vector<4x32xf32>
    tpu.vector_store %arg11[%c0_197, %c69], %242 {strides = array<i32>} : memref<4x614xf32, #tpu.memory_space<vmem>>, vector<4x32xf32>,
    %cst_198 = arith.constant 0.000000e+00 : f32
    %244 = vector.broadcast %cst_198 : f32 to vector<4x16xf32>
    %cst_199 = arith.constant 0.000000e+00 : f32
    %245 = vector.broadcast %cst_199 : f32 to vector<4x16xf32>
    %c0_200 = arith.constant 0 : index
    %c1_201 = arith.constant 1 : index
    %c0_202 = arith.constant 0 : index
    %246 = vector.load %arg10[%c0_200, %c1_201, %c0_202] : memref<4x10x18xf32, #tpu.memory_space<vmem>>, vector<4x1x16xf32>
    %247 = vector.shape_cast %246 : vector<4x1x16xf32> to vector<4x16xf32>
    %c0_203 = arith.constant 0 : index
    %c1_204 = arith.constant 1 : index
    %c1_205 = arith.constant 1 : index
    %248 = vector.load %arg10[%c0_203, %c1_204, %c1_205] : memref<4x10x18xf32, #tpu.memory_space<vmem>>, vector<4x1x16xf32>
    %249 = vector.shape_cast %248 : vector<4x1x16xf32> to vector<4x16xf32>
    %c0_206 = arith.constant 0 : index
    %c1_207 = arith.constant 1 : index
    %c2_208 = arith.constant 2 : index
    %250 = vector.load %arg10[%c0_206, %c1_207, %c2_208] : memref<4x10x18xf32, #tpu.memory_space<vmem>>, vector<4x1x16xf32>
    %251 = vector.shape_cast %250 : vector<4x1x16xf32> to vector<4x16xf32>
    %c0_209 = arith.constant 0 : index
    %c0_210 = arith.constant 0 : index
    %c0_211 = arith.constant 0 : index
    %252 = vector.load %arg5[%c0_209, %c0_210, %c0_211] : memref<16x4x4xf32, #tpu.memory_space<vmem>>, vector<1x4x4xf32>
    %253 = vector.shape_cast %252 : vector<1x4x4xf32> to vector<4x4xf32>
    %cst_212 = arith.constant dense<0.000000e+00> : vector<4x16xf32>
    %254 = tpu.matmul %253, %247, %cst_212 {dimension_numbers = #tpu.dot_dimension_numbers<[1], [0], [0], [1], [0, 0, 1, 1], [], []>} : vector<4x4xf32>, vector<4x16xf32>, vector<4x16xf32> -> vector<4x16xf32>
    %255 = arith.addf %244, %254 : vector<4x16xf32>
    %c1_213 = arith.constant 1 : index
    %c0_214 = arith.constant 0 : index
    %c0_215 = arith.constant 0 : index
    %256 = vector.load %arg5[%c1_213, %c0_214, %c0_215] : memref<16x4x4xf32, #tpu.memory_space<vmem>>, vector<1x4x4xf32>
    %257 = vector.shape_cast %256 : vector<1x4x4xf32> to vector<4x4xf32>
    %cst_216 = arith.constant dense<0.000000e+00> : vector<4x16xf32>
    %258 = tpu.matmul %257, %249, %cst_216 {dimension_numbers = #tpu.dot_dimension_numbers<[1], [0], [0], [1], [0, 0, 1, 1], [], []>} : vector<4x4xf32>, vector<4x16xf32>, vector<4x16xf32> -> vector<4x16xf32>
    %259 = arith.addf %255, %258 : vector<4x16xf32>
    %c4_217 = arith.constant 4 : index
    %c0_218 = arith.constant 0 : index
    %c0_219 = arith.constant 0 : index
    %260 = vector.load %arg5[%c4_217, %c0_218, %c0_219] : memref<16x4x4xf32, #tpu.memory_space<vmem>>, vector<1x4x4xf32>
    %261 = vector.shape_cast %260 : vector<1x4x4xf32> to vector<4x4xf32>
    %cst_220 = arith.constant dense<0.000000e+00> : vector<4x16xf32>
    %262 = tpu.matmul %261, %249, %cst_220 {dimension_numbers = #tpu.dot_dimension_numbers<[1], [0], [0], [1], [0, 0, 1, 1], [], []>} : vector<4x4xf32>, vector<4x16xf32>, vector<4x16xf32> -> vector<4x16xf32>
    %263 = arith.addf %245, %262 : vector<4x16xf32>
    %c5_221 = arith.constant 5 : index
    %c0_222 = arith.constant 0 : index
    %c0_223 = arith.constant 0 : index
    %264 = vector.load %arg5[%c5_221, %c0_222, %c0_223] : memref<16x4x4xf32, #tpu.memory_space<vmem>>, vector<1x4x4xf32>
    %265 = vector.shape_cast %264 : vector<1x4x4xf32> to vector<4x4xf32>
    %cst_224 = arith.constant dense<0.000000e+00> : vector<4x16xf32>
    %266 = tpu.matmul %265, %251, %cst_224 {dimension_numbers = #tpu.dot_dimension_numbers<[1], [0], [0], [1], [0, 0, 1, 1], [], []>} : vector<4x4xf32>, vector<4x16xf32>, vector<4x16xf32> -> vector<4x16xf32>
    %267 = arith.addf %263, %266 : vector<4x16xf32>
    %c0_225 = arith.constant 0 : index
    %c2_226 = arith.constant 2 : index
    %c0_227 = arith.constant 0 : index
    %268 = vector.load %arg10[%c0_225, %c2_226, %c0_227] : memref<4x10x18xf32, #tpu.memory_space<vmem>>, vector<4x1x16xf32>
    %269 = vector.shape_cast %268 : vector<4x1x16xf32> to vector<4x16xf32>
    %c0_228 = arith.constant 0 : index
    %c2_229 = arith.constant 2 : index
    %c1_230 = arith.constant 1 : index
    %270 = vector.load %arg10[%c0_228, %c2_229, %c1_230] : memref<4x10x18xf32, #tpu.memory_space<vmem>>, vector<4x1x16xf32>
    %271 = vector.shape_cast %270 : vector<4x1x16xf32> to vector<4x16xf32>
    %c0_231 = arith.constant 0 : index
    %c2_232 = arith.constant 2 : index
    %c2_233 = arith.constant 2 : index
    %272 = vector.load %arg10[%c0_231, %c2_232, %c2_233] : memref<4x10x18xf32, #tpu.memory_space<vmem>>, vector<4x1x16xf32>
    %273 = vector.shape_cast %272 : vector<4x1x16xf32> to vector<4x16xf32>
    %c2_234 = arith.constant 2 : index
    %c0_235 = arith.constant 0 : index
    %c0_236 = arith.constant 0 : index
    %274 = vector.load %arg5[%c2_234, %c0_235, %c0_236] : memref<16x4x4xf32, #tpu.memory_space<vmem>>, vector<1x4x4xf32>
    %275 = vector.shape_cast %274 : vector<1x4x4xf32> to vector<4x4xf32>
    %cst_237 = arith.constant dense<0.000000e+00> : vector<4x16xf32>
    %276 = tpu.matmul %275, %269, %cst_237 {dimension_numbers = #tpu.dot_dimension_numbers<[1], [0], [0], [1], [0, 0, 1, 1], [], []>} : vector<4x4xf32>, vector<4x16xf32>, vector<4x16xf32> -> vector<4x16xf32>
    %277 = arith.addf %259, %276 : vector<4x16xf32>
    %c3_238 = arith.constant 3 : index
    %c0_239 = arith.constant 0 : index
    %c0_240 = arith.constant 0 : index
    %278 = vector.load %arg5[%c3_238, %c0_239, %c0_240] : memref<16x4x4xf32, #tpu.memory_space<vmem>>, vector<1x4x4xf32>
    %279 = vector.shape_cast %278 : vector<1x4x4xf32> to vector<4x4xf32>
    %cst_241 = arith.constant dense<0.000000e+00> : vector<4x16xf32>
    %280 = tpu.matmul %279, %271, %cst_241 {dimension_numbers = #tpu.dot_dimension_numbers<[1], [0], [0], [1], [0, 0, 1, 1], [], []>} : vector<4x4xf32>, vector<4x16xf32>, vector<4x16xf32> -> vector<4x16xf32>
    %281 = arith.addf %277, %280 : vector<4x16xf32>
    %c6_242 = arith.constant 6 : index
    %c0_243 = arith.constant 0 : index
    %c0_244 = arith.constant 0 : index
    %282 = vector.load %arg5[%c6_242, %c0_243, %c0_244] : memref<16x4x4xf32, #tpu.memory_space<vmem>>, vector<1x4x4xf32>
    %283 = vector.shape_cast %282 : vector<1x4x4xf32> to vector<4x4xf32>
    %cst_245 = arith.constant dense<0.000000e+00> : vector<4x16xf32>
    %284 = tpu.matmul %283, %271, %cst_245 {dimension_numbers = #tpu.dot_dimension_numbers<[1], [0], [0], [1], [0, 0, 1, 1], [], []>} : vector<4x4xf32>, vector<4x16xf32>, vector<4x16xf32> -> vector<4x16xf32>
    %285 = arith.addf %267, %284 : vector<4x16xf32>
    %c7_246 = arith.constant 7 : index
    %c0_247 = arith.constant 0 : index
    %c0_248 = arith.constant 0 : index
    %286 = vector.load %arg5[%c7_246, %c0_247, %c0_248] : memref<16x4x4xf32, #tpu.memory_space<vmem>>, vector<1x4x4xf32>
    %287 = vector.shape_cast %286 : vector<1x4x4xf32> to vector<4x4xf32>
    %cst_249 = arith.constant dense<0.000000e+00> : vector<4x16xf32>
    %288 = tpu.matmul %287, %273, %cst_249 {dimension_numbers = #tpu.dot_dimension_numbers<[1], [0], [0], [1], [0, 0, 1, 1], [], []>} : vector<4x4xf32>, vector<4x16xf32>, vector<4x16xf32> -> vector<4x16xf32>
    %289 = arith.addf %285, %288 : vector<4x16xf32>
    %cst_250 = arith.constant dense<0.000000e+00> : vector<4x32xf32>
    %290 = tpu.matmul %281, %31, %cst_250 {dimension_numbers = #tpu.dot_dimension_numbers<[1], [0], [0], [1], [0, 0, 1, 1], [], []>} : vector<4x16xf32>, vector<16x32xf32>, vector<4x32xf32> -> vector<4x32xf32>
    %cst_251 = arith.constant dense<0.000000e+00> : vector<4x32xf32>
    %291 = tpu.matmul %289, %38, %cst_251 {dimension_numbers = #tpu.dot_dimension_numbers<[1], [0], [0], [1], [0, 0, 1, 1], [], []>} : vector<4x16xf32>, vector<16x32xf32>, vector<4x32xf32> -> vector<4x32xf32>
    %292 = arith.addf %290, %291 : vector<4x32xf32>
    %293 = vector.broadcast %39 : vector<4x1xf32> to vector<4x32xf32>
    %294 = arith.addf %292, %293 : vector<4x32xf32>
    %cst_252 = arith.constant 0.000000e+00 : f32
    %295 = vector.broadcast %cst_252 : f32 to vector<4x32xf32>
    %296 = arith.cmpf oge, %294, %295 : vector<4x32xf32>
    %cst_253 = arith.constant 2.000000e-01 : f32
    %297 = vector.broadcast %cst_253 : f32 to vector<4x32xf32>
    %298 = arith.mulf %297, %294 : vector<4x32xf32>
    %299 = arith.select %296, %294, %298 : vector<4x32xi1>, vector<4x32xf32>
    %300 = arith.mulf %299, %299 : vector<4x32xf32>
    %cst_254 = arith.constant dense<0.000000e+00> : vector<32xf32>
    %301 = vector.multi_reduction <add>, %300, %cst_254 [0] : vector<4x32xf32> to vector<32xf32>
    %302 = vector.shape_cast %301 : vector<32xf32> to vector<1x32xf32>
    %cst_255 = arith.constant 4.000000e+00 : f32
    %303 = vector.broadcast %cst_255 : f32 to vector<1x32xf32>
    %304 = arith.divf %302, %303 : vector<1x32xf32>
    %cst_256 = arith.constant 9.99999993E-9 : f32
    %305 = vector.broadcast %cst_256 : f32 to vector<1x32xf32>
    %306 = arith.addf %304, %305 : vector<1x32xf32>
    %307 = math.rsqrt %306 : vector<1x32xf32>
    %308 = vector.broadcast %307 : vector<1x32xf32> to vector<4x32xf32>
    %309 = arith.mulf %299, %308 : vector<4x32xf32>
    %c0_257 = arith.constant 0 : index
    %c103 = arith.constant 103 : index
    %310 = vector.load %arg11[%c0_257, %c103] : memref<4x614xf32, #tpu.memory_space<vmem>>, vector<4x32xf32>
    tpu.vector_store %arg11[%c0_257, %c103], %309 {strides = array<i32>} : memref<4x614xf32, #tpu.memory_space<vmem>>, vector<4x32xf32>,
    %cst_258 = arith.constant 0.000000e+00 : f32
    %311 = vector.broadcast %cst_258 : f32 to vector<4x16xf32>
    %cst_259 = arith.constant 0.000000e+00 : f32
    %312 = vector.broadcast %cst_259 : f32 to vector<4x16xf32>
    %c0_260 = arith.constant 0 : index
    %c2_261 = arith.constant 2 : index
    %c0_262 = arith.constant 0 : index
    %313 = vector.load %arg10[%c0_260, %c2_261, %c0_262] : memref<4x10x18xf32, #tpu.memory_space<vmem>>, vector<4x1x16xf32>
    %314 = vector.shape_cast %313 : vector<4x1x16xf32> to vector<4x16xf32>
    %c0_263 = arith.constant 0 : index
    %c2_264 = arith.constant 2 : index
    %c1_265 = arith.constant 1 : index
    %315 = vector.load %arg10[%c0_263, %c2_264, %c1_265] : memref<4x10x18xf32, #tpu.memory_space<vmem>>, vector<4x1x16xf32>
    %316 = vector.shape_cast %315 : vector<4x1x16xf32> to vector<4x16xf32>
    %c0_266 = arith.constant 0 : index
    %c2_267 = arith.constant 2 : index
    %c2_268 = arith.constant 2 : index
    %317 = vector.load %arg10[%c0_266, %c2_267, %c2_268] : memref<4x10x18xf32, #tpu.memory_space<vmem>>, vector<4x1x16xf32>
    %318 = vector.shape_cast %317 : vector<4x1x16xf32> to vector<4x16xf32>
    %c8_269 = arith.constant 8 : index
    %c0_270 = arith.constant 0 : index
    %c0_271 = arith.constant 0 : index
    %319 = vector.load %arg5[%c8_269, %c0_270, %c0_271] : memref<16x4x4xf32, #tpu.memory_space<vmem>>, vector<1x4x4xf32>
    %320 = vector.shape_cast %319 : vector<1x4x4xf32> to vector<4x4xf32>
    %cst_272 = arith.constant dense<0.000000e+00> : vector<4x16xf32>
    %321 = tpu.matmul %320, %314, %cst_272 {dimension_numbers = #tpu.dot_dimension_numbers<[1], [0], [0], [1], [0, 0, 1, 1], [], []>} : vector<4x4xf32>, vector<4x16xf32>, vector<4x16xf32> -> vector<4x16xf32>
    %322 = arith.addf %311, %321 : vector<4x16xf32>
    %c9_273 = arith.constant 9 : index
    %c0_274 = arith.constant 0 : index
    %c0_275 = arith.constant 0 : index
    %323 = vector.load %arg5[%c9_273, %c0_274, %c0_275] : memref<16x4x4xf32, #tpu.memory_space<vmem>>, vector<1x4x4xf32>
    %324 = vector.shape_cast %323 : vector<1x4x4xf32> to vector<4x4xf32>
    %cst_276 = arith.constant dense<0.000000e+00> : vector<4x16xf32>
    %325 = tpu.matmul %324, %316, %cst_276 {dimension_numbers = #tpu.dot_dimension_numbers<[1], [0], [0], [1], [0, 0, 1, 1], [], []>} : vector<4x4xf32>, vector<4x16xf32>, vector<4x16xf32> -> vector<4x16xf32>
    %326 = arith.addf %322, %325 : vector<4x16xf32>
    %c12_277 = arith.constant 12 : index
    %c0_278 = arith.constant 0 : index
    %c0_279 = arith.constant 0 : index
    %327 = vector.load %arg5[%c12_277, %c0_278, %c0_279] : memref<16x4x4xf32, #tpu.memory_space<vmem>>, vector<1x4x4xf32>
    %328 = vector.shape_cast %327 : vector<1x4x4xf32> to vector<4x4xf32>
    %cst_280 = arith.constant dense<0.000000e+00> : vector<4x16xf32>
    %329 = tpu.matmul %328, %316, %cst_280 {dimension_numbers = #tpu.dot_dimension_numbers<[1], [0], [0], [1], [0, 0, 1, 1], [], []>} : vector<4x4xf32>, vector<4x16xf32>, vector<4x16xf32> -> vector<4x16xf32>
    %330 = arith.addf %312, %329 : vector<4x16xf32>
    %c13_281 = arith.constant 13 : index
    %c0_282 = arith.constant 0 : index
    %c0_283 = arith.constant 0 : index
    %331 = vector.load %arg5[%c13_281, %c0_282, %c0_283] : memref<16x4x4xf32, #tpu.memory_space<vmem>>, vector<1x4x4xf32>
    %332 = vector.shape_cast %331 : vector<1x4x4xf32> to vector<4x4xf32>
    %cst_284 = arith.constant dense<0.000000e+00> : vector<4x16xf32>
    %333 = tpu.matmul %332, %318, %cst_284 {dimension_numbers = #tpu.dot_dimension_numbers<[1], [0], [0], [1], [0, 0, 1, 1], [], []>} : vector<4x4xf32>, vector<4x16xf32>, vector<4x16xf32> -> vector<4x16xf32>
    %334 = arith.addf %330, %333 : vector<4x16xf32>
    %c0_285 = arith.constant 0 : index
    %c3_286 = arith.constant 3 : index
    %c0_287 = arith.constant 0 : index
    %335 = vector.load %arg10[%c0_285, %c3_286, %c0_287] : memref<4x10x18xf32, #tpu.memory_space<vmem>>, vector<4x1x16xf32>
    %336 = vector.shape_cast %335 : vector<4x1x16xf32> to vector<4x16xf32>
    %c0_288 = arith.constant 0 : index
    %c3_289 = arith.constant 3 : index
    %c1_290 = arith.constant 1 : index
    %337 = vector.load %arg10[%c0_288, %c3_289, %c1_290] : memref<4x10x18xf32, #tpu.memory_space<vmem>>, vector<4x1x16xf32>
    %338 = vector.shape_cast %337 : vector<4x1x16xf32> to vector<4x16xf32>
    %c0_291 = arith.constant 0 : index
    %c3_292 = arith.constant 3 : index
    %c2_293 = arith.constant 2 : index
    %339 = vector.load %arg10[%c0_291, %c3_292, %c2_293] : memref<4x10x18xf32, #tpu.memory_space<vmem>>, vector<4x1x16xf32>
    %340 = vector.shape_cast %339 : vector<4x1x16xf32> to vector<4x16xf32>
    %c10_294 = arith.constant 10 : index
    %c0_295 = arith.constant 0 : index
    %c0_296 = arith.constant 0 : index
    %341 = vector.load %arg5[%c10_294, %c0_295, %c0_296] : memref<16x4x4xf32, #tpu.memory_space<vmem>>, vector<1x4x4xf32>
    %342 = vector.shape_cast %341 : vector<1x4x4xf32> to vector<4x4xf32>
    %cst_297 = arith.constant dense<0.000000e+00> : vector<4x16xf32>
    %343 = tpu.matmul %342, %336, %cst_297 {dimension_numbers = #tpu.dot_dimension_numbers<[1], [0], [0], [1], [0, 0, 1, 1], [], []>} : vector<4x4xf32>, vector<4x16xf32>, vector<4x16xf32> -> vector<4x16xf32>
    %344 = arith.addf %326, %343 : vector<4x16xf32>
    %c11_298 = arith.constant 11 : index
    %c0_299 = arith.constant 0 : index
    %c0_300 = arith.constant 0 : index
    %345 = vector.load %arg5[%c11_298, %c0_299, %c0_300] : memref<16x4x4xf32, #tpu.memory_space<vmem>>, vector<1x4x4xf32>
    %346 = vector.shape_cast %345 : vector<1x4x4xf32> to vector<4x4xf32>
    %cst_301 = arith.constant dense<0.000000e+00> : vector<4x16xf32>
    %347 = tpu.matmul %346, %338, %cst_301 {dimension_numbers = #tpu.dot_dimension_numbers<[1], [0], [0], [1], [0, 0, 1, 1], [], []>} : vector<4x4xf32>, vector<4x16xf32>, vector<4x16xf32> -> vector<4x16xf32>
    %348 = arith.addf %344, %347 : vector<4x16xf32>
    %c14_302 = arith.constant 14 : index
    %c0_303 = arith.constant 0 : index
    %c0_304 = arith.constant 0 : index
    %349 = vector.load %arg5[%c14_302, %c0_303, %c0_304] : memref<16x4x4xf32, #tpu.memory_space<vmem>>, vector<1x4x4xf32>
    %350 = vector.shape_cast %349 : vector<1x4x4xf32> to vector<4x4xf32>
    %cst_305 = arith.constant dense<0.000000e+00> : vector<4x16xf32>
    %351 = tpu.matmul %350, %338, %cst_305 {dimension_numbers = #tpu.dot_dimension_numbers<[1], [0], [0], [1], [0, 0, 1, 1], [], []>} : vector<4x4xf32>, vector<4x16xf32>, vector<4x16xf32> -> vector<4x16xf32>
    %352 = arith.addf %334, %351 : vector<4x16xf32>
    %c15_306 = arith.constant 15 : index
    %c0_307 = arith.constant 0 : index
    %c0_308 = arith.constant 0 : index
    %353 = vector.load %arg5[%c15_306, %c0_307, %c0_308] : memref<16x4x4xf32, #tpu.memory_space<vmem>>, vector<1x4x4xf32>
    %354 = vector.shape_cast %353 : vector<1x4x4xf32> to vector<4x4xf32>
    %cst_309 = arith.constant dense<0.000000e+00> : vector<4x16xf32>
    %355 = tpu.matmul %354, %340, %cst_309 {dimension_numbers = #tpu.dot_dimension_numbers<[1], [0], [0], [1], [0, 0, 1, 1], [], []>} : vector<4x4xf32>, vector<4x16xf32>, vector<4x16xf32> -> vector<4x16xf32>
    %356 = arith.addf %352, %355 : vector<4x16xf32>
    %cst_310 = arith.constant dense<0.000000e+00> : vector<4x32xf32>
    %357 = tpu.matmul %348, %31, %cst_310 {dimension_numbers = #tpu.dot_dimension_numbers<[1], [0], [0], [1], [0, 0, 1, 1], [], []>} : vector<4x16xf32>, vector<16x32xf32>, vector<4x32xf32> -> vector<4x32xf32>
    %cst_311 = arith.constant dense<0.000000e+00> : vector<4x32xf32>
    %358 = tpu.matmul %356, %38, %cst_311 {dimension_numbers = #tpu.dot_dimension_numbers<[1], [0], [0], [1], [0, 0, 1, 1], [], []>} : vector<4x16xf32>, vector<16x32xf32>, vector<4x32xf32> -> vector<4x32xf32>
    %359 = arith.addf %357, %358 : vector<4x32xf32>
    %360 = vector.broadcast %39 : vector<4x1xf32> to vector<4x32xf32>
    %361 = arith.addf %359, %360 : vector<4x32xf32>
    %cst_312 = arith.constant 0.000000e+00 : f32
    %362 = vector.broadcast %cst_312 : f32 to vector<4x32xf32>
    %363 = arith.cmpf oge, %361, %362 : vector<4x32xf32>
    %cst_313 = arith.constant 2.000000e-01 : f32
    %364 = vector.broadcast %cst_313 : f32 to vector<4x32xf32>
    %365 = arith.mulf %364, %361 : vector<4x32xf32>
    %366 = arith.select %363, %361, %365 : vector<4x32xi1>, vector<4x32xf32>
    %367 = arith.mulf %366, %366 : vector<4x32xf32>
    %cst_314 = arith.constant dense<0.000000e+00> : vector<32xf32>
    %368 = vector.multi_reduction <add>, %367, %cst_314 [0] : vector<4x32xf32> to vector<32xf32>
    %369 = vector.shape_cast %368 : vector<32xf32> to vector<1x32xf32>
    %cst_315 = arith.constant 4.000000e+00 : f32
    %370 = vector.broadcast %cst_315 : f32 to vector<1x32xf32>
    %371 = arith.divf %369, %370 : vector<1x32xf32>
    %cst_316 = arith.constant 9.99999993E-9 : f32
    %372 = vector.broadcast %cst_316 : f32 to vector<1x32xf32>
    %373 = arith.addf %371, %372 : vector<1x32xf32>
    %374 = math.rsqrt %373 : vector<1x32xf32>
    %375 = vector.broadcast %374 : vector<1x32xf32> to vector<4x32xf32>
    %376 = arith.mulf %366, %375 : vector<4x32xf32>
    %c0_317 = arith.constant 0 : index
    %c137 = arith.constant 137 : index
    %377 = vector.load %arg11[%c0_317, %c137] : memref<4x614xf32, #tpu.memory_space<vmem>>, vector<4x32xf32>
    tpu.vector_store %arg11[%c0_317, %c137], %376 {strides = array<i32>} : memref<4x614xf32, #tpu.memory_space<vmem>>, vector<4x32xf32>,
    %cst_318 = arith.constant 0.000000e+00 : f32
    %378 = vector.broadcast %cst_318 : f32 to vector<4x16xf32>
    %cst_319 = arith.constant 0.000000e+00 : f32
    %379 = vector.broadcast %cst_319 : f32 to vector<4x16xf32>
    %c0_320 = arith.constant 0 : index
    %c2_321 = arith.constant 2 : index
    %c0_322 = arith.constant 0 : index
    %380 = vector.load %arg10[%c0_320, %c2_321, %c0_322] : memref<4x10x18xf32, #tpu.memory_space<vmem>>, vector<4x1x16xf32>
    %381 = vector.shape_cast %380 : vector<4x1x16xf32> to vector<4x16xf32>
    %c0_323 = arith.constant 0 : index
    %c2_324 = arith.constant 2 : index
    %c1_325 = arith.constant 1 : index
    %382 = vector.load %arg10[%c0_323, %c2_324, %c1_325] : memref<4x10x18xf32, #tpu.memory_space<vmem>>, vector<4x1x16xf32>
    %383 = vector.shape_cast %382 : vector<4x1x16xf32> to vector<4x16xf32>
    %c0_326 = arith.constant 0 : index
    %c2_327 = arith.constant 2 : index
    %c2_328 = arith.constant 2 : index
    %384 = vector.load %arg10[%c0_326, %c2_327, %c2_328] : memref<4x10x18xf32, #tpu.memory_space<vmem>>, vector<4x1x16xf32>
    %385 = vector.shape_cast %384 : vector<4x1x16xf32> to vector<4x16xf32>
    %c0_329 = arith.constant 0 : index
    %c0_330 = arith.constant 0 : index
    %c0_331 = arith.constant 0 : index
    %386 = vector.load %arg5[%c0_329, %c0_330, %c0_331] : memref<16x4x4xf32, #tpu.memory_space<vmem>>, vector<1x4x4xf32>
    %387 = vector.shape_cast %386 : vector<1x4x4xf32> to vector<4x4xf32>
    %cst_332 = arith.constant dense<0.000000e+00> : vector<4x16xf32>
    %388 = tpu.matmul %387, %381, %cst_332 {dimension_numbers = #tpu.dot_dimension_numbers<[1], [0], [0], [1], [0, 0, 1, 1], [], []>} : vector<4x4xf32>, vector<4x16xf32>, vector<4x16xf32> -> vector<4x16xf32>
    %389 = arith.addf %378, %388 : vector<4x16xf32>
    %c1_333 = arith.constant 1 : index
    %c0_334 = arith.constant 0 : index
    %c0_335 = arith.constant 0 : index
    %390 = vector.load %arg5[%c1_333, %c0_334, %c0_335] : memref<16x4x4xf32, #tpu.memory_space<vmem>>, vector<1x4x4xf32>
    %391 = vector.shape_cast %390 : vector<1x4x4xf32> to vector<4x4xf32>
    %cst_336 = arith.constant dense<0.000000e+00> : vector<4x16xf32>
    %392 = tpu.matmul %391, %383, %cst_336 {dimension_numbers = #tpu.dot_dimension_numbers<[1], [0], [0], [1], [0, 0, 1, 1], [], []>} : vector<4x4xf32>, vector<4x16xf32>, vector<4x16xf32> -> vector<4x16xf32>
    %393 = arith.addf %389, %392 : vector<4x16xf32>
    %c4_337 = arith.constant 4 : index
    %c0_338 = arith.constant 0 : index
    %c0_339 = arith.constant 0 : index
    %394 = vector.load %arg5[%c4_337, %c0_338, %c0_339] : memref<16x4x4xf32, #tpu.memory_space<vmem>>, vector<1x4x4xf32>
    %395 = vector.shape_cast %394 : vector<1x4x4xf32> to vector<4x4xf32>
    %cst_340 = arith.constant dense<0.000000e+00> : vector<4x16xf32>
    %396 = tpu.matmul %395, %383, %cst_340 {dimension_numbers = #tpu.dot_dimension_numbers<[1], [0], [0], [1], [0, 0, 1, 1], [], []>} : vector<4x4xf32>, vector<4x16xf32>, vector<4x16xf32> -> vector<4x16xf32>
    %397 = arith.addf %379, %396 : vector<4x16xf32>
    %c5_341 = arith.constant 5 : index
    %c0_342 = arith.constant 0 : index
    %c0_343 = arith.constant 0 : index
    %398 = vector.load %arg5[%c5_341, %c0_342, %c0_343] : memref<16x4x4xf32, #tpu.memory_space<vmem>>, vector<1x4x4xf32>
    %399 = vector.shape_cast %398 : vector<1x4x4xf32> to vector<4x4xf32>
    %cst_344 = arith.constant dense<0.000000e+00> : vector<4x16xf32>
    %400 = tpu.matmul %399, %385, %cst_344 {dimension_numbers = #tpu.dot_dimension_numbers<[1], [0], [0], [1], [0, 0, 1, 1], [], []>} : vector<4x4xf32>, vector<4x16xf32>, vector<4x16xf32> -> vector<4x16xf32>
    %401 = arith.addf %397, %400 : vector<4x16xf32>
    %c0_345 = arith.constant 0 : index
    %c3_346 = arith.constant 3 : index
    %c0_347 = arith.constant 0 : index
    %402 = vector.load %arg10[%c0_345, %c3_346, %c0_347] : memref<4x10x18xf32, #tpu.memory_space<vmem>>, vector<4x1x16xf32>
    %403 = vector.shape_cast %402 : vector<4x1x16xf32> to vector<4x16xf32>
    %c0_348 = arith.constant 0 : index
    %c3_349 = arith.constant 3 : index
    %c1_350 = arith.constant 1 : index
    %404 = vector.load %arg10[%c0_348, %c3_349, %c1_350] : memref<4x10x18xf32, #tpu.memory_space<vmem>>, vector<4x1x16xf32>
    %405 = vector.shape_cast %404 : vector<4x1x16xf32> to vector<4x16xf32>
    %c0_351 = arith.constant 0 : index
    %c3_352 = arith.constant 3 : index
    %c2_353 = arith.constant 2 : index
    %406 = vector.load %arg10[%c0_351, %c3_352, %c2_353] : memref<4x10x18xf32, #tpu.memory_space<vmem>>, vector<4x1x16xf32>
    %407 = vector.shape_cast %406 : vector<4x1x16xf32> to vector<4x16xf32>
    %c2_354 = arith.constant 2 : index
    %c0_355 = arith.constant 0 : index
    %c0_356 = arith.constant 0 : index
    %408 = vector.load %arg5[%c2_354, %c0_355, %c0_356] : memref<16x4x4xf32, #tpu.memory_space<vmem>>, vector<1x4x4xf32>
    %409 = vector.shape_cast %408 : vector<1x4x4xf32> to vector<4x4xf32>
    %cst_357 = arith.constant dense<0.000000e+00> : vector<4x16xf32>
    %410 = tpu.matmul %409, %403, %cst_357 {dimension_numbers = #tpu.dot_dimension_numbers<[1], [0], [0], [1], [0, 0, 1, 1], [], []>} : vector<4x4xf32>, vector<4x16xf32>, vector<4x16xf32> -> vector<4x16xf32>
    %411 = arith.addf %393, %410 : vector<4x16xf32>
    %c3_358 = arith.constant 3 : index
    %c0_359 = arith.constant 0 : index
    %c0_360 = arith.constant 0 : index
    %412 = vector.load %arg5[%c3_358, %c0_359, %c0_360] : memref<16x4x4xf32, #tpu.memory_space<vmem>>, vector<1x4x4xf32>
    %413 = vector.shape_cast %412 : vector<1x4x4xf32> to vector<4x4xf32>
    %cst_361 = arith.constant dense<0.000000e+00> : vector<4x16xf32>
    %414 = tpu.matmul %413, %405, %cst_361 {dimension_numbers = #tpu.dot_dimension_numbers<[1], [0], [0], [1], [0, 0, 1, 1], [], []>} : vector<4x4xf32>, vector<4x16xf32>, vector<4x16xf32> -> vector<4x16xf32>
    %415 = arith.addf %411, %414 : vector<4x16xf32>
    %c6_362 = arith.constant 6 : index
    %c0_363 = arith.constant 0 : index
    %c0_364 = arith.constant 0 : index
    %416 = vector.load %arg5[%c6_362, %c0_363, %c0_364] : memref<16x4x4xf32, #tpu.memory_space<vmem>>, vector<1x4x4xf32>
    %417 = vector.shape_cast %416 : vector<1x4x4xf32> to vector<4x4xf32>
    %cst_365 = arith.constant dense<0.000000e+00> : vector<4x16xf32>
    %418 = tpu.matmul %417, %405, %cst_365 {dimension_numbers = #tpu.dot_dimension_numbers<[1], [0], [0], [1], [0, 0, 1, 1], [], []>} : vector<4x4xf32>, vector<4x16xf32>, vector<4x16xf32> -> vector<4x16xf32>
    %419 = arith.addf %401, %418 : vector<4x16xf32>
    %c7_366 = arith.constant 7 : index
    %c0_367 = arith.constant 0 : index
    %c0_368 = arith.constant 0 : index
    %420 = vector.load %arg5[%c7_366, %c0_367, %c0_368] : memref<16x4x4xf32, #tpu.memory_space<vmem>>, vector<1x4x4xf32>
    %421 = vector.shape_cast %420 : vector<1x4x4xf32> to vector<4x4xf32>
    %cst_369 = arith.constant dense<0.000000e+00> : vector<4x16xf32>
    %422 = tpu.matmul %421, %407, %cst_369 {dimension_numbers = #tpu.dot_dimension_numbers<[1], [0], [0], [1], [0, 0, 1, 1], [], []>} : vector<4x4xf32>, vector<4x16xf32>, vector<4x16xf32> -> vector<4x16xf32>
    %423 = arith.addf %419, %422 : vector<4x16xf32>
    %cst_370 = arith.constant dense<0.000000e+00> : vector<4x32xf32>
    %424 = tpu.matmul %415, %31, %cst_370 {dimension_numbers = #tpu.dot_dimension_numbers<[1], [0], [0], [1], [0, 0, 1, 1], [], []>} : vector<4x16xf32>, vector<16x32xf32>, vector<4x32xf32> -> vector<4x32xf32>
    %cst_371 = arith.constant dense<0.000000e+00> : vector<4x32xf32>
    %425 = tpu.matmul %423, %38, %cst_371 {dimension_numbers = #tpu.dot_dimension_numbers<[1], [0], [0], [1], [0, 0, 1, 1], [], []>} : vector<4x16xf32>, vector<16x32xf32>, vector<4x32xf32> -> vector<4x32xf32>
    %426 = arith.addf %424, %425 : vector<4x32xf32>
    %427 = vector.broadcast %39 : vector<4x1xf32> to vector<4x32xf32>
    %428 = arith.addf %426, %427 : vector<4x32xf32>
    %cst_372 = arith.constant 0.000000e+00 : f32
    %429 = vector.broadcast %cst_372 : f32 to vector<4x32xf32>
    %430 = arith.cmpf oge, %428, %429 : vector<4x32xf32>
    %cst_373 = arith.constant 2.000000e-01 : f32
    %431 = vector.broadcast %cst_373 : f32 to vector<4x32xf32>
    %432 = arith.mulf %431, %428 : vector<4x32xf32>
    %433 = arith.select %430, %428, %432 : vector<4x32xi1>, vector<4x32xf32>
    %434 = arith.mulf %433, %433 : vector<4x32xf32>
    %cst_374 = arith.constant dense<0.000000e+00> : vector<32xf32>
    %435 = vector.multi_reduction <add>, %434, %cst_374 [0] : vector<4x32xf32> to vector<32xf32>
    %436 = vector.shape_cast %435 : vector<32xf32> to vector<1x32xf32>
    %cst_375 = arith.constant 4.000000e+00 : f32
    %437 = vector.broadcast %cst_375 : f32 to vector<1x32xf32>
    %438 = arith.divf %436, %437 : vector<1x32xf32>
    %cst_376 = arith.constant 9.99999993E-9 : f32
    %439 = vector.broadcast %cst_376 : f32 to vector<1x32xf32>
    %440 = arith.addf %438, %439 : vector<1x32xf32>
    %441 = math.rsqrt %440 : vector<1x32xf32>
    %442 = vector.broadcast %441 : vector<1x32xf32> to vector<4x32xf32>
    %443 = arith.mulf %433, %442 : vector<4x32xf32>
    %c0_377 = arith.constant 0 : index
    %c171 = arith.constant 171 : index
    %444 = vector.load %arg11[%c0_377, %c171] : memref<4x614xf32, #tpu.memory_space<vmem>>, vector<4x32xf32>
    tpu.vector_store %arg11[%c0_377, %c171], %443 {strides = array<i32>} : memref<4x614xf32, #tpu.memory_space<vmem>>, vector<4x32xf32>,
    %cst_378 = arith.constant 0.000000e+00 : f32
    %445 = vector.broadcast %cst_378 : f32 to vector<4x16xf32>
    %cst_379 = arith.constant 0.000000e+00 : f32
    %446 = vector.broadcast %cst_379 : f32 to vector<4x16xf32>
    %c0_380 = arith.constant 0 : index
    %c3_381 = arith.constant 3 : index
    %c0_382 = arith.constant 0 : index
    %447 = vector.load %arg10[%c0_380, %c3_381, %c0_382] : memref<4x10x18xf32, #tpu.memory_space<vmem>>, vector<4x1x16xf32>
    %448 = vector.shape_cast %447 : vector<4x1x16xf32> to vector<4x16xf32>
    %c0_383 = arith.constant 0 : index
    %c3_384 = arith.constant 3 : index
    %c1_385 = arith.constant 1 : index
    %449 = vector.load %arg10[%c0_383, %c3_384, %c1_385] : memref<4x10x18xf32, #tpu.memory_space<vmem>>, vector<4x1x16xf32>
    %450 = vector.shape_cast %449 : vector<4x1x16xf32> to vector<4x16xf32>
    %c0_386 = arith.constant 0 : index
    %c3_387 = arith.constant 3 : index
    %c2_388 = arith.constant 2 : index
    %451 = vector.load %arg10[%c0_386, %c3_387, %c2_388] : memref<4x10x18xf32, #tpu.memory_space<vmem>>, vector<4x1x16xf32>
    %452 = vector.shape_cast %451 : vector<4x1x16xf32> to vector<4x16xf32>
    %c8_389 = arith.constant 8 : index
    %c0_390 = arith.constant 0 : index
    %c0_391 = arith.constant 0 : index
    %453 = vector.load %arg5[%c8_389, %c0_390, %c0_391] : memref<16x4x4xf32, #tpu.memory_space<vmem>>, vector<1x4x4xf32>
    %454 = vector.shape_cast %453 : vector<1x4x4xf32> to vector<4x4xf32>
    %cst_392 = arith.constant dense<0.000000e+00> : vector<4x16xf32>
    %455 = tpu.matmul %454, %448, %cst_392 {dimension_numbers = #tpu.dot_dimension_numbers<[1], [0], [0], [1], [0, 0, 1, 1], [], []>} : vector<4x4xf32>, vector<4x16xf32>, vector<4x16xf32> -> vector<4x16xf32>
    %456 = arith.addf %445, %455 : vector<4x16xf32>
    %c9_393 = arith.constant 9 : index
    %c0_394 = arith.constant 0 : index
    %c0_395 = arith.constant 0 : index
    %457 = vector.load %arg5[%c9_393, %c0_394, %c0_395] : memref<16x4x4xf32, #tpu.memory_space<vmem>>, vector<1x4x4xf32>
    %458 = vector.shape_cast %457 : vector<1x4x4xf32> to vector<4x4xf32>
    %cst_396 = arith.constant dense<0.000000e+00> : vector<4x16xf32>
    %459 = tpu.matmul %458, %450, %cst_396 {dimension_numbers = #tpu.dot_dimension_numbers<[1], [0], [0], [1], [0, 0, 1, 1], [], []>} : vector<4x4xf32>, vector<4x16xf32>, vector<4x16xf32> -> vector<4x16xf32>
    %460 = arith.addf %456, %459 : vector<4x16xf32>
    %c12_397 = arith.constant 12 : index
    %c0_398 = arith.constant 0 : index
    %c0_399 = arith.constant 0 : index
    %461 = vector.load %arg5[%c12_397, %c0_398, %c0_399] : memref<16x4x4xf32, #tpu.memory_space<vmem>>, vector<1x4x4xf32>
    %462 = vector.shape_cast %461 : vector<1x4x4xf32> to vector<4x4xf32>
    %cst_400 = arith.constant dense<0.000000e+00> : vector<4x16xf32>
    %463 = tpu.matmul %462, %450, %cst_400 {dimension_numbers = #tpu.dot_dimension_numbers<[1], [0], [0], [1], [0, 0, 1, 1], [], []>} : vector<4x4xf32>, vector<4x16xf32>, vector<4x16xf32> -> vector<4x16xf32>
    %464 = arith.addf %446, %463 : vector<4x16xf32>
    %c13_401 = arith.constant 13 : index
    %c0_402 = arith.constant 0 : index
    %c0_403 = arith.constant 0 : index
    %465 = vector.load %arg5[%c13_401, %c0_402, %c0_403] : memref<16x4x4xf32, #tpu.memory_space<vmem>>, vector<1x4x4xf32>
    %466 = vector.shape_cast %465 : vector<1x4x4xf32> to vector<4x4xf32>
    %cst_404 = arith.constant dense<0.000000e+00> : vector<4x16xf32>
    %467 = tpu.matmul %466, %452, %cst_404 {dimension_numbers = #tpu.dot_dimension_numbers<[1], [0], [0], [1], [0, 0, 1, 1], [], []>} : vector<4x4xf32>, vector<4x16xf32>, vector<4x16xf32> -> vector<4x16xf32>
    %468 = arith.addf %464, %467 : vector<4x16xf32>
    %c0_405 = arith.constant 0 : index
    %c4_406 = arith.constant 4 : index
    %c0_407 = arith.constant 0 : index
    %469 = vector.load %arg10[%c0_405, %c4_406, %c0_407] : memref<4x10x18xf32, #tpu.memory_space<vmem>>, vector<4x1x16xf32>
    %470 = vector.shape_cast %469 : vector<4x1x16xf32> to vector<4x16xf32>
    %c0_408 = arith.constant 0 : index
    %c4_409 = arith.constant 4 : index
    %c1_410 = arith.constant 1 : index
    %471 = vector.load %arg10[%c0_408, %c4_409, %c1_410] : memref<4x10x18xf32, #tpu.memory_space<vmem>>, vector<4x1x16xf32>
    %472 = vector.shape_cast %471 : vector<4x1x16xf32> to vector<4x16xf32>
    %c0_411 = arith.constant 0 : index
    %c4_412 = arith.constant 4 : index
    %c2_413 = arith.constant 2 : index
    %473 = vector.load %arg10[%c0_411, %c4_412, %c2_413] : memref<4x10x18xf32, #tpu.memory_space<vmem>>, vector<4x1x16xf32>
    %474 = vector.shape_cast %473 : vector<4x1x16xf32> to vector<4x16xf32>
    %c10_414 = arith.constant 10 : index
    %c0_415 = arith.constant 0 : index
    %c0_416 = arith.constant 0 : index
    %475 = vector.load %arg5[%c10_414, %c0_415, %c0_416] : memref<16x4x4xf32, #tpu.memory_space<vmem>>, vector<1x4x4xf32>
    %476 = vector.shape_cast %475 : vector<1x4x4xf32> to vector<4x4xf32>
    %cst_417 = arith.constant dense<0.000000e+00> : vector<4x16xf32>
    %477 = tpu.matmul %476, %470, %cst_417 {dimension_numbers = #tpu.dot_dimension_numbers<[1], [0], [0], [1], [0, 0, 1, 1], [], []>} : vector<4x4xf32>, vector<4x16xf32>, vector<4x16xf32> -> vector<4x16xf32>
    %478 = arith.addf %460, %477 : vector<4x16xf32>
    %c11_418 = arith.constant 11 : index
    %c0_419 = arith.constant 0 : index
    %c0_420 = arith.constant 0 : index
    %479 = vector.load %arg5[%c11_418, %c0_419, %c0_420] : memref<16x4x4xf32, #tpu.memory_space<vmem>>, vector<1x4x4xf32>
    %480 = vector.shape_cast %479 : vector<1x4x4xf32> to vector<4x4xf32>
    %cst_421 = arith.constant dense<0.000000e+00> : vector<4x16xf32>
    %481 = tpu.matmul %480, %472, %cst_421 {dimension_numbers = #tpu.dot_dimension_numbers<[1], [0], [0], [1], [0, 0, 1, 1], [], []>} : vector<4x4xf32>, vector<4x16xf32>, vector<4x16xf32> -> vector<4x16xf32>
    %482 = arith.addf %478, %481 : vector<4x16xf32>
    %c14_422 = arith.constant 14 : index
    %c0_423 = arith.constant 0 : index
    %c0_424 = arith.constant 0 : index
    %483 = vector.load %arg5[%c14_422, %c0_423, %c0_424] : memref<16x4x4xf32, #tpu.memory_space<vmem>>, vector<1x4x4xf32>
    %484 = vector.shape_cast %483 : vector<1x4x4xf32> to vector<4x4xf32>
    %cst_425 = arith.constant dense<0.000000e+00> : vector<4x16xf32>
    %485 = tpu.matmul %484, %472, %cst_425 {dimension_numbers = #tpu.dot_dimension_numbers<[1], [0], [0], [1], [0, 0, 1, 1], [], []>} : vector<4x4xf32>, vector<4x16xf32>, vector<4x16xf32> -> vector<4x16xf32>
    %486 = arith.addf %468, %485 : vector<4x16xf32>
    %c15_426 = arith.constant 15 : index
    %c0_427 = arith.constant 0 : index
    %c0_428 = arith.constant 0 : index
    %487 = vector.load %arg5[%c15_426, %c0_427, %c0_428] : memref<16x4x4xf32, #tpu.memory_space<vmem>>, vector<1x4x4xf32>
    %488 = vector.shape_cast %487 : vector<1x4x4xf32> to vector<4x4xf32>
    %cst_429 = arith.constant dense<0.000000e+00> : vector<4x16xf32>
    %489 = tpu.matmul %488, %474, %cst_429 {dimension_numbers = #tpu.dot_dimension_numbers<[1], [0], [0], [1], [0, 0, 1, 1], [], []>} : vector<4x4xf32>, vector<4x16xf32>, vector<4x16xf32> -> vector<4x16xf32>
    %490 = arith.addf %486, %489 : vector<4x16xf32>
    %cst_430 = arith.constant dense<0.000000e+00> : vector<4x32xf32>
    %491 = tpu.matmul %482, %31, %cst_430 {dimension_numbers = #tpu.dot_dimension_numbers<[1], [0], [0], [1], [0, 0, 1, 1], [], []>} : vector<4x16xf32>, vector<16x32xf32>, vector<4x32xf32> -> vector<4x32xf32>
    %cst_431 = arith.constant dense<0.000000e+00> : vector<4x32xf32>
    %492 = tpu.matmul %490, %38, %cst_431 {dimension_numbers = #tpu.dot_dimension_numbers<[1], [0], [0], [1], [0, 0, 1, 1], [], []>} : vector<4x16xf32>, vector<16x32xf32>, vector<4x32xf32> -> vector<4x32xf32>
    %493 = arith.addf %491, %492 : vector<4x32xf32>
    %494 = vector.broadcast %39 : vector<4x1xf32> to vector<4x32xf32>
    %495 = arith.addf %493, %494 : vector<4x32xf32>
    %cst_432 = arith.constant 0.000000e+00 : f32
    %496 = vector.broadcast %cst_432 : f32 to vector<4x32xf32>
    %497 = arith.cmpf oge, %495, %496 : vector<4x32xf32>
    %cst_433 = arith.constant 2.000000e-01 : f32
    %498 = vector.broadcast %cst_433 : f32 to vector<4x32xf32>
    %499 = arith.mulf %498, %495 : vector<4x32xf32>
    %500 = arith.select %497, %495, %499 : vector<4x32xi1>, vector<4x32xf32>
    %501 = arith.mulf %500, %500 : vector<4x32xf32>
    %cst_434 = arith.constant dense<0.000000e+00> : vector<32xf32>
    %502 = vector.multi_reduction <add>, %501, %cst_434 [0] : vector<4x32xf32> to vector<32xf32>
    %503 = vector.shape_cast %502 : vector<32xf32> to vector<1x32xf32>
    %cst_435 = arith.constant 4.000000e+00 : f32
    %504 = vector.broadcast %cst_435 : f32 to vector<1x32xf32>
    %505 = arith.divf %503, %504 : vector<1x32xf32>
    %cst_436 = arith.constant 9.99999993E-9 : f32
    %506 = vector.broadcast %cst_436 : f32 to vector<1x32xf32>
    %507 = arith.addf %505, %506 : vector<1x32xf32>
    %508 = math.rsqrt %507 : vector<1x32xf32>
    %509 = vector.broadcast %508 : vector<1x32xf32> to vector<4x32xf32>
    %510 = arith.mulf %500, %509 : vector<4x32xf32>
    %c0_437 = arith.constant 0 : index
    %c205 = arith.constant 205 : index
    %511 = vector.load %arg11[%c0_437, %c205] : memref<4x614xf32, #tpu.memory_space<vmem>>, vector<4x32xf32>
    tpu.vector_store %arg11[%c0_437, %c205], %510 {strides = array<i32>} : memref<4x614xf32, #tpu.memory_space<vmem>>, vector<4x32xf32>,
    %cst_438 = arith.constant 0.000000e+00 : f32
    %512 = vector.broadcast %cst_438 : f32 to vector<4x16xf32>
    %cst_439 = arith.constant 0.000000e+00 : f32
    %513 = vector.broadcast %cst_439 : f32 to vector<4x16xf32>
    %c0_440 = arith.constant 0 : index
    %c3_441 = arith.constant 3 : index
    %c0_442 = arith.constant 0 : index
    %514 = vector.load %arg10[%c0_440, %c3_441, %c0_442] : memref<4x10x18xf32, #tpu.memory_space<vmem>>, vector<4x1x16xf32>
    %515 = vector.shape_cast %514 : vector<4x1x16xf32> to vector<4x16xf32>
    %c0_443 = arith.constant 0 : index
    %c3_444 = arith.constant 3 : index
    %c1_445 = arith.constant 1 : index
    %516 = vector.load %arg10[%c0_443, %c3_444, %c1_445] : memref<4x10x18xf32, #tpu.memory_space<vmem>>, vector<4x1x16xf32>
    %517 = vector.shape_cast %516 : vector<4x1x16xf32> to vector<4x16xf32>
    %c0_446 = arith.constant 0 : index
    %c3_447 = arith.constant 3 : index
    %c2_448 = arith.constant 2 : index
    %518 = vector.load %arg10[%c0_446, %c3_447, %c2_448] : memref<4x10x18xf32, #tpu.memory_space<vmem>>, vector<4x1x16xf32>
    %519 = vector.shape_cast %518 : vector<4x1x16xf32> to vector<4x16xf32>
    %c0_449 = arith.constant 0 : index
    %c0_450 = arith.constant 0 : index
    %c0_451 = arith.constant 0 : index
    %520 = vector.load %arg5[%c0_449, %c0_450, %c0_451] : memref<16x4x4xf32, #tpu.memory_space<vmem>>, vector<1x4x4xf32>
    %521 = vector.shape_cast %520 : vector<1x4x4xf32> to vector<4x4xf32>
    %cst_452 = arith.constant dense<0.000000e+00> : vector<4x16xf32>
    %522 = tpu.matmul %521, %515, %cst_452 {dimension_numbers = #tpu.dot_dimension_numbers<[1], [0], [0], [1], [0, 0, 1, 1], [], []>} : vector<4x4xf32>, vector<4x16xf32>, vector<4x16xf32> -> vector<4x16xf32>
    %523 = arith.addf %512, %522 : vector<4x16xf32>
    %c1_453 = arith.constant 1 : index
    %c0_454 = arith.constant 0 : index
    %c0_455 = arith.constant 0 : index
    %524 = vector.load %arg5[%c1_453, %c0_454, %c0_455] : memref<16x4x4xf32, #tpu.memory_space<vmem>>, vector<1x4x4xf32>
    %525 = vector.shape_cast %524 : vector<1x4x4xf32> to vector<4x4xf32>
    %cst_456 = arith.constant dense<0.000000e+00> : vector<4x16xf32>
    %526 = tpu.matmul %525, %517, %cst_456 {dimension_numbers = #tpu.dot_dimension_numbers<[1], [0], [0], [1], [0, 0, 1, 1], [], []>} : vector<4x4xf32>, vector<4x16xf32>, vector<4x16xf32> -> vector<4x16xf32>
    %527 = arith.addf %523, %526 : vector<4x16xf32>
    %c4_457 = arith.constant 4 : index
    %c0_458 = arith.constant 0 : index
    %c0_459 = arith.constant 0 : index
    %528 = vector.load %arg5[%c4_457, %c0_458, %c0_459] : memref<16x4x4xf32, #tpu.memory_space<vmem>>, vector<1x4x4xf32>
    %529 = vector.shape_cast %528 : vector<1x4x4xf32> to vector<4x4xf32>
    %cst_460 = arith.constant dense<0.000000e+00> : vector<4x16xf32>
    %530 = tpu.matmul %529, %517, %cst_460 {dimension_numbers = #tpu.dot_dimension_numbers<[1], [0], [0], [1], [0, 0, 1, 1], [], []>} : vector<4x4xf32>, vector<4x16xf32>, vector<4x16xf32> -> vector<4x16xf32>
    %531 = arith.addf %513, %530 : vector<4x16xf32>
    %c5_461 = arith.constant 5 : index
    %c0_462 = arith.constant 0 : index
    %c0_463 = arith.constant 0 : index
    %532 = vector.load %arg5[%c5_461, %c0_462, %c0_463] : memref<16x4x4xf32, #tpu.memory_space<vmem>>, vector<1x4x4xf32>
    %533 = vector.shape_cast %532 : vector<1x4x4xf32> to vector<4x4xf32>
    %cst_464 = arith.constant dense<0.000000e+00> : vector<4x16xf32>
    %534 = tpu.matmul %533, %519, %cst_464 {dimension_numbers = #tpu.dot_dimension_numbers<[1], [0], [0], [1], [0, 0, 1, 1], [], []>} : vector<4x4xf32>, vector<4x16xf32>, vector<4x16xf32> -> vector<4x16xf32>
    %535 = arith.addf %531, %534 : vector<4x16xf32>
    %c0_465 = arith.constant 0 : index
    %c4_466 = arith.constant 4 : index
    %c0_467 = arith.constant 0 : index
    %536 = vector.load %arg10[%c0_465, %c4_466, %c0_467] : memref<4x10x18xf32, #tpu.memory_space<vmem>>, vector<4x1x16xf32>
    %537 = vector.shape_cast %536 : vector<4x1x16xf32> to vector<4x16xf32>
    %c0_468 = arith.constant 0 : index
    %c4_469 = arith.constant 4 : index
    %c1_470 = arith.constant 1 : index
    %538 = vector.load %arg10[%c0_468, %c4_469, %c1_470] : memref<4x10x18xf32, #tpu.memory_space<vmem>>, vector<4x1x16xf32>
    %539 = vector.shape_cast %538 : vector<4x1x16xf32> to vector<4x16xf32>
    %c0_471 = arith.constant 0 : index
    %c4_472 = arith.constant 4 : index
    %c2_473 = arith.constant 2 : index
    %540 = vector.load %arg10[%c0_471, %c4_472, %c2_473] : memref<4x10x18xf32, #tpu.memory_space<vmem>>, vector<4x1x16xf32>
    %541 = vector.shape_cast %540 : vector<4x1x16xf32> to vector<4x16xf32>
    %c2_474 = arith.constant 2 : index
    %c0_475 = arith.constant 0 : index
    %c0_476 = arith.constant 0 : index
    %542 = vector.load %arg5[%c2_474, %c0_475, %c0_476] : memref<16x4x4xf32, #tpu.memory_space<vmem>>, vector<1x4x4xf32>
    %543 = vector.shape_cast %542 : vector<1x4x4xf32> to vector<4x4xf32>
    %cst_477 = arith.constant dense<0.000000e+00> : vector<4x16xf32>
    %544 = tpu.matmul %543, %537, %cst_477 {dimension_numbers = #tpu.dot_dimension_numbers<[1], [0], [0], [1], [0, 0, 1, 1], [], []>} : vector<4x4xf32>, vector<4x16xf32>, vector<4x16xf32> -> vector<4x16xf32>
    %545 = arith.addf %527, %544 : vector<4x16xf32>
    %c3_478 = arith.constant 3 : index
    %c0_479 = arith.constant 0 : index
    %c0_480 = arith.constant 0 : index
    %546 = vector.load %arg5[%c3_478, %c0_479, %c0_480] : memref<16x4x4xf32, #tpu.memory_space<vmem>>, vector<1x4x4xf32>
    %547 = vector.shape_cast %546 : vector<1x4x4xf32> to vector<4x4xf32>
    %cst_481 = arith.constant dense<0.000000e+00> : vector<4x16xf32>
    %548 = tpu.matmul %547, %539, %cst_481 {dimension_numbers = #tpu.dot_dimension_numbers<[1], [0], [0], [1], [0, 0, 1, 1], [], []>} : vector<4x4xf32>, vector<4x16xf32>, vector<4x16xf32> -> vector<4x16xf32>
    %549 = arith.addf %545, %548 : vector<4x16xf32>
    %c6_482 = arith.constant 6 : index
    %c0_483 = arith.constant 0 : index
    %c0_484 = arith.constant 0 : index
    %550 = vector.load %arg5[%c6_482, %c0_483, %c0_484] : memref<16x4x4xf32, #tpu.memory_space<vmem>>, vector<1x4x4xf32>
    %551 = vector.shape_cast %550 : vector<1x4x4xf32> to vector<4x4xf32>
    %cst_485 = arith.constant dense<0.000000e+00> : vector<4x16xf32>
    %552 = tpu.matmul %551, %539, %cst_485 {dimension_numbers = #tpu.dot_dimension_numbers<[1], [0], [0], [1], [0, 0, 1, 1], [], []>} : vector<4x4xf32>, vector<4x16xf32>, vector<4x16xf32> -> vector<4x16xf32>
    %553 = arith.addf %535, %552 : vector<4x16xf32>
    %c7_486 = arith.constant 7 : index
    %c0_487 = arith.constant 0 : index
    %c0_488 = arith.constant 0 : index
    %554 = vector.load %arg5[%c7_486, %c0_487, %c0_488] : memref<16x4x4xf32, #tpu.memory_space<vmem>>, vector<1x4x4xf32>
    %555 = vector.shape_cast %554 : vector<1x4x4xf32> to vector<4x4xf32>
    %cst_489 = arith.constant dense<0.000000e+00> : vector<4x16xf32>
    %556 = tpu.matmul %555, %541, %cst_489 {dimension_numbers = #tpu.dot_dimension_numbers<[1], [0], [0], [1], [0, 0, 1, 1], [], []>} : vector<4x4xf32>, vector<4x16xf32>, vector<4x16xf32> -> vector<4x16xf32>
    %557 = arith.addf %553, %556 : vector<4x16xf32>
    %cst_490 = arith.constant dense<0.000000e+00> : vector<4x32xf32>
    %558 = tpu.matmul %549, %31, %cst_490 {dimension_numbers = #tpu.dot_dimension_numbers<[1], [0], [0], [1], [0, 0, 1, 1], [], []>} : vector<4x16xf32>, vector<16x32xf32>, vector<4x32xf32> -> vector<4x32xf32>
    %cst_491 = arith.constant dense<0.000000e+00> : vector<4x32xf32>
    %559 = tpu.matmul %557, %38, %cst_491 {dimension_numbers = #tpu.dot_dimension_numbers<[1], [0], [0], [1], [0, 0, 1, 1], [], []>} : vector<4x16xf32>, vector<16x32xf32>, vector<4x32xf32> -> vector<4x32xf32>
    %560 = arith.addf %558, %559 : vector<4x32xf32>
    %561 = vector.broadcast %39 : vector<4x1xf32> to vector<4x32xf32>
    %562 = arith.addf %560, %561 : vector<4x32xf32>
    %cst_492 = arith.constant 0.000000e+00 : f32
    %563 = vector.broadcast %cst_492 : f32 to vector<4x32xf32>
    %564 = arith.cmpf oge, %562, %563 : vector<4x32xf32>
    %cst_493 = arith.constant 2.000000e-01 : f32
    %565 = vector.broadcast %cst_493 : f32 to vector<4x32xf32>
    %566 = arith.mulf %565, %562 : vector<4x32xf32>
    %567 = arith.select %564, %562, %566 : vector<4x32xi1>, vector<4x32xf32>
    %568 = arith.mulf %567, %567 : vector<4x32xf32>
    %cst_494 = arith.constant dense<0.000000e+00> : vector<32xf32>
    %569 = vector.multi_reduction <add>, %568, %cst_494 [0] : vector<4x32xf32> to vector<32xf32>
    %570 = vector.shape_cast %569 : vector<32xf32> to vector<1x32xf32>
    %cst_495 = arith.constant 4.000000e+00 : f32
    %571 = vector.broadcast %cst_495 : f32 to vector<1x32xf32>
    %572 = arith.divf %570, %571 : vector<1x32xf32>
    %cst_496 = arith.constant 9.99999993E-9 : f32
    %573 = vector.broadcast %cst_496 : f32 to vector<1x32xf32>
    %574 = arith.addf %572, %573 : vector<1x32xf32>
    %575 = math.rsqrt %574 : vector<1x32xf32>
    %576 = vector.broadcast %575 : vector<1x32xf32> to vector<4x32xf32>
    %577 = arith.mulf %567, %576 : vector<4x32xf32>
    %c0_497 = arith.constant 0 : index
    %c239 = arith.constant 239 : index
    %578 = vector.load %arg11[%c0_497, %c239] : memref<4x614xf32, #tpu.memory_space<vmem>>, vector<4x32xf32>
    tpu.vector_store %arg11[%c0_497, %c239], %577 {strides = array<i32>} : memref<4x614xf32, #tpu.memory_space<vmem>>, vector<4x32xf32>,
    %cst_498 = arith.constant 0.000000e+00 : f32
    %579 = vector.broadcast %cst_498 : f32 to vector<4x16xf32>
    %cst_499 = arith.constant 0.000000e+00 : f32
    %580 = vector.broadcast %cst_499 : f32 to vector<4x16xf32>
    %c0_500 = arith.constant 0 : index
    %c4_501 = arith.constant 4 : index
    %c0_502 = arith.constant 0 : index
    %581 = vector.load %arg10[%c0_500, %c4_501, %c0_502] : memref<4x10x18xf32, #tpu.memory_space<vmem>>, vector<4x1x16xf32>
    %582 = vector.shape_cast %581 : vector<4x1x16xf32> to vector<4x16xf32>
    %c0_503 = arith.constant 0 : index
    %c4_504 = arith.constant 4 : index
    %c1_505 = arith.constant 1 : index
    %583 = vector.load %arg10[%c0_503, %c4_504, %c1_505] : memref<4x10x18xf32, #tpu.memory_space<vmem>>, vector<4x1x16xf32>
    %584 = vector.shape_cast %583 : vector<4x1x16xf32> to vector<4x16xf32>
    %c0_506 = arith.constant 0 : index
    %c4_507 = arith.constant 4 : index
    %c2_508 = arith.constant 2 : index
    %585 = vector.load %arg10[%c0_506, %c4_507, %c2_508] : memref<4x10x18xf32, #tpu.memory_space<vmem>>, vector<4x1x16xf32>
    %586 = vector.shape_cast %585 : vector<4x1x16xf32> to vector<4x16xf32>
    %c8_509 = arith.constant 8 : index
    %c0_510 = arith.constant 0 : index
    %c0_511 = arith.constant 0 : index
    %587 = vector.load %arg5[%c8_509, %c0_510, %c0_511] : memref<16x4x4xf32, #tpu.memory_space<vmem>>, vector<1x4x4xf32>
    %588 = vector.shape_cast %587 : vector<1x4x4xf32> to vector<4x4xf32>
    %cst_512 = arith.constant dense<0.000000e+00> : vector<4x16xf32>
    %589 = tpu.matmul %588, %582, %cst_512 {dimension_numbers = #tpu.dot_dimension_numbers<[1], [0], [0], [1], [0, 0, 1, 1], [], []>} : vector<4x4xf32>, vector<4x16xf32>, vector<4x16xf32> -> vector<4x16xf32>
    %590 = arith.addf %579, %589 : vector<4x16xf32>
    %c9_513 = arith.constant 9 : index
    %c0_514 = arith.constant 0 : index
    %c0_515 = arith.constant 0 : index
    %591 = vector.load %arg5[%c9_513, %c0_514, %c0_515] : memref<16x4x4xf32, #tpu.memory_space<vmem>>, vector<1x4x4xf32>
    %592 = vector.shape_cast %591 : vector<1x4x4xf32> to vector<4x4xf32>
    %cst_516 = arith.constant dense<0.000000e+00> : vector<4x16xf32>
    %593 = tpu.matmul %592, %584, %cst_516 {dimension_numbers = #tpu.dot_dimension_numbers<[1], [0], [0], [1], [0, 0, 1, 1], [], []>} : vector<4x4xf32>, vector<4x16xf32>, vector<4x16xf32> -> vector<4x16xf32>
    %594 = arith.addf %590, %593 : vector<4x16xf32>
    %c12_517 = arith.constant 12 : index
    %c0_518 = arith.constant 0 : index
    %c0_519 = arith.constant 0 : index
    %595 = vector.load %arg5[%c12_517, %c0_518, %c0_519] : memref<16x4x4xf32, #tpu.memory_space<vmem>>, vector<1x4x4xf32>
    %596 = vector.shape_cast %595 : vector<1x4x4xf32> to vector<4x4xf32>
    %cst_520 = arith.constant dense<0.000000e+00> : vector<4x16xf32>
    %597 = tpu.matmul %596, %584, %cst_520 {dimension_numbers = #tpu.dot_dimension_numbers<[1], [0], [0], [1], [0, 0, 1, 1], [], []>} : vector<4x4xf32>, vector<4x16xf32>, vector<4x16xf32> -> vector<4x16xf32>
    %598 = arith.addf %580, %597 : vector<4x16xf32>
    %c13_521 = arith.constant 13 : index
    %c0_522 = arith.constant 0 : index
    %c0_523 = arith.constant 0 : index
    %599 = vector.load %arg5[%c13_521, %c0_522, %c0_523] : memref<16x4x4xf32, #tpu.memory_space<vmem>>, vector<1x4x4xf32>
    %600 = vector.shape_cast %599 : vector<1x4x4xf32> to vector<4x4xf32>
    %cst_524 = arith.constant dense<0.000000e+00> : vector<4x16xf32>
    %601 = tpu.matmul %600, %586, %cst_524 {dimension_numbers = #tpu.dot_dimension_numbers<[1], [0], [0], [1], [0, 0, 1, 1], [], []>} : vector<4x4xf32>, vector<4x16xf32>, vector<4x16xf32> -> vector<4x16xf32>
    %602 = arith.addf %598, %601 : vector<4x16xf32>
    %c0_525 = arith.constant 0 : index
    %c5_526 = arith.constant 5 : index
    %c0_527 = arith.constant 0 : index
    %603 = vector.load %arg10[%c0_525, %c5_526, %c0_527] : memref<4x10x18xf32, #tpu.memory_space<vmem>>, vector<4x1x16xf32>
    %604 = vector.shape_cast %603 : vector<4x1x16xf32> to vector<4x16xf32>
    %c0_528 = arith.constant 0 : index
    %c5_529 = arith.constant 5 : index
    %c1_530 = arith.constant 1 : index
    %605 = vector.load %arg10[%c0_528, %c5_529, %c1_530] : memref<4x10x18xf32, #tpu.memory_space<vmem>>, vector<4x1x16xf32>
    %606 = vector.shape_cast %605 : vector<4x1x16xf32> to vector<4x16xf32>
    %c0_531 = arith.constant 0 : index
    %c5_532 = arith.constant 5 : index
    %c2_533 = arith.constant 2 : index
    %607 = vector.load %arg10[%c0_531, %c5_532, %c2_533] : memref<4x10x18xf32, #tpu.memory_space<vmem>>, vector<4x1x16xf32>
    %608 = vector.shape_cast %607 : vector<4x1x16xf32> to vector<4x16xf32>
    %c10_534 = arith.constant 10 : index
    %c0_535 = arith.constant 0 : index
    %c0_536 = arith.constant 0 : index
    %609 = vector.load %arg5[%c10_534, %c0_535, %c0_536] : memref<16x4x4xf32, #tpu.memory_space<vmem>>, vector<1x4x4xf32>
    %610 = vector.shape_cast %609 : vector<1x4x4xf32> to vector<4x4xf32>
    %cst_537 = arith.constant dense<0.000000e+00> : vector<4x16xf32>
    %611 = tpu.matmul %610, %604, %cst_537 {dimension_numbers = #tpu.dot_dimension_numbers<[1], [0], [0], [1], [0, 0, 1, 1], [], []>} : vector<4x4xf32>, vector<4x16xf32>, vector<4x16xf32> -> vector<4x16xf32>
    %612 = arith.addf %594, %611 : vector<4x16xf32>
    %c11_538 = arith.constant 11 : index
    %c0_539 = arith.constant 0 : index
    %c0_540 = arith.constant 0 : index
    %613 = vector.load %arg5[%c11_538, %c0_539, %c0_540] : memref<16x4x4xf32, #tpu.memory_space<vmem>>, vector<1x4x4xf32>
    %614 = vector.shape_cast %613 : vector<1x4x4xf32> to vector<4x4xf32>
    %cst_541 = arith.constant dense<0.000000e+00> : vector<4x16xf32>
    %615 = tpu.matmul %614, %606, %cst_541 {dimension_numbers = #tpu.dot_dimension_numbers<[1], [0], [0], [1], [0, 0, 1, 1], [], []>} : vector<4x4xf32>, vector<4x16xf32>, vector<4x16xf32> -> vector<4x16xf32>
    %616 = arith.addf %612, %615 : vector<4x16xf32>
    %c14_542 = arith.constant 14 : index
    %c0_543 = arith.constant 0 : index
    %c0_544 = arith.constant 0 : index
    %617 = vector.load %arg5[%c14_542, %c0_543, %c0_544] : memref<16x4x4xf32, #tpu.memory_space<vmem>>, vector<1x4x4xf32>
    %618 = vector.shape_cast %617 : vector<1x4x4xf32> to vector<4x4xf32>
    %cst_545 = arith.constant dense<0.000000e+00> : vector<4x16xf32>
    %619 = tpu.matmul %618, %606, %cst_545 {dimension_numbers = #tpu.dot_dimension_numbers<[1], [0], [0], [1], [0, 0, 1, 1], [], []>} : vector<4x4xf32>, vector<4x16xf32>, vector<4x16xf32> -> vector<4x16xf32>
    %620 = arith.addf %602, %619 : vector<4x16xf32>
    %c15_546 = arith.constant 15 : index
    %c0_547 = arith.constant 0 : index
    %c0_548 = arith.constant 0 : index
    %621 = vector.load %arg5[%c15_546, %c0_547, %c0_548] : memref<16x4x4xf32, #tpu.memory_space<vmem>>, vector<1x4x4xf32>
    %622 = vector.shape_cast %621 : vector<1x4x4xf32> to vector<4x4xf32>
    %cst_549 = arith.constant dense<0.000000e+00> : vector<4x16xf32>
    %623 = tpu.matmul %622, %608, %cst_549 {dimension_numbers = #tpu.dot_dimension_numbers<[1], [0], [0], [1], [0, 0, 1, 1], [], []>} : vector<4x4xf32>, vector<4x16xf32>, vector<4x16xf32> -> vector<4x16xf32>
    %624 = arith.addf %620, %623 : vector<4x16xf32>
    %cst_550 = arith.constant dense<0.000000e+00> : vector<4x32xf32>
    %625 = tpu.matmul %616, %31, %cst_550 {dimension_numbers = #tpu.dot_dimension_numbers<[1], [0], [0], [1], [0, 0, 1, 1], [], []>} : vector<4x16xf32>, vector<16x32xf32>, vector<4x32xf32> -> vector<4x32xf32>
    %cst_551 = arith.constant dense<0.000000e+00> : vector<4x32xf32>
    %626 = tpu.matmul %624, %38, %cst_551 {dimension_numbers = #tpu.dot_dimension_numbers<[1], [0], [0], [1], [0, 0, 1, 1], [], []>} : vector<4x16xf32>, vector<16x32xf32>, vector<4x32xf32> -> vector<4x32xf32>
    %627 = arith.addf %625, %626 : vector<4x32xf32>
    %628 = vector.broadcast %39 : vector<4x1xf32> to vector<4x32xf32>
    %629 = arith.addf %627, %628 : vector<4x32xf32>
    %cst_552 = arith.constant 0.000000e+00 : f32
    %630 = vector.broadcast %cst_552 : f32 to vector<4x32xf32>
    %631 = arith.cmpf oge, %629, %630 : vector<4x32xf32>
    %cst_553 = arith.constant 2.000000e-01 : f32
    %632 = vector.broadcast %cst_553 : f32 to vector<4x32xf32>
    %633 = arith.mulf %632, %629 : vector<4x32xf32>
    %634 = arith.select %631, %629, %633 : vector<4x32xi1>, vector<4x32xf32>
    %635 = arith.mulf %634, %634 : vector<4x32xf32>
    %cst_554 = arith.constant dense<0.000000e+00> : vector<32xf32>
    %636 = vector.multi_reduction <add>, %635, %cst_554 [0] : vector<4x32xf32> to vector<32xf32>
    %637 = vector.shape_cast %636 : vector<32xf32> to vector<1x32xf32>
    %cst_555 = arith.constant 4.000000e+00 : f32
    %638 = vector.broadcast %cst_555 : f32 to vector<1x32xf32>
    %639 = arith.divf %637, %638 : vector<1x32xf32>
    %cst_556 = arith.constant 9.99999993E-9 : f32
    %640 = vector.broadcast %cst_556 : f32 to vector<1x32xf32>
    %641 = arith.addf %639, %640 : vector<1x32xf32>
    %642 = math.rsqrt %641 : vector<1x32xf32>
    %643 = vector.broadcast %642 : vector<1x32xf32> to vector<4x32xf32>
    %644 = arith.mulf %634, %643 : vector<4x32xf32>
    %c0_557 = arith.constant 0 : index
    %c273 = arith.constant 273 : index
    %645 = vector.load %arg11[%c0_557, %c273] : memref<4x614xf32, #tpu.memory_space<vmem>>, vector<4x32xf32>
    tpu.vector_store %arg11[%c0_557, %c273], %644 {strides = array<i32>} : memref<4x614xf32, #tpu.memory_space<vmem>>, vector<4x32xf32>,
    %cst_558 = arith.constant 0.000000e+00 : f32
    %646 = vector.broadcast %cst_558 : f32 to vector<4x16xf32>
    %cst_559 = arith.constant 0.000000e+00 : f32
    %647 = vector.broadcast %cst_559 : f32 to vector<4x16xf32>
    %c0_560 = arith.constant 0 : index
    %c4_561 = arith.constant 4 : index
    %c0_562 = arith.constant 0 : index
    %648 = vector.load %arg10[%c0_560, %c4_561, %c0_562] : memref<4x10x18xf32, #tpu.memory_space<vmem>>, vector<4x1x16xf32>
    %649 = vector.shape_cast %648 : vector<4x1x16xf32> to vector<4x16xf32>
    %c0_563 = arith.constant 0 : index
    %c4_564 = arith.constant 4 : index
    %c1_565 = arith.constant 1 : index
    %650 = vector.load %arg10[%c0_563, %c4_564, %c1_565] : memref<4x10x18xf32, #tpu.memory_space<vmem>>, vector<4x1x16xf32>
    %651 = vector.shape_cast %650 : vector<4x1x16xf32> to vector<4x16xf32>
    %c0_566 = arith.constant 0 : index
    %c4_567 = arith.constant 4 : index
    %c2_568 = arith.constant 2 : index
    %652 = vector.load %arg10[%c0_566, %c4_567, %c2_568] : memref<4x10x18xf32, #tpu.memory_space<vmem>>, vector<4x1x16xf32>
    %653 = vector.shape_cast %652 : vector<4x1x16xf32> to vector<4x16xf32>
    %c0_569 = arith.constant 0 : index
    %c0_570 = arith.constant 0 : index
    %c0_571 = arith.constant 0 : index
    %654 = vector.load %arg5[%c0_569, %c0_570, %c0_571] : memref<16x4x4xf32, #tpu.memory_space<vmem>>, vector<1x4x4xf32>
    %655 = vector.shape_cast %654 : vector<1x4x4xf32> to vector<4x4xf32>
    %cst_572 = arith.constant dense<0.000000e+00> : vector<4x16xf32>
    %656 = tpu.matmul %655, %649, %cst_572 {dimension_numbers = #tpu.dot_dimension_numbers<[1], [0], [0], [1], [0, 0, 1, 1], [], []>} : vector<4x4xf32>, vector<4x16xf32>, vector<4x16xf32> -> vector<4x16xf32>
    %657 = arith.addf %646, %656 : vector<4x16xf32>
    %c1_573 = arith.constant 1 : index
    %c0_574 = arith.constant 0 : index
    %c0_575 = arith.constant 0 : index
    %658 = vector.load %arg5[%c1_573, %c0_574, %c0_575] : memref<16x4x4xf32, #tpu.memory_space<vmem>>, vector<1x4x4xf32>
    %659 = vector.shape_cast %658 : vector<1x4x4xf32> to vector<4x4xf32>
    %cst_576 = arith.constant dense<0.000000e+00> : vector<4x16xf32>
    %660 = tpu.matmul %659, %651, %cst_576 {dimension_numbers = #tpu.dot_dimension_numbers<[1], [0], [0], [1], [0, 0, 1, 1], [], []>} : vector<4x4xf32>, vector<4x16xf32>, vector<4x16xf32> -> vector<4x16xf32>
    %661 = arith.addf %657, %660 : vector<4x16xf32>
    %c4_577 = arith.constant 4 : index
    %c0_578 = arith.constant 0 : index
    %c0_579 = arith.constant 0 : index
    %662 = vector.load %arg5[%c4_577, %c0_578, %c0_579] : memref<16x4x4xf32, #tpu.memory_space<vmem>>, vector<1x4x4xf32>
    %663 = vector.shape_cast %662 : vector<1x4x4xf32> to vector<4x4xf32>
    %cst_580 = arith.constant dense<0.000000e+00> : vector<4x16xf32>
    %664 = tpu.matmul %663, %651, %cst_580 {dimension_numbers = #tpu.dot_dimension_numbers<[1], [0], [0], [1], [0, 0, 1, 1], [], []>} : vector<4x4xf32>, vector<4x16xf32>, vector<4x16xf32> -> vector<4x16xf32>
    %665 = arith.addf %647, %664 : vector<4x16xf32>
    %c5_581 = arith.constant 5 : index
    %c0_582 = arith.constant 0 : index
    %c0_583 = arith.constant 0 : index
    %666 = vector.load %arg5[%c5_581, %c0_582, %c0_583] : memref<16x4x4xf32, #tpu.memory_space<vmem>>, vector<1x4x4xf32>
    %667 = vector.shape_cast %666 : vector<1x4x4xf32> to vector<4x4xf32>
    %cst_584 = arith.constant dense<0.000000e+00> : vector<4x16xf32>
    %668 = tpu.matmul %667, %653, %cst_584 {dimension_numbers = #tpu.dot_dimension_numbers<[1], [0], [0], [1], [0, 0, 1, 1], [], []>} : vector<4x4xf32>, vector<4x16xf32>, vector<4x16xf32> -> vector<4x16xf32>
    %669 = arith.addf %665, %668 : vector<4x16xf32>
    %c0_585 = arith.constant 0 : index
    %c5_586 = arith.constant 5 : index
    %c0_587 = arith.constant 0 : index
    %670 = vector.load %arg10[%c0_585, %c5_586, %c0_587] : memref<4x10x18xf32, #tpu.memory_space<vmem>>, vector<4x1x16xf32>
    %671 = vector.shape_cast %670 : vector<4x1x16xf32> to vector<4x16xf32>
    %c0_588 = arith.constant 0 : index
    %c5_589 = arith.constant 5 : index
    %c1_590 = arith.constant 1 : index
    %672 = vector.load %arg10[%c0_588, %c5_589, %c1_590] : memref<4x10x18xf32, #tpu.memory_space<vmem>>, vector<4x1x16xf32>
    %673 = vector.shape_cast %672 : vector<4x1x16xf32> to vector<4x16xf32>
    %c0_591 = arith.constant 0 : index
    %c5_592 = arith.constant 5 : index
    %c2_593 = arith.constant 2 : index
    %674 = vector.load %arg10[%c0_591, %c5_592, %c2_593] : memref<4x10x18xf32, #tpu.memory_space<vmem>>, vector<4x1x16xf32>
    %675 = vector.shape_cast %674 : vector<4x1x16xf32> to vector<4x16xf32>
    %c2_594 = arith.constant 2 : index
    %c0_595 = arith.constant 0 : index
    %c0_596 = arith.constant 0 : index
    %676 = vector.load %arg5[%c2_594, %c0_595, %c0_596] : memref<16x4x4xf32, #tpu.memory_space<vmem>>, vector<1x4x4xf32>
    %677 = vector.shape_cast %676 : vector<1x4x4xf32> to vector<4x4xf32>
    %cst_597 = arith.constant dense<0.000000e+00> : vector<4x16xf32>
    %678 = tpu.matmul %677, %671, %cst_597 {dimension_numbers = #tpu.dot_dimension_numbers<[1], [0], [0], [1], [0, 0, 1, 1], [], []>} : vector<4x4xf32>, vector<4x16xf32>, vector<4x16xf32> -> vector<4x16xf32>
    %679 = arith.addf %661, %678 : vector<4x16xf32>
    %c3_598 = arith.constant 3 : index
    %c0_599 = arith.constant 0 : index
    %c0_600 = arith.constant 0 : index
    %680 = vector.load %arg5[%c3_598, %c0_599, %c0_600] : memref<16x4x4xf32, #tpu.memory_space<vmem>>, vector<1x4x4xf32>
    %681 = vector.shape_cast %680 : vector<1x4x4xf32> to vector<4x4xf32>
    %cst_601 = arith.constant dense<0.000000e+00> : vector<4x16xf32>
    %682 = tpu.matmul %681, %673, %cst_601 {dimension_numbers = #tpu.dot_dimension_numbers<[1], [0], [0], [1], [0, 0, 1, 1], [], []>} : vector<4x4xf32>, vector<4x16xf32>, vector<4x16xf32> -> vector<4x16xf32>
    %683 = arith.addf %679, %682 : vector<4x16xf32>
    %c6_602 = arith.constant 6 : index
    %c0_603 = arith.constant 0 : index
    %c0_604 = arith.constant 0 : index
    %684 = vector.load %arg5[%c6_602, %c0_603, %c0_604] : memref<16x4x4xf32, #tpu.memory_space<vmem>>, vector<1x4x4xf32>
    %685 = vector.shape_cast %684 : vector<1x4x4xf32> to vector<4x4xf32>
    %cst_605 = arith.constant dense<0.000000e+00> : vector<4x16xf32>
    %686 = tpu.matmul %685, %673, %cst_605 {dimension_numbers = #tpu.dot_dimension_numbers<[1], [0], [0], [1], [0, 0, 1, 1], [], []>} : vector<4x4xf32>, vector<4x16xf32>, vector<4x16xf32> -> vector<4x16xf32>
    %687 = arith.addf %669, %686 : vector<4x16xf32>
    %c7_606 = arith.constant 7 : index
    %c0_607 = arith.constant 0 : index
    %c0_608 = arith.constant 0 : index
    %688 = vector.load %arg5[%c7_606, %c0_607, %c0_608] : memref<16x4x4xf32, #tpu.memory_space<vmem>>, vector<1x4x4xf32>
    %689 = vector.shape_cast %688 : vector<1x4x4xf32> to vector<4x4xf32>
    %cst_609 = arith.constant dense<0.000000e+00> : vector<4x16xf32>
    %690 = tpu.matmul %689, %675, %cst_609 {dimension_numbers = #tpu.dot_dimension_numbers<[1], [0], [0], [1], [0, 0, 1, 1], [], []>} : vector<4x4xf32>, vector<4x16xf32>, vector<4x16xf32> -> vector<4x16xf32>
    %691 = arith.addf %687, %690 : vector<4x16xf32>
    %cst_610 = arith.constant dense<0.000000e+00> : vector<4x32xf32>
    %692 = tpu.matmul %683, %31, %cst_610 {dimension_numbers = #tpu.dot_dimension_numbers<[1], [0], [0], [1], [0, 0, 1, 1], [], []>} : vector<4x16xf32>, vector<16x32xf32>, vector<4x32xf32> -> vector<4x32xf32>
    %cst_611 = arith.constant dense<0.000000e+00> : vector<4x32xf32>
    %693 = tpu.matmul %691, %38, %cst_611 {dimension_numbers = #tpu.dot_dimension_numbers<[1], [0], [0], [1], [0, 0, 1, 1], [], []>} : vector<4x16xf32>, vector<16x32xf32>, vector<4x32xf32> -> vector<4x32xf32>
    %694 = arith.addf %692, %693 : vector<4x32xf32>
    %695 = vector.broadcast %39 : vector<4x1xf32> to vector<4x32xf32>
    %696 = arith.addf %694, %695 : vector<4x32xf32>
    %cst_612 = arith.constant 0.000000e+00 : f32
    %697 = vector.broadcast %cst_612 : f32 to vector<4x32xf32>
    %698 = arith.cmpf oge, %696, %697 : vector<4x32xf32>
    %cst_613 = arith.constant 2.000000e-01 : f32
    %699 = vector.broadcast %cst_613 : f32 to vector<4x32xf32>
    %700 = arith.mulf %699, %696 : vector<4x32xf32>
    %701 = arith.select %698, %696, %700 : vector<4x32xi1>, vector<4x32xf32>
    %702 = arith.mulf %701, %701 : vector<4x32xf32>
    %cst_614 = arith.constant dense<0.000000e+00> : vector<32xf32>
    %703 = vector.multi_reduction <add>, %702, %cst_614 [0] : vector<4x32xf32> to vector<32xf32>
    %704 = vector.shape_cast %703 : vector<32xf32> to vector<1x32xf32>
    %cst_615 = arith.constant 4.000000e+00 : f32
    %705 = vector.broadcast %cst_615 : f32 to vector<1x32xf32>
    %706 = arith.divf %704, %705 : vector<1x32xf32>
    %cst_616 = arith.constant 9.99999993E-9 : f32
    %707 = vector.broadcast %cst_616 : f32 to vector<1x32xf32>
    %708 = arith.addf %706, %707 : vector<1x32xf32>
    %709 = math.rsqrt %708 : vector<1x32xf32>
    %710 = vector.broadcast %709 : vector<1x32xf32> to vector<4x32xf32>
    %711 = arith.mulf %701, %710 : vector<4x32xf32>
    %c0_617 = arith.constant 0 : index
    %c307 = arith.constant 307 : index
    %712 = vector.load %arg11[%c0_617, %c307] : memref<4x614xf32, #tpu.memory_space<vmem>>, vector<4x32xf32>
    tpu.vector_store %arg11[%c0_617, %c307], %711 {strides = array<i32>} : memref<4x614xf32, #tpu.memory_space<vmem>>, vector<4x32xf32>,
    %cst_618 = arith.constant 0.000000e+00 : f32
    %713 = vector.broadcast %cst_618 : f32 to vector<4x16xf32>
    %cst_619 = arith.constant 0.000000e+00 : f32
    %714 = vector.broadcast %cst_619 : f32 to vector<4x16xf32>
    %c0_620 = arith.constant 0 : index
    %c5_621 = arith.constant 5 : index
    %c0_622 = arith.constant 0 : index
    %715 = vector.load %arg10[%c0_620, %c5_621, %c0_622] : memref<4x10x18xf32, #tpu.memory_space<vmem>>, vector<4x1x16xf32>
    %716 = vector.shape_cast %715 : vector<4x1x16xf32> to vector<4x16xf32>
    %c0_623 = arith.constant 0 : index
    %c5_624 = arith.constant 5 : index
    %c1_625 = arith.constant 1 : index
    %717 = vector.load %arg10[%c0_623, %c5_624, %c1_625] : memref<4x10x18xf32, #tpu.memory_space<vmem>>, vector<4x1x16xf32>
    %718 = vector.shape_cast %717 : vector<4x1x16xf32> to vector<4x16xf32>
    %c0_626 = arith.constant 0 : index
    %c5_627 = arith.constant 5 : index
    %c2_628 = arith.constant 2 : index
    %719 = vector.load %arg10[%c0_626, %c5_627, %c2_628] : memref<4x10x18xf32, #tpu.memory_space<vmem>>, vector<4x1x16xf32>
    %720 = vector.shape_cast %719 : vector<4x1x16xf32> to vector<4x16xf32>
    %c8_629 = arith.constant 8 : index
    %c0_630 = arith.constant 0 : index
    %c0_631 = arith.constant 0 : index
    %721 = vector.load %arg5[%c8_629, %c0_630, %c0_631] : memref<16x4x4xf32, #tpu.memory_space<vmem>>, vector<1x4x4xf32>
    %722 = vector.shape_cast %721 : vector<1x4x4xf32> to vector<4x4xf32>
    %cst_632 = arith.constant dense<0.000000e+00> : vector<4x16xf32>
    %723 = tpu.matmul %722, %716, %cst_632 {dimension_numbers = #tpu.dot_dimension_numbers<[1], [0], [0], [1], [0, 0, 1, 1], [], []>} : vector<4x4xf32>, vector<4x16xf32>, vector<4x16xf32> -> vector<4x16xf32>
    %724 = arith.addf %713, %723 : vector<4x16xf32>
    %c9_633 = arith.constant 9 : index
    %c0_634 = arith.constant 0 : index
    %c0_635 = arith.constant 0 : index
    %725 = vector.load %arg5[%c9_633, %c0_634, %c0_635] : memref<16x4x4xf32, #tpu.memory_space<vmem>>, vector<1x4x4xf32>
    %726 = vector.shape_cast %725 : vector<1x4x4xf32> to vector<4x4xf32>
    %cst_636 = arith.constant dense<0.000000e+00> : vector<4x16xf32>
    %727 = tpu.matmul %726, %718, %cst_636 {dimension_numbers = #tpu.dot_dimension_numbers<[1], [0], [0], [1], [0, 0, 1, 1], [], []>} : vector<4x4xf32>, vector<4x16xf32>, vector<4x16xf32> -> vector<4x16xf32>
    %728 = arith.addf %724, %727 : vector<4x16xf32>
    %c12_637 = arith.constant 12 : index
    %c0_638 = arith.constant 0 : index
    %c0_639 = arith.constant 0 : index
    %729 = vector.load %arg5[%c12_637, %c0_638, %c0_639] : memref<16x4x4xf32, #tpu.memory_space<vmem>>, vector<1x4x4xf32>
    %730 = vector.shape_cast %729 : vector<1x4x4xf32> to vector<4x4xf32>
    %cst_640 = arith.constant dense<0.000000e+00> : vector<4x16xf32>
    %731 = tpu.matmul %730, %718, %cst_640 {dimension_numbers = #tpu.dot_dimension_numbers<[1], [0], [0], [1], [0, 0, 1, 1], [], []>} : vector<4x4xf32>, vector<4x16xf32>, vector<4x16xf32> -> vector<4x16xf32>
    %732 = arith.addf %714, %731 : vector<4x16xf32>
    %c13_641 = arith.constant 13 : index
    %c0_642 = arith.constant 0 : index
    %c0_643 = arith.constant 0 : index
    %733 = vector.load %arg5[%c13_641, %c0_642, %c0_643] : memref<16x4x4xf32, #tpu.memory_space<vmem>>, vector<1x4x4xf32>
    %734 = vector.shape_cast %733 : vector<1x4x4xf32> to vector<4x4xf32>
    %cst_644 = arith.constant dense<0.000000e+00> : vector<4x16xf32>
    %735 = tpu.matmul %734, %720, %cst_644 {dimension_numbers = #tpu.dot_dimension_numbers<[1], [0], [0], [1], [0, 0, 1, 1], [], []>} : vector<4x4xf32>, vector<4x16xf32>, vector<4x16xf32> -> vector<4x16xf32>
    %736 = arith.addf %732, %735 : vector<4x16xf32>
    %c0_645 = arith.constant 0 : index
    %c6_646 = arith.constant 6 : index
    %c0_647 = arith.constant 0 : index
    %737 = vector.load %arg10[%c0_645, %c6_646, %c0_647] : memref<4x10x18xf32, #tpu.memory_space<vmem>>, vector<4x1x16xf32>
    %738 = vector.shape_cast %737 : vector<4x1x16xf32> to vector<4x16xf32>
    %c0_648 = arith.constant 0 : index
    %c6_649 = arith.constant 6 : index
    %c1_650 = arith.constant 1 : index
    %739 = vector.load %arg10[%c0_648, %c6_649, %c1_650] : memref<4x10x18xf32, #tpu.memory_space<vmem>>, vector<4x1x16xf32>
    %740 = vector.shape_cast %739 : vector<4x1x16xf32> to vector<4x16xf32>
    %c0_651 = arith.constant 0 : index
    %c6_652 = arith.constant 6 : index
    %c2_653 = arith.constant 2 : index
    %741 = vector.load %arg10[%c0_651, %c6_652, %c2_653] : memref<4x10x18xf32, #tpu.memory_space<vmem>>, vector<4x1x16xf32>
    %742 = vector.shape_cast %741 : vector<4x1x16xf32> to vector<4x16xf32>
    %c10_654 = arith.constant 10 : index
    %c0_655 = arith.constant 0 : index
    %c0_656 = arith.constant 0 : index
    %743 = vector.load %arg5[%c10_654, %c0_655, %c0_656] : memref<16x4x4xf32, #tpu.memory_space<vmem>>, vector<1x4x4xf32>
    %744 = vector.shape_cast %743 : vector<1x4x4xf32> to vector<4x4xf32>
    %cst_657 = arith.constant dense<0.000000e+00> : vector<4x16xf32>
    %745 = tpu.matmul %744, %738, %cst_657 {dimension_numbers = #tpu.dot_dimension_numbers<[1], [0], [0], [1], [0, 0, 1, 1], [], []>} : vector<4x4xf32>, vector<4x16xf32>, vector<4x16xf32> -> vector<4x16xf32>
    %746 = arith.addf %728, %745 : vector<4x16xf32>
    %c11_658 = arith.constant 11 : index
    %c0_659 = arith.constant 0 : index
    %c0_660 = arith.constant 0 : index
    %747 = vector.load %arg5[%c11_658, %c0_659, %c0_660] : memref<16x4x4xf32, #tpu.memory_space<vmem>>, vector<1x4x4xf32>
    %748 = vector.shape_cast %747 : vector<1x4x4xf32> to vector<4x4xf32>
    %cst_661 = arith.constant dense<0.000000e+00> : vector<4x16xf32>
    %749 = tpu.matmul %748, %740, %cst_661 {dimension_numbers = #tpu.dot_dimension_numbers<[1], [0], [0], [1], [0, 0, 1, 1], [], []>} : vector<4x4xf32>, vector<4x16xf32>, vector<4x16xf32> -> vector<4x16xf32>
    %750 = arith.addf %746, %749 : vector<4x16xf32>
    %c14_662 = arith.constant 14 : index
    %c0_663 = arith.constant 0 : index
    %c0_664 = arith.constant 0 : index
    %751 = vector.load %arg5[%c14_662, %c0_663, %c0_664] : memref<16x4x4xf32, #tpu.memory_space<vmem>>, vector<1x4x4xf32>
    %752 = vector.shape_cast %751 : vector<1x4x4xf32> to vector<4x4xf32>
    %cst_665 = arith.constant dense<0.000000e+00> : vector<4x16xf32>
    %753 = tpu.matmul %752, %740, %cst_665 {dimension_numbers = #tpu.dot_dimension_numbers<[1], [0], [0], [1], [0, 0, 1, 1], [], []>} : vector<4x4xf32>, vector<4x16xf32>, vector<4x16xf32> -> vector<4x16xf32>
    %754 = arith.addf %736, %753 : vector<4x16xf32>
    %c15_666 = arith.constant 15 : index
    %c0_667 = arith.constant 0 : index
    %c0_668 = arith.constant 0 : index
    %755 = vector.load %arg5[%c15_666, %c0_667, %c0_668] : memref<16x4x4xf32, #tpu.memory_space<vmem>>, vector<1x4x4xf32>
    %756 = vector.shape_cast %755 : vector<1x4x4xf32> to vector<4x4xf32>
    %cst_669 = arith.constant dense<0.000000e+00> : vector<4x16xf32>
    %757 = tpu.matmul %756, %742, %cst_669 {dimension_numbers = #tpu.dot_dimension_numbers<[1], [0], [0], [1], [0, 0, 1, 1], [], []>} : vector<4x4xf32>, vector<4x16xf32>, vector<4x16xf32> -> vector<4x16xf32>
    %758 = arith.addf %754, %757 : vector<4x16xf32>
    %cst_670 = arith.constant dense<0.000000e+00> : vector<4x32xf32>
    %759 = tpu.matmul %750, %31, %cst_670 {dimension_numbers = #tpu.dot_dimension_numbers<[1], [0], [0], [1], [0, 0, 1, 1], [], []>} : vector<4x16xf32>, vector<16x32xf32>, vector<4x32xf32> -> vector<4x32xf32>
    %cst_671 = arith.constant dense<0.000000e+00> : vector<4x32xf32>
    %760 = tpu.matmul %758, %38, %cst_671 {dimension_numbers = #tpu.dot_dimension_numbers<[1], [0], [0], [1], [0, 0, 1, 1], [], []>} : vector<4x16xf32>, vector<16x32xf32>, vector<4x32xf32> -> vector<4x32xf32>
    %761 = arith.addf %759, %760 : vector<4x32xf32>
    %762 = vector.broadcast %39 : vector<4x1xf32> to vector<4x32xf32>
    %763 = arith.addf %761, %762 : vector<4x32xf32>
    %cst_672 = arith.constant 0.000000e+00 : f32
    %764 = vector.broadcast %cst_672 : f32 to vector<4x32xf32>
    %765 = arith.cmpf oge, %763, %764 : vector<4x32xf32>
    %cst_673 = arith.constant 2.000000e-01 : f32
    %766 = vector.broadcast %cst_673 : f32 to vector<4x32xf32>
    %767 = arith.mulf %766, %763 : vector<4x32xf32>
    %768 = arith.select %765, %763, %767 : vector<4x32xi1>, vector<4x32xf32>
    %769 = arith.mulf %768, %768 : vector<4x32xf32>
    %cst_674 = arith.constant dense<0.000000e+00> : vector<32xf32>
    %770 = vector.multi_reduction <add>, %769, %cst_674 [0] : vector<4x32xf32> to vector<32xf32>
    %771 = vector.shape_cast %770 : vector<32xf32> to vector<1x32xf32>
    %cst_675 = arith.constant 4.000000e+00 : f32
    %772 = vector.broadcast %cst_675 : f32 to vector<1x32xf32>
    %773 = arith.divf %771, %772 : vector<1x32xf32>
    %cst_676 = arith.constant 9.99999993E-9 : f32
    %774 = vector.broadcast %cst_676 : f32 to vector<1x32xf32>
    %775 = arith.addf %773, %774 : vector<1x32xf32>
    %776 = math.rsqrt %775 : vector<1x32xf32>
    %777 = vector.broadcast %776 : vector<1x32xf32> to vector<4x32xf32>
    %778 = arith.mulf %768, %777 : vector<4x32xf32>
    %c0_677 = arith.constant 0 : index
    %c341 = arith.constant 341 : index
    %779 = vector.load %arg11[%c0_677, %c341] : memref<4x614xf32, #tpu.memory_space<vmem>>, vector<4x32xf32>
    tpu.vector_store %arg11[%c0_677, %c341], %778 {strides = array<i32>} : memref<4x614xf32, #tpu.memory_space<vmem>>, vector<4x32xf32>,
    %cst_678 = arith.constant 0.000000e+00 : f32
    %780 = vector.broadcast %cst_678 : f32 to vector<4x16xf32>
    %cst_679 = arith.constant 0.000000e+00 : f32
    %781 = vector.broadcast %cst_679 : f32 to vector<4x16xf32>
    %c0_680 = arith.constant 0 : index
    %c5_681 = arith.constant 5 : index
    %c0_682 = arith.constant 0 : index
    %782 = vector.load %arg10[%c0_680, %c5_681, %c0_682] : memref<4x10x18xf32, #tpu.memory_space<vmem>>, vector<4x1x16xf32>
    %783 = vector.shape_cast %782 : vector<4x1x16xf32> to vector<4x16xf32>
    %c0_683 = arith.constant 0 : index
    %c5_684 = arith.constant 5 : index
    %c1_685 = arith.constant 1 : index
    %784 = vector.load %arg10[%c0_683, %c5_684, %c1_685] : memref<4x10x18xf32, #tpu.memory_space<vmem>>, vector<4x1x16xf32>
    %785 = vector.shape_cast %784 : vector<4x1x16xf32> to vector<4x16xf32>
    %c0_686 = arith.constant 0 : index
    %c5_687 = arith.constant 5 : index
    %c2_688 = arith.constant 2 : index
    %786 = vector.load %arg10[%c0_686, %c5_687, %c2_688] : memref<4x10x18xf32, #tpu.memory_space<vmem>>, vector<4x1x16xf32>
    %787 = vector.shape_cast %786 : vector<4x1x16xf32> to vector<4x16xf32>
    %c0_689 = arith.constant 0 : index
    %c0_690 = arith.constant 0 : index
    %c0_691 = arith.constant 0 : index
    %788 = vector.load %arg5[%c0_689, %c0_690, %c0_691] : memref<16x4x4xf32, #tpu.memory_space<vmem>>, vector<1x4x4xf32>
    %789 = vector.shape_cast %788 : vector<1x4x4xf32> to vector<4x4xf32>
    %cst_692 = arith.constant dense<0.000000e+00> : vector<4x16xf32>
    %790 = tpu.matmul %789, %783, %cst_692 {dimension_numbers = #tpu.dot_dimension_numbers<[1], [0], [0], [1], [0, 0, 1, 1], [], []>} : vector<4x4xf32>, vector<4x16xf32>, vector<4x16xf32> -> vector<4x16xf32>
    %791 = arith.addf %780, %790 : vector<4x16xf32>
    %c1_693 = arith.constant 1 : index
    %c0_694 = arith.constant 0 : index
    %c0_695 = arith.constant 0 : index
    %792 = vector.load %arg5[%c1_693, %c0_694, %c0_695] : memref<16x4x4xf32, #tpu.memory_space<vmem>>, vector<1x4x4xf32>
    %793 = vector.shape_cast %792 : vector<1x4x4xf32> to vector<4x4xf32>
    %cst_696 = arith.constant dense<0.000000e+00> : vector<4x16xf32>
    %794 = tpu.matmul %793, %785, %cst_696 {dimension_numbers = #tpu.dot_dimension_numbers<[1], [0], [0], [1], [0, 0, 1, 1], [], []>} : vector<4x4xf32>, vector<4x16xf32>, vector<4x16xf32> -> vector<4x16xf32>
    %795 = arith.addf %791, %794 : vector<4x16xf32>
    %c4_697 = arith.constant 4 : index
    %c0_698 = arith.constant 0 : index
    %c0_699 = arith.constant 0 : index
    %796 = vector.load %arg5[%c4_697, %c0_698, %c0_699] : memref<16x4x4xf32, #tpu.memory_space<vmem>>, vector<1x4x4xf32>
    %797 = vector.shape_cast %796 : vector<1x4x4xf32> to vector<4x4xf32>
    %cst_700 = arith.constant dense<0.000000e+00> : vector<4x16xf32>
    %798 = tpu.matmul %797, %785, %cst_700 {dimension_numbers = #tpu.dot_dimension_numbers<[1], [0], [0], [1], [0, 0, 1, 1], [], []>} : vector<4x4xf32>, vector<4x16xf32>, vector<4x16xf32> -> vector<4x16xf32>
    %799 = arith.addf %781, %798 : vector<4x16xf32>
    %c5_701 = arith.constant 5 : index
    %c0_702 = arith.constant 0 : index
    %c0_703 = arith.constant 0 : index
    %800 = vector.load %arg5[%c5_701, %c0_702, %c0_703] : memref<16x4x4xf32, #tpu.memory_space<vmem>>, vector<1x4x4xf32>
    %801 = vector.shape_cast %800 : vector<1x4x4xf32> to vector<4x4xf32>
    %cst_704 = arith.constant dense<0.000000e+00> : vector<4x16xf32>
    %802 = tpu.matmul %801, %787, %cst_704 {dimension_numbers = #tpu.dot_dimension_numbers<[1], [0], [0], [1], [0, 0, 1, 1], [], []>} : vector<4x4xf32>, vector<4x16xf32>, vector<4x16xf32> -> vector<4x16xf32>
    %803 = arith.addf %799, %802 : vector<4x16xf32>
    %c0_705 = arith.constant 0 : index
    %c6_706 = arith.constant 6 : index
    %c0_707 = arith.constant 0 : index
    %804 = vector.load %arg10[%c0_705, %c6_706, %c0_707] : memref<4x10x18xf32, #tpu.memory_space<vmem>>, vector<4x1x16xf32>
    %805 = vector.shape_cast %804 : vector<4x1x16xf32> to vector<4x16xf32>
    %c0_708 = arith.constant 0 : index
    %c6_709 = arith.constant 6 : index
    %c1_710 = arith.constant 1 : index
    %806 = vector.load %arg10[%c0_708, %c6_709, %c1_710] : memref<4x10x18xf32, #tpu.memory_space<vmem>>, vector<4x1x16xf32>
    %807 = vector.shape_cast %806 : vector<4x1x16xf32> to vector<4x16xf32>
    %c0_711 = arith.constant 0 : index
    %c6_712 = arith.constant 6 : index
    %c2_713 = arith.constant 2 : index
    %808 = vector.load %arg10[%c0_711, %c6_712, %c2_713] : memref<4x10x18xf32, #tpu.memory_space<vmem>>, vector<4x1x16xf32>
    %809 = vector.shape_cast %808 : vector<4x1x16xf32> to vector<4x16xf32>
    %c2_714 = arith.constant 2 : index
    %c0_715 = arith.constant 0 : index
    %c0_716 = arith.constant 0 : index
    %810 = vector.load %arg5[%c2_714, %c0_715, %c0_716] : memref<16x4x4xf32, #tpu.memory_space<vmem>>, vector<1x4x4xf32>
    %811 = vector.shape_cast %810 : vector<1x4x4xf32> to vector<4x4xf32>
    %cst_717 = arith.constant dense<0.000000e+00> : vector<4x16xf32>
    %812 = tpu.matmul %811, %805, %cst_717 {dimension_numbers = #tpu.dot_dimension_numbers<[1], [0], [0], [1], [0, 0, 1, 1], [], []>} : vector<4x4xf32>, vector<4x16xf32>, vector<4x16xf32> -> vector<4x16xf32>
    %813 = arith.addf %795, %812 : vector<4x16xf32>
    %c3_718 = arith.constant 3 : index
    %c0_719 = arith.constant 0 : index
    %c0_720 = arith.constant 0 : index
    %814 = vector.load %arg5[%c3_718, %c0_719, %c0_720] : memref<16x4x4xf32, #tpu.memory_space<vmem>>, vector<1x4x4xf32>
    %815 = vector.shape_cast %814 : vector<1x4x4xf32> to vector<4x4xf32>
    %cst_721 = arith.constant dense<0.000000e+00> : vector<4x16xf32>
    %816 = tpu.matmul %815, %807, %cst_721 {dimension_numbers = #tpu.dot_dimension_numbers<[1], [0], [0], [1], [0, 0, 1, 1], [], []>} : vector<4x4xf32>, vector<4x16xf32>, vector<4x16xf32> -> vector<4x16xf32>
    %817 = arith.addf %813, %816 : vector<4x16xf32>
    %c6_722 = arith.constant 6 : index
    %c0_723 = arith.constant 0 : index
    %c0_724 = arith.constant 0 : index
    %818 = vector.load %arg5[%c6_722, %c0_723, %c0_724] : memref<16x4x4xf32, #tpu.memory_space<vmem>>, vector<1x4x4xf32>
    %819 = vector.shape_cast %818 : vector<1x4x4xf32> to vector<4x4xf32>
    %cst_725 = arith.constant dense<0.000000e+00> : vector<4x16xf32>
    %820 = tpu.matmul %819, %807, %cst_725 {dimension_numbers = #tpu.dot_dimension_numbers<[1], [0], [0], [1], [0, 0, 1, 1], [], []>} : vector<4x4xf32>, vector<4x16xf32>, vector<4x16xf32> -> vector<4x16xf32>
    %821 = arith.addf %803, %820 : vector<4x16xf32>
    %c7_726 = arith.constant 7 : index
    %c0_727 = arith.constant 0 : index
    %c0_728 = arith.constant 0 : index
    %822 = vector.load %arg5[%c7_726, %c0_727, %c0_728] : memref<16x4x4xf32, #tpu.memory_space<vmem>>, vector<1x4x4xf32>
    %823 = vector.shape_cast %822 : vector<1x4x4xf32> to vector<4x4xf32>
    %cst_729 = arith.constant dense<0.000000e+00> : vector<4x16xf32>
    %824 = tpu.matmul %823, %809, %cst_729 {dimension_numbers = #tpu.dot_dimension_numbers<[1], [0], [0], [1], [0, 0, 1, 1], [], []>} : vector<4x4xf32>, vector<4x16xf32>, vector<4x16xf32> -> vector<4x16xf32>
    %825 = arith.addf %821, %824 : vector<4x16xf32>
    %cst_730 = arith.constant dense<0.000000e+00> : vector<4x32xf32>
    %826 = tpu.matmul %817, %31, %cst_730 {dimension_numbers = #tpu.dot_dimension_numbers<[1], [0], [0], [1], [0, 0, 1, 1], [], []>} : vector<4x16xf32>, vector<16x32xf32>, vector<4x32xf32> -> vector<4x32xf32>
    %cst_731 = arith.constant dense<0.000000e+00> : vector<4x32xf32>
    %827 = tpu.matmul %825, %38, %cst_731 {dimension_numbers = #tpu.dot_dimension_numbers<[1], [0], [0], [1], [0, 0, 1, 1], [], []>} : vector<4x16xf32>, vector<16x32xf32>, vector<4x32xf32> -> vector<4x32xf32>
    %828 = arith.addf %826, %827 : vector<4x32xf32>
    %829 = vector.broadcast %39 : vector<4x1xf32> to vector<4x32xf32>
    %830 = arith.addf %828, %829 : vector<4x32xf32>
    %cst_732 = arith.constant 0.000000e+00 : f32
    %831 = vector.broadcast %cst_732 : f32 to vector<4x32xf32>
    %832 = arith.cmpf oge, %830, %831 : vector<4x32xf32>
    %cst_733 = arith.constant 2.000000e-01 : f32
    %833 = vector.broadcast %cst_733 : f32 to vector<4x32xf32>
    %834 = arith.mulf %833, %830 : vector<4x32xf32>
    %835 = arith.select %832, %830, %834 : vector<4x32xi1>, vector<4x32xf32>
    %836 = arith.mulf %835, %835 : vector<4x32xf32>
    %cst_734 = arith.constant dense<0.000000e+00> : vector<32xf32>
    %837 = vector.multi_reduction <add>, %836, %cst_734 [0] : vector<4x32xf32> to vector<32xf32>
    %838 = vector.shape_cast %837 : vector<32xf32> to vector<1x32xf32>
    %cst_735 = arith.constant 4.000000e+00 : f32
    %839 = vector.broadcast %cst_735 : f32 to vector<1x32xf32>
    %840 = arith.divf %838, %839 : vector<1x32xf32>
    %cst_736 = arith.constant 9.99999993E-9 : f32
    %841 = vector.broadcast %cst_736 : f32 to vector<1x32xf32>
    %842 = arith.addf %840, %841 : vector<1x32xf32>
    %843 = math.rsqrt %842 : vector<1x32xf32>
    %844 = vector.broadcast %843 : vector<1x32xf32> to vector<4x32xf32>
    %845 = arith.mulf %835, %844 : vector<4x32xf32>
    %c0_737 = arith.constant 0 : index
    %c375 = arith.constant 375 : index
    %846 = vector.load %arg11[%c0_737, %c375] : memref<4x614xf32, #tpu.memory_space<vmem>>, vector<4x32xf32>
    tpu.vector_store %arg11[%c0_737, %c375], %845 {strides = array<i32>} : memref<4x614xf32, #tpu.memory_space<vmem>>, vector<4x32xf32>,
    %cst_738 = arith.constant 0.000000e+00 : f32
    %847 = vector.broadcast %cst_738 : f32 to vector<4x16xf32>
    %cst_739 = arith.constant 0.000000e+00 : f32
    %848 = vector.broadcast %cst_739 : f32 to vector<4x16xf32>
    %c0_740 = arith.constant 0 : index
    %c6_741 = arith.constant 6 : index
    %c0_742 = arith.constant 0 : index
    %849 = vector.load %arg10[%c0_740, %c6_741, %c0_742] : memref<4x10x18xf32, #tpu.memory_space<vmem>>, vector<4x1x16xf32>
    %850 = vector.shape_cast %849 : vector<4x1x16xf32> to vector<4x16xf32>
    %c0_743 = arith.constant 0 : index
    %c6_744 = arith.constant 6 : index
    %c1_745 = arith.constant 1 : index
    %851 = vector.load %arg10[%c0_743, %c6_744, %c1_745] : memref<4x10x18xf32, #tpu.memory_space<vmem>>, vector<4x1x16xf32>
    %852 = vector.shape_cast %851 : vector<4x1x16xf32> to vector<4x16xf32>
    %c0_746 = arith.constant 0 : index
    %c6_747 = arith.constant 6 : index
    %c2_748 = arith.constant 2 : index
    %853 = vector.load %arg10[%c0_746, %c6_747, %c2_748] : memref<4x10x18xf32, #tpu.memory_space<vmem>>, vector<4x1x16xf32>
    %854 = vector.shape_cast %853 : vector<4x1x16xf32> to vector<4x16xf32>
    %c8_749 = arith.constant 8 : index
    %c0_750 = arith.constant 0 : index
    %c0_751 = arith.constant 0 : index
    %855 = vector.load %arg5[%c8_749, %c0_750, %c0_751] : memref<16x4x4xf32, #tpu.memory_space<vmem>>, vector<1x4x4xf32>
    %856 = vector.shape_cast %855 : vector<1x4x4xf32> to vector<4x4xf32>
    %cst_752 = arith.constant dense<0.000000e+00> : vector<4x16xf32>
    %857 = tpu.matmul %856, %850, %cst_752 {dimension_numbers = #tpu.dot_dimension_numbers<[1], [0], [0], [1], [0, 0, 1, 1], [], []>} : vector<4x4xf32>, vector<4x16xf32>, vector<4x16xf32> -> vector<4x16xf32>
    %858 = arith.addf %847, %857 : vector<4x16xf32>
    %c9_753 = arith.constant 9 : index
    %c0_754 = arith.constant 0 : index
    %c0_755 = arith.constant 0 : index
    %859 = vector.load %arg5[%c9_753, %c0_754, %c0_755] : memref<16x4x4xf32, #tpu.memory_space<vmem>>, vector<1x4x4xf32>
    %860 = vector.shape_cast %859 : vector<1x4x4xf32> to vector<4x4xf32>
    %cst_756 = arith.constant dense<0.000000e+00> : vector<4x16xf32>
    %861 = tpu.matmul %860, %852, %cst_756 {dimension_numbers = #tpu.dot_dimension_numbers<[1], [0], [0], [1], [0, 0, 1, 1], [], []>} : vector<4x4xf32>, vector<4x16xf32>, vector<4x16xf32> -> vector<4x16xf32>
    %862 = arith.addf %858, %861 : vector<4x16xf32>
    %c12_757 = arith.constant 12 : index
    %c0_758 = arith.constant 0 : index
    %c0_759 = arith.constant 0 : index
    %863 = vector.load %arg5[%c12_757, %c0_758, %c0_759] : memref<16x4x4xf32, #tpu.memory_space<vmem>>, vector<1x4x4xf32>
    %864 = vector.shape_cast %863 : vector<1x4x4xf32> to vector<4x4xf32>
    %cst_760 = arith.constant dense<0.000000e+00> : vector<4x16xf32>
    %865 = tpu.matmul %864, %852, %cst_760 {dimension_numbers = #tpu.dot_dimension_numbers<[1], [0], [0], [1], [0, 0, 1, 1], [], []>} : vector<4x4xf32>, vector<4x16xf32>, vector<4x16xf32> -> vector<4x16xf32>
    %866 = arith.addf %848, %865 : vector<4x16xf32>
    %c13_761 = arith.constant 13 : index
    %c0_762 = arith.constant 0 : index
    %c0_763 = arith.constant 0 : index
    %867 = vector.load %arg5[%c13_761, %c0_762, %c0_763] : memref<16x4x4xf32, #tpu.memory_space<vmem>>, vector<1x4x4xf32>
    %868 = vector.shape_cast %867 : vector<1x4x4xf32> to vector<4x4xf32>
    %cst_764 = arith.constant dense<0.000000e+00> : vector<4x16xf32>
    %869 = tpu.matmul %868, %854, %cst_764 {dimension_numbers = #tpu.dot_dimension_numbers<[1], [0], [0], [1], [0, 0, 1, 1], [], []>} : vector<4x4xf32>, vector<4x16xf32>, vector<4x16xf32> -> vector<4x16xf32>
    %870 = arith.addf %866, %869 : vector<4x16xf32>
    %c0_765 = arith.constant 0 : index
    %c7_766 = arith.constant 7 : index
    %c0_767 = arith.constant 0 : index
    %871 = vector.load %arg10[%c0_765, %c7_766, %c0_767] : memref<4x10x18xf32, #tpu.memory_space<vmem>>, vector<4x1x16xf32>
    %872 = vector.shape_cast %871 : vector<4x1x16xf32> to vector<4x16xf32>
    %c0_768 = arith.constant 0 : index
    %c7_769 = arith.constant 7 : index
    %c1_770 = arith.constant 1 : index
    %873 = vector.load %arg10[%c0_768, %c7_769, %c1_770] : memref<4x10x18xf32, #tpu.memory_space<vmem>>, vector<4x1x16xf32>
    %874 = vector.shape_cast %873 : vector<4x1x16xf32> to vector<4x16xf32>
    %c0_771 = arith.constant 0 : index
    %c7_772 = arith.constant 7 : index
    %c2_773 = arith.constant 2 : index
    %875 = vector.load %arg10[%c0_771, %c7_772, %c2_773] : memref<4x10x18xf32, #tpu.memory_space<vmem>>, vector<4x1x16xf32>
    %876 = vector.shape_cast %875 : vector<4x1x16xf32> to vector<4x16xf32>
    %c10_774 = arith.constant 10 : index
    %c0_775 = arith.constant 0 : index
    %c0_776 = arith.constant 0 : index
    %877 = vector.load %arg5[%c10_774, %c0_775, %c0_776] : memref<16x4x4xf32, #tpu.memory_space<vmem>>, vector<1x4x4xf32>
    %878 = vector.shape_cast %877 : vector<1x4x4xf32> to vector<4x4xf32>
    %cst_777 = arith.constant dense<0.000000e+00> : vector<4x16xf32>
    %879 = tpu.matmul %878, %872, %cst_777 {dimension_numbers = #tpu.dot_dimension_numbers<[1], [0], [0], [1], [0, 0, 1, 1], [], []>} : vector<4x4xf32>, vector<4x16xf32>, vector<4x16xf32> -> vector<4x16xf32>
    %880 = arith.addf %862, %879 : vector<4x16xf32>
    %c11_778 = arith.constant 11 : index
    %c0_779 = arith.constant 0 : index
    %c0_780 = arith.constant 0 : index
    %881 = vector.load %arg5[%c11_778, %c0_779, %c0_780] : memref<16x4x4xf32, #tpu.memory_space<vmem>>, vector<1x4x4xf32>
    %882 = vector.shape_cast %881 : vector<1x4x4xf32> to vector<4x4xf32>
    %cst_781 = arith.constant dense<0.000000e+00> : vector<4x16xf32>
    %883 = tpu.matmul %882, %874, %cst_781 {dimension_numbers = #tpu.dot_dimension_numbers<[1], [0], [0], [1], [0, 0, 1, 1], [], []>} : vector<4x4xf32>, vector<4x16xf32>, vector<4x16xf32> -> vector<4x16xf32>
    %884 = arith.addf %880, %883 : vector<4x16xf32>
    %c14_782 = arith.constant 14 : index
    %c0_783 = arith.constant 0 : index
    %c0_784 = arith.constant 0 : index
    %885 = vector.load %arg5[%c14_782, %c0_783, %c0_784] : memref<16x4x4xf32, #tpu.memory_space<vmem>>, vector<1x4x4xf32>
    %886 = vector.shape_cast %885 : vector<1x4x4xf32> to vector<4x4xf32>
    %cst_785 = arith.constant dense<0.000000e+00> : vector<4x16xf32>
    %887 = tpu.matmul %886, %874, %cst_785 {dimension_numbers = #tpu.dot_dimension_numbers<[1], [0], [0], [1], [0, 0, 1, 1], [], []>} : vector<4x4xf32>, vector<4x16xf32>, vector<4x16xf32> -> vector<4x16xf32>
    %888 = arith.addf %870, %887 : vector<4x16xf32>
    %c15_786 = arith.constant 15 : index
    %c0_787 = arith.constant 0 : index
    %c0_788 = arith.constant 0 : index
    %889 = vector.load %arg5[%c15_786, %c0_787, %c0_788] : memref<16x4x4xf32, #tpu.memory_space<vmem>>, vector<1x4x4xf32>
    %890 = vector.shape_cast %889 : vector<1x4x4xf32> to vector<4x4xf32>
    %cst_789 = arith.constant dense<0.000000e+00> : vector<4x16xf32>
    %891 = tpu.matmul %890, %876, %cst_789 {dimension_numbers = #tpu.dot_dimension_numbers<[1], [0], [0], [1], [0, 0, 1, 1], [], []>} : vector<4x4xf32>, vector<4x16xf32>, vector<4x16xf32> -> vector<4x16xf32>
    %892 = arith.addf %888, %891 : vector<4x16xf32>
    %cst_790 = arith.constant dense<0.000000e+00> : vector<4x32xf32>
    %893 = tpu.matmul %884, %31, %cst_790 {dimension_numbers = #tpu.dot_dimension_numbers<[1], [0], [0], [1], [0, 0, 1, 1], [], []>} : vector<4x16xf32>, vector<16x32xf32>, vector<4x32xf32> -> vector<4x32xf32>
    %cst_791 = arith.constant dense<0.000000e+00> : vector<4x32xf32>
    %894 = tpu.matmul %892, %38, %cst_791 {dimension_numbers = #tpu.dot_dimension_numbers<[1], [0], [0], [1], [0, 0, 1, 1], [], []>} : vector<4x16xf32>, vector<16x32xf32>, vector<4x32xf32> -> vector<4x32xf32>
    %895 = arith.addf %893, %894 : vector<4x32xf32>
    %896 = vector.broadcast %39 : vector<4x1xf32> to vector<4x32xf32>
    %897 = arith.addf %895, %896 : vector<4x32xf32>
    %cst_792 = arith.constant 0.000000e+00 : f32
    %898 = vector.broadcast %cst_792 : f32 to vector<4x32xf32>
    %899 = arith.cmpf oge, %897, %898 : vector<4x32xf32>
    %cst_793 = arith.constant 2.000000e-01 : f32
    %900 = vector.broadcast %cst_793 : f32 to vector<4x32xf32>
    %901 = arith.mulf %900, %897 : vector<4x32xf32>
    %902 = arith.select %899, %897, %901 : vector<4x32xi1>, vector<4x32xf32>
    %903 = arith.mulf %902, %902 : vector<4x32xf32>
    %cst_794 = arith.constant dense<0.000000e+00> : vector<32xf32>
    %904 = vector.multi_reduction <add>, %903, %cst_794 [0] : vector<4x32xf32> to vector<32xf32>
    %905 = vector.shape_cast %904 : vector<32xf32> to vector<1x32xf32>
    %cst_795 = arith.constant 4.000000e+00 : f32
    %906 = vector.broadcast %cst_795 : f32 to vector<1x32xf32>
    %907 = arith.divf %905, %906 : vector<1x32xf32>
    %cst_796 = arith.constant 9.99999993E-9 : f32
    %908 = vector.broadcast %cst_796 : f32 to vector<1x32xf32>
    %909 = arith.addf %907, %908 : vector<1x32xf32>
    %910 = math.rsqrt %909 : vector<1x32xf32>
    %911 = vector.broadcast %910 : vector<1x32xf32> to vector<4x32xf32>
    %912 = arith.mulf %902, %911 : vector<4x32xf32>
    %c0_797 = arith.constant 0 : index
    %c409 = arith.constant 409 : index
    %913 = vector.load %arg11[%c0_797, %c409] : memref<4x614xf32, #tpu.memory_space<vmem>>, vector<4x32xf32>
    tpu.vector_store %arg11[%c0_797, %c409], %912 {strides = array<i32>} : memref<4x614xf32, #tpu.memory_space<vmem>>, vector<4x32xf32>,
    %cst_798 = arith.constant 0.000000e+00 : f32
    %914 = vector.broadcast %cst_798 : f32 to vector<4x16xf32>
    %cst_799 = arith.constant 0.000000e+00 : f32
    %915 = vector.broadcast %cst_799 : f32 to vector<4x16xf32>
    %c0_800 = arith.constant 0 : index
    %c6_801 = arith.constant 6 : index
    %c0_802 = arith.constant 0 : index
    %916 = vector.load %arg10[%c0_800, %c6_801, %c0_802] : memref<4x10x18xf32, #tpu.memory_space<vmem>>, vector<4x1x16xf32>
    %917 = vector.shape_cast %916 : vector<4x1x16xf32> to vector<4x16xf32>
    %c0_803 = arith.constant 0 : index
    %c6_804 = arith.constant 6 : index
    %c1_805 = arith.constant 1 : index
    %918 = vector.load %arg10[%c0_803, %c6_804, %c1_805] : memref<4x10x18xf32, #tpu.memory_space<vmem>>, vector<4x1x16xf32>
    %919 = vector.shape_cast %918 : vector<4x1x16xf32> to vector<4x16xf32>
    %c0_806 = arith.constant 0 : index
    %c6_807 = arith.constant 6 : index
    %c2_808 = arith.constant 2 : index
    %920 = vector.load %arg10[%c0_806, %c6_807, %c2_808] : memref<4x10x18xf32, #tpu.memory_space<vmem>>, vector<4x1x16xf32>
    %921 = vector.shape_cast %920 : vector<4x1x16xf32> to vector<4x16xf32>
    %c0_809 = arith.constant 0 : index
    %c0_810 = arith.constant 0 : index
    %c0_811 = arith.constant 0 : index
    %922 = vector.load %arg5[%c0_809, %c0_810, %c0_811] : memref<16x4x4xf32, #tpu.memory_space<vmem>>, vector<1x4x4xf32>
    %923 = vector.shape_cast %922 : vector<1x4x4xf32> to vector<4x4xf32>
    %cst_812 = arith.constant dense<0.000000e+00> : vector<4x16xf32>
    %924 = tpu.matmul %923, %917, %cst_812 {dimension_numbers = #tpu.dot_dimension_numbers<[1], [0], [0], [1], [0, 0, 1, 1], [], []>} : vector<4x4xf32>, vector<4x16xf32>, vector<4x16xf32> -> vector<4x16xf32>
    %925 = arith.addf %914, %924 : vector<4x16xf32>
    %c1_813 = arith.constant 1 : index
    %c0_814 = arith.constant 0 : index
    %c0_815 = arith.constant 0 : index
    %926 = vector.load %arg5[%c1_813, %c0_814, %c0_815] : memref<16x4x4xf32, #tpu.memory_space<vmem>>, vector<1x4x4xf32>
    %927 = vector.shape_cast %926 : vector<1x4x4xf32> to vector<4x4xf32>
    %cst_816 = arith.constant dense<0.000000e+00> : vector<4x16xf32>
    %928 = tpu.matmul %927, %919, %cst_816 {dimension_numbers = #tpu.dot_dimension_numbers<[1], [0], [0], [1], [0, 0, 1, 1], [], []>} : vector<4x4xf32>, vector<4x16xf32>, vector<4x16xf32> -> vector<4x16xf32>
    %929 = arith.addf %925, %928 : vector<4x16xf32>
    %c4_817 = arith.constant 4 : index
    %c0_818 = arith.constant 0 : index
    %c0_819 = arith.constant 0 : index
    %930 = vector.load %arg5[%c4_817, %c0_818, %c0_819] : memref<16x4x4xf32, #tpu.memory_space<vmem>>, vector<1x4x4xf32>
    %931 = vector.shape_cast %930 : vector<1x4x4xf32> to vector<4x4xf32>
    %cst_820 = arith.constant dense<0.000000e+00> : vector<4x16xf32>
    %932 = tpu.matmul %931, %919, %cst_820 {dimension_numbers = #tpu.dot_dimension_numbers<[1], [0], [0], [1], [0, 0, 1, 1], [], []>} : vector<4x4xf32>, vector<4x16xf32>, vector<4x16xf32> -> vector<4x16xf32>
    %933 = arith.addf %915, %932 : vector<4x16xf32>
    %c5_821 = arith.constant 5 : index
    %c0_822 = arith.constant 0 : index
    %c0_823 = arith.constant 0 : index
    %934 = vector.load %arg5[%c5_821, %c0_822, %c0_823] : memref<16x4x4xf32, #tpu.memory_space<vmem>>, vector<1x4x4xf32>
    %935 = vector.shape_cast %934 : vector<1x4x4xf32> to vector<4x4xf32>
    %cst_824 = arith.constant dense<0.000000e+00> : vector<4x16xf32>
    %936 = tpu.matmul %935, %921, %cst_824 {dimension_numbers = #tpu.dot_dimension_numbers<[1], [0], [0], [1], [0, 0, 1, 1], [], []>} : vector<4x4xf32>, vector<4x16xf32>, vector<4x16xf32> -> vector<4x16xf32>
    %937 = arith.addf %933, %936 : vector<4x16xf32>
    %c0_825 = arith.constant 0 : index
    %c7_826 = arith.constant 7 : index
    %c0_827 = arith.constant 0 : index
    %938 = vector.load %arg10[%c0_825, %c7_826, %c0_827] : memref<4x10x18xf32, #tpu.memory_space<vmem>>, vector<4x1x16xf32>
    %939 = vector.shape_cast %938 : vector<4x1x16xf32> to vector<4x16xf32>
    %c0_828 = arith.constant 0 : index
    %c7_829 = arith.constant 7 : index
    %c1_830 = arith.constant 1 : index
    %940 = vector.load %arg10[%c0_828, %c7_829, %c1_830] : memref<4x10x18xf32, #tpu.memory_space<vmem>>, vector<4x1x16xf32>
    %941 = vector.shape_cast %940 : vector<4x1x16xf32> to vector<4x16xf32>
    %c0_831 = arith.constant 0 : index
    %c7_832 = arith.constant 7 : index
    %c2_833 = arith.constant 2 : index
    %942 = vector.load %arg10[%c0_831, %c7_832, %c2_833] : memref<4x10x18xf32, #tpu.memory_space<vmem>>, vector<4x1x16xf32>
    %943 = vector.shape_cast %942 : vector<4x1x16xf32> to vector<4x16xf32>
    %c2_834 = arith.constant 2 : index
    %c0_835 = arith.constant 0 : index
    %c0_836 = arith.constant 0 : index
    %944 = vector.load %arg5[%c2_834, %c0_835, %c0_836] : memref<16x4x4xf32, #tpu.memory_space<vmem>>, vector<1x4x4xf32>
    %945 = vector.shape_cast %944 : vector<1x4x4xf32> to vector<4x4xf32>
    %cst_837 = arith.constant dense<0.000000e+00> : vector<4x16xf32>
    %946 = tpu.matmul %945, %939, %cst_837 {dimension_numbers = #tpu.dot_dimension_numbers<[1], [0], [0], [1], [0, 0, 1, 1], [], []>} : vector<4x4xf32>, vector<4x16xf32>, vector<4x16xf32> -> vector<4x16xf32>
    %947 = arith.addf %929, %946 : vector<4x16xf32>
    %c3_838 = arith.constant 3 : index
    %c0_839 = arith.constant 0 : index
    %c0_840 = arith.constant 0 : index
    %948 = vector.load %arg5[%c3_838, %c0_839, %c0_840] : memref<16x4x4xf32, #tpu.memory_space<vmem>>, vector<1x4x4xf32>
    %949 = vector.shape_cast %948 : vector<1x4x4xf32> to vector<4x4xf32>
    %cst_841 = arith.constant dense<0.000000e+00> : vector<4x16xf32>
    %950 = tpu.matmul %949, %941, %cst_841 {dimension_numbers = #tpu.dot_dimension_numbers<[1], [0], [0], [1], [0, 0, 1, 1], [], []>} : vector<4x4xf32>, vector<4x16xf32>, vector<4x16xf32> -> vector<4x16xf32>
    %951 = arith.addf %947, %950 : vector<4x16xf32>
    %c6_842 = arith.constant 6 : index
    %c0_843 = arith.constant 0 : index
    %c0_844 = arith.constant 0 : index
    %952 = vector.load %arg5[%c6_842, %c0_843, %c0_844] : memref<16x4x4xf32, #tpu.memory_space<vmem>>, vector<1x4x4xf32>
    %953 = vector.shape_cast %952 : vector<1x4x4xf32> to vector<4x4xf32>
    %cst_845 = arith.constant dense<0.000000e+00> : vector<4x16xf32>
    %954 = tpu.matmul %953, %941, %cst_845 {dimension_numbers = #tpu.dot_dimension_numbers<[1], [0], [0], [1], [0, 0, 1, 1], [], []>} : vector<4x4xf32>, vector<4x16xf32>, vector<4x16xf32> -> vector<4x16xf32>
    %955 = arith.addf %937, %954 : vector<4x16xf32>
    %c7_846 = arith.constant 7 : index
    %c0_847 = arith.constant 0 : index
    %c0_848 = arith.constant 0 : index
    %956 = vector.load %arg5[%c7_846, %c0_847, %c0_848] : memref<16x4x4xf32, #tpu.memory_space<vmem>>, vector<1x4x4xf32>
    %957 = vector.shape_cast %956 : vector<1x4x4xf32> to vector<4x4xf32>
    %cst_849 = arith.constant dense<0.000000e+00> : vector<4x16xf32>
    %958 = tpu.matmul %957, %943, %cst_849 {dimension_numbers = #tpu.dot_dimension_numbers<[1], [0], [0], [1], [0, 0, 1, 1], [], []>} : vector<4x4xf32>, vector<4x16xf32>, vector<4x16xf32> -> vector<4x16xf32>
    %959 = arith.addf %955, %958 : vector<4x16xf32>
    %cst_850 = arith.constant dense<0.000000e+00> : vector<4x32xf32>
    %960 = tpu.matmul %951, %31, %cst_850 {dimension_numbers = #tpu.dot_dimension_numbers<[1], [0], [0], [1], [0, 0, 1, 1], [], []>} : vector<4x16xf32>, vector<16x32xf32>, vector<4x32xf32> -> vector<4x32xf32>
    %cst_851 = arith.constant dense<0.000000e+00> : vector<4x32xf32>
    %961 = tpu.matmul %959, %38, %cst_851 {dimension_numbers = #tpu.dot_dimension_numbers<[1], [0], [0], [1], [0, 0, 1, 1], [], []>} : vector<4x16xf32>, vector<16x32xf32>, vector<4x32xf32> -> vector<4x32xf32>
    %962 = arith.addf %960, %961 : vector<4x32xf32>
    %963 = vector.broadcast %39 : vector<4x1xf32> to vector<4x32xf32>
    %964 = arith.addf %962, %963 : vector<4x32xf32>
    %cst_852 = arith.constant 0.000000e+00 : f32
    %965 = vector.broadcast %cst_852 : f32 to vector<4x32xf32>
    %966 = arith.cmpf oge, %964, %965 : vector<4x32xf32>
    %cst_853 = arith.constant 2.000000e-01 : f32
    %967 = vector.broadcast %cst_853 : f32 to vector<4x32xf32>
    %968 = arith.mulf %967, %964 : vector<4x32xf32>
    %969 = arith.select %966, %964, %968 : vector<4x32xi1>, vector<4x32xf32>
    %970 = arith.mulf %969, %969 : vector<4x32xf32>
    %cst_854 = arith.constant dense<0.000000e+00> : vector<32xf32>
    %971 = vector.multi_reduction <add>, %970, %cst_854 [0] : vector<4x32xf32> to vector<32xf32>
    %972 = vector.shape_cast %971 : vector<32xf32> to vector<1x32xf32>
    %cst_855 = arith.constant 4.000000e+00 : f32
    %973 = vector.broadcast %cst_855 : f32 to vector<1x32xf32>
    %974 = arith.divf %972, %973 : vector<1x32xf32>
    %cst_856 = arith.constant 9.99999993E-9 : f32
    %975 = vector.broadcast %cst_856 : f32 to vector<1x32xf32>
    %976 = arith.addf %974, %975 : vector<1x32xf32>
    %977 = math.rsqrt %976 : vector<1x32xf32>
    %978 = vector.broadcast %977 : vector<1x32xf32> to vector<4x32xf32>
    %979 = arith.mulf %969, %978 : vector<4x32xf32>
    %c0_857 = arith.constant 0 : index
    %c443 = arith.constant 443 : index
    %980 = vector.load %arg11[%c0_857, %c443] : memref<4x614xf32, #tpu.memory_space<vmem>>, vector<4x32xf32>
    tpu.vector_store %arg11[%c0_857, %c443], %979 {strides = array<i32>} : memref<4x614xf32, #tpu.memory_space<vmem>>, vector<4x32xf32>,
    %cst_858 = arith.constant 0.000000e+00 : f32
    %981 = vector.broadcast %cst_858 : f32 to vector<4x16xf32>
    %cst_859 = arith.constant 0.000000e+00 : f32
    %982 = vector.broadcast %cst_859 : f32 to vector<4x16xf32>
    %c0_860 = arith.constant 0 : index
    %c7_861 = arith.constant 7 : index
    %c0_862 = arith.constant 0 : index
    %983 = vector.load %arg10[%c0_860, %c7_861, %c0_862] : memref<4x10x18xf32, #tpu.memory_space<vmem>>, vector<4x1x16xf32>
    %984 = vector.shape_cast %983 : vector<4x1x16xf32> to vector<4x16xf32>
    %c0_863 = arith.constant 0 : index
    %c7_864 = arith.constant 7 : index
    %c1_865 = arith.constant 1 : index
    %985 = vector.load %arg10[%c0_863, %c7_864, %c1_865] : memref<4x10x18xf32, #tpu.memory_space<vmem>>, vector<4x1x16xf32>
    %986 = vector.shape_cast %985 : vector<4x1x16xf32> to vector<4x16xf32>
    %c0_866 = arith.constant 0 : index
    %c7_867 = arith.constant 7 : index
    %c2_868 = arith.constant 2 : index
    %987 = vector.load %arg10[%c0_866, %c7_867, %c2_868] : memref<4x10x18xf32, #tpu.memory_space<vmem>>, vector<4x1x16xf32>
    %988 = vector.shape_cast %987 : vector<4x1x16xf32> to vector<4x16xf32>
    %c8_869 = arith.constant 8 : index
    %c0_870 = arith.constant 0 : index
    %c0_871 = arith.constant 0 : index
    %989 = vector.load %arg5[%c8_869, %c0_870, %c0_871] : memref<16x4x4xf32, #tpu.memory_space<vmem>>, vector<1x4x4xf32>
    %990 = vector.shape_cast %989 : vector<1x4x4xf32> to vector<4x4xf32>
    %cst_872 = arith.constant dense<0.000000e+00> : vector<4x16xf32>
    %991 = tpu.matmul %990, %984, %cst_872 {dimension_numbers = #tpu.dot_dimension_numbers<[1], [0], [0], [1], [0, 0, 1, 1], [], []>} : vector<4x4xf32>, vector<4x16xf32>, vector<4x16xf32> -> vector<4x16xf32>
    %992 = arith.addf %981, %991 : vector<4x16xf32>
    %c9_873 = arith.constant 9 : index
    %c0_874 = arith.constant 0 : index
    %c0_875 = arith.constant 0 : index
    %993 = vector.load %arg5[%c9_873, %c0_874, %c0_875] : memref<16x4x4xf32, #tpu.memory_space<vmem>>, vector<1x4x4xf32>
    %994 = vector.shape_cast %993 : vector<1x4x4xf32> to vector<4x4xf32>
    %cst_876 = arith.constant dense<0.000000e+00> : vector<4x16xf32>
    %995 = tpu.matmul %994, %986, %cst_876 {dimension_numbers = #tpu.dot_dimension_numbers<[1], [0], [0], [1], [0, 0, 1, 1], [], []>} : vector<4x4xf32>, vector<4x16xf32>, vector<4x16xf32> -> vector<4x16xf32>
    %996 = arith.addf %992, %995 : vector<4x16xf32>
    %c12_877 = arith.constant 12 : index
    %c0_878 = arith.constant 0 : index
    %c0_879 = arith.constant 0 : index
    %997 = vector.load %arg5[%c12_877, %c0_878, %c0_879] : memref<16x4x4xf32, #tpu.memory_space<vmem>>, vector<1x4x4xf32>
    %998 = vector.shape_cast %997 : vector<1x4x4xf32> to vector<4x4xf32>
    %cst_880 = arith.constant dense<0.000000e+00> : vector<4x16xf32>
    %999 = tpu.matmul %998, %986, %cst_880 {dimension_numbers = #tpu.dot_dimension_numbers<[1], [0], [0], [1], [0, 0, 1, 1], [], []>} : vector<4x4xf32>, vector<4x16xf32>, vector<4x16xf32> -> vector<4x16xf32>
    %1000 = arith.addf %982, %999 : vector<4x16xf32>
    %c13_881 = arith.constant 13 : index
    %c0_882 = arith.constant 0 : index
    %c0_883 = arith.constant 0 : index
    %1001 = vector.load %arg5[%c13_881, %c0_882, %c0_883] : memref<16x4x4xf32, #tpu.memory_space<vmem>>, vector<1x4x4xf32>
    %1002 = vector.shape_cast %1001 : vector<1x4x4xf32> to vector<4x4xf32>
    %cst_884 = arith.constant dense<0.000000e+00> : vector<4x16xf32>
    %1003 = tpu.matmul %1002, %988, %cst_884 {dimension_numbers = #tpu.dot_dimension_numbers<[1], [0], [0], [1], [0, 0, 1, 1], [], []>} : vector<4x4xf32>, vector<4x16xf32>, vector<4x16xf32> -> vector<4x16xf32>
    %1004 = arith.addf %1000, %1003 : vector<4x16xf32>
    %c0_885 = arith.constant 0 : index
    %c8_886 = arith.constant 8 : index
    %c0_887 = arith.constant 0 : index
    %1005 = vector.load %arg10[%c0_885, %c8_886, %c0_887] : memref<4x10x18xf32, #tpu.memory_space<vmem>>, vector<4x1x16xf32>
    %1006 = vector.shape_cast %1005 : vector<4x1x16xf32> to vector<4x16xf32>
    %c0_888 = arith.constant 0 : index
    %c8_889 = arith.constant 8 : index
    %c1_890 = arith.constant 1 : index
    %1007 = vector.load %arg10[%c0_888, %c8_889, %c1_890] : memref<4x10x18xf32, #tpu.memory_space<vmem>>, vector<4x1x16xf32>
    %1008 = vector.shape_cast %1007 : vector<4x1x16xf32> to vector<4x16xf32>
    %c0_891 = arith.constant 0 : index
    %c8_892 = arith.constant 8 : index
    %c2_893 = arith.constant 2 : index
    %1009 = vector.load %arg10[%c0_891, %c8_892, %c2_893] : memref<4x10x18xf32, #tpu.memory_space<vmem>>, vector<4x1x16xf32>
    %1010 = vector.shape_cast %1009 : vector<4x1x16xf32> to vector<4x16xf32>
    %c10_894 = arith.constant 10 : index
    %c0_895 = arith.constant 0 : index
    %c0_896 = arith.constant 0 : index
    %1011 = vector.load %arg5[%c10_894, %c0_895, %c0_896] : memref<16x4x4xf32, #tpu.memory_space<vmem>>, vector<1x4x4xf32>
    %1012 = vector.shape_cast %1011 : vector<1x4x4xf32> to vector<4x4xf32>
    %cst_897 = arith.constant dense<0.000000e+00> : vector<4x16xf32>
    %1013 = tpu.matmul %1012, %1006, %cst_897 {dimension_numbers = #tpu.dot_dimension_numbers<[1], [0], [0], [1], [0, 0, 1, 1], [], []>} : vector<4x4xf32>, vector<4x16xf32>, vector<4x16xf32> -> vector<4x16xf32>
    %1014 = arith.addf %996, %1013 : vector<4x16xf32>
    %c11_898 = arith.constant 11 : index
    %c0_899 = arith.constant 0 : index
    %c0_900 = arith.constant 0 : index
    %1015 = vector.load %arg5[%c11_898, %c0_899, %c0_900] : memref<16x4x4xf32, #tpu.memory_space<vmem>>, vector<1x4x4xf32>
    %1016 = vector.shape_cast %1015 : vector<1x4x4xf32> to vector<4x4xf32>
    %cst_901 = arith.constant dense<0.000000e+00> : vector<4x16xf32>
    %1017 = tpu.matmul %1016, %1008, %cst_901 {dimension_numbers = #tpu.dot_dimension_numbers<[1], [0], [0], [1], [0, 0, 1, 1], [], []>} : vector<4x4xf32>, vector<4x16xf32>, vector<4x16xf32> -> vector<4x16xf32>
    %1018 = arith.addf %1014, %1017 : vector<4x16xf32>
    %c14_902 = arith.constant 14 : index
    %c0_903 = arith.constant 0 : index
    %c0_904 = arith.constant 0 : index
    %1019 = vector.load %arg5[%c14_902, %c0_903, %c0_904] : memref<16x4x4xf32, #tpu.memory_space<vmem>>, vector<1x4x4xf32>
    %1020 = vector.shape_cast %1019 : vector<1x4x4xf32> to vector<4x4xf32>
    %cst_905 = arith.constant dense<0.000000e+00> : vector<4x16xf32>
    %1021 = tpu.matmul %1020, %1008, %cst_905 {dimension_numbers = #tpu.dot_dimension_numbers<[1], [0], [0], [1], [0, 0, 1, 1], [], []>} : vector<4x4xf32>, vector<4x16xf32>, vector<4x16xf32> -> vector<4x16xf32>
    %1022 = arith.addf %1004, %1021 : vector<4x16xf32>
    %c15_906 = arith.constant 15 : index
    %c0_907 = arith.constant 0 : index
    %c0_908 = arith.constant 0 : index
    %1023 = vector.load %arg5[%c15_906, %c0_907, %c0_908] : memref<16x4x4xf32, #tpu.memory_space<vmem>>, vector<1x4x4xf32>
    %1024 = vector.shape_cast %1023 : vector<1x4x4xf32> to vector<4x4xf32>
    %cst_909 = arith.constant dense<0.000000e+00> : vector<4x16xf32>
    %1025 = tpu.matmul %1024, %1010, %cst_909 {dimension_numbers = #tpu.dot_dimension_numbers<[1], [0], [0], [1], [0, 0, 1, 1], [], []>} : vector<4x4xf32>, vector<4x16xf32>, vector<4x16xf32> -> vector<4x16xf32>
    %1026 = arith.addf %1022, %1025 : vector<4x16xf32>
    %cst_910 = arith.constant dense<0.000000e+00> : vector<4x32xf32>
    %1027 = tpu.matmul %1018, %31, %cst_910 {dimension_numbers = #tpu.dot_dimension_numbers<[1], [0], [0], [1], [0, 0, 1, 1], [], []>} : vector<4x16xf32>, vector<16x32xf32>, vector<4x32xf32> -> vector<4x32xf32>
    %cst_911 = arith.constant dense<0.000000e+00> : vector<4x32xf32>
    %1028 = tpu.matmul %1026, %38, %cst_911 {dimension_numbers = #tpu.dot_dimension_numbers<[1], [0], [0], [1], [0, 0, 1, 1], [], []>} : vector<4x16xf32>, vector<16x32xf32>, vector<4x32xf32> -> vector<4x32xf32>
    %1029 = arith.addf %1027, %1028 : vector<4x32xf32>
    %1030 = vector.broadcast %39 : vector<4x1xf32> to vector<4x32xf32>
    %1031 = arith.addf %1029, %1030 : vector<4x32xf32>
    %cst_912 = arith.constant 0.000000e+00 : f32
    %1032 = vector.broadcast %cst_912 : f32 to vector<4x32xf32>
    %1033 = arith.cmpf oge, %1031, %1032 : vector<4x32xf32>
    %cst_913 = arith.constant 2.000000e-01 : f32
    %1034 = vector.broadcast %cst_913 : f32 to vector<4x32xf32>
    %1035 = arith.mulf %1034, %1031 : vector<4x32xf32>
    %1036 = arith.select %1033, %1031, %1035 : vector<4x32xi1>, vector<4x32xf32>
    %1037 = arith.mulf %1036, %1036 : vector<4x32xf32>
    %cst_914 = arith.constant dense<0.000000e+00> : vector<32xf32>
    %1038 = vector.multi_reduction <add>, %1037, %cst_914 [0] : vector<4x32xf32> to vector<32xf32>
    %1039 = vector.shape_cast %1038 : vector<32xf32> to vector<1x32xf32>
    %cst_915 = arith.constant 4.000000e+00 : f32
    %1040 = vector.broadcast %cst_915 : f32 to vector<1x32xf32>
    %1041 = arith.divf %1039, %1040 : vector<1x32xf32>
    %cst_916 = arith.constant 9.99999993E-9 : f32
    %1042 = vector.broadcast %cst_916 : f32 to vector<1x32xf32>
    %1043 = arith.addf %1041, %1042 : vector<1x32xf32>
    %1044 = math.rsqrt %1043 : vector<1x32xf32>
    %1045 = vector.broadcast %1044 : vector<1x32xf32> to vector<4x32xf32>
    %1046 = arith.mulf %1036, %1045 : vector<4x32xf32>
    %c0_917 = arith.constant 0 : index
    %c477 = arith.constant 477 : index
    %1047 = vector.load %arg11[%c0_917, %c477] : memref<4x614xf32, #tpu.memory_space<vmem>>, vector<4x32xf32>
    tpu.vector_store %arg11[%c0_917, %c477], %1046 {strides = array<i32>} : memref<4x614xf32, #tpu.memory_space<vmem>>, vector<4x32xf32>,
    %cst_918 = arith.constant 0.000000e+00 : f32
    %1048 = vector.broadcast %cst_918 : f32 to vector<4x16xf32>
    %cst_919 = arith.constant 0.000000e+00 : f32
    %1049 = vector.broadcast %cst_919 : f32 to vector<4x16xf32>
    %c0_920 = arith.constant 0 : index
    %c7_921 = arith.constant 7 : index
    %c0_922 = arith.constant 0 : index
    %1050 = vector.load %arg10[%c0_920, %c7_921, %c0_922] : memref<4x10x18xf32, #tpu.memory_space<vmem>>, vector<4x1x16xf32>
    %1051 = vector.shape_cast %1050 : vector<4x1x16xf32> to vector<4x16xf32>
    %c0_923 = arith.constant 0 : index
    %c7_924 = arith.constant 7 : index
    %c1_925 = arith.constant 1 : index
    %1052 = vector.load %arg10[%c0_923, %c7_924, %c1_925] : memref<4x10x18xf32, #tpu.memory_space<vmem>>, vector<4x1x16xf32>
    %1053 = vector.shape_cast %1052 : vector<4x1x16xf32> to vector<4x16xf32>
    %c0_926 = arith.constant 0 : index
    %c7_927 = arith.constant 7 : index
    %c2_928 = arith.constant 2 : index
    %1054 = vector.load %arg10[%c0_926, %c7_927, %c2_928] : memref<4x10x18xf32, #tpu.memory_space<vmem>>, vector<4x1x16xf32>
    %1055 = vector.shape_cast %1054 : vector<4x1x16xf32> to vector<4x16xf32>
    %c0_929 = arith.constant 0 : index
    %c0_930 = arith.constant 0 : index
    %c0_931 = arith.constant 0 : index
    %1056 = vector.load %arg5[%c0_929, %c0_930, %c0_931] : memref<16x4x4xf32, #tpu.memory_space<vmem>>, vector<1x4x4xf32>
    %1057 = vector.shape_cast %1056 : vector<1x4x4xf32> to vector<4x4xf32>
    %cst_932 = arith.constant dense<0.000000e+00> : vector<4x16xf32>
    %1058 = tpu.matmul %1057, %1051, %cst_932 {dimension_numbers = #tpu.dot_dimension_numbers<[1], [0], [0], [1], [0, 0, 1, 1], [], []>} : vector<4x4xf32>, vector<4x16xf32>, vector<4x16xf32> -> vector<4x16xf32>
    %1059 = arith.addf %1048, %1058 : vector<4x16xf32>
    %c1_933 = arith.constant 1 : index
    %c0_934 = arith.constant 0 : index
    %c0_935 = arith.constant 0 : index
    %1060 = vector.load %arg5[%c1_933, %c0_934, %c0_935] : memref<16x4x4xf32, #tpu.memory_space<vmem>>, vector<1x4x4xf32>
    %1061 = vector.shape_cast %1060 : vector<1x4x4xf32> to vector<4x4xf32>
    %cst_936 = arith.constant dense<0.000000e+00> : vector<4x16xf32>
    %1062 = tpu.matmul %1061, %1053, %cst_936 {dimension_numbers = #tpu.dot_dimension_numbers<[1], [0], [0], [1], [0, 0, 1, 1], [], []>} : vector<4x4xf32>, vector<4x16xf32>, vector<4x16xf32> -> vector<4x16xf32>
    %1063 = arith.addf %1059, %1062 : vector<4x16xf32>
    %c4_937 = arith.constant 4 : index
    %c0_938 = arith.constant 0 : index
    %c0_939 = arith.constant 0 : index
    %1064 = vector.load %arg5[%c4_937, %c0_938, %c0_939] : memref<16x4x4xf32, #tpu.memory_space<vmem>>, vector<1x4x4xf32>
    %1065 = vector.shape_cast %1064 : vector<1x4x4xf32> to vector<4x4xf32>
    %cst_940 = arith.constant dense<0.000000e+00> : vector<4x16xf32>
    %1066 = tpu.matmul %1065, %1053, %cst_940 {dimension_numbers = #tpu.dot_dimension_numbers<[1], [0], [0], [1], [0, 0, 1, 1], [], []>} : vector<4x4xf32>, vector<4x16xf32>, vector<4x16xf32> -> vector<4x16xf32>
    %1067 = arith.addf %1049, %1066 : vector<4x16xf32>
    %c5_941 = arith.constant 5 : index
    %c0_942 = arith.constant 0 : index
    %c0_943 = arith.constant 0 : index
    %1068 = vector.load %arg5[%c5_941, %c0_942, %c0_943] : memref<16x4x4xf32, #tpu.memory_space<vmem>>, vector<1x4x4xf32>
    %1069 = vector.shape_cast %1068 : vector<1x4x4xf32> to vector<4x4xf32>
    %cst_944 = arith.constant dense<0.000000e+00> : vector<4x16xf32>
    %1070 = tpu.matmul %1069, %1055, %cst_944 {dimension_numbers = #tpu.dot_dimension_numbers<[1], [0], [0], [1], [0, 0, 1, 1], [], []>} : vector<4x4xf32>, vector<4x16xf32>, vector<4x16xf32> -> vector<4x16xf32>
    %1071 = arith.addf %1067, %1070 : vector<4x16xf32>
    %c0_945 = arith.constant 0 : index
    %c8_946 = arith.constant 8 : index
    %c0_947 = arith.constant 0 : index
    %1072 = vector.load %arg10[%c0_945, %c8_946, %c0_947] : memref<4x10x18xf32, #tpu.memory_space<vmem>>, vector<4x1x16xf32>
    %1073 = vector.shape_cast %1072 : vector<4x1x16xf32> to vector<4x16xf32>
    %c0_948 = arith.constant 0 : index
    %c8_949 = arith.constant 8 : index
    %c1_950 = arith.constant 1 : index
    %1074 = vector.load %arg10[%c0_948, %c8_949, %c1_950] : memref<4x10x18xf32, #tpu.memory_space<vmem>>, vector<4x1x16xf32>
    %1075 = vector.shape_cast %1074 : vector<4x1x16xf32> to vector<4x16xf32>
    %c0_951 = arith.constant 0 : index
    %c8_952 = arith.constant 8 : index
    %c2_953 = arith.constant 2 : index
    %1076 = vector.load %arg10[%c0_951, %c8_952, %c2_953] : memref<4x10x18xf32, #tpu.memory_space<vmem>>, vector<4x1x16xf32>
    %1077 = vector.shape_cast %1076 : vector<4x1x16xf32> to vector<4x16xf32>
    %c2_954 = arith.constant 2 : index
    %c0_955 = arith.constant 0 : index
    %c0_956 = arith.constant 0 : index
    %1078 = vector.load %arg5[%c2_954, %c0_955, %c0_956] : memref<16x4x4xf32, #tpu.memory_space<vmem>>, vector<1x4x4xf32>
    %1079 = vector.shape_cast %1078 : vector<1x4x4xf32> to vector<4x4xf32>
    %cst_957 = arith.constant dense<0.000000e+00> : vector<4x16xf32>
    %1080 = tpu.matmul %1079, %1073, %cst_957 {dimension_numbers = #tpu.dot_dimension_numbers<[1], [0], [0], [1], [0, 0, 1, 1], [], []>} : vector<4x4xf32>, vector<4x16xf32>, vector<4x16xf32> -> vector<4x16xf32>
    %1081 = arith.addf %1063, %1080 : vector<4x16xf32>
    %c3_958 = arith.constant 3 : index
    %c0_959 = arith.constant 0 : index
    %c0_960 = arith.constant 0 : index
    %1082 = vector.load %arg5[%c3_958, %c0_959, %c0_960] : memref<16x4x4xf32, #tpu.memory_space<vmem>>, vector<1x4x4xf32>
    %1083 = vector.shape_cast %1082 : vector<1x4x4xf32> to vector<4x4xf32>
    %cst_961 = arith.constant dense<0.000000e+00> : vector<4x16xf32>
    %1084 = tpu.matmul %1083, %1075, %cst_961 {dimension_numbers = #tpu.dot_dimension_numbers<[1], [0], [0], [1], [0, 0, 1, 1], [], []>} : vector<4x4xf32>, vector<4x16xf32>, vector<4x16xf32> -> vector<4x16xf32>
    %1085 = arith.addf %1081, %1084 : vector<4x16xf32>
    %c6_962 = arith.constant 6 : index
    %c0_963 = arith.constant 0 : index
    %c0_964 = arith.constant 0 : index
    %1086 = vector.load %arg5[%c6_962, %c0_963, %c0_964] : memref<16x4x4xf32, #tpu.memory_space<vmem>>, vector<1x4x4xf32>
    %1087 = vector.shape_cast %1086 : vector<1x4x4xf32> to vector<4x4xf32>
    %cst_965 = arith.constant dense<0.000000e+00> : vector<4x16xf32>
    %1088 = tpu.matmul %1087, %1075, %cst_965 {dimension_numbers = #tpu.dot_dimension_numbers<[1], [0], [0], [1], [0, 0, 1, 1], [], []>} : vector<4x4xf32>, vector<4x16xf32>, vector<4x16xf32> -> vector<4x16xf32>
    %1089 = arith.addf %1071, %1088 : vector<4x16xf32>
    %c7_966 = arith.constant 7 : index
    %c0_967 = arith.constant 0 : index
    %c0_968 = arith.constant 0 : index
    %1090 = vector.load %arg5[%c7_966, %c0_967, %c0_968] : memref<16x4x4xf32, #tpu.memory_space<vmem>>, vector<1x4x4xf32>
    %1091 = vector.shape_cast %1090 : vector<1x4x4xf32> to vector<4x4xf32>
    %cst_969 = arith.constant dense<0.000000e+00> : vector<4x16xf32>
    %1092 = tpu.matmul %1091, %1077, %cst_969 {dimension_numbers = #tpu.dot_dimension_numbers<[1], [0], [0], [1], [0, 0, 1, 1], [], []>} : vector<4x4xf32>, vector<4x16xf32>, vector<4x16xf32> -> vector<4x16xf32>
    %1093 = arith.addf %1089, %1092 : vector<4x16xf32>
    %cst_970 = arith.constant dense<0.000000e+00> : vector<4x32xf32>
    %1094 = tpu.matmul %1085, %31, %cst_970 {dimension_numbers = #tpu.dot_dimension_numbers<[1], [0], [0], [1], [0, 0, 1, 1], [], []>} : vector<4x16xf32>, vector<16x32xf32>, vector<4x32xf32> -> vector<4x32xf32>
    %cst_971 = arith.constant dense<0.000000e+00> : vector<4x32xf32>
    %1095 = tpu.matmul %1093, %38, %cst_971 {dimension_numbers = #tpu.dot_dimension_numbers<[1], [0], [0], [1], [0, 0, 1, 1], [], []>} : vector<4x16xf32>, vector<16x32xf32>, vector<4x32xf32> -> vector<4x32xf32>
    %1096 = arith.addf %1094, %1095 : vector<4x32xf32>
    %1097 = vector.broadcast %39 : vector<4x1xf32> to vector<4x32xf32>
    %1098 = arith.addf %1096, %1097 : vector<4x32xf32>
    %cst_972 = arith.constant 0.000000e+00 : f32
    %1099 = vector.broadcast %cst_972 : f32 to vector<4x32xf32>
    %1100 = arith.cmpf oge, %1098, %1099 : vector<4x32xf32>
    %cst_973 = arith.constant 2.000000e-01 : f32
    %1101 = vector.broadcast %cst_973 : f32 to vector<4x32xf32>
    %1102 = arith.mulf %1101, %1098 : vector<4x32xf32>
    %1103 = arith.select %1100, %1098, %1102 : vector<4x32xi1>, vector<4x32xf32>
    %1104 = arith.mulf %1103, %1103 : vector<4x32xf32>
    %cst_974 = arith.constant dense<0.000000e+00> : vector<32xf32>
    %1105 = vector.multi_reduction <add>, %1104, %cst_974 [0] : vector<4x32xf32> to vector<32xf32>
    %1106 = vector.shape_cast %1105 : vector<32xf32> to vector<1x32xf32>
    %cst_975 = arith.constant 4.000000e+00 : f32
    %1107 = vector.broadcast %cst_975 : f32 to vector<1x32xf32>
    %1108 = arith.divf %1106, %1107 : vector<1x32xf32>
    %cst_976 = arith.constant 9.99999993E-9 : f32
    %1109 = vector.broadcast %cst_976 : f32 to vector<1x32xf32>
    %1110 = arith.addf %1108, %1109 : vector<1x32xf32>
    %1111 = math.rsqrt %1110 : vector<1x32xf32>
    %1112 = vector.broadcast %1111 : vector<1x32xf32> to vector<4x32xf32>
    %1113 = arith.mulf %1103, %1112 : vector<4x32xf32>
    %c0_977 = arith.constant 0 : index
    %c511 = arith.constant 511 : index
    %1114 = vector.load %arg11[%c0_977, %c511] : memref<4x614xf32, #tpu.memory_space<vmem>>, vector<4x32xf32>
    tpu.vector_store %arg11[%c0_977, %c511], %1113 {strides = array<i32>} : memref<4x614xf32, #tpu.memory_space<vmem>>, vector<4x32xf32>,
    %cst_978 = arith.constant 0.000000e+00 : f32
    %1115 = vector.broadcast %cst_978 : f32 to vector<4x16xf32>
    %cst_979 = arith.constant 0.000000e+00 : f32
    %1116 = vector.broadcast %cst_979 : f32 to vector<4x16xf32>
    %c0_980 = arith.constant 0 : index
    %c8_981 = arith.constant 8 : index
    %c0_982 = arith.constant 0 : index
    %1117 = vector.load %arg10[%c0_980, %c8_981, %c0_982] : memref<4x10x18xf32, #tpu.memory_space<vmem>>, vector<4x1x16xf32>
    %1118 = vector.shape_cast %1117 : vector<4x1x16xf32> to vector<4x16xf32>
    %c0_983 = arith.constant 0 : index
    %c8_984 = arith.constant 8 : index
    %c1_985 = arith.constant 1 : index
    %1119 = vector.load %arg10[%c0_983, %c8_984, %c1_985] : memref<4x10x18xf32, #tpu.memory_space<vmem>>, vector<4x1x16xf32>
    %1120 = vector.shape_cast %1119 : vector<4x1x16xf32> to vector<4x16xf32>
    %c0_986 = arith.constant 0 : index
    %c8_987 = arith.constant 8 : index
    %c2_988 = arith.constant 2 : index
    %1121 = vector.load %arg10[%c0_986, %c8_987, %c2_988] : memref<4x10x18xf32, #tpu.memory_space<vmem>>, vector<4x1x16xf32>
    %1122 = vector.shape_cast %1121 : vector<4x1x16xf32> to vector<4x16xf32>
    %c8_989 = arith.constant 8 : index
    %c0_990 = arith.constant 0 : index
    %c0_991 = arith.constant 0 : index
    %1123 = vector.load %arg5[%c8_989, %c0_990, %c0_991] : memref<16x4x4xf32, #tpu.memory_space<vmem>>, vector<1x4x4xf32>
    %1124 = vector.shape_cast %1123 : vector<1x4x4xf32> to vector<4x4xf32>
    %cst_992 = arith.constant dense<0.000000e+00> : vector<4x16xf32>
    %1125 = tpu.matmul %1124, %1118, %cst_992 {dimension_numbers = #tpu.dot_dimension_numbers<[1], [0], [0], [1], [0, 0, 1, 1], [], []>} : vector<4x4xf32>, vector<4x16xf32>, vector<4x16xf32> -> vector<4x16xf32>
    %1126 = arith.addf %1115, %1125 : vector<4x16xf32>
    %c9_993 = arith.constant 9 : index
    %c0_994 = arith.constant 0 : index
    %c0_995 = arith.constant 0 : index
    %1127 = vector.load %arg5[%c9_993, %c0_994, %c0_995] : memref<16x4x4xf32, #tpu.memory_space<vmem>>, vector<1x4x4xf32>
    %1128 = vector.shape_cast %1127 : vector<1x4x4xf32> to vector<4x4xf32>
    %cst_996 = arith.constant dense<0.000000e+00> : vector<4x16xf32>
    %1129 = tpu.matmul %1128, %1120, %cst_996 {dimension_numbers = #tpu.dot_dimension_numbers<[1], [0], [0], [1], [0, 0, 1, 1], [], []>} : vector<4x4xf32>, vector<4x16xf32>, vector<4x16xf32> -> vector<4x16xf32>
    %1130 = arith.addf %1126, %1129 : vector<4x16xf32>
    %c12_997 = arith.constant 12 : index
    %c0_998 = arith.constant 0 : index
    %c0_999 = arith.constant 0 : index
    %1131 = vector.load %arg5[%c12_997, %c0_998, %c0_999] : memref<16x4x4xf32, #tpu.memory_space<vmem>>, vector<1x4x4xf32>
    %1132 = vector.shape_cast %1131 : vector<1x4x4xf32> to vector<4x4xf32>
    %cst_1000 = arith.constant dense<0.000000e+00> : vector<4x16xf32>
    %1133 = tpu.matmul %1132, %1120, %cst_1000 {dimension_numbers = #tpu.dot_dimension_numbers<[1], [0], [0], [1], [0, 0, 1, 1], [], []>} : vector<4x4xf32>, vector<4x16xf32>, vector<4x16xf32> -> vector<4x16xf32>
    %1134 = arith.addf %1116, %1133 : vector<4x16xf32>
    %c13_1001 = arith.constant 13 : index
    %c0_1002 = arith.constant 0 : index
    %c0_1003 = arith.constant 0 : index
    %1135 = vector.load %arg5[%c13_1001, %c0_1002, %c0_1003] : memref<16x4x4xf32, #tpu.memory_space<vmem>>, vector<1x4x4xf32>
    %1136 = vector.shape_cast %1135 : vector<1x4x4xf32> to vector<4x4xf32>
    %cst_1004 = arith.constant dense<0.000000e+00> : vector<4x16xf32>
    %1137 = tpu.matmul %1136, %1122, %cst_1004 {dimension_numbers = #tpu.dot_dimension_numbers<[1], [0], [0], [1], [0, 0, 1, 1], [], []>} : vector<4x4xf32>, vector<4x16xf32>, vector<4x16xf32> -> vector<4x16xf32>
    %1138 = arith.addf %1134, %1137 : vector<4x16xf32>
    %c0_1005 = arith.constant 0 : index
    %c9_1006 = arith.constant 9 : index
    %c0_1007 = arith.constant 0 : index
    %1139 = vector.load %arg10[%c0_1005, %c9_1006, %c0_1007] : memref<4x10x18xf32, #tpu.memory_space<vmem>>, vector<4x1x16xf32>
    %1140 = vector.shape_cast %1139 : vector<4x1x16xf32> to vector<4x16xf32>
    %c0_1008 = arith.constant 0 : index
    %c9_1009 = arith.constant 9 : index
    %c1_1010 = arith.constant 1 : index
    %1141 = vector.load %arg10[%c0_1008, %c9_1009, %c1_1010] : memref<4x10x18xf32, #tpu.memory_space<vmem>>, vector<4x1x16xf32>
    %1142 = vector.shape_cast %1141 : vector<4x1x16xf32> to vector<4x16xf32>
    %c0_1011 = arith.constant 0 : index
    %c9_1012 = arith.constant 9 : index
    %c2_1013 = arith.constant 2 : index
    %1143 = vector.load %arg10[%c0_1011, %c9_1012, %c2_1013] : memref<4x10x18xf32, #tpu.memory_space<vmem>>, vector<4x1x16xf32>
    %1144 = vector.shape_cast %1143 : vector<4x1x16xf32> to vector<4x16xf32>
    %c10_1014 = arith.constant 10 : index
    %c0_1015 = arith.constant 0 : index
    %c0_1016 = arith.constant 0 : index
    %1145 = vector.load %arg5[%c10_1014, %c0_1015, %c0_1016] : memref<16x4x4xf32, #tpu.memory_space<vmem>>, vector<1x4x4xf32>
    %1146 = vector.shape_cast %1145 : vector<1x4x4xf32> to vector<4x4xf32>
    %cst_1017 = arith.constant dense<0.000000e+00> : vector<4x16xf32>
    %1147 = tpu.matmul %1146, %1140, %cst_1017 {dimension_numbers = #tpu.dot_dimension_numbers<[1], [0], [0], [1], [0, 0, 1, 1], [], []>} : vector<4x4xf32>, vector<4x16xf32>, vector<4x16xf32> -> vector<4x16xf32>
    %1148 = arith.addf %1130, %1147 : vector<4x16xf32>
    %c11_1018 = arith.constant 11 : index
    %c0_1019 = arith.constant 0 : index
    %c0_1020 = arith.constant 0 : index
    %1149 = vector.load %arg5[%c11_1018, %c0_1019, %c0_1020] : memref<16x4x4xf32, #tpu.memory_space<vmem>>, vector<1x4x4xf32>
    %1150 = vector.shape_cast %1149 : vector<1x4x4xf32> to vector<4x4xf32>
    %cst_1021 = arith.constant dense<0.000000e+00> : vector<4x16xf32>
    %1151 = tpu.matmul %1150, %1142, %cst_1021 {dimension_numbers = #tpu.dot_dimension_numbers<[1], [0], [0], [1], [0, 0, 1, 1], [], []>} : vector<4x4xf32>, vector<4x16xf32>, vector<4x16xf32> -> vector<4x16xf32>
    %1152 = arith.addf %1148, %1151 : vector<4x16xf32>
    %c14_1022 = arith.constant 14 : index
    %c0_1023 = arith.constant 0 : index
    %c0_1024 = arith.constant 0 : index
    %1153 = vector.load %arg5[%c14_1022, %c0_1023, %c0_1024] : memref<16x4x4xf32, #tpu.memory_space<vmem>>, vector<1x4x4xf32>
    %1154 = vector.shape_cast %1153 : vector<1x4x4xf32> to vector<4x4xf32>
    %cst_1025 = arith.constant dense<0.000000e+00> : vector<4x16xf32>
    %1155 = tpu.matmul %1154, %1142, %cst_1025 {dimension_numbers = #tpu.dot_dimension_numbers<[1], [0], [0], [1], [0, 0, 1, 1], [], []>} : vector<4x4xf32>, vector<4x16xf32>, vector<4x16xf32> -> vector<4x16xf32>
    %1156 = arith.addf %1138, %1155 : vector<4x16xf32>
    %c15_1026 = arith.constant 15 : index
    %c0_1027 = arith.constant 0 : index
    %c0_1028 = arith.constant 0 : index
    %1157 = vector.load %arg5[%c15_1026, %c0_1027, %c0_1028] : memref<16x4x4xf32, #tpu.memory_space<vmem>>, vector<1x4x4xf32>
    %1158 = vector.shape_cast %1157 : vector<1x4x4xf32> to vector<4x4xf32>
    %cst_1029 = arith.constant dense<0.000000e+00> : vector<4x16xf32>
    %1159 = tpu.matmul %1158, %1144, %cst_1029 {dimension_numbers = #tpu.dot_dimension_numbers<[1], [0], [0], [1], [0, 0, 1, 1], [], []>} : vector<4x4xf32>, vector<4x16xf32>, vector<4x16xf32> -> vector<4x16xf32>
    %1160 = arith.addf %1156, %1159 : vector<4x16xf32>
    %cst_1030 = arith.constant dense<0.000000e+00> : vector<4x32xf32>
    %1161 = tpu.matmul %1152, %31, %cst_1030 {dimension_numbers = #tpu.dot_dimension_numbers<[1], [0], [0], [1], [0, 0, 1, 1], [], []>} : vector<4x16xf32>, vector<16x32xf32>, vector<4x32xf32> -> vector<4x32xf32>
    %cst_1031 = arith.constant dense<0.000000e+00> : vector<4x32xf32>
    %1162 = tpu.matmul %1160, %38, %cst_1031 {dimension_numbers = #tpu.dot_dimension_numbers<[1], [0], [0], [1], [0, 0, 1, 1], [], []>} : vector<4x16xf32>, vector<16x32xf32>, vector<4x32xf32> -> vector<4x32xf32>
    %1163 = arith.addf %1161, %1162 : vector<4x32xf32>
    %1164 = vector.broadcast %39 : vector<4x1xf32> to vector<4x32xf32>
    %1165 = arith.addf %1163, %1164 : vector<4x32xf32>
    %cst_1032 = arith.constant 0.000000e+00 : f32
    %1166 = vector.broadcast %cst_1032 : f32 to vector<4x32xf32>
    %1167 = arith.cmpf oge, %1165, %1166 : vector<4x32xf32>
    %cst_1033 = arith.constant 2.000000e-01 : f32
    %1168 = vector.broadcast %cst_1033 : f32 to vector<4x32xf32>
    %1169 = arith.mulf %1168, %1165 : vector<4x32xf32>
    %1170 = arith.select %1167, %1165, %1169 : vector<4x32xi1>, vector<4x32xf32>
    %1171 = arith.mulf %1170, %1170 : vector<4x32xf32>
    %cst_1034 = arith.constant dense<0.000000e+00> : vector<32xf32>
    %1172 = vector.multi_reduction <add>, %1171, %cst_1034 [0] : vector<4x32xf32> to vector<32xf32>
    %1173 = vector.shape_cast %1172 : vector<32xf32> to vector<1x32xf32>
    %cst_1035 = arith.constant 4.000000e+00 : f32
    %1174 = vector.broadcast %cst_1035 : f32 to vector<1x32xf32>
    %1175 = arith.divf %1173, %1174 : vector<1x32xf32>
    %cst_1036 = arith.constant 9.99999993E-9 : f32
    %1176 = vector.broadcast %cst_1036 : f32 to vector<1x32xf32>
    %1177 = arith.addf %1175, %1176 : vector<1x32xf32>
    %1178 = math.rsqrt %1177 : vector<1x32xf32>
    %1179 = vector.broadcast %1178 : vector<1x32xf32> to vector<4x32xf32>
    %1180 = arith.mulf %1170, %1179 : vector<4x32xf32>
    %c0_1037 = arith.constant 0 : index
    %c545 = arith.constant 545 : index
    %1181 = vector.load %arg11[%c0_1037, %c545] : memref<4x614xf32, #tpu.memory_space<vmem>>, vector<4x32xf32>
    tpu.vector_store %arg11[%c0_1037, %c545], %1180 {strides = array<i32>} : memref<4x614xf32, #tpu.memory_space<vmem>>, vector<4x32xf32>,
    %cst_1038 = arith.constant 0.000000e+00 : f32
    %1182 = vector.broadcast %cst_1038 : f32 to vector<4x16xf32>
    %cst_1039 = arith.constant 0.000000e+00 : f32
    %1183 = vector.broadcast %cst_1039 : f32 to vector<4x16xf32>
    %c0_1040 = arith.constant 0 : index
    %c8_1041 = arith.constant 8 : index
    %c0_1042 = arith.constant 0 : index
    %1184 = vector.load %arg10[%c0_1040, %c8_1041, %c0_1042] : memref<4x10x18xf32, #tpu.memory_space<vmem>>, vector<4x1x16xf32>
    %1185 = vector.shape_cast %1184 : vector<4x1x16xf32> to vector<4x16xf32>
    %c0_1043 = arith.constant 0 : index
    %c8_1044 = arith.constant 8 : index
    %c1_1045 = arith.constant 1 : index
    %1186 = vector.load %arg10[%c0_1043, %c8_1044, %c1_1045] : memref<4x10x18xf32, #tpu.memory_space<vmem>>, vector<4x1x16xf32>
    %1187 = vector.shape_cast %1186 : vector<4x1x16xf32> to vector<4x16xf32>
    %c0_1046 = arith.constant 0 : index
    %c8_1047 = arith.constant 8 : index
    %c2_1048 = arith.constant 2 : index
    %1188 = vector.load %arg10[%c0_1046, %c8_1047, %c2_1048] : memref<4x10x18xf32, #tpu.memory_space<vmem>>, vector<4x1x16xf32>
    %1189 = vector.shape_cast %1188 : vector<4x1x16xf32> to vector<4x16xf32>
    %c0_1049 = arith.constant 0 : index
    %c0_1050 = arith.constant 0 : index
    %c0_1051 = arith.constant 0 : index
    %1190 = vector.load %arg5[%c0_1049, %c0_1050, %c0_1051] : memref<16x4x4xf32, #tpu.memory_space<vmem>>, vector<1x4x4xf32>
    %1191 = vector.shape_cast %1190 : vector<1x4x4xf32> to vector<4x4xf32>
    %cst_1052 = arith.constant dense<0.000000e+00> : vector<4x16xf32>
    %1192 = tpu.matmul %1191, %1185, %cst_1052 {dimension_numbers = #tpu.dot_dimension_numbers<[1], [0], [0], [1], [0, 0, 1, 1], [], []>} : vector<4x4xf32>, vector<4x16xf32>, vector<4x16xf32> -> vector<4x16xf32>
    %1193 = arith.addf %1182, %1192 : vector<4x16xf32>
    %c1_1053 = arith.constant 1 : index
    %c0_1054 = arith.constant 0 : index
    %c0_1055 = arith.constant 0 : index
    %1194 = vector.load %arg5[%c1_1053, %c0_1054, %c0_1055] : memref<16x4x4xf32, #tpu.memory_space<vmem>>, vector<1x4x4xf32>
    %1195 = vector.shape_cast %1194 : vector<1x4x4xf32> to vector<4x4xf32>
    %cst_1056 = arith.constant dense<0.000000e+00> : vector<4x16xf32>
    %1196 = tpu.matmul %1195, %1187, %cst_1056 {dimension_numbers = #tpu.dot_dimension_numbers<[1], [0], [0], [1], [0, 0, 1, 1], [], []>} : vector<4x4xf32>, vector<4x16xf32>, vector<4x16xf32> -> vector<4x16xf32>
    %1197 = arith.addf %1193, %1196 : vector<4x16xf32>
    %c4_1057 = arith.constant 4 : index
    %c0_1058 = arith.constant 0 : index
    %c0_1059 = arith.constant 0 : index
    %1198 = vector.load %arg5[%c4_1057, %c0_1058, %c0_1059] : memref<16x4x4xf32, #tpu.memory_space<vmem>>, vector<1x4x4xf32>
    %1199 = vector.shape_cast %1198 : vector<1x4x4xf32> to vector<4x4xf32>
    %cst_1060 = arith.constant dense<0.000000e+00> : vector<4x16xf32>
    %1200 = tpu.matmul %1199, %1187, %cst_1060 {dimension_numbers = #tpu.dot_dimension_numbers<[1], [0], [0], [1], [0, 0, 1, 1], [], []>} : vector<4x4xf32>, vector<4x16xf32>, vector<4x16xf32> -> vector<4x16xf32>
    %1201 = arith.addf %1183, %1200 : vector<4x16xf32>
    %c5_1061 = arith.constant 5 : index
    %c0_1062 = arith.constant 0 : index
    %c0_1063 = arith.constant 0 : index
    %1202 = vector.load %arg5[%c5_1061, %c0_1062, %c0_1063] : memref<16x4x4xf32, #tpu.memory_space<vmem>>, vector<1x4x4xf32>
    %1203 = vector.shape_cast %1202 : vector<1x4x4xf32> to vector<4x4xf32>
    %cst_1064 = arith.constant dense<0.000000e+00> : vector<4x16xf32>
    %1204 = tpu.matmul %1203, %1189, %cst_1064 {dimension_numbers = #tpu.dot_dimension_numbers<[1], [0], [0], [1], [0, 0, 1, 1], [], []>} : vector<4x4xf32>, vector<4x16xf32>, vector<4x16xf32> -> vector<4x16xf32>
    %1205 = arith.addf %1201, %1204 : vector<4x16xf32>
    %c0_1065 = arith.constant 0 : index
    %c9_1066 = arith.constant 9 : index
    %c0_1067 = arith.constant 0 : index
    %1206 = vector.load %arg10[%c0_1065, %c9_1066, %c0_1067] : memref<4x10x18xf32, #tpu.memory_space<vmem>>, vector<4x1x16xf32>
    %1207 = vector.shape_cast %1206 : vector<4x1x16xf32> to vector<4x16xf32>
    %c0_1068 = arith.constant 0 : index
    %c9_1069 = arith.constant 9 : index
    %c1_1070 = arith.constant 1 : index
    %1208 = vector.load %arg10[%c0_1068, %c9_1069, %c1_1070] : memref<4x10x18xf32, #tpu.memory_space<vmem>>, vector<4x1x16xf32>
    %1209 = vector.shape_cast %1208 : vector<4x1x16xf32> to vector<4x16xf32>
    %c0_1071 = arith.constant 0 : index
    %c9_1072 = arith.constant 9 : index
    %c2_1073 = arith.constant 2 : index
    %1210 = vector.load %arg10[%c0_1071, %c9_1072, %c2_1073] : memref<4x10x18xf32, #tpu.memory_space<vmem>>, vector<4x1x16xf32>
    %1211 = vector.shape_cast %1210 : vector<4x1x16xf32> to vector<4x16xf32>
    %c2_1074 = arith.constant 2 : index
    %c0_1075 = arith.constant 0 : index
    %c0_1076 = arith.constant 0 : index
    %1212 = vector.load %arg5[%c2_1074, %c0_1075, %c0_1076] : memref<16x4x4xf32, #tpu.memory_space<vmem>>, vector<1x4x4xf32>
    %1213 = vector.shape_cast %1212 : vector<1x4x4xf32> to vector<4x4xf32>
    %cst_1077 = arith.constant dense<0.000000e+00> : vector<4x16xf32>
    %1214 = tpu.matmul %1213, %1207, %cst_1077 {dimension_numbers = #tpu.dot_dimension_numbers<[1], [0], [0], [1], [0, 0, 1, 1], [], []>} : vector<4x4xf32>, vector<4x16xf32>, vector<4x16xf32> -> vector<4x16xf32>
    %1215 = arith.addf %1197, %1214 : vector<4x16xf32>
    %c3_1078 = arith.constant 3 : index
    %c0_1079 = arith.constant 0 : index
    %c0_1080 = arith.constant 0 : index
    %1216 = vector.load %arg5[%c3_1078, %c0_1079, %c0_1080] : memref<16x4x4xf32, #tpu.memory_space<vmem>>, vector<1x4x4xf32>
    %1217 = vector.shape_cast %1216 : vector<1x4x4xf32> to vector<4x4xf32>
    %cst_1081 = arith.constant dense<0.000000e+00> : vector<4x16xf32>
    %1218 = tpu.matmul %1217, %1209, %cst_1081 {dimension_numbers = #tpu.dot_dimension_numbers<[1], [0], [0], [1], [0, 0, 1, 1], [], []>} : vector<4x4xf32>, vector<4x16xf32>, vector<4x16xf32> -> vector<4x16xf32>
    %1219 = arith.addf %1215, %1218 : vector<4x16xf32>
    %c6_1082 = arith.constant 6 : index
    %c0_1083 = arith.constant 0 : index
    %c0_1084 = arith.constant 0 : index
    %1220 = vector.load %arg5[%c6_1082, %c0_1083, %c0_1084] : memref<16x4x4xf32, #tpu.memory_space<vmem>>, vector<1x4x4xf32>
    %1221 = vector.shape_cast %1220 : vector<1x4x4xf32> to vector<4x4xf32>
    %cst_1085 = arith.constant dense<0.000000e+00> : vector<4x16xf32>
    %1222 = tpu.matmul %1221, %1209, %cst_1085 {dimension_numbers = #tpu.dot_dimension_numbers<[1], [0], [0], [1], [0, 0, 1, 1], [], []>} : vector<4x4xf32>, vector<4x16xf32>, vector<4x16xf32> -> vector<4x16xf32>
    %1223 = arith.addf %1205, %1222 : vector<4x16xf32>
    %c7_1086 = arith.constant 7 : index
    %c0_1087 = arith.constant 0 : index
    %c0_1088 = arith.constant 0 : index
    %1224 = vector.load %arg5[%c7_1086, %c0_1087, %c0_1088] : memref<16x4x4xf32, #tpu.memory_space<vmem>>, vector<1x4x4xf32>
    %1225 = vector.shape_cast %1224 : vector<1x4x4xf32> to vector<4x4xf32>
    %cst_1089 = arith.constant dense<0.000000e+00> : vector<4x16xf32>
    %1226 = tpu.matmul %1225, %1211, %cst_1089 {dimension_numbers = #tpu.dot_dimension_numbers<[1], [0], [0], [1], [0, 0, 1, 1], [], []>} : vector<4x4xf32>, vector<4x16xf32>, vector<4x16xf32> -> vector<4x16xf32>
    %1227 = arith.addf %1223, %1226 : vector<4x16xf32>
    %cst_1090 = arith.constant dense<0.000000e+00> : vector<4x32xf32>
    %1228 = tpu.matmul %1219, %31, %cst_1090 {dimension_numbers = #tpu.dot_dimension_numbers<[1], [0], [0], [1], [0, 0, 1, 1], [], []>} : vector<4x16xf32>, vector<16x32xf32>, vector<4x32xf32> -> vector<4x32xf32>
    %cst_1091 = arith.constant dense<0.000000e+00> : vector<4x32xf32>
    %1229 = tpu.matmul %1227, %38, %cst_1091 {dimension_numbers = #tpu.dot_dimension_numbers<[1], [0], [0], [1], [0, 0, 1, 1], [], []>} : vector<4x16xf32>, vector<16x32xf32>, vector<4x32xf32> -> vector<4x32xf32>
    %1230 = arith.addf %1228, %1229 : vector<4x32xf32>
    %1231 = vector.broadcast %39 : vector<4x1xf32> to vector<4x32xf32>
    %1232 = arith.addf %1230, %1231 : vector<4x32xf32>
    %cst_1092 = arith.constant 0.000000e+00 : f32
    %1233 = vector.broadcast %cst_1092 : f32 to vector<4x32xf32>
    %1234 = arith.cmpf oge, %1232, %1233 : vector<4x32xf32>
    %cst_1093 = arith.constant 2.000000e-01 : f32
    %1235 = vector.broadcast %cst_1093 : f32 to vector<4x32xf32>
    %1236 = arith.mulf %1235, %1232 : vector<4x32xf32>
    %1237 = arith.select %1234, %1232, %1236 : vector<4x32xi1>, vector<4x32xf32>
    %1238 = arith.mulf %1237, %1237 : vector<4x32xf32>
    %cst_1094 = arith.constant dense<0.000000e+00> : vector<32xf32>
    %1239 = vector.multi_reduction <add>, %1238, %cst_1094 [0] : vector<4x32xf32> to vector<32xf32>
    %1240 = vector.shape_cast %1239 : vector<32xf32> to vector<1x32xf32>
    %cst_1095 = arith.constant 4.000000e+00 : f32
    %1241 = vector.broadcast %cst_1095 : f32 to vector<1x32xf32>
    %1242 = arith.divf %1240, %1241 : vector<1x32xf32>
    %cst_1096 = arith.constant 9.99999993E-9 : f32
    %1243 = vector.broadcast %cst_1096 : f32 to vector<1x32xf32>
    %1244 = arith.addf %1242, %1243 : vector<1x32xf32>
    %1245 = math.rsqrt %1244 : vector<1x32xf32>
    %1246 = vector.broadcast %1245 : vector<1x32xf32> to vector<4x32xf32>
    %1247 = arith.mulf %1237, %1246 : vector<4x32xf32>
    %c0_1097 = arith.constant 0 : index
    %c579 = arith.constant 579 : index
    %1248 = vector.load %arg11[%c0_1097, %c579] : memref<4x614xf32, #tpu.memory_space<vmem>>, vector<4x32xf32>
    tpu.vector_store %arg11[%c0_1097, %c579], %1247 {strides = array<i32>} : memref<4x614xf32, #tpu.memory_space<vmem>>, vector<4x32xf32>,
    %c0_i32_1098 = arith.constant 0 : i32
    %1249 = arith.cmpi eq, %arg1, %c0_i32_1098 : i32
    %1250 = arith.extui %1249 : i1 to i32
    %c0_i32_1099 = arith.constant 0 : i32
    %1251 = arith.cmpi ne, %1250, %c0_i32_1099 : i32
    scf.if %1251 {
      %cst_1149 = arith.constant 0.000000e+00 : f32
      %1339 = vector.broadcast %cst_1149 : f32 to vector<4x34xf32>
      %c0_1150 = arith.constant 0 : index
      %c0_1151 = arith.constant 0 : index
      %1340 = vector.load %arg11[%c0_1150, %c0_1151] : memref<4x614xf32, #tpu.memory_space<vmem>>, vector<4x34xf32>
      tpu.vector_store %arg11[%c0_1150, %c0_1151], %1339 {strides = array<i32>} : memref<4x614xf32, #tpu.memory_space<vmem>>, vector<4x34xf32>,
    } else {
    }
    %c1_i32_1100 = arith.constant 1 : i32
    %1252 = arith.cmpi eq, %arg1, %c1_i32_1100 : i32
    %1253 = arith.extui %1252 : i1 to i32
    %c0_i32_1101 = arith.constant 0 : i32
    %1254 = arith.cmpi ne, %1253, %c0_i32_1101 : i32
    scf.if %1254 {
      %cst_1149 = arith.constant 0.000000e+00 : f32
      %1339 = vector.broadcast %cst_1149 : f32 to vector<4x34xf32>
      %c0_1150 = arith.constant 0 : index
      %c578 = arith.constant 578 : index
      %1340 = vector.load %arg11[%c0_1150, %c578] : memref<4x614xf32, #tpu.memory_space<vmem>>, vector<4x34xf32>
      tpu.vector_store %arg11[%c0_1150, %c578], %1339 {strides = array<i32>} : memref<4x614xf32, #tpu.memory_space<vmem>>, vector<4x34xf32>,
    } else {
    }
    %c0_1102 = arith.constant 0 : index
    %c0_1103 = arith.constant 0 : index
    %1255 = vector.load %arg11[%c0_1102, %c0_1103] : memref<4x614xf32, #tpu.memory_space<vmem>>, vector<4x614xf32>
    %cst_1104 = arith.constant 0.000000e+00 : f32
    %1256 = vector.broadcast %cst_1104 : f32 to vector<4x544xf32>
    %c0_1105 = arith.constant 0 : index
    %c0_1106 = arith.constant 0 : index
    %c0_1107 = arith.constant 0 : index
    %1257 = vector.load %arg7[%c0_1105, %c0_1106, %c0_1107] : memref<9x4x4xf32, #tpu.memory_space<vmem>>, vector<1x4x4xf32>
    %1258 = vector.shape_cast %1257 : vector<1x4x4xf32> to vector<4x4xf32>
    %cst_1108 = arith.constant dense<0.000000e+00> : vector<4x614xf32>
    %1259 = tpu.matmul %1258, %1255, %cst_1108 {dimension_numbers = #tpu.dot_dimension_numbers<[1], [0], [0], [1], [0, 0, 1, 1], [], []>} : vector<4x4xf32>, vector<4x614xf32>, vector<4x614xf32> -> vector<4x614xf32>
    %1260 = vector.extract_strided_slice %1259 {offsets = [0, 0], sizes = [4, 544], strides = [1, 1]} : vector<4x614xf32> to vector<4x544xf32>
    %1261 = arith.addf %1256, %1260 : vector<4x544xf32>
    %c1_1109 = arith.constant 1 : index
    %c0_1110 = arith.constant 0 : index
    %c0_1111 = arith.constant 0 : index
    %1262 = vector.load %arg7[%c1_1109, %c0_1110, %c0_1111] : memref<9x4x4xf32, #tpu.memory_space<vmem>>, vector<1x4x4xf32>
    %1263 = vector.shape_cast %1262 : vector<1x4x4xf32> to vector<4x4xf32>
    %cst_1112 = arith.constant dense<0.000000e+00> : vector<4x614xf32>
    %1264 = tpu.matmul %1263, %1255, %cst_1112 {dimension_numbers = #tpu.dot_dimension_numbers<[1], [0], [0], [1], [0, 0, 1, 1], [], []>} : vector<4x4xf32>, vector<4x614xf32>, vector<4x614xf32> -> vector<4x614xf32>
    %1265 = vector.extract_strided_slice %1264 {offsets = [0, 1], sizes = [4, 544], strides = [1, 1]} : vector<4x614xf32> to vector<4x544xf32>
    %1266 = arith.addf %1261, %1265 : vector<4x544xf32>
    %c2_1113 = arith.constant 2 : index
    %c0_1114 = arith.constant 0 : index
    %c0_1115 = arith.constant 0 : index
    %1267 = vector.load %arg7[%c2_1113, %c0_1114, %c0_1115] : memref<9x4x4xf32, #tpu.memory_space<vmem>>, vector<1x4x4xf32>
    %1268 = vector.shape_cast %1267 : vector<1x4x4xf32> to vector<4x4xf32>
    %cst_1116 = arith.constant dense<0.000000e+00> : vector<4x614xf32>
    %1269 = tpu.matmul %1268, %1255, %cst_1116 {dimension_numbers = #tpu.dot_dimension_numbers<[1], [0], [0], [1], [0, 0, 1, 1], [], []>} : vector<4x4xf32>, vector<4x614xf32>, vector<4x614xf32> -> vector<4x614xf32>
    %1270 = vector.extract_strided_slice %1269 {offsets = [0, 2], sizes = [4, 544], strides = [1, 1]} : vector<4x614xf32> to vector<4x544xf32>
    %1271 = arith.addf %1266, %1270 : vector<4x544xf32>
    %c3_1117 = arith.constant 3 : index
    %c0_1118 = arith.constant 0 : index
    %c0_1119 = arith.constant 0 : index
    %1272 = vector.load %arg7[%c3_1117, %c0_1118, %c0_1119] : memref<9x4x4xf32, #tpu.memory_space<vmem>>, vector<1x4x4xf32>
    %1273 = vector.shape_cast %1272 : vector<1x4x4xf32> to vector<4x4xf32>
    %cst_1120 = arith.constant dense<0.000000e+00> : vector<4x614xf32>
    %1274 = tpu.matmul %1273, %1255, %cst_1120 {dimension_numbers = #tpu.dot_dimension_numbers<[1], [0], [0], [1], [0, 0, 1, 1], [], []>} : vector<4x4xf32>, vector<4x614xf32>, vector<4x614xf32> -> vector<4x614xf32>
    %1275 = vector.extract_strided_slice %1274 {offsets = [0, 34], sizes = [4, 544], strides = [1, 1]} : vector<4x614xf32> to vector<4x544xf32>
    %1276 = arith.addf %1271, %1275 : vector<4x544xf32>
    %c4_1121 = arith.constant 4 : index
    %c0_1122 = arith.constant 0 : index
    %c0_1123 = arith.constant 0 : index
    %1277 = vector.load %arg7[%c4_1121, %c0_1122, %c0_1123] : memref<9x4x4xf32, #tpu.memory_space<vmem>>, vector<1x4x4xf32>
    %1278 = vector.shape_cast %1277 : vector<1x4x4xf32> to vector<4x4xf32>
    %cst_1124 = arith.constant dense<0.000000e+00> : vector<4x614xf32>
    %1279 = tpu.matmul %1278, %1255, %cst_1124 {dimension_numbers = #tpu.dot_dimension_numbers<[1], [0], [0], [1], [0, 0, 1, 1], [], []>} : vector<4x4xf32>, vector<4x614xf32>, vector<4x614xf32> -> vector<4x614xf32>
    %1280 = vector.extract_strided_slice %1279 {offsets = [0, 35], sizes = [4, 544], strides = [1, 1]} : vector<4x614xf32> to vector<4x544xf32>
    %1281 = arith.addf %1276, %1280 : vector<4x544xf32>
    %c5_1125 = arith.constant 5 : index
    %c0_1126 = arith.constant 0 : index
    %c0_1127 = arith.constant 0 : index
    %1282 = vector.load %arg7[%c5_1125, %c0_1126, %c0_1127] : memref<9x4x4xf32, #tpu.memory_space<vmem>>, vector<1x4x4xf32>
    %1283 = vector.shape_cast %1282 : vector<1x4x4xf32> to vector<4x4xf32>
    %cst_1128 = arith.constant dense<0.000000e+00> : vector<4x614xf32>
    %1284 = tpu.matmul %1283, %1255, %cst_1128 {dimension_numbers = #tpu.dot_dimension_numbers<[1], [0], [0], [1], [0, 0, 1, 1], [], []>} : vector<4x4xf32>, vector<4x614xf32>, vector<4x614xf32> -> vector<4x614xf32>
    %1285 = vector.extract_strided_slice %1284 {offsets = [0, 36], sizes = [4, 544], strides = [1, 1]} : vector<4x614xf32> to vector<4x544xf32>
    %1286 = arith.addf %1281, %1285 : vector<4x544xf32>
    %c6_1129 = arith.constant 6 : index
    %c0_1130 = arith.constant 0 : index
    %c0_1131 = arith.constant 0 : index
    %1287 = vector.load %arg7[%c6_1129, %c0_1130, %c0_1131] : memref<9x4x4xf32, #tpu.memory_space<vmem>>, vector<1x4x4xf32>
    %1288 = vector.shape_cast %1287 : vector<1x4x4xf32> to vector<4x4xf32>
    %cst_1132 = arith.constant dense<0.000000e+00> : vector<4x614xf32>
    %1289 = tpu.matmul %1288, %1255, %cst_1132 {dimension_numbers = #tpu.dot_dimension_numbers<[1], [0], [0], [1], [0, 0, 1, 1], [], []>} : vector<4x4xf32>, vector<4x614xf32>, vector<4x614xf32> -> vector<4x614xf32>
    %1290 = vector.extract_strided_slice %1289 {offsets = [0, 68], sizes = [4, 544], strides = [1, 1]} : vector<4x614xf32> to vector<4x544xf32>
    %1291 = arith.addf %1286, %1290 : vector<4x544xf32>
    %c7_1133 = arith.constant 7 : index
    %c0_1134 = arith.constant 0 : index
    %c0_1135 = arith.constant 0 : index
    %1292 = vector.load %arg7[%c7_1133, %c0_1134, %c0_1135] : memref<9x4x4xf32, #tpu.memory_space<vmem>>, vector<1x4x4xf32>
    %1293 = vector.shape_cast %1292 : vector<1x4x4xf32> to vector<4x4xf32>
    %cst_1136 = arith.constant dense<0.000000e+00> : vector<4x614xf32>
    %1294 = tpu.matmul %1293, %1255, %cst_1136 {dimension_numbers = #tpu.dot_dimension_numbers<[1], [0], [0], [1], [0, 0, 1, 1], [], []>} : vector<4x4xf32>, vector<4x614xf32>, vector<4x614xf32> -> vector<4x614xf32>
    %1295 = vector.extract_strided_slice %1294 {offsets = [0, 69], sizes = [4, 544], strides = [1, 1]} : vector<4x614xf32> to vector<4x544xf32>
    %1296 = arith.addf %1291, %1295 : vector<4x544xf32>
    %c8_1137 = arith.constant 8 : index
    %c0_1138 = arith.constant 0 : index
    %c0_1139 = arith.constant 0 : index
    %1297 = vector.load %arg7[%c8_1137, %c0_1138, %c0_1139] : memref<9x4x4xf32, #tpu.memory_space<vmem>>, vector<1x4x4xf32>
    %1298 = vector.shape_cast %1297 : vector<1x4x4xf32> to vector<4x4xf32>
    %cst_1140 = arith.constant dense<0.000000e+00> : vector<4x614xf32>
    %1299 = tpu.matmul %1298, %1255, %cst_1140 {dimension_numbers = #tpu.dot_dimension_numbers<[1], [0], [0], [1], [0, 0, 1, 1], [], []>} : vector<4x4xf32>, vector<4x614xf32>, vector<4x614xf32> -> vector<4x614xf32>
    %1300 = vector.extract_strided_slice %1299 {offsets = [0, 70], sizes = [4, 544], strides = [1, 1]} : vector<4x614xf32> to vector<4x544xf32>
    %1301 = arith.addf %1296, %1300 : vector<4x544xf32>
    %1302 = vector.broadcast %40 : vector<4x1xf32> to vector<4x544xf32>
    %1303 = arith.addf %1301, %1302 : vector<4x544xf32>
    %cst_1141 = arith.constant 0.000000e+00 : f32
    %1304 = vector.broadcast %cst_1141 : f32 to vector<4x544xf32>
    %1305 = arith.cmpf oge, %1303, %1304 : vector<4x544xf32>
    %cst_1142 = arith.constant 2.000000e-01 : f32
    %1306 = vector.broadcast %cst_1142 : f32 to vector<4x544xf32>
    %1307 = arith.mulf %1306, %1303 : vector<4x544xf32>
    %1308 = arith.select %1305, %1303, %1307 : vector<4x544xi1>, vector<4x544xf32>
    %1309 = arith.mulf %1308, %1308 : vector<4x544xf32>
    %cst_1143 = arith.constant dense<0.000000e+00> : vector<544xf32>
    %1310 = vector.multi_reduction <add>, %1309, %cst_1143 [0] : vector<4x544xf32> to vector<544xf32>
    %1311 = vector.shape_cast %1310 : vector<544xf32> to vector<1x544xf32>
    %cst_1144 = arith.constant 4.000000e+00 : f32
    %1312 = vector.broadcast %cst_1144 : f32 to vector<1x544xf32>
    %1313 = arith.divf %1311, %1312 : vector<1x544xf32>
    %cst_1145 = arith.constant 9.99999993E-9 : f32
    %1314 = vector.broadcast %cst_1145 : f32 to vector<1x544xf32>
    %1315 = arith.addf %1313, %1314 : vector<1x544xf32>
    %1316 = math.rsqrt %1315 : vector<1x544xf32>
    %1317 = vector.broadcast %1316 : vector<1x544xf32> to vector<4x544xf32>
    %1318 = arith.mulf %1308, %1317 : vector<4x544xf32>
    %1319 = vector.extract_strided_slice %1318 {offsets = [0, 0], sizes = [4, 32], strides = [1, 1]} : vector<4x544xf32> to vector<4x32xf32>
    %1320 = vector.extract_strided_slice %1318 {offsets = [0, 34], sizes = [4, 32], strides = [1, 1]} : vector<4x544xf32> to vector<4x32xf32>
    %1321 = vector.extract_strided_slice %1318 {offsets = [0, 68], sizes = [4, 32], strides = [1, 1]} : vector<4x544xf32> to vector<4x32xf32>
    %1322 = vector.extract_strided_slice %1318 {offsets = [0, 102], sizes = [4, 32], strides = [1, 1]} : vector<4x544xf32> to vector<4x32xf32>
    %1323 = vector.extract_strided_slice %1318 {offsets = [0, 136], sizes = [4, 32], strides = [1, 1]} : vector<4x544xf32> to vector<4x32xf32>
    %1324 = vector.extract_strided_slice %1318 {offsets = [0, 170], sizes = [4, 32], strides = [1, 1]} : vector<4x544xf32> to vector<4x32xf32>
    %1325 = vector.extract_strided_slice %1318 {offsets = [0, 204], sizes = [4, 32], strides = [1, 1]} : vector<4x544xf32> to vector<4x32xf32>
    %1326 = vector.extract_strided_slice %1318 {offsets = [0, 238], sizes = [4, 32], strides = [1, 1]} : vector<4x544xf32> to vector<4x32xf32>
    %1327 = vector.extract_strided_slice %1318 {offsets = [0, 272], sizes = [4, 32], strides = [1, 1]} : vector<4x544xf32> to vector<4x32xf32>
    %1328 = vector.extract_strided_slice %1318 {offsets = [0, 306], sizes = [4, 32], strides = [1, 1]} : vector<4x544xf32> to vector<4x32xf32>
    %1329 = vector.extract_strided_slice %1318 {offsets = [0, 340], sizes = [4, 32], strides = [1, 1]} : vector<4x544xf32> to vector<4x32xf32>
    %1330 = vector.extract_strided_slice %1318 {offsets = [0, 374], sizes = [4, 32], strides = [1, 1]} : vector<4x544xf32> to vector<4x32xf32>
    %1331 = vector.extract_strided_slice %1318 {offsets = [0, 408], sizes = [4, 32], strides = [1, 1]} : vector<4x544xf32> to vector<4x32xf32>
    %1332 = vector.extract_strided_slice %1318 {offsets = [0, 442], sizes = [4, 32], strides = [1, 1]} : vector<4x544xf32> to vector<4x32xf32>
    %1333 = vector.extract_strided_slice %1318 {offsets = [0, 476], sizes = [4, 32], strides = [1, 1]} : vector<4x544xf32> to vector<4x32xf32>
    %1334 = vector.extract_strided_slice %1318 {offsets = [0, 510], sizes = [4, 32], strides = [1, 1]} : vector<4x544xf32> to vector<4x32xf32>
    %1335 = tpu.concatenate %1319, %1320, %1321, %1322, %1323, %1324, %1325, %1326, %1327, %1328, %1329, %1330, %1331, %1332, %1333, %1334 in 1 : vector<4x32xf32>, vector<4x32xf32>, vector<4x32xf32>, vector<4x32xf32>, vector<4x32xf32>, vector<4x32xf32>, vector<4x32xf32>, vector<4x32xf32>, vector<4x32xf32>, vector<4x32xf32>, vector<4x32xf32>, vector<4x32xf32>, vector<4x32xf32>, vector<4x32xf32>, vector<4x32xf32>, vector<4x32xf32> -> vector<4x512xf32>
    %c0_1146 = arith.constant 0 : index
    %c0_1147 = arith.constant 0 : index
    %c0_1148 = arith.constant 0 : index
    %1336 = vector.load %arg9[%c0_1146, %c0_1147, %c0_1148] : memref<1x4x512xf32, #tpu.memory_space<vmem>>, vector<1x4x512xf32>
    %1337 = vector.shape_cast %1336 : vector<1x4x512xf32> to vector<4x512xf32>
    %1338 = vector.shape_cast %1335 : vector<4x512xf32> to vector<1x4x512xf32>
    tpu.vector_store %arg9[%c0_1146, %c0_1147, %c0_1148], %1338 {strides = array<i32>} : memref<1x4x512xf32, #tpu.memory_space<vmem>>, vector<1x4x512xf32>,
    return
  }
  func.func @transform_0(%arg0: i32, %arg1: i32) -> (i32, i32, i32, i32) {
    %c0_i32 = arith.constant 0 : i32
    %c0_i32_0 = arith.constant 0 : i32
    %c0_i32_1 = arith.constant 0 : i32
    return %arg0, %c0_i32, %arg1, %c0_i32_0 : i32, i32, i32, i32
  }
  func.func @transform_1(%arg0: i32, %arg1: i32) -> (i32, i32, i32, i32) {
    %c1_i32 = arith.constant 1 : i32
    %0 = arith.muli %arg1, %c1_i32 : i32
    %c1_i32_0 = arith.constant 1 : i32
    %1 = arith.subi %0, %c1_i32_0 : i32
    %c0_i32 = arith.constant 0 : i32
    %2 = arith.maxsi %1, %c0_i32 : i32
    %c0_i32_1 = arith.constant 0 : i32
    %c0_i32_2 = arith.constant 0 : i32
    %c0_i32_3 = arith.constant 0 : i32
    return %arg0, %c0_i32_1, %2, %c0_i32_2 : i32, i32, i32, i32
  }
  func.func @transform_2(%arg0: i32, %arg1: i32) -> (i32, i32, i32, i32) {
    %c1_i32 = arith.constant 1 : i32
    %0 = arith.addi %arg1, %c1_i32 : i32
    %c1_i32_0 = arith.constant 1 : i32
    %1 = arith.muli %0, %c1_i32_0 : i32
    %c1_i32_1 = arith.constant 1 : i32
    %2 = arith.minsi %1, %c1_i32_1 : i32
    %c0_i32 = arith.constant 0 : i32
    %c0_i32_2 = arith.constant 0 : i32
    %c0_i32_3 = arith.constant 0 : i32
    return %arg0, %c0_i32, %2, %c0_i32_2 : i32, i32, i32, i32
  }
  func.func @transform_3(%arg0: i32, %arg1: i32) -> (i32, i32, i32) {
    %c0_i32 = arith.constant 0 : i32
    %c0_i32_0 = arith.constant 0 : i32
    %c0_i32_1 = arith.constant 0 : i32
    %c0_i32_2 = arith.constant 0 : i32
    return %c0_i32, %c0_i32_0, %c0_i32_1 : i32, i32, i32
  }
  func.func @transform_4(%arg0: i32, %arg1: i32) -> (i32, i32) {
    %c0_i32 = arith.constant 0 : i32
    %c0_i32_0 = arith.constant 0 : i32
    %c0_i32_1 = arith.constant 0 : i32
    return %c0_i32, %c0_i32_0 : i32, i32
  }
  func.func @transform_5(%arg0: i32, %arg1: i32) -> (i32, i32, i32) {
    %c0_i32 = arith.constant 0 : i32
    %c0_i32_0 = arith.constant 0 : i32
    %c0_i32_1 = arith.constant 0 : i32
    %c0_i32_2 = arith.constant 0 : i32
    return %c0_i32, %c0_i32_0, %c0_i32_1 : i32, i32, i32
  }
  func.func @transform_6(%arg0: i32, %arg1: i32) -> (i32, i32) {
    %c0_i32 = arith.constant 0 : i32
    %c0_i32_0 = arith.constant 0 : i32
    %c0_i32_1 = arith.constant 0 : i32
    return %c0_i32, %c0_i32_0 : i32, i32
  }
  func.func @transform_7(%arg0: i32, %arg1: i32) -> (i32, i32, i32) {
    %c0_i32 = arith.constant 0 : i32
    %c0_i32_0 = arith.constant 0 : i32
    return %arg0, %c0_i32, %arg1 : i32, i32, i32
  }
}

</mosaic_0001>

<bundles_post_ra>
// kernel: gen_general_conv_block.1
= control target key start
LH: loop header
LB: loop body
LE: loop exit
PB: predicated region body
PF: predicated region fallthrough
CT: control target
= control target key end

     0   :  { %s11372_s0 = inlined_call_operand.vmem [shape: f32[2,4,16,16], index: 0, kind: input, shape index: {}, may-alias: {0,1,2}]   ;;  %s11373_s1 = inlined_call_operand.vmem [shape: f32[2,4,16,16], index: 1, kind: input, shape index: {}, may-alias: {0,1,2}]   ;;  %s11374_s2 = inlined_call_operand.vmem [shape: f32[2,4,16,16], index: 2, kind: input, shape index: {}, may-alias: {0,1,2}]   ;;  %s11375_s3 = inlined_call_operand.vmem [shape: f32[16,4,4], index: 3, kind: input, shape index: {}]   ;;  %s11376_s4 = inlined_call_operand.vmem [shape: f32[4,1], index: 4, kind: input, shape index: {}]   ;;  %s11377_s5 = inlined_call_operand.vmem [shape: f32[9,4,4], index: 5, kind: input, shape index: {}]   ;;  %s11378_s6 = inlined_call_operand.vmem [shape: f32[4,1], index: 6, kind: input, shape index: {}]   ;;  %s11379_s7 = inlined_call_operand.vmem [shape: f32[2,4,1024], index: 7, kind: output, shape index: {}]  }
   0x1   :  { %11415 = sst [smem:[#allocation50_spill]] %s11377_s5 }
   0x2   :  { %s9236_s24 = smov 0   ;;  %s9238_s25 = smov 0  }
   0x3   :  { %s9240_s26 = smov 0   ;;  %s9242_s27 = smov 0  }
   0x4   :  { %s9244_s28 = smov 0   ;;  %s9246_s29 = smov 0  }
   0x5   :  { %s9248_s30 = smov 0   ;;  %s9250_s8 = smov 0  }
   0x6   :  { %s9252_s9 = smov 0   ;;  %s9254_s10 = smov 0  }
   0x7   :  { %s9256_s11 = smov 0  }
   0x8 LB: > { %s26_s12 = sadd.s32 1, %s9143_s9  ;;  %s29_s13 = sadd.s32 1, %s9147_s10  ;;  %s9151_s11 = sphi %s9256_s11, %s17_s11   ;;  %s9147_s10 = sphi %s9254_s10, %s11526_s10   ;;  %s9143_s9 = sphi %s9252_s9, %s11525_s9   ;;  %s9139_s8 = sphi %s9250_s8, %s11524_s8   ;;  %s9135_s30 = sphi %s9248_s30, %s11523_s30   ;;  %s9131_s29 = sphi %s9246_s29, %s11522_s29   ;;  %s9127_s28 = sphi %s9244_s28, %s11521_s28   ;;  %s9123_s27 = sphi %s9242_s27, %s11520_s27   ;;  %s9119_s26 = sphi %s9240_s26, %s11519_s26   ;;  %s9115_s25 = sphi %s9238_s25, %s11518_s25   ;;  %s9111_s24 = sphi %s9236_s24, %s11517_s24  }
   0x9   : > { %p27_p0 = scmp.ge.s32.totalorder %s26_s12, 2  ;;  %s38_s14 = sadd.s32 1, %s9131_s29 }
   0xa   : > { %p45_p1 = scmp.ne.s32.totalorder %s9131_s29, %s9127_s28  ;;  %p46_p2 = scmp.eq.s32.totalorder %s9151_s11, 0 }
   0xb   : > { %s11528_s12 = smov (%p27_p0, %s26_s12), 0  ;;  %s11530_s13 = smov (!%p27_p0, %s29_s13), %s9147_s10 }
   0xc   : > { %11416 = sst [smem:[#allocation7_spill]] %s11528_s12  ;;  %s34_s15 = ssub.s32 %s9143_s9, %s11528_s12 }
   0xd   : > { %p9304_p3 = por %p46_p2, %p45_p1  ;;  %p31_p4 = scmp.ge.s32.totalorder %s11530_s13, 2 }
   0xe   : > { %s72_s19 = sadd.s32 1, %s9123_s27  ;;  %p79_p6 = scmp.ne.s32.totalorder %s9123_s27, %s9119_s26 }
   0xf   : > { %s11532_s13 = smov (%p31_p4, %s11530_s13), 0  ;;  %p113_p9 = scmp.ne.s32.totalorder %s9115_s25, %s9111_s24 }
  0x10   : > { %11418 = sst [smem:[#allocation8_spill]] %s11532_s13  ;;  %s33_s17 = ssub.s32 %s9147_s10, %s11532_s13 }
  0x11   : > { %s35_s18 = sor.u32 %s34_s15, %s33_s17  ;;  %p9320_p7 = por %p79_p6, %p46_p2 }
  0x12   : > { %p36_p5 = scmp.eq.s32.totalorder %s35_s18, 0  ;;  %p70_p8 = scmp.eq.s32.totalorder %s33_s17, 0 }
  0x13   : > { %p9331_p10 = por %p113_p9, %p46_p2  ;;  %s106_s15 = sadd.s32 1, %s9115_s25 }
  0x14   : > { %s9316_s20 = scalar_select %p36_p5, %s9131_s29, %s38_s14  }
  0x15   : > { %s9325_s22 = scalar_select %p70_p8, %s9123_s27, %s72_s19  }
  0x16   : > { %11419 = sst [smem:[#allocation9_spill]] %s9316_s20  ;;  %p8224_p11 = scmp.ge.s32.totalorder %s9151_s11, 4 }
  0x17   : > { %11421 = sst [smem:[#allocation10_spill]] %s9325_s22 }
  0x18   : > { %s9337_s13 = scalar_select %p70_p8, %s9115_s25, %s106_s15  }
  0x19   : > { %263 = sbr.rel (%p8224_p11) target bundleno = 57 (0x39), region = 32 }
  0x1e   : > { %266 = sbr.rel (!%p9304_p3) target bundleno = 40 (0x28), region = 36  ;;  %s268_s14 = sand.u32 (%p9304_p3), 1, %s9131_s29  }
  0x1f   : > { %s8226_s17 = sshll.u32 (%p9304_p3), %s9147_s10, 3  ;;  %s8225_s18 = sshll.u32 (%p9304_p3), %s268_s14, 5 }
  0x20   : > { %s272_s19 = sadd.s32 (%p9304_p3), %s9143_s9, %s8226_s17  ;;  %s270_s15 = scalar_lea.vmem (%p9304_p3), [#allocation4], %s8225_s18 }
  0x21   : > { %s8227_s12 = sshll.u32 (%p9304_p3), %s272_s19, 3 }
  0x22   : > { %s274_s5 = scalar_lea.vmem (%p9304_p3), %s11372_s0, %s8227_s12 }
  0x23   : > { %v309_v0 = vld [vmem:[%s274_s5] sm:$0xff]  ;;  %v311_v1 = vld [vmem:[%s274_s5 + $0x10] sm:$0xff] }
  0x24   : > { %v313_v2 = vld [vmem:[%s274_s5 + $0x20] sm:$0xff]  ;;  %310 = vst [vmem:[%s270_s15] sm:$0xff] %v309_v0  ;;  %v315_v3 = vld [vmem:[%s274_s5 + $0x30] sm:$0xff] }
  0x25   : > { %312 = vst [vmem:[%s270_s15 + $0x8] sm:$0xff] %v311_v1 }
  0x26   : > { %314 = vst [vmem:[%s270_s15 + $0x10] sm:$0xff] %v313_v2 }
  0x27   : > { %316 = vst [vmem:[%s270_s15 + $0x18] sm:$0xff] %v315_v3 }
  0x28 PF: > { %322 = sbr.rel (!%p9320_p7) target bundleno = 48 (0x30), region = 74  ;;  %s324_s16 = sand.u32 (%p9320_p7), 1, %s9123_s27  }
  0x29   : > { %s8228_s14 = sshll.u32 (%p9320_p7), %s324_s16, 5  ;;  %s9105_s17 = sshll.u32 (%p9320_p7), %s9147_s10, 6 }
  0x2a   : > { %s333_s22 = scalar_lea.vmem (%p9320_p7), %s11373_s1, %s9105_s17  ;;  %s326_s5 = scalar_lea.vmem (%p9320_p7), [#allocation5], %s8228_s14 }
  0x2b   : > { %v368_v4 = vld [vmem:[%s333_s22] sm:$0xff] (%p9320_p7)  ;;  %v370_v5 = vld [vmem:[%s333_s22 + $0x10] sm:$0xff] (%p9320_p7) }
  0x2c   : > { %v372_v6 = vld [vmem:[%s333_s22 + $0x20] sm:$0xff] (%p9320_p7)  ;;  %369 = vst [vmem:[%s326_s5] sm:$0xff] (%p9320_p7), %v368_v4  ;;  %v374_v7 = vld [vmem:[%s333_s22 + $0x30] sm:$0xff] (%p9320_p7) }
  0x2d   : > { %371 = vst [vmem:[%s326_s5 + $0x8] sm:$0xff] %v370_v5 }
  0x2e   : > { %373 = vst [vmem:[%s326_s5 + $0x10] sm:$0xff] %v372_v6 }
  0x2f   : > { %375 = vst [vmem:[%s326_s5 + $0x18] sm:$0xff] %v374_v7 }
  0x30 PF: > { %381 = sbr.rel (!%p9331_p10) target bundleno = 57 (0x39), region = 112  ;;  %s383_s21 = sand.u32 (%p9331_p10), 1, %s9115_s25  }
  0x31   : > { %s8232_s18 = sshll.u32 (%p9331_p10), %s383_s21, 5  ;;  %s9108_s19 = sshll.u32 (%p9331_p10), %s9147_s10, 6 }
  0x32   : > { %s9107_s15 = sadd.s32 (%p9331_p10), 8, %s9108_s19  ;;  %s385_s14 = scalar_lea.vmem (%p9331_p10), [#allocation6], %s8232_s18 }
  0x33   : > { %s392_s20 = scalar_lea.vmem (%p9331_p10), %s11374_s2, %s9107_s15 }
  0x34   : > { %v427_v8 = vld [vmem:[%s392_s20] sm:$0xff] (%p9331_p10)  ;;  %v429_v9 = vld [vmem:[%s392_s20 + $0x10] sm:$0xff] (%p9331_p10) }
  0x35   : > { %v431_v10 = vld [vmem:[%s392_s20 + $0x20] sm:$0xff]  ;;  %428 = vst [vmem:[%s385_s14] sm:$0xff] %v427_v8  ;;  %v433_v11 = vld [vmem:[%s392_s20 + $0x30] sm:$0xff] }
  0x36   : > { %430 = vst [vmem:[%s385_s14 + $0x8] sm:$0xff] %v429_v9 }
  0x37   : > { %432 = vst [vmem:[%s385_s14 + $0x10] sm:$0xff] %v431_v10 }
  0x38   : > { %434 = vst [vmem:[%s385_s14 + $0x18] sm:$0xff] %v433_v11 }
  0x39 PF: > { %p8235_p12 = scmp.ge.s32.totalorder %s9151_s11, 1  ;;  %p439_p13 = scmp.lt.s32.totalorder %s9151_s11, 5 }
  0x3b   : > { %p440_p0 = pnand %p8235_p12, %p439_p13 }
  0x3d   : > { %443 = sbr.rel (%p440_p0) target bundleno = 3880 (0xf28), region = 150 }
  0x42   : > { %s453_s23 = sand.u32 1, %s9119_s26   ;;  %vm519_vm0 = vcmask 146432   ;;  %p562_p1 = scmp.gt.s32.totalorder %s9135_s30, 0  ;;  %v11383_v12 = vmov 0.0   ;;  %vm521_vm1 = vcmask 140288   ;;  %vm549_vm2 = vcmask 138248  }
  0x43   : > { %s8237_s12 = sshll.u32 %s453_s23, 5  ;;  %523 = vst.msk [vmem:[#allocation2 + $0x10] sm:$0xff] %vm519_vm0, %v11383_v12  ;;  %s446_s22 = sand.u32 1, %s9127_s28   ;;  %vm586_vm3 = vcmask 131080   ;;  %vm659_vm4 = vcmask 1041409   ;;  %vm662_vm5 = vcmask 1042434  }
  0x44   : > { %520 = vst.msk [vmem:[#allocation2] sm:$0xff] %vm519_vm0, %v11383_v12  ;;  %s563_s5 = scalar_select %p562_p1, 1, 0  ;;  %vm665_vm6 = vcmask 1043459   ;;  %vm673_vm7 = vcmask 1043456   ;;  %vm669_vm8 = vcmask 31744  }
  0x45   : > { %s8236_s21 = sshll.u32 %s446_s22, 5  ;;  %525 = vst.msk [vmem:[#allocation2 + $0x20] sm:$0xff] %vm519_vm0, %v11383_v12  ;;  %s455_s18 = scalar_lea.vmem [#allocation5], %s8237_s12  ;;  %vm903_vm13 = vcmask 130048   ;;  %vm960_vm15 = vcmask 257024  }
  0x46   : > { %v555_v13 = vld [vmem:[%s455_s18 + $0xf] sm:$0x1]  ;;  %s564_s19 = scvt.s32.f32 %s563_s5  ;;  %v554_v14 = vld [vmem:[%s455_s18 + $0x7] sm:$0x1]  ;;  %527 = vst.msk [vmem:[#allocation2 + $0x30] sm:$0xff] %vm519_vm0, %v11383_v12  ;;  %s448_s26 = scalar_lea.vmem [#allocation4], %s8236_s21 }
  0x47   : > { %v530_v15 = vld [vmem:[%s448_s26 + $0x8] sm:$0xff]  ;;  %642 = vst [vmem:[#allocation3] sm:$0xff] %v11383_v12  ;;  %s9154_s15 = smov 1   ;;  %v556_v19 = vld [vmem:[%s455_s18 + $0x17] sm:$0x1]  ;;  %v532_v24 = vld [vmem:[%s448_s26 + $0x18] sm:$0xff] }
  0x48   : > { %v565_v16 = vstv %s564_s19  ;;  %539 = vrot.lane.b32.xlu2 %v530_v15, %s9154_s15  ;;  %643 = vst [vmem:[#allocation3 + $0x8] sm:$0xff] %v11383_v12  ;;  %v557_v20 = vld [vmem:[%s455_s18 + $0x1f] sm:$0x1]  ;;  %v531_v21 = vld [vmem:[%s448_s26 + $0x10] sm:$0xff]  ;;  %s8239_s28 = sshll.u32 %s9135_s30, 2  ;;  %p510_p2 = scmp.lt.s32.totalorder %s9139_s8, 1 }
  0x49   : > { %v567_v17 = vmul.f32 %v565_v16, %v555_v13  ;;  %v566_v18 = vmul.f32 %v565_v16, %v554_v14  ;;  %v568_v22 = vmul.f32 %v565_v16, %v556_v19  ;;  %v569_v23 = vmul.f32 %v565_v16, %v557_v20  ;;  %v529_v25 = vld [vmem:[%s448_s26] sm:$0xff]  ;;  %524 = vst.msk [vmem:[#allocation2 + $0x18] sm:$0x3] %vm521_vm1, %v11383_v12  ;;  %p512_p3 = scmp.lt.s32.totalorder %s8239_s28, 7  ;;  %s9155_s12 = smov 126  }
  0x4a   : > { %522 = vst.msk [vmem:[#allocation2 + $0x8] sm:$0x3] %vm521_vm1, %v11383_v12  ;;  %s11534_s8 = smov (!%p510_p2, %s9139_s8), 1  ;;  %s9156_s22 = smov 127  }
  0x4b   : > { %576 = vrot.lane.b32.xlu0 %v567_v17, %s9154_s15  ;;  %574 = vrot.lane.b32.xlu1 %v566_v18, %s9154_s15  ;;  %526 = vst.msk [vmem:[#allocation2 + $0x28] sm:$0x3] %vm521_vm1, %v11383_v12  ;;  %s11536_s28 = smov (!%p512_p3, %s8239_s28), 7  ;;  %s8240_s16 = sshll.u32 %s11534_s8, 3 }
  0x4c   : > { %528 = vst.msk [vmem:[#allocation2 + $0x38] sm:$0x3] %vm521_vm1, %v11383_v12  ;;  %s515_s17 = sadd.s32 %s8240_s16, %s11536_s28  ;;  %p591_p4 = scmp.lt.s32.totalorder %s9135_s30, 1 }
  0x4d   : > { %s8241_s20 = sshll.u32 %s515_s17, 2  ;;  %s460_s26 = sand.u32 1, %s9111_s24  }
  0x4e   : > { %s9401_s23 = scalar_lea.vmem %s11379_s7, %s8241_s20  ;;  %s8238_s16 = sshll.u32 %s460_s26, 5 }
  0x4f   : > { %s592_s28 = scalar_select %p591_p4, 1, 0 }
  0x50   : > { %541 = vrot.lane.b32.xlu2 %v531_v21, %s9154_s15  ;;  %s462_s17 = scalar_lea.vmem [#allocation6], %s8238_s16  ;;  %s9160_s18 = smov 35  }
  0x51   : > { %s593_s24 = scvt.s32.f32 %s592_s28  ;;  %s9161_s28 = smov 69  }
  0x52   : > { %s9162_s20 = smov 103   ;;  %s9163_s21 = smov 9  }
  0x53   : > { %578 = vrot.lane.b32.xlu0 %v568_v22, %s9154_s15  ;;  %580 = vrot.lane.b32.xlu1 %v569_v23, %s9154_s15  ;;  %s9164_s26 = smov 43   ;;  %s9166_s5 = smov 111  }
  0x54   : > { %s9167_s19 = smov 17   ;;  %s9169_s14 = smov 85  }
  0x55   : > { %s9171_s16 = smov 25   ;;  %s9175_s8 = smov 67  }
  0x56   : > { %p8777_p5 = scmp.ne.s32.totalorder %s9135_s30, 0 }
  0x5b   : > { %543 = vrot.lane.b32.xlu1 %v532_v24, %s9154_s15  ;;  %537 = vrot.lane.b32.xlu0 %v529_v25, %s9154_s15 }
  0xa2   : > { %v540_v26 = vpop.permute.xlu2 %539 }
  0xa3   : > { %551 = vst.msk [vmem:[#allocation2 + $0x11] sm:$0xff] %vm549_vm2, %v540_v26 }
  0xaa   : > { %v542_v27 = vpop.permute.xlu2 %541  ;;  %v776_v47 = vld [vmem:[#allocation2 + $0x11] sm:$0x1]  ;;  %v1443_v11 = vld [vmem:[#allocation2 + $0x12] sm:$0x1] }
  0xab   : > { %552 = vst.msk [vmem:[#allocation2 + $0x21] sm:$0xff] %vm549_vm2, %v542_v27  ;;  %v785_v53 = vrot.slane %v776_v47, 7  ;;  %v1118_v59 = vld [vmem:[#allocation2 + $0x11] sm:$0x1]  ;;  %v1451_v20 = vrot.slane %v1443_v11, 7 }
  0xac   : > { %v1127_v2 = vrot.slane %v1118_v59, 7  ;;  %v1323_v9 = vld [vmem:[#allocation2 + $0x11] sm:$0x1] }
  0xad   : > { %v1332_v16 = vrot.slane %v1323_v9, 7 }
  0xb2   : > { %v777_v46 = vld [vmem:[#allocation2 + $0x21] sm:$0x1]  ;;  %v1444_v14 = vld [vmem:[#allocation2 + $0x22] sm:$0x1] }
  0xb3   : > { %v787_v51 = vrot.slane %v777_v46, 6  ;;  %v1119_v62 = vld [vmem:[#allocation2 + $0x21] sm:$0x1]  ;;  %v1453_v23 = vrot.slane %v1444_v14, 6  ;;  %v2292_v9 = vld [vmem:[#allocation2 + $0x22] sm:$0x1] }
  0xb4   : > { %v1129_v5 = vrot.slane %v1119_v62, 6  ;;  %v1324_v10 = vld [vmem:[#allocation2 + $0x21] sm:$0x1] }
  0xb5   : > { %v1334_v19 = vrot.slane %v1324_v10, 6  ;;  %v2411_v10 = vld [vmem:[#allocation2 + $0x13] sm:$0x1] }
  0xbd   : > { %v577_v28 = vpop.permute.xlu0 %576  ;;  %v575_v29 = vpop.permute.xlu1 %574 }
  0xbe   : > { %588 = vst.msk [vmem:[#allocation2 + $0x10] sm:$0x1] %vm586_vm3, %v577_v28  ;;  %v1644_v28 = vld [vmem:[#allocation2 + $0x11] sm:$0x1] }
  0xbf   : > { %587 = vst.msk [vmem:[#allocation2] sm:$0x1] %vm586_vm3, %v575_v29 }
  0xc5   : > { %v579_v30 = vpop.permute.xlu0 %578  ;;  %v581_v31 = vpop.permute.xlu1 %580  ;;  %v647_v32 = vld [vmem:[#allocation2 + $0x10] sm:$0x1] }
  0xc6   : > { %589 = vst.msk [vmem:[#allocation2 + $0x20] sm:$0x1] %vm586_vm3, %v579_v30  ;;  %v658_v33 = vrot.slane %v647_v32, 7  ;;  %v646_v37 = vld [vmem:[#allocation2] sm:$0x1] }
  0xc7   : > { %590 = vst.msk [vmem:[#allocation2 + $0x30] sm:$0x1] %vm586_vm3, %v581_v31  ;;  %v995_v42 = vld [vmem:[#allocation2 + $0x10] sm:$0x1]  ;;  %v994_v54 = vld [vmem:[#allocation2] sm:$0x1] }
  0xc8   : > { %v660_v40 = vsel %vm659_vm4, %v658_v33, %v646_v37  ;;  %v1005_v48 = vrot.slane %v995_v42, 7  ;;  %v1645_v30 = vld [vmem:[#allocation2 + $0x21] sm:$0x1]  ;;  %v1653_v33 = vrot.slane %v1644_v28, 7  ;;  %v1970_v42 = vld [vmem:[#allocation2 + $0x12] sm:$0x1] }
  0xc9   : > { %v2612_v28 = vld [vmem:[#allocation2 + $0x13] sm:$0x1] }
  0xca   : > { %v1006_v57 = vsel %vm659_vm4, %v1005_v48, %v994_v54 }
  0xcd   : > { %v544_v34 = vpop.permute.xlu1 %543  ;;  %v538_v35 = vpop.permute.xlu0 %537  ;;  %v648_v36 = vld [vmem:[#allocation2 + $0x20] sm:$0x1] }
  0xce   : > { %553 = vst.msk [vmem:[#allocation2 + $0x31] sm:$0xff] %vm549_vm2, %v544_v34  ;;  %v649_v38 = vld [vmem:[#allocation2 + $0x30] sm:$0x1]  ;;  %v661_v39 = vrot.slane %v648_v36, 6  ;;  %v996_v44 = vld [vmem:[#allocation2 + $0x20] sm:$0x1] }
  0xcf   : > { %550 = vst.msk [vmem:[#allocation2 + $0x1] sm:$0xff] %vm549_vm2, %v538_v35  ;;  %v664_v41 = vrot.slane %v649_v38, 5  ;;  %v997_v49 = vld [vmem:[#allocation2 + $0x30] sm:$0x1]  ;;  %v1007_v50 = vrot.slane %v996_v44, 6  ;;  %v1655_v36 = vrot.slane %v1645_v30, 6 }
  0xd0   : > { %v663_v43 = vsel %vm662_vm5, %v661_v39, %v660_v40  ;;  %v1009_v58 = vrot.slane %v997_v49, 5  ;;  %v1764_v40 = vld [vmem:[#allocation2 + $0x12] sm:$0x1]  ;;  %v1971_v44 = vld [vmem:[#allocation2 + $0x22] sm:$0x1] }
  0xd1   : > { %v666_v45 = vsel %vm665_vm6, %v664_v41, %v663_v43  ;;  %v1008_v61 = vsel %vm662_vm5, %v1007_v50, %v1006_v57  ;;  %v1765_v41 = vld [vmem:[#allocation2 + $0x22] sm:$0x1]  ;;  %v1772_v46 = vrot.slane %v1764_v40, 7  ;;  %v1979_v50 = vrot.slane %v1970_v42, 7  ;;  %v2613_v30 = vld [vmem:[#allocation2 + $0x23] sm:$0x1] }
  0xd2   : > { %8250 = vmatpush.msk.msra.mxu1 %vm673_vm7, %v666_v45  ;;  %725 = vrot.lane.b32.xlu2 %v666_v45, %s9155_s12  ;;  %v9417_v3 = vsel %vm665_vm6, %v1009_v58, %v1008_v61  ;;  %v1774_v49 = vrot.slane %v1765_v41, 6  ;;  %v2090_v58 = vld [vmem:[#allocation2 + $0x13] sm:$0x1]  ;;  %v2732_v42 = vld [vmem:[#allocation2 + $0x14] sm:$0x1] }
  0xd3   : > { %667 = vrot.lane.b32.xlu0 %v666_v45, %s9156_s22 }
  0xd5   : > { %v778_v52 = vld [vmem:[#allocation2 + $0x31] sm:$0x1]  ;;  %v1445_v22 = vld [vmem:[#allocation2 + $0x32] sm:$0x1] }
  0xd6   : > { %v775_v55 = vld [vmem:[#allocation2 + $0x1] sm:$0x1]  ;;  %v789_v56 = vrot.slane %v778_v52, 5  ;;  %v1120_v4 = vld [vmem:[#allocation2 + $0x31] sm:$0x1]  ;;  %v1455_v27 = vrot.slane %v1445_v22, 5 }
  0xd7   : > { %v786_v60 = vsel %vm659_vm4, %v785_v53, %v775_v55  ;;  %v1117_v0 = vld [vmem:[#allocation2 + $0x1] sm:$0x1]  ;;  %v1131_v7 = vrot.slane %v1120_v4, 5  ;;  %v1442_v17 = vld [vmem:[#allocation2 + $0x2] sm:$0x1]  ;;  %v1981_v53 = vrot.slane %v1971_v44, 6 }
  0xd8   : > { %v788_v63 = vsel %vm662_vm5, %v787_v51, %v786_v60  ;;  %v1128_v6 = vsel %vm659_vm4, %v1127_v2, %v1117_v0  ;;  %v1322_v13 = vld [vmem:[#allocation2 + $0x1] sm:$0x1]  ;;  %v1325_v18 = vld [vmem:[#allocation2 + $0x31] sm:$0x1]  ;;  %v1452_v24 = vsel %vm659_vm4, %v1451_v20, %v1442_v17  ;;  %v1763_v43 = vld [vmem:[#allocation2 + $0x2] sm:$0x1] }
  0xd9   : > { %v9412_v1 = vsel %vm665_vm6, %v789_v56, %v788_v63  ;;  %v1130_v8 = vsel %vm662_vm5, %v1129_v5, %v1128_v6  ;;  %v1333_v21 = vsel %vm659_vm4, %v1332_v16, %v1322_v13  ;;  %v1336_v25 = vrot.slane %v1325_v18, 5  ;;  %v1643_v31 = vld [vmem:[#allocation2 + $0x1] sm:$0x1]  ;;  %v1646_v35 = vld [vmem:[#allocation2 + $0x31] sm:$0x1] }
  0xda   : > { %819 = vrot.lane.b32.xlu1 %v9412_v1, %s9156_s22  ;;  %875 = vrot.lane.b32.xlu2 %v9412_v1, %s9155_s12  ;;  %v9426_v15 = vsel %vm665_vm6, %v1131_v7, %v1130_v8  ;;  %v1335_v26 = vsel %vm662_vm5, %v1334_v19, %v1333_v21  ;;  %v1454_v29 = vsel %vm662_vm5, %v1453_v23, %v1452_v24  ;;  %v1657_v38 = vrot.slane %v1646_v35, 5  ;;  %v1969_v47 = vld [vmem:[#allocation2 + $0x2] sm:$0x1]  ;;  %v1766_v48 = vld [vmem:[#allocation2 + $0x32] sm:$0x1] }
  0xdb   : > { %1011 = vrot.lane.b32.xlu0 %v9417_v3, %s9156_s22  ;;  %v9439_v32 = vsel %vm665_vm6, %v1336_v25, %v1335_v26  ;;  %v9444_v34 = vsel %vm665_vm6, %v1455_v27, %v1454_v29  ;;  %v1654_v37 = vsel %vm659_vm4, %v1653_v33, %v1643_v31  ;;  %v1773_v51 = vsel %vm659_vm4, %v1772_v46, %v1763_v43  ;;  %v1972_v52 = vld [vmem:[#allocation2 + $0x32] sm:$0x1]  ;;  %v2091_v60 = vld [vmem:[#allocation2 + $0x23] sm:$0x1]  ;;  %v2092_v2 = vld [vmem:[#allocation2 + $0x33] sm:$0x1] }
  0xdc   : > { %v1656_v39 = vsel %vm662_vm5, %v1655_v36, %v1654_v37  ;;  %v1980_v54 = vsel %vm659_vm4, %v1979_v50, %v1969_v47  ;;  %v1776_v55 = vrot.slane %v1766_v48, 5  ;;  %v1775_v56 = vsel %vm662_vm5, %v1774_v49, %v1773_v51  ;;  %v2089_v61 = vld [vmem:[#allocation2 + $0x3] sm:$0x1]  ;;  %v2291_v8 = vld [vmem:[#allocation2 + $0x12] sm:$0x1] }
  0xdd   : > { %v9453_v45 = vsel %vm665_vm6, %v1657_v38, %v1656_v39  ;;  %v1983_v57 = vrot.slane %v1972_v52, 5  ;;  %v1982_v59 = vsel %vm662_vm5, %v1981_v53, %v1980_v54  ;;  %v2098_v63 = vrot.slane %v2090_v58, 7  ;;  %v2290_v11 = vld [vmem:[#allocation2 + $0x2] sm:$0x1]  ;;  %v2412_v13 = vld [vmem:[#allocation2 + $0x23] sm:$0x1] }
  0xde   : > { %v9466_v62 = vsel %vm665_vm6, %v1776_v55, %v1775_v56  ;;  %v2100_v4 = vrot.slane %v2091_v60, 6  ;;  %v2102_v6 = vrot.slane %v2092_v2, 5  ;;  %v2300_v16 = vrot.slane %v2291_v8, 7  ;;  %v2410_v17 = vld [vmem:[#allocation2 + $0x3] sm:$0x1] }
  0xdf   : > { %v9471_v0 = vsel %vm665_vm6, %v1983_v57, %v1982_v59  ;;  %v2099_v5 = vsel %vm659_vm4, %v2098_v63, %v2089_v61  ;;  %v2293_v18 = vld [vmem:[#allocation2 + $0x32] sm:$0x1]  ;;  %v2302_v19 = vrot.slane %v2292_v9, 6  ;;  %v2419_v20 = vrot.slane %v2411_v10, 7  ;;  %v2413_v22 = vld [vmem:[#allocation2 + $0x33] sm:$0x1] }
  0xe0   : > { %v2101_v7 = vsel %vm662_vm5, %v2100_v4, %v2099_v5  ;;  %v2301_v21 = vsel %vm659_vm4, %v2300_v16, %v2290_v11  ;;  %v2421_v23 = vrot.slane %v2412_v13, 6  ;;  %v2304_v25 = vrot.slane %v2293_v18, 5  ;;  %v2611_v31 = vld [vmem:[#allocation2 + $0x3] sm:$0x1]  ;;  %v2614_v37 = vld [vmem:[#allocation2 + $0x33] sm:$0x1] }
  0xe1   : > { %v9480_v14 = vsel %vm665_vm6, %v2102_v6, %v2101_v7  ;;  %v2420_v24 = vsel %vm659_vm4, %v2419_v20, %v2410_v17  ;;  %v2303_v26 = vsel %vm662_vm5, %v2302_v19, %v2301_v21  ;;  %v2423_v27 = vrot.slane %v2413_v22, 5  ;;  %v2733_v43 = vld [vmem:[#allocation2 + $0x24] sm:$0x1]  ;;  %v2933_v44 = vld [vmem:[#allocation2 + $0x13] sm:$0x1] }
  0xe2   : > { %1067 = vrot.lane.b32.xlu1 %v9417_v3, %s9155_s12  ;;  %1161 = vrot.lane.b32.xlu2 %v9426_v15, %s9156_s22  ;;  %v2422_v29 = vsel %vm662_vm5, %v2421_v23, %v2420_v24  ;;  %v9493_v33 = vsel %vm665_vm6, %v2304_v25, %v2303_v26  ;;  %v2621_v35 = vrot.slane %v2612_v28, 7  ;;  %v2623_v38 = vrot.slane %v2613_v30, 6  ;;  %v2731_v46 = vld [vmem:[#allocation2 + $0x4] sm:$0x1]  ;;  %v2934_v47 = vld [vmem:[#allocation2 + $0x23] sm:$0x1] }
  0xe3   : > { %1217 = vrot.lane.b32.xlu0 %v9426_v15, %s9155_s12  ;;  %v9498_v36 = vsel %vm665_vm6, %v2423_v27, %v2422_v29  ;;  %v2625_v40 = vrot.slane %v2614_v37, 5  ;;  %v2740_v49 = vrot.slane %v2732_v42, 7  ;;  %v2932_v50 = vld [vmem:[#allocation2 + $0x3] sm:$0x1]  ;;  %v2734_v51 = vld [vmem:[#allocation2 + $0x34] sm:$0x1] }
  0xe4   : > { %v2622_v39 = vsel %vm659_vm4, %v2621_v35, %v2611_v31  ;;  %v2742_v52 = vrot.slane %v2733_v43, 6  ;;  %v2942_v53 = vrot.slane %v2933_v44, 7  ;;  %v2935_v55 = vld [vmem:[#allocation2 + $0x33] sm:$0x1]  ;;  %v2944_v56 = vrot.slane %v2934_v47, 6 }
  0xe5   : > { %v2624_v41 = vsel %vm662_vm5, %v2623_v38, %v2622_v39  ;;  %v2741_v54 = vsel %vm659_vm4, %v2740_v49, %v2731_v46  ;;  %v2744_v58 = vrot.slane %v2734_v51, 5  ;;  %v2946_v60 = vrot.slane %v2935_v55, 5  ;;  %v3053_v61 = vld [vmem:[#allocation2 + $0x14] sm:$0x1]  ;;  %v3054_v2 = vld [vmem:[#allocation2 + $0x24] sm:$0x1] }
  0xe6   : > { %v9507_v48 = vsel %vm665_vm6, %v2625_v40, %v2624_v41  ;;  %v2943_v57 = vsel %vm659_vm4, %v2942_v53, %v2932_v50  ;;  %v2743_v59 = vsel %vm662_vm5, %v2742_v52, %v2741_v54  ;;  %v3052_v4 = vld [vmem:[#allocation2 + $0x4] sm:$0x1]  ;;  %v3061_v6 = vrot.slane %v3053_v61, 7  ;;  %v3055_v8 = vld [vmem:[#allocation2 + $0x34] sm:$0x1] }
  0xe7   : > { %v2945_v63 = vsel %vm662_vm5, %v2944_v56, %v2943_v57  ;;  %v9520_v5 = vsel %vm665_vm6, %v2744_v58, %v2743_v59  ;;  %v3063_v9 = vrot.slane %v3054_v2, 6  ;;  %v3065_v11 = vrot.slane %v3055_v8, 5  ;;  %v3259_v16 = vld [vmem:[#allocation2 + $0x14] sm:$0x1]  ;;  %v3260_v17 = vld [vmem:[#allocation2 + $0x24] sm:$0x1] }
  0xe8   : > { %v9525_v7 = vsel %vm665_vm6, %v2946_v60, %v2945_v63  ;;  %v3062_v10 = vsel %vm659_vm4, %v3061_v6, %v3052_v4  ;;  %v3379_v18 = vld [vmem:[#allocation2 + $0x15] sm:$0x1]  ;;  %v3258_v19 = vld [vmem:[#allocation2 + $0x4] sm:$0x1]  ;;  %v3380_v20 = vld [vmem:[#allocation2 + $0x25] sm:$0x1] }
  0xe9   : > { %v3064_v13 = vsel %vm662_vm5, %v3063_v9, %v3062_v10  ;;  %v3268_v22 = vrot.slane %v3259_v16, 7  ;;  %v3378_v23 = vld [vmem:[#allocation2 + $0x5] sm:$0x1]  ;;  %v3261_v24 = vld [vmem:[#allocation2 + $0x34] sm:$0x1]  ;;  %v3270_v25 = vrot.slane %v3260_v17, 6  ;;  %v619_v17 = vlaneseq }
  0xea   : > { %1392 = vrot.lane.b32.xlu1 %v9439_v32, %s9155_s12  ;;  %1338 = vrot.lane.b32.xlu2 %v9439_v32, %s9156_s22  ;;  %v9534_v21 = vsel %vm665_vm6, %v3065_v11, %v3064_v13  ;;  %v3387_v26 = vrot.slane %v3379_v18, 7  ;;  %v3381_v28 = vld [vmem:[#allocation2 + $0x35] sm:$0x1]  ;;  %v3389_v29 = vrot.slane %v3380_v20, 6  ;;  %v3272_v31 = vrot.slane %v3261_v24, 5 }
  0xeb   : > { %1484 = vrot.lane.b32.xlu0 %v9444_v34, %s9156_s22  ;;  %v3269_v27 = vsel %vm659_vm4, %v3268_v22, %v3258_v19  ;;  %v9547_v35 = vld [vmem:[%s11378_s6] sm:$0xf]  ;;  %v3391_v38 = vrot.slane %v3381_v28, 5  ;;  %v3580_v39 = vld [vmem:[#allocation2 + $0x14] sm:$0x1] }
  0xec   : > { %v3388_v30 = vsel %vm659_vm4, %v3387_v26, %v3378_v23  ;;  %11423 = vst [vmem:[#allocation11_spill] sm:$0xff] %v9547_v35  ;;  %v3271_v37 = vsel %vm662_vm5, %v3270_v25, %v3269_v27  ;;  %v3581_v41 = vld [vmem:[#allocation2 + $0x24] sm:$0x1]  ;;  %v3589_v44 = vrot.slane %v3580_v39, 7  ;;  %v8246_v46 = vld [vmem:[%s11375_s3 + $0x20] sm:$0xf] }
  0xed   : > { %v3390_v40 = vsel %vm662_vm5, %v3389_v29, %v3388_v30  ;;  %v3579_v42 = vld [vmem:[#allocation2 + $0x4] sm:$0x1]  ;;  %v9552_v43 = vsel %vm665_vm6, %v3272_v31, %v3271_v37  ;;  %v3582_v49 = vld [vmem:[#allocation2 + $0x34] sm:$0x1]  ;;  %v3591_v50 = vrot.slane %v3581_v41, 6  ;;  %8251 = vmatmul.msk.f32.vlgmr.msra.gmra.mxu1 %vm669_vm8, %v8246_v46  ;;  %v9587_v26 = vshrl.u32 %v619_v17, 7 }
  0xee   : > { %v9560_v47 = vsel %vm665_vm6, %v3391_v38, %v3390_v40  ;;  %v3590_v51 = vsel %vm659_vm4, %v3589_v44, %v3579_v42  ;;  %v8253_v52 = vld [vmem:[%s11375_s3 + $0x34] sm:$0xf]  ;;  %v3593_v54 = vrot.slane %v3582_v49, 5  ;;  %v3700_v56 = vld [vmem:[#allocation2 + $0x15] sm:$0x1] }
  0xef   : > { %v3592_v55 = vsel %vm662_vm5, %v3591_v50, %v3590_v51  ;;  %v3701_v57 = vld [vmem:[#allocation2 + $0x25] sm:$0x1]  ;;  %v3901_v58 = vld [vmem:[#allocation2 + $0x15] sm:$0x1]  ;;  %v3708_v63 = vrot.slane %v3700_v56, 7  ;;  %v621_v39 = vadd.s32 8, %v9587_v26 }
  0xf0   : > { %v3699_v59 = vld [vmem:[#allocation2 + $0x5] sm:$0x1]  ;;  %v9575_v61 = vsel %vm665_vm6, %v3593_v54, %v3592_v55  ;;  %v3702_v4 = vld [vmem:[#allocation2 + $0x35] sm:$0x1]  ;;  %v3710_v6 = vrot.slane %v3701_v57, 6  ;;  %v3910_v8 = vrot.slane %v3901_v58, 7 }
  0xf1   : > { %v3902_v60 = vld [vmem:[#allocation2 + $0x25] sm:$0x1]  ;;  %11424 = vst [vmem:[#allocation12_spill] sm:$0xff] %v9575_v61  ;;  %v3709_v9 = vsel %vm659_vm4, %v3708_v63, %v3699_v59  ;;  %v3903_v10 = vld [vmem:[#allocation2 + $0x35] sm:$0x1]  ;;  %v3712_v18 = vrot.slane %v3702_v4, 5 }
  0xf2   : > { %1538 = vrot.lane.b32.xlu1 %v9444_v34, %s9155_s12  ;;  %1659 = vrot.lane.b32.xlu2 %v9453_v45, %s9156_s22  ;;  %v3900_v2 = vld [vmem:[#allocation2 + $0x5] sm:$0x1]  ;;  %v3912_v11 = vrot.slane %v3902_v60, 6  ;;  %v3711_v19 = vsel %vm662_vm5, %v3710_v6, %v3709_v9  ;;  %v3914_v20 = vrot.slane %v3903_v10, 5  ;;  %v4021_v22 = vld [vmem:[#allocation2 + $0x16] sm:$0x1] }
  0xf3   : > { %1713 = vrot.lane.b32.xlu0 %v9453_v45, %s9155_s12  ;;  %v3911_v16 = vsel %vm659_vm4, %v3910_v8, %v3900_v2  ;;  %v4022_v24 = vld [vmem:[#allocation2 + $0x26] sm:$0x1]  ;;  %v9590_v27 = vsel %vm665_vm6, %v3712_v18, %v3711_v19  ;;  %v4029_v28 = vrot.slane %v4021_v22, 7  ;;  %v4023_v30 = vld [vmem:[#allocation2 + $0x36] sm:$0x1]  ;;  %v625_v51 = vmul.u32 2, %v621_v39 }
  0xf4   : > { %v3913_v23 = vsel %vm662_vm5, %v3912_v11, %v3911_v16  ;;  %v4020_v25 = vld [vmem:[#allocation2 + $0x6] sm:$0x1]  ;;  %11425 = vst [vmem:[#allocation13_spill] sm:$0xff] %v9590_v27  ;;  %v4031_v31 = vrot.slane %v4022_v24, 6  ;;  %v4033_v40 = vrot.slane %v4023_v30, 5  ;;  %v624_v58 = vmul.u32 2, %v9587_v26 }
  0xf5   : > { %v9595_v29 = vsel %vm665_vm6, %v3914_v20, %v3913_v23  ;;  %v4030_v37 = vsel %vm659_vm4, %v4029_v28, %v4020_v25  ;;  %v4222_v42 = vld [vmem:[#allocation2 + $0x15] sm:$0x1]  ;;  %v4223_v44 = vld [vmem:[#allocation2 + $0x25] sm:$0x1]  ;;  %v4342_v46 = vld [vmem:[#allocation2 + $0x16] sm:$0x1] }
  0xf6   : > { %11426 = vst [vmem:[#allocation14_spill] sm:$0xff] %v9595_v29  ;;  %v4032_v41 = vsel %vm662_vm5, %v4031_v31, %v4030_v37  ;;  %v4221_v49 = vld [vmem:[#allocation2 + $0x5] sm:$0x1]  ;;  %v4343_v50 = vld [vmem:[#allocation2 + $0x26] sm:$0x1]  ;;  %v4233_v56 = vrot.slane %v4223_v44, 6 }
  0xf7   : > { %v4341_v54 = vld [vmem:[#allocation2 + $0x6] sm:$0x1]  ;;  %v4224_v55 = vld [vmem:[#allocation2 + $0x35] sm:$0x1]  ;;  %v4350_v57 = vrot.slane %v4342_v46, 7  ;;  %v633_v59 = vadd.s32 1, %v625_v51 }
  0xf8   : > { %v4344_v63 = vld [vmem:[#allocation2 + $0x36] sm:$0x1]  ;;  %v4352_v2 = vrot.slane %v4343_v50, 6  ;;  %v8247_v6 = vld [vmem:[%s11375_s3 + $0x24] sm:$0xf]  ;;  %v623_v10 = vand.u32 127, %v619_v17 }
  0xf9   : > { %v8252_v8 = vld [vmem:[%s11375_s3 + $0x30] sm:$0xf]  ;;  %v4351_v9 = vsel %vm659_vm4, %v4350_v57, %v4341_v54  ;;  %v632_v11 = vadd.s32 1, %v624_v58  ;;  %v4235_v18 = vrot.slane %v4224_v55, 5  ;;  %v4354_v20 = vrot.slane %v4344_v63, 5 }
  0xfa   : > { %1805 = vrot.lane.b32.xlu1 %v9466_v62, %s9156_s22  ;;  %1859 = vrot.lane.b32.xlu2 %v9466_v62, %s9155_s12  ;;  %vm9629_vm9 = vcmp.eq.s32.totalorder %v623_v10, %v633_v59  ;;  %v4353_v17 = vsel %vm662_vm5, %v4352_v2, %v4351_v9  ;;  %v4548_v23 = vld [vmem:[#allocation2 + $0x16] sm:$0x1]  ;;  %v4549_v24 = vld [vmem:[#allocation2 + $0x26] sm:$0x1]  ;;  %v11384_v28 = vmov 1.0   ;;  %vm9663_vm11 = vcmp.eq.s32.totalorder %v623_v10, %v625_v51 }
  0xfb   : > { %2039 = vrot.lane.b32.xlu0 %v9471_v0, %s9155_s12  ;;  %vm9639_vm10 = vcmp.eq.s32.totalorder %v623_v10, %v632_v11  ;;  %v4547_v30 = vld [vmem:[#allocation2 + $0x6] sm:$0x1]  ;;  %v4550_v37 = vld [vmem:[#allocation2 + $0x36] sm:$0x1]  ;;  %v4559_v39 = vrot.slane %v4549_v24, 6  ;;  %vm9685_vm12 = vcmp.eq.s32.totalorder %v623_v10, %v624_v58 }
  0xfc   : > { %v4561_v51 = vrot.slane %v4550_v37, 5  ;;  %v8261_v54 = vld [vmem:[%s11375_s3 + $0x2c] sm:$0xf]  ;;  %v4869_v57 = vld [vmem:[#allocation2 + $0x16] sm:$0x1] }
  0xfd   : > { %v4667_v58 = vld [vmem:[#allocation2 + $0x7] sm:$0x1]  ;;  %v4870_v59 = vld [vmem:[#allocation2 + $0x26] sm:$0x1]  ;;  %v8276_v9 = vld [vmem:[%s11375_s3 + $0x4] sm:$0xf] }
  0xfe   : > { %v4868_v63 = vld [vmem:[#allocation2 + $0x6] sm:$0x1]  ;;  %v4871_v11 = vld [vmem:[#allocation2 + $0x36] sm:$0x1]  ;;  %v4989_v37 = vld [vmem:[#allocation2 + $0x17] sm:$0x1] }
  0xff   : > { %v5836_v12 = vld [vmem:[#allocation2 + $0x8] sm:$0x1]  ;;  %v8759_v22 = vld [vmem:[%s11375_s3 + $0x8] sm:$0xf]  ;;  %v8762_v31 = vld [vmem:[%s11375_s3 + $0xc] sm:$0xf] }
 0x102   : > { %1985 = vrot.lane.b32.xlu1 %v9471_v0, %s9156_s22  ;;  %2131 = vrot.lane.b32.xlu2 %v9480_v14, %s9156_s22 }
 0x103   : > { %2185 = vrot.lane.b32.xlu0 %v9480_v14, %s9155_s12 }
 0x10a   : > { %2306 = vrot.lane.b32.xlu1 %v9493_v33, %s9156_s22  ;;  %2360 = vrot.lane.b32.xlu2 %v9493_v33, %s9155_s12 }
 0x10b   : > { %2452 = vrot.lane.b32.xlu0 %v9498_v36, %s9156_s22 }
 0x112   : > { %2506 = vrot.lane.b32.xlu1 %v9498_v36, %s9155_s12  ;;  %2681 = vrot.lane.b32.xlu2 %v9507_v48, %s9155_s12 }
 0x113   : > { %2627 = vrot.lane.b32.xlu0 %v9507_v48, %s9156_s22 }
 0x11a   : > { %2773 = vrot.lane.b32.xlu1 %v9520_v5, %s9156_s22  ;;  %2827 = vrot.lane.b32.xlu2 %v9520_v5, %s9155_s12 }
 0x11b   : > { %2948 = vrot.lane.b32.xlu0 %v9525_v7, %s9156_s22 }
 0x122   : > { %3002 = vrot.lane.b32.xlu1 %v9525_v7, %s9155_s12  ;;  %3094 = vrot.lane.b32.xlu2 %v9534_v21, %s9156_s22 }
 0x123   : > { %3148 = vrot.lane.b32.xlu0 %v9534_v21, %s9155_s12 }
 0x12a   : > { %3328 = vrot.lane.b32.xlu1 %v9552_v43, %s9155_s12  ;;  %3274 = vrot.lane.b32.xlu2 %v9552_v43, %s9156_s22 }
 0x12b   : > { %3420 = vrot.lane.b32.xlu0 %v9560_v47, %s9156_s22 }
 0x12c   : > { %v726_v53 = vpop.permute.xlu2 %725 }
 0x12d   : > { %8254 = vmatpush.msk.msra.mxu2 %vm673_vm7, %v726_v53  ;;  %v4231_v53 = vrot.slane %v4222_v42, 7  ;;  %v8258_v42 = vld [vmem:[%s11375_s3 + $0x28] sm:$0xf] }
 0x12e   : > { %8255 = vmatmul.msk.f32.vlgmr.msra.gmra.mxu2 %vm669_vm8, %v8253_v52  ;;  %v9607_v52 = vsel %vm665_vm6, %v4033_v40, %v4032_v41 }
 0x12f   : > { %11427 = vst [vmem:[#allocation15_spill] sm:$0xff] %v9607_v52  ;;  %v4232_v60 = vsel %vm659_vm4, %v4231_v53, %v4221_v49  ;;  %v8267_v49 = vld [vmem:[%s11375_s3 + $0x3c] sm:$0xf] }
 0x130   : > { %v4234_v19 = vsel %vm662_vm5, %v4233_v56, %v4232_v60  ;;  %v4668_v53 = vld [vmem:[#allocation2 + $0x17] sm:$0x1]  ;;  %v4669_v56 = vld [vmem:[#allocation2 + $0x27] sm:$0x1] }
 0x131   : > { %v9646_v26 = vsel %vm665_vm6, %v4235_v18, %v4234_v19  ;;  %v4676_v60 = vrot.slane %v4668_v53, 7 }
 0x132   : > { %3474 = vrot.lane.b32.xlu1 %v9560_v47, %s9155_s12  ;;  %3595 = vrot.lane.b32.xlu2 %v9575_v61, %s9156_s22  ;;  %11432 = vst [vmem:[#allocation16_spill] sm:$0xff] %v9646_v26 }
 0x133   : > { %3649 = vrot.lane.b32.xlu0 %v9575_v61, %s9155_s12  ;;  %v4677_v10 = vsel %vm659_vm4, %v4676_v60, %v4667_v58  ;;  %v8290_v58 = vld [vmem:[%s11375_s3 + $0xc] sm:$0xf]  ;;  %v5190_v60 = vld [vmem:[#allocation2 + $0x17] sm:$0x1] }
 0x134   : > { %v876_v13 = vpop.permute.xlu2 %875 }
 0x13a   : > { %3741 = vrot.lane.b32.xlu1 %v9590_v27, %s9156_s22  ;;  %3795 = vrot.lane.b32.xlu2 %v9590_v27, %s9155_s12 }
 0x13b   : > { %3970 = vrot.lane.b32.xlu0 %v9595_v29, %s9155_s12 }
 0x13c   : > { %v9602_v38 = vpop.permute.xlu2 %1161 }
 0x142   : > { %3916 = vrot.lane.b32.xlu1 %v9595_v29, %s9156_s22  ;;  %4062 = vrot.lane.b32.xlu2 %v9607_v52, %s9156_s22 }
 0x143   : > { %4116 = vrot.lane.b32.xlu0 %v9607_v52, %s9155_s12 }
 0x144   : > { %v9617_v4 = vpop.permute.xlu2 %1338 }
 0x145   : > { %v668_v16 = vpop.permute.xlu0 %667 }
 0x146   : > { %8248 = vmatpush.msk.msra.mxu0 %vm673_vm7, %v668_v16  ;;  %8256 = vmatpush.msk.msra.mxu3 %vm673_vm7, %v668_v16  ;;  %v4880_v16 = vrot.slane %v4870_v59, 6 }
 0x147   : > { %8249 = vmatmul.msk.f32.vlgmr.msra.gmra.mxu0 %vm669_vm8, %v8247_v6  ;;  %8257 = vmatmul.msk.f32.vlgmr.msra.gmra.mxu3 %vm669_vm8, %v8252_v8  ;;  %v4678_v6 = vrot.slane %v4669_v56, 6  ;;  %v4878_v8 = vrot.slane %v4869_v57, 7 }
 0x148   : > { %8259 = vmatpush.msk.msrb.mxu0 %vm673_vm7, %v9412_v1  ;;  %8268 = vmatpush.msk.msrb.mxu3 %vm673_vm7, %v876_v13  ;;  %v9654_v1 = vsel %vm665_vm6, %v4354_v20, %v4353_v17  ;;  %v4557_v13 = vrot.slane %v4548_v23, 7  ;;  %v998_v23 = vld [vmem:[%s11375_s3] sm:$0xf] }
 0x149   : > { %11433 = vst [vmem:[#allocation17_spill] sm:$0xff] %v9654_v1  ;;  %v4879_v20 = vsel %vm659_vm4, %v4878_v8, %v4868_v63  ;;  %v5189_v8 = vld [vmem:[#allocation2 + $0x7] sm:$0x1] }
 0x14a   : > { %8279 = vmatpush.msk.msra.mxu3 %vm673_vm7, %v9417_v3  ;;  %8270 = vmatpush.msk.msra.mxu0 %vm9629_vm9, %v11384_v28  ;;  %v8264_v3 = vld [vmem:[%s11375_s3 + $0x38] sm:$0xf]  ;;  %v4558_v44 = vsel %vm659_vm4, %v4557_v13, %v4547_v30  ;;  %v4679_v30 = vsel %vm662_vm5, %v4678_v6, %v4677_v10  ;;  %v4882_v13 = vrot.slane %v4871_v11, 5  ;;  %v5310_v6 = vld [vmem:[#allocation2 + $0x18] sm:$0x1]  ;;  %v5199_v10 = vrot.slane %v5190_v60, 7 }
 0x14b   : > { %4237 = vrot.lane.b32.xlu1 %v9646_v26, %s9156_s22  ;;  %4291 = vrot.lane.b32.xlu2 %v9646_v26, %s9155_s12  ;;  %v4560_v55 = vsel %vm662_vm5, %v4559_v39, %v4558_v44  ;;  %v4990_v39 = vld [vmem:[#allocation2 + $0x27] sm:$0x1]  ;;  %v5309_v11 = vld [vmem:[#allocation2 + $0x8] sm:$0x1] }
 0x14c   : > { %4383 = vrot.lane.b32.xlu0 %v9654_v1, %s9156_s22  ;;  %8271 = vmatpush.msk.msra.mxu0 %vm9639_vm10, %v11384_v28  ;;  %v820_v40 = vpop.permute.xlu1 %819  ;;  %v9670_v41 = vpop.permute.xlu2 %1659  ;;  %v9707_v2 = vsel %vm665_vm6, %v4561_v51, %v4560_v55  ;;  %v4991_v51 = vld [vmem:[#allocation2 + $0x37] sm:$0x1]  ;;  %v4999_v53 = vrot.slane %v4990_v39, 6 }
 0x14d   : > { %8262 = vmatpush.msk.msrb.mxu1 %vm673_vm7, %v820_v40  ;;  %8265 = vmatpush.msk.msrb.mxu2 %vm673_vm7, %v820_v40  ;;  %v1012_v46 = vpop.permute.xlu0 %1011  ;;  %11438 = vst [vmem:[#allocation18_spill] sm:$0xff] %v9707_v2  ;;  %v5001_v59 = vrot.slane %v4991_v51, 5 }
 0x14e   : > { %8266 = vmatmul.msk.f32.vlgmr.msrb.gmra.mxu2 %vm669_vm8, %v8264_v3  ;;  %8263 = vmatmul.msk.f32.vlgmr.msrb.gmra.mxu1 %vm669_vm8, %v8261_v54  ;;  %v4881_v3 = vsel %vm662_vm5, %v4880_v16, %v4879_v20 }
 0x14f   : > { %8273 = vmatpush.msk.msra.mxu1 %vm9663_vm11, %v11384_v28  ;;  %8277 = vmatpush.msk.msra.mxu2 %vm673_vm7, %v1012_v46  ;;  %v9746_v44 = vsel %vm665_vm6, %v4882_v13, %v4881_v3 }
 0x150   : > { %8260 = vmatmul.msk.f32.vlgmr.msrb.gmra.mxu0 %vm669_vm8, %v8258_v42  ;;  %8269 = vmatmul.msk.f32.vlgmr.msrb.gmra.mxu3 %vm669_vm8, %v8267_v49  ;;  %v4988_v42 = vld [vmem:[#allocation2 + $0x7] sm:$0x1]  ;;  %11440 = vst [vmem:[#allocation20_spill] sm:$0xff] %v9746_v44  ;;  %v8287_v49 = vld [vmem:[%s11375_s3 + $0x8] sm:$0xf] }
 0x151   : > { %8288 = vmatpush.msk.msrb.mxu2 %vm673_vm7, %v9426_v15  ;;  %8291 = vmatpush.msk.msrb.mxu3 %vm673_vm7, %v9602_v38  ;;  %v4670_v15 = vld [vmem:[#allocation2 + $0x37] sm:$0x1] }
 0x152   : > { %8274 = vmatpush.msk.msra.mxu1 %vm9685_vm12, %v11384_v28  ;;  %v4680_v24 = vrot.slane %v4670_v15, 5  ;;  %v5191_v15 = vld [vmem:[#allocation2 + $0x27] sm:$0x1] }
 0x153   : > { %4437 = vrot.lane.b32.xlu1 %v9654_v1, %s9155_s12  ;;  %4617 = vrot.lane.b32.xlu2 %v9707_v2, %s9155_s12  ;;  %v5201_v20 = vrot.slane %v5191_v15, 6  ;;  %v5513_v15 = vld [vmem:[#allocation2 + $0x37] sm:$0x1] }
 0x154   : > { %8285 = vmatpush.msk.msrb.mxu1 %vm673_vm7, %v1012_v46  ;;  %4563 = vrot.lane.b32.xlu0 %v9707_v2, %s9156_s22  ;;  %v1068_v18 = vpop.permute.xlu1 %1067  ;;  %v9718_v19 = vpop.permute.xlu2 %1859  ;;  %v9735_v40 = vsel %vm665_vm6, %v4680_v24, %v4679_v30  ;;  %v4997_v46 = vrot.slane %v4989_v37, 7  ;;  %v5200_v24 = vsel %vm659_vm4, %v5199_v10, %v5189_v8  ;;  %v5312_v30 = vld [vmem:[#allocation2 + $0x38] sm:$0x1] }
 0x155   : > { %8283 = vmatpush.msk.msrb.mxu0 %vm673_vm7, %v1068_v18  ;;  %v9722_v17 = vpop.permute.xlu0 %1217  ;;  %11439 = vst [vmem:[#allocation19_spill] sm:$0xff] %v9735_v40  ;;  %v5192_v18 = vld [vmem:[#allocation2 + $0x37] sm:$0x1]  ;;  %v5322_v51 = vrot.slane %v5312_v30, 5  ;;  %v5630_v30 = vld [vmem:[#allocation2 + $0x8] sm:$0x1] }
 0x156   : > { %8278 = vmatmul.msk.f32.vlgmr.msra.gmra.mxu2 %vm669_vm8, %v8276_v9  ;;  %v4998_v56 = vsel %vm659_vm4, %v4997_v46, %v4988_v42  ;;  %v5311_v9 = vld [vmem:[#allocation2 + $0x28] sm:$0x1]  ;;  %v5203_v46 = vrot.slane %v5192_v18, 5  ;;  %v5524_v18 = vrot.slane %v5513_v15, 5 }
 0x157   : > { %8299 = vmatpush.msk.msra.mxu2 %vm9629_vm9, %v11384_v28  ;;  %v5000_v63 = vsel %vm662_vm5, %v4999_v53, %v4998_v56  ;;  %v5320_v13 = vrot.slane %v5311_v9, 6  ;;  %v5512_v56 = vld [vmem:[#allocation2 + $0x27] sm:$0x1] }
 0x158   : > { %8280 = vmatmul.msk.f32.vlgmr.msra.gmra.mxu3 %vm669_vm8, %v998_v23  ;;  %v9775_v16 = vsel %vm665_vm6, %v5001_v59, %v5000_v63  ;;  %v5318_v23 = vrot.slane %v5310_v6, 7  ;;  %v5510_v59 = vld [vmem:[#allocation2 + $0x7] sm:$0x1]  ;;  %v5522_v6 = vrot.slane %v5512_v56, 6  ;;  %v559_v56 = vld [vmem:[%s462_s17 + $0x8] sm:$0x1] }
 0x159   : > { %8302 = vmatpush.msk.msra.mxu3 %vm9663_vm11, %v11384_v28  ;;  %8300 = vmatpush.msk.msra.mxu2 %vm9639_vm10, %v11384_v28  ;;  %11441 = vst [vmem:[#allocation21_spill] sm:$0xff] %v9775_v16 }
 0x15a   : > { %v5319_v39 = vsel %vm659_vm4, %v5318_v23, %v5309_v11 }
 0x15b   : > { %4709 = vrot.lane.b32.xlu1 %v9735_v40, %s9156_s22  ;;  %8303 = vmatpush.msk.msra.mxu3 %vm9685_vm12, %v11384_v28  ;;  %v5321_v53 = vsel %vm662_vm5, %v5320_v13, %v5319_v39 }
 0x15c   : > { %4884 = vrot.lane.b32.xlu0 %v9746_v44, %s9156_s22  ;;  %4763 = vrot.lane.b32.xlu2 %v9735_v40, %s9155_s12  ;;  %v1393_v54 = vpop.permute.xlu1 %1392  ;;  %v9758_v55 = vpop.permute.xlu2 %2131  ;;  %v9798_v60 = vsel %vm665_vm6, %v5322_v51, %v5321_v53 }
 0x15d   : > { %v9761_v57 = vpop.permute.xlu0 %1484  ;;  %11443 = vst [vmem:[#allocation23_spill] sm:$0xff] %v9798_v60 }
 0x15e   : > { %8289 = vmatmul.msk.f32.vlgmr.msrb.gmra.mxu2 %vm669_vm8, %v8287_v49  ;;  %v5202_v49 = vsel %vm662_vm5, %v5201_v20, %v5200_v24  ;;  %v5631_v20 = vld [vmem:[#allocation2 + $0x18] sm:$0x1]  ;;  %v5632_v24 = vld [vmem:[#allocation2 + $0x28] sm:$0x1] }
 0x15f   : > { %8313 = vmatpush.msk.msrb.mxu2 %vm673_vm7, %v1393_v54  ;;  %v5511_v54 = vld [vmem:[#allocation2 + $0x17] sm:$0x1]  ;;  %v5639_v13 = vrot.slane %v5631_v20, 7  ;;  %v560_v20 = vld [vmem:[%s462_s17 + $0x10] sm:$0x1] }
 0x160   : > { %8292 = vmatmul.msk.f32.vlgmr.msrb.gmra.mxu3 %vm669_vm8, %v8290_v58  ;;  %v9793_v58 = vsel %vm665_vm6, %v5203_v46, %v5202_v49  ;;  %v5520_v63 = vrot.slane %v5511_v54, 7  ;;  %v5633_v46 = vld [vmem:[#allocation2 + $0x38] sm:$0x1]  ;;  %v5641_v49 = vrot.slane %v5632_v24, 6 }
 0x161   : > { %8315 = vmatpush.msk.msrb.mxu3 %vm673_vm7, %v9617_v4  ;;  %11442 = vst [vmem:[#allocation22_spill] sm:$0xff] %v9793_v58  ;;  %v5640_v51 = vsel %vm659_vm4, %v5639_v13, %v5630_v30  ;;  %v5643_v15 = vrot.slane %v5633_v46, 5  ;;  %v561_v30 = vld [vmem:[%s462_s17 + $0x18] sm:$0x1]  ;;  %v558_v46 = vld [vmem:[%s462_s17] sm:$0x1] }
 0x162   : > { %v5521_v10 = vsel %vm659_vm4, %v5520_v63, %v5510_v59  ;;  %v594_v59 = vstv %s593_s24  ;;  %s9165_s17 = smov 77   ;;  %s9168_s24 = smov 51  }
 0x163   : > { %4938 = vrot.lane.b32.xlu1 %v9746_v44, %s9155_s12  ;;  %v5523_v23 = vsel %vm662_vm5, %v5522_v6, %v5521_v10  ;;  %v5642_v6 = vsel %vm662_vm5, %v5641_v49, %v5640_v51  ;;  %v596_v10 = vmul.f32 %v594_v59, %v559_v56  ;;  %v597_v49 = vmul.f32 %v594_v59, %v560_v20  ;;  %v5837_v51 = vld [vmem:[#allocation2 + $0x18] sm:$0x1] }
 0x164   : > { %5084 = vrot.lane.b32.xlu0 %v9775_v16, %s9155_s12  ;;  %5030 = vrot.lane.b32.xlu2 %v9775_v16, %s9156_s22  ;;  %v9782_v3 = vpop.permute.xlu1 %1538  ;;  %v9784_v37 = vpop.permute.xlu2 %2360  ;;  %v9818_v39 = vsel %vm665_vm6, %v5524_v18, %v5523_v23  ;;  %v9833_v18 = vsel %vm665_vm6, %v5643_v15, %v5642_v6  ;;  %v598_v56 = vmul.f32 %v594_v59, %v561_v30  ;;  %v5838_v15 = vld [vmem:[#allocation2 + $0x28] sm:$0x1]  ;;  %v5846_v28 = vrot.slane %v5837_v51, 7 }
 0x165   : > { %v9787_v42 = vpop.permute.xlu0 %1713  ;;  %11444 = vst [vmem:[#allocation24_spill] sm:$0xff] %v9818_v39  ;;  %v595_v6 = vmul.f32 %v594_v59, %v558_v46  ;;  %v5848_v35 = vrot.slane %v5838_v15, 6  ;;  %v6158_v46 = vld [vmem:[#allocation2 + $0x18] sm:$0x1]  ;;  %v6159_v51 = vld [vmem:[#allocation2 + $0x28] sm:$0x1] }
 0x166   : > { %11445 = vst [vmem:[#allocation25_spill] sm:$0xff] %v9833_v18 }
 0x16b   : > { %5259 = vrot.lane.b32.xlu1 %v9793_v58, %s9155_s12 }
 0x16c   : > { %5351 = vrot.lane.b32.xlu0 %v9798_v60, %s9156_s22  ;;  %5205 = vrot.lane.b32.xlu2 %v9793_v58, %s9156_s22  ;;  %v9805_v8 = vpop.permute.xlu1 %1805  ;;  %v9807_v9 = vpop.permute.xlu2 %2681 }
 0x16d   : > { %v9812_v11 = vpop.permute.xlu0 %2039 }
 0x173   : > { %5405 = vrot.lane.b32.xlu1 %v9798_v60, %s9155_s12 }
 0x174   : > { %5580 = vrot.lane.b32.xlu0 %v9818_v39, %s9155_s12  ;;  %5526 = vrot.lane.b32.xlu2 %v9818_v39, %s9156_s22  ;;  %v9825_v53 = vpop.permute.xlu1 %1985  ;;  %v9827_v54 = vpop.permute.xlu2 %2827 }
 0x175   : > { %v9829_v63 = vpop.permute.xlu0 %2185 }
 0x17b   : > { %5672 = vrot.lane.b32.xlu1 %v9833_v18, %s9156_s22 }
 0x17c   : > { %605 = vrot.lane.b32.xlu0 %v596_v10, %s9154_s15  ;;  %5726 = vrot.lane.b32.xlu2 %v9833_v18, %s9155_s12  ;;  %v9840_v23 = vpop.permute.xlu1 %2306  ;;  %v9842_v24 = vpop.permute.xlu2 %3094  ;;  %v5839_v10 = vld [vmem:[#allocation2 + $0x38] sm:$0x1]  ;;  %v5847_v18 = vsel %vm659_vm4, %v5846_v28, %v5836_v12  ;;  %v6157_v12 = vld [vmem:[#allocation2 + $0x8] sm:$0x1]  ;;  %v6167_v28 = vrot.slane %v6158_v46, 7 }
 0x17d   : > { %v9844_v13 = vpop.permute.xlu0 %2452  ;;  %v5850_v30 = vrot.slane %v5839_v10, 5  ;;  %v5849_v59 = vsel %vm662_vm5, %v5848_v35, %v5847_v18  ;;  %v6169_v10 = vrot.slane %v6159_v51, 6 }
 0x17e   : > { %v6168_v18 = vsel %vm659_vm4, %v6167_v28, %v6157_v12 }
 0x183   : > { %607 = vrot.lane.b32.xlu1 %v597_v49, %s9154_s15  ;;  %v9858_v49 = vsel %vm665_vm6, %v5850_v30, %v5849_v59  ;;  %v6170_v59 = vsel %vm662_vm5, %v6169_v10, %v6168_v18 }
 0x184   : > { %609 = vrot.lane.b32.xlu0 %v598_v56, %s9154_s15  ;;  %603 = vrot.lane.b32.xlu2 %v595_v6, %s9154_s15  ;;  %v9850_v39 = vpop.permute.xlu1 %2506  ;;  %v9852_v60 = vpop.permute.xlu2 %3274  ;;  %11446 = vst [vmem:[#allocation26_spill] sm:$0xff] %v9858_v49  ;;  %v6160_v6 = vld [vmem:[#allocation2 + $0x38] sm:$0x1] }
 0x185   : > { %v9854_v20 = vpop.permute.xlu0 %2627  ;;  %v6171_v30 = vrot.slane %v6160_v6, 5 }
 0x187   : > { %v9873_v58 = vsel %vm665_vm6, %v6171_v30, %v6170_v59 }
 0x188   : > { %11447 = vst [vmem:[#allocation27_spill] sm:$0xff] %v9873_v58 }
 0x18b   : > { %5906 = vrot.lane.b32.xlu1 %v9858_v49, %s9155_s12 }
 0x18c   : > { %5852 = vrot.lane.b32.xlu2 %v9858_v49, %s9156_s22  ;;  %v9864_v56 = vpop.permute.xlu1 %2773  ;;  %v9866_v15 = vpop.permute.xlu2 %3595 }
 0x18d   : > { %v9868_v35 = vpop.permute.xlu0 %2948 }
 0x194   : > { %6173 = vrot.lane.b32.xlu2 %v9873_v58, %s9156_s22  ;;  %v9877_v46 = vpop.permute.xlu1 %3002  ;;  %v9879_v49 = vpop.permute.xlu2 %3795 }
 0x195   : > { %11448 = vst [vmem:[#allocation28_spill] sm:$0xff] %v9879_v49  ;;  %v9881_v16 = vpop.permute.xlu0 %3148 }
 0x19c   : > { %v9883_v51 = vpop.permute.xlu1 %3328  ;;  %v9885_v44 = vpop.permute.xlu2 %4062 }
 0x19d   : > { %11449 = vst [vmem:[#allocation29_spill] sm:$0xff] %v9885_v44  ;;  %v9887_v12 = vpop.permute.xlu0 %3420 }
 0x1a4   : > { %v9889_v28 = vpop.permute.xlu1 %3474 }
 0x1a5   : > { %11450 = vst [vmem:[#allocation30_spill] sm:$0xff] %v9889_v28  ;;  %v9891_v6 = vpop.permute.xlu2 %4291  ;;  %v9893_v10 = vpop.permute.xlu0 %3649 }
 0x1a6   : > { %11451 = vst [vmem:[#allocation31_spill] sm:$0xff] %v9891_v6 }
 0x1a7   : > { %11452 = vst [vmem:[#allocation32_spill] sm:$0xff] %v9893_v10 }
 0x1ac   : > { %v9895_v18 = vpop.permute.xlu1 %3741 }
 0x1ad   : > { %11453 = vst [vmem:[#allocation33_spill] sm:$0xff] %v9895_v18  ;;  %v9897_v30 = vpop.permute.xlu0 %3970  ;;  %v9899_v59 = vpop.permute.xlu2 %4617 }
 0x1ae   : > { %11454 = vst [vmem:[#allocation34_spill] sm:$0xff] %v9897_v30  ;;  %v718_v30 = vpop.f32.mrf.mxu1 }
 0x1af   : > { %11455 = vst [vmem:[#allocation35_spill] sm:$0xff] %v9899_v59 }
 0x1b1   : > { %v749_v59 = vpop.f32.mrf.mxu2 }
 0x1b4   : > { %v9901_v40 = vpop.permute.xlu1 %3916 }
 0x1b5   : > { %11456 = vst [vmem:[#allocation36_spill] sm:$0xff] %v9901_v40  ;;  %v9903_v2 = vpop.permute.xlu0 %4116 }
 0x1b6   : > { %11457 = vst [vmem:[#allocation37_spill] sm:$0xff] %v9903_v2  ;;  %v9905_v1 = vpop.permute.xlu2 %4763 }
 0x1b7   : > { %11458 = vst [vmem:[#allocation38_spill] sm:$0xff] %v9905_v1 }
 0x1bd   : > { %v9907_v26 = vpop.permute.xlu1 %4237 }
 0x1be   : > { %11459 = vst [vmem:[#allocation39_spill] sm:$0xff] %v9907_v26  ;;  %v9909_v52 = vpop.permute.xlu0 %4383  ;;  %v9911_v44 = vpop.permute.xlu2 %5030 }
 0x1bf   : > { %11460 = vst [vmem:[#allocation40_spill] sm:$0xff] %v9909_v52 }
 0x1c0   : > { %11461 = vst [vmem:[#allocation41_spill] sm:$0xff] %v9911_v44 }
 0x1c4   : > { %v693_v29 = vpop.f32.mrf.mxu0 }
 0x1c5   : > { %v9913_v6 = vpop.permute.xlu1 %4437  ;;  %v719_v40 = vadd.f32 %v718_v30, %v693_v29 }
 0x1c6   : > { %11462 = vst [vmem:[#allocation42_spill] sm:$0xff] %v9913_v6  ;;  %v9915_v49 = vpop.permute.xlu0 %4563  ;;  %v9917_v27 = vpop.permute.xlu2 %5205 }
 0x1c7   : > { %11463 = vst [vmem:[#allocation43_spill] sm:$0xff] %v9915_v49 }
 0x1c8   : > { %11464 = vst [vmem:[#allocation44_spill] sm:$0xff] %v9917_v27 }
 0x1ca   : > { %v772_v18 = vpop.f32.mrf.mxu3 }
 0x1cb   : > { %v843_v44 = vpop.f32.mrf.mxu1  ;;  %v773_v6 = vadd.f32 %v772_v18, %v749_v59 }
 0x1cd   : > { %v9919_v2 = vpop.permute.xlu1 %4709  ;;  %v813_v1 = vpop.f32.mrf.mxu0 }
 0x1ce   : > { %v816_v10 = vadd.f32 %v813_v1, %v719_v40  ;;  %v9921_v26 = vpop.permute.xlu0 %4884  ;;  %v9923_v52 = vpop.permute.xlu2 %5526 }
 0x1d0   : > { %v846_v61 = vadd.f32 %v843_v44, %v816_v10 }
 0x1d1   : > { %v869_v28 = vpop.f32.mrf.mxu2 }
 0x1d2   : > { %v872_v49 = vadd.f32 %v869_v28, %v773_v6  ;;  %8275 = vmatmul.msk.f32.vlgmr.msra.gmra.mxu1 %vm903_vm13, %v846_v61  ;;  %v8281_v61 = vld [vmem:[%s11375_s3 + $0x10] sm:$0xf] }
 0x1d3   : > { %8297 = vmatpush.msk.msra.mxu1 %vm673_vm7, %v9722_v17  ;;  %v899_v29 = vpop.f32.mrf.mxu3 }
 0x1d4   : > { %v902_v30 = vadd.f32 %v899_v29, %v872_v49  ;;  %v8282_v49 = vld [vmem:[%s11375_s3 + $0x14] sm:$0xf] }
 0x1d5   : > { %v9928_v27 = vpop.permute.xlu1 %4938 }
 0x1d6   : > { %v9930_v1 = vpop.permute.xlu0 %5084  ;;  %v9932_v40 = vpop.permute.xlu2 %5726  ;;  %8272 = vmatmul.msk.f32.vlgmr.msra.gmra.mxu0 %vm903_vm13, %v902_v30  ;;  %v8293_v30 = vld [vmem:[%s11375_s3 + $0x18] sm:$0xf] }
 0x1d7   : > { %11465 = vst [vmem:[#allocation45_spill] sm:$0xff] %v9932_v40  ;;  %8294 = vmatpush.msk.msra.mxu0 %vm673_vm7, %v9602_v38 }
 0x1d9   : > { %v1035_v44 = vpop.f32.mrf.mxu2 }
 0x1da   : > { %8286 = vmatmul.msk.f32.vlgmr.msrb.gmra.mxu1 %vm669_vm8, %v8281_v61 }
 0x1db   : > { %8309 = vmatpush.msk.msrb.mxu1 %vm673_vm7, %v9439_v32  ;;  %v1060_v17 = vpop.f32.mrf.mxu3  ;;  %v8296_v32 = vld [vmem:[%s11375_s3 + $0x1c] sm:$0xf] }
 0x1dc   : > { %v1061_v38 = vadd.f32 %v1060_v17, %v1035_v44  ;;  %v8305_v17 = vld [vmem:[%s11375_s3 + $0x20] sm:$0xf] }
 0x1dd   : > { %v9946_v28 = vpop.permute.xlu1 %5259 }
 0x1de   : > { %v9948_v6 = vpop.permute.xlu0 %5351  ;;  %v604_v10 = vpop.permute.xlu2 %603  ;;  %8284 = vmatmul.msk.f32.vlgmr.msrb.gmra.mxu0 %vm669_vm8, %v8282_v49  ;;  %v11409_v49 = vmov 0  }
 0x1df   : > { %615 = vst.msk [vmem:[#allocation2 + $0x9] sm:$0x1] %vm586_vm3, %v604_v10  ;;  %8307 = vmatpush.msk.msrb.mxu0 %vm673_vm7, %v9617_v4  ;;  %9010 = vset.pattern.permute.xlu0 %v11409_v49  ;;  %v11466_v10 = vmov 1.0  }
 0x1e1   : > { %v1155_v18 = vpop.f32.mrf.mxu2 }
 0x1e2   : > { %v1158_v59 = vadd.f32 %v1155_v18, %v1061_v38  ;;  %8298 = vmatmul.msk.f32.vlgmr.msra.gmra.mxu1 %vm669_vm8, %v8296_v32  ;;  %v8306_v38 = vld [vmem:[%s11375_s3 + $0x24] sm:$0xf]  ;;  %v8320_v18 = vld [vmem:[%s11375_s3 + $0x2c] sm:$0xf] }
 0x1e3   : > { %8321 = vmatpush.msk.msra.mxu1 %vm673_vm7, %v9761_v57  ;;  %v1185_v29 = vpop.f32.mrf.mxu3 }
 0x1e4   : > { %v1188_v61 = vadd.f32 %v1185_v29, %v1158_v59  ;;  %v8326_v59 = vld [vmem:[%s11375_s3 + $0x3c] sm:$0xf] }
 0x1e5   : > { %v9963_v44 = vpop.permute.xlu1 %5405 }
 0x1e6   : > { %v9965_v4 = vpop.permute.xlu0 %5580  ;;  %8295 = vmatmul.msk.f32.vlgmr.msra.gmra.mxu0 %vm669_vm8, %v8293_v30  ;;  %8304 = vmatmul.msk.f32.vlgmr.msra.gmra.mxu3 %vm903_vm13, %v1188_v61 }
 0x1e7   : > { %8318 = vmatpush.msk.msra.mxu0 %vm673_vm7, %v9444_v34  ;;  %8327 = vmatpush.msk.msra.mxu3 %vm673_vm7, %v9782_v3  ;;  %v8311_v34 = vld [vmem:[%s11375_s3 + $0x30] sm:$0xf] }
 0x1ea   : > { %8310 = vmatmul.msk.f32.vlgmr.msrb.gmra.mxu1 %vm669_vm8, %v8305_v17 }
 0x1eb   : > { %8332 = vmatpush.msk.msrb.mxu1 %vm9663_vm11, %v11466_v10 }
 0x1ed   : > { %v9987_v3 = vpop.permute.xlu1 %5672  ;;  %8333 = vmatpush.msk.msrb.mxu1 %vm9685_vm12, %v11466_v10 }
 0x1ee   : > { %v606_v32 = vpop.permute.xlu0 %605  ;;  %8308 = vmatmul.msk.f32.vlgmr.msrb.gmra.mxu0 %vm669_vm8, %v8306_v38  ;;  %8316 = vmatmul.msk.f32.vlgmr.msrb.gmra.mxu3 %vm669_vm8, %v8311_v34  ;;  %v5956_v38 = vld [vmem:[#allocation2 + $0x9] sm:$0x1]  ;;  %v1647_v34 = vld [vmem:[%s11375_s3] sm:$0xf] }
 0x1ef   : > { %616 = vst.msk [vmem:[#allocation2 + $0x19] sm:$0x1] %vm586_vm3, %v606_v32  ;;  %8338 = vmatpush.msk.msrb.mxu3 %vm673_vm7, %v9453_v45  ;;  %8329 = vmatpush.msk.msrb.mxu0 %vm9629_vm9, %v11466_v10  ;;  %v8317_v45 = vld [vmem:[%s11375_s3 + $0x28] sm:$0xf] }
 0x1f1   : > { %8330 = vmatpush.msk.msrb.mxu0 %vm9639_vm10, %v11466_v10 }
 0x1f2   : > { %8322 = vmatmul.msk.f32.vlgmr.msra.gmra.mxu1 %vm669_vm8, %v8320_v18 }
 0x1f3   : > { %8344 = vmatpush.msk.msra.mxu1 %vm673_vm7, %v9670_v41 }
 0x1f5   : > { %v608_v29 = vpop.permute.xlu1 %607 }
 0x1f6   : > { %617 = vst.msk [vmem:[#allocation2 + $0x29] sm:$0x1] %vm586_vm3, %v608_v29  ;;  %v610_v30 = vpop.permute.xlu0 %609  ;;  %v5957_v61 = vld [vmem:[#allocation2 + $0x19] sm:$0x1]  ;;  %8319 = vmatmul.msk.f32.vlgmr.msra.gmra.mxu0 %vm669_vm8, %v8317_v45  ;;  %8328 = vmatmul.msk.f32.vlgmr.msra.gmra.mxu3 %vm669_vm8, %v8326_v59 }
 0x1f7   : > { %618 = vst.msk [vmem:[#allocation2 + $0x39] sm:$0x1] %vm586_vm3, %v610_v30  ;;  %8342 = vmatpush.msk.msra.mxu0 %vm673_vm7, %v9787_v42  ;;  %8350 = vmatpush.msk.msra.mxu3 %vm673_vm7, %v9805_v8  ;;  %v5965_v17 = vrot.slane %v5957_v61, 7  ;;  %v8349_v61 = vld [vmem:[%s11375_s3 + $0xc] sm:$0xf] }
 0x1f9   : > { %v5966_v18 = vsel %vm659_vm4, %v5965_v17, %v5956_v38  ;;  %v640_v17 = vld [vmem:[%s11376_s4] sm:$0xf] }
 0x1fd   : > { %v5958_v32 = vld [vmem:[#allocation2 + $0x29] sm:$0x1] }
 0x1fe   : > { %v5959_v29 = vld [vmem:[#allocation2 + $0x39] sm:$0x1]  ;;  %v5967_v30 = vrot.slane %v5958_v32, 6  ;;  %8339 = vmatmul.msk.f32.vlgmr.msrb.gmra.mxu3 %vm669_vm8, %v1647_v34 }
 0x1ff   : > { %v5969_v45 = vrot.slane %v5959_v29, 5  ;;  %8361 = vmatpush.msk.msrb.mxu3 %vm9663_vm11, %v11466_v10 }
 0x200   : > { %v5968_v59 = vsel %vm662_vm5, %v5967_v30, %v5966_v18 }
 0x201   : > { %v10033_v42 = vsel %vm665_vm6, %v5969_v45, %v5968_v59  ;;  %8362 = vmatpush.msk.msrb.mxu3 %vm9685_vm12, %v11466_v10 }
 0x202   : > { %11467 = vst [vmem:[#allocation46_spill] sm:$0xff] %v10033_v42  ;;  %5998 = vrot.lane.b32.xlu0 %v10033_v42, %s9156_s22  ;;  %6052 = vrot.lane.b32.xlu1 %v10033_v42, %s9155_s12 }
 0x206   : > { %8351 = vmatmul.msk.f32.vlgmr.msra.gmra.mxu3 %vm669_vm8, %v8349_v61 }
 0x207   : > { %8374 = vmatpush.msk.msra.mxu3 %vm673_vm7, %v9825_v53 }
 0x20a   : > { %6227 = vrot.lane.b32.xlu0 %v9873_v58, %s9155_s12 }
 0x212   : > { %952 = vperm.xlu0 %9010, %v640_v17   ;;  %v8312_v17 = vld [vmem:[%s11375_s3 + $0x34] sm:$0xf] }
 0x24f   : > { %v947_v38 = vpop.f32.mrf.mxu1 }
 0x253   : > { %v924_v34 = vpop.f32.mrf.mxu0 }
 0x257   : > { %v1114_v32 = vpop.f32.mrf.mxu1 }
 0x25b   : > { %v1091_v18 = vpop.f32.mrf.mxu0 }
 0x25c   : > { %v1115_v30 = vadd.f32 %v1114_v32, %v1091_v18 }
 0x25f   : > { %v1241_v29 = vpop.f32.mrf.mxu1 }
 0x263   : > { %v1211_v45 = vpop.f32.mrf.mxu0 }
 0x264   : > { %v1214_v59 = vadd.f32 %v1211_v45, %v1115_v30 }
 0x266   : > { %v1244_v61 = vadd.f32 %v1241_v29, %v1214_v59  ;;  %v6280_v59 = vld [vmem:[#allocation2 + $0x39] sm:$0x1] }
 0x267   : > { %v1387_v49 = vpop.f32.mrf.mxu1 }
 0x268   : > { %8301 = vmatmul.msk.f32.vlgmr.msra.gmra.mxu2 %vm903_vm13, %v1244_v61 }
 0x269   : > { %8324 = vmatpush.msk.msra.mxu2 %vm673_vm7, %v9761_v57  ;;  %v8323_v57 = vld [vmem:[%s11375_s3 + $0x38] sm:$0xf] }
 0x26b   : > { %v1362_v58 = vpop.f32.mrf.mxu0 }
 0x26c   : > { %v1388_v42 = vadd.f32 %v1387_v49, %v1362_v58  ;;  %v6278_v58 = vld [vmem:[#allocation2 + $0x19] sm:$0x1]  ;;  %v6279_v49 = vld [vmem:[#allocation2 + $0x29] sm:$0x1] }
 0x26d   : > { %v6288_v61 = vrot.slane %v6279_v49, 6 }
 0x26f   : > { %v1508_v32 = vpop.f32.mrf.mxu1 }
 0x270   : > { %8314 = vmatmul.msk.f32.vlgmr.msrb.gmra.mxu2 %vm669_vm8, %v8312_v17 }
 0x271   : > { %8336 = vmatpush.msk.msrb.mxu2 %vm673_vm7, %v9670_v41  ;;  %v6277_v41 = vld [vmem:[#allocation2 + $0x9] sm:$0x1] }
 0x273   : > { %v1479_v18 = vpop.f32.mrf.mxu0 }
 0x274   : > { %v10062_v29 = vpop.permute.xlu0 %5998  ;;  %v1482_v30 = vadd.f32 %v1479_v18, %v1388_v42  ;;  %v6286_v42 = vrot.slane %v6278_v58, 7  ;;  %v6290_v18 = vrot.slane %v6280_v59, 5  ;;  %v948_v58 = vadd.f32 %v947_v38, %v924_v34 }
 0x275   : > { %11468 = vst [vmem:[#allocation47_spill] sm:$0xff] %v10062_v29 }
 0x276   : > { %v1511_v45 = vadd.f32 %v1508_v32, %v1482_v30  ;;  %v6287_v32 = vsel %vm659_vm4, %v6286_v42, %v6277_v41  ;;  %v9159_v30 = vmov 4.0   ;;  %v8346_v42 = vld [vmem:[%s11375_s3 + $0x8] sm:$0xf] }
 0x277   : > { %9011 = vrcp.f32 %v9159_v30 }
 0x278   : > { %8325 = vmatmul.msk.f32.vlgmr.msra.gmra.mxu2 %vm669_vm8, %v8323_v57  ;;  %8334 = vmatmul.msk.f32.vlgmr.msrb.gmra.mxu1 %vm903_vm13, %v1511_v45  ;;  %v6289_v57 = vsel %vm662_vm5, %v6288_v61, %v6287_v32 }
 0x279   : > { %8347 = vmatpush.msk.msra.mxu2 %vm673_vm7, %v9466_v62  ;;  %8356 = vmatpush.msk.msrb.mxu1 %vm673_vm7, %v9718_v19  ;;  %v8335_v62 = vld [vmem:[%s11375_s3 + $0x4] sm:$0xf]  ;;  %v8340_v19 = vld [vmem:[%s11375_s3 + $0x10] sm:$0xf]  ;;  %v10084_v45 = vsel %vm665_vm6, %v6290_v18, %v6289_v57 }
 0x27a   : > { %11470 = vst [vmem:[#allocation49_spill] sm:$0xff] %v10084_v45  ;;  %6319 = vrot.lane.b32.xlu1 %v10084_v45, %s9156_s22  ;;  %6373 = vrot.lane.b32.xlu2 %v10084_v45, %s9155_s12 }
 0x27c   : > { %v10073_v17 = vpop.permute.xlu0 %6227 }
 0x27d   : > { %11469 = vst [vmem:[#allocation48_spill] sm:$0xff] %v10073_v17  ;;  %v9012_v41 = vpop.eup %9011 }
 0x27e   : > { %v969_v61 = vmul.f32 4.0, %v9012_v41  ;;  %vm973_vm0 = vweird.f32 %v9012_v41 }
 0x280   : > { %8337 = vmatmul.msk.f32.vlgmr.msrb.gmra.mxu2 %vm669_vm8, %v8335_v62  ;;  %8345 = vmatmul.msk.f32.vlgmr.msra.gmra.mxu1 %vm669_vm8, %v8340_v19  ;;  %v970_v32 = vsub.f32 1.0, %v969_v61  ;;  %v8364_v19 = vld [vmem:[%s11375_s3 + $0x20] sm:$0xf]  ;;  %v8379_v61 = vld [vmem:[%s11375_s3 + $0x2c] sm:$0xf] }
 0x281   : > { %8368 = vmatpush.msk.msra.mxu1 %vm673_vm7, %v9471_v0  ;;  %8358 = vmatpush.msk.msrb.mxu2 %vm9629_vm9, %v11466_v10  ;;  %v8355_v0 = vld [vmem:[%s11375_s3 + $0x1c] sm:$0xf] }
 0x282   : > { %v971_v57 = vmul.f32 %v9012_v41, %v970_v32 }
 0x283   : > { %8359 = vmatpush.msk.msrb.mxu2 %vm9639_vm10, %v11466_v10 }
 0x284   : > { %v10097_v49 = vpop.permute.xlu0 %952 }
 0x285   : > { %v955_v59 = vadd.f32 %v10097_v49, %v948_v58 }
 0x287   : > { %vm956_vm14 = vcmp.ge.f32.partialorder %v955_v59, 0.0  ;;  %v957_v18 = vmul.f32 0.2, %v955_v59 }
 0x288   : > { %8348 = vmatmul.msk.f32.vlgmr.msra.gmra.mxu2 %vm669_vm8, %v8346_v42  ;;  %8357 = vmatmul.msk.f32.vlgmr.msrb.gmra.mxu1 %vm669_vm8, %v8355_v0 }
 0x289   : > { %v958_v38 = vsel %vm956_vm14, %v955_v59, %v957_v18  ;;  %8372 = vmatpush.msk.msra.mxu2 %vm673_vm7, %v9812_v11  ;;  %8380 = vmatpush.msk.msrb.mxu1 %vm673_vm7, %v9758_v55  ;;  %v972_v11 = vadd.f32 %v9012_v41, %v971_v57 }
 0x28a   : > { %v959_v34 = vmul.f32 %v958_v38, %v958_v38 }
 0x28b   : > { %v10129_v18 = vsel %vm973_vm0, %v9012_v41, %v972_v11  ;;  %vm992_vm0 = vcmask 265224  }
 0x28c   : > { %v961_v30 = vsel %vm960_vm15, %v959_v34, 0.0 }
 0x28d   : > { %v962_v62 = vrot.slane %v961_v30, 4 }
 0x28f   : > { %v963_v58 = vadd.f32 %v962_v62, %v961_v30 }
 0x290   : > { %8369 = vmatmul.msk.f32.vlgmr.msra.gmra.mxu1 %vm669_vm8, %v8364_v19 }
 0x291   : > { %v964_v59 = vrot.slane %v963_v58, 2  ;;  %8391 = vmatpush.msk.msra.mxu1 %vm9663_vm11, %v11466_v10 }
 0x293   : > { %v965_v42 = vadd.f32 %v964_v59, %v963_v58  ;;  %8392 = vmatpush.msk.msra.mxu1 %vm9685_vm12, %v11466_v10 }
 0x295   : > { %v966_v0 = vrot.slane %v965_v42, 1 }
 0x297   : > { %v967_v34 = vadd.f32 %v966_v0, %v965_v42  ;;  %v1288_v42 = vpop.f32.mrf.mxu3 }
 0x298   : > { %8381 = vmatmul.msk.f32.vlgmr.msrb.gmra.mxu1 %vm669_vm8, %v8379_v61 }
 0x299   : > { %v975_v32 = vmul.f32 %v10129_v18, %v967_v34  ;;  %8403 = vmatpush.msk.msrb.mxu1 %vm673_vm7, %v9840_v23 }
 0x29b   : > { %v976_v30 = vadd.f32 1e-08, %v975_v32 }
 0x29d   : > { %9013 = vrsqrt.f32 %v976_v30  ;;  %vm983_vm2 = vweird.f32 %v976_v30 }
 0x29f   : > { %v1439_v34 = vpop.f32.mrf.mxu3 }
 0x2a3   : > { %v9014_v62 = vpop.eup %9013 }
 0x2a4   : > { %v978_v19 = vmul.f32 %v9014_v62, %v976_v30  ;;  %vm984_vm1 = vweird.f32 %v9014_v62 }
 0x2a5   : > { %vm985_vm3 = vmor %vm983_vm2, %vm984_vm1  ;;  %vm1320_vm2 = vcmask 544024  }
 0x2a6   : > { %v979_v57 = vmul.f32 %v9014_v62, %v978_v19 }
 0x2a7   : > { %v1562_v40 = vpop.f32.mrf.mxu3 }
 0x2a8   : > { %v980_v58 = vmul.f32 0.5, %v979_v57 }
 0x2aa   : > { %v981_v59 = vsub.f32 1.5, %v980_v58 }
 0x2ac   : > { %v982_v45 = vmul.f32 %v9014_v62, %v981_v59 }
 0x2ae   : > { %v986_v41 = vsel %vm985_vm3, %v9014_v62, %v982_v45 }
 0x2af   : > { %v987_v11 = vmul.f32 %v986_v41, %v958_v38 }
 0x2b1   : > { %989 = vrot.lane.b32.xlu1 %v987_v11, %s9154_s15  ;;  %v1708_v11 = vpop.f32.mrf.mxu3  ;;  %s9170_s15 = smov 119  }
 0x2eb   : > { %v1265_v0 = vpop.f32.mrf.mxu2 }
 0x2ec   : > { %v1289_v61 = vadd.f32 %v1288_v42, %v1265_v0 }
 0x2ee   : > { %v1291_v32 = vadd.f32 %v1289_v61, %v10097_v49 }
 0x2f0   : > { %v1293_v29 = vmul.f32 0.2, %v1291_v32  ;;  %vm1292_vm4 = vcmp.ge.f32.partialorder %v1291_v32, 0.0 }
 0x2f2   : > { %v1294_v57 = vsel %vm1292_vm4, %v1291_v32, %v1293_v29  ;;  %v8341_v29 = vld [vmem:[%s11375_s3 + $0x14] sm:$0xf] }
 0x2f3   : > { %v1416_v17 = vpop.f32.mrf.mxu2  ;;  %v1295_v59 = vmul.f32 %v1294_v57, %v1294_v57 }
 0x2f4   : > { %v1440_v19 = vadd.f32 %v1439_v34, %v1416_v17  ;;  %v10144_v17 = vpop.permute.xlu1 %5906 }
 0x2f5   : > { %v1296_v45 = vsel %vm960_vm15, %v1295_v59, 0.0 }
 0x2f6   : > { %v1297_v62 = vrot.slane %v1296_v45, 4 }
 0x2f8   : > { %v1298_v41 = vadd.f32 %v1297_v62, %v1296_v45  ;;  %v8352_v45 = vld [vmem:[%s11375_s3 + $0x18] sm:$0xf] }
 0x2fa   : > { %v1299_v42 = vrot.slane %v1298_v41, 2 }
 0x2fb   : > { %v1533_v58 = vpop.f32.mrf.mxu2 }
 0x2fc   : > { %v1536_v30 = vadd.f32 %v1533_v58, %v1440_v19  ;;  %v1300_v61 = vadd.f32 %v1299_v42, %v1298_v41  ;;  %v1829_v58 = vpop.f32.mrf.mxu3  ;;  %v10153_v62 = vpop.permute.xlu1 %6052  ;;  %v8365_v41 = vld [vmem:[%s11375_s3 + $0x24] sm:$0xf] }
 0x2fe   : > { %v1565_v38 = vadd.f32 %v1562_v40, %v1536_v30  ;;  %v1301_v34 = vrot.slane %v1300_v61, 1 }
 0x300   : > { %8331 = vmatmul.msk.f32.vlgmr.msrb.gmra.mxu0 %vm903_vm13, %v1565_v38  ;;  %v1302_v40 = vadd.f32 %v1301_v34, %v1300_v61  ;;  %v8376_v34 = vld [vmem:[%s11375_s3 + $0x28] sm:$0xf] }
 0x301   : > { %8353 = vmatpush.msk.msrb.mxu0 %vm673_vm7, %v9805_v8 }
 0x302   : > { %v1303_v8 = vmul.f32 %v1302_v40, %v10129_v18 }
 0x303   : > { %v1683_v0 = vpop.f32.mrf.mxu2 }
 0x304   : > { %v1709_v32 = vadd.f32 %v1708_v11, %v1683_v0  ;;  %v1304_v30 = vadd.f32 1e-08, %v1303_v8  ;;  %v8370_v11 = vld [vmem:[%s11375_s3 + $0x30] sm:$0xf]  ;;  %v10169_v61 = vpop.permute.xlu1 %6319 }
 0x306   : > { %9015 = vrsqrt.f32 %v1304_v30  ;;  %vm1311_vm6 = vweird.f32 %v1304_v30 }
 0x308   : > { %8343 = vmatmul.msk.f32.vlgmr.msra.gmra.mxu0 %vm669_vm8, %v8341_v29 }
 0x309   : > { %8366 = vmatpush.msk.msra.mxu0 %vm673_vm7, %v9825_v53 }
 0x30b   : > { %v1800_v19 = vpop.f32.mrf.mxu2 }
 0x30c   : > { %v1803_v59 = vadd.f32 %v1800_v19, %v1709_v32  ;;  %v9016_v53 = vpop.eup %9015  ;;  %v2294_v19 = vld [vmem:[%s11375_s3] sm:$0xf] }
 0x30d   : > { %v1306_v42 = vmul.f32 %v9016_v53, %v1304_v30  ;;  %vm1312_vm5 = vweird.f32 %v9016_v53 }
 0x30e   : > { %v1832_v38 = vadd.f32 %v1829_v58, %v1803_v59  ;;  %vm1313_vm14 = vmor %vm1311_vm6, %vm1312_vm5  ;;  %vm1641_vm6 = vcmask 822824  }
 0x30f   : > { %v1307_v0 = vmul.f32 %v9016_v53, %v1306_v42 }
 0x310   : > { %8354 = vmatmul.msk.f32.vlgmr.msrb.gmra.mxu0 %vm669_vm8, %v8352_v45  ;;  %8363 = vmatmul.msk.f32.vlgmr.msrb.gmra.mxu3 %vm903_vm13, %v1832_v38 }
 0x311   : > { %8377 = vmatpush.msk.msrb.mxu0 %vm673_vm7, %v9480_v14  ;;  %8386 = vmatpush.msk.msrb.mxu3 %vm673_vm7, %v9829_v63  ;;  %v1308_v14 = vmul.f32 0.5, %v1307_v0 }
 0x313   : > { %v1309_v63 = vsub.f32 1.5, %v1308_v14 }
 0x315   : > { %v1310_v29 = vmul.f32 %v9016_v53, %v1309_v63 }
 0x317   : > { %v1314_v32 = vsel %vm1313_vm14, %v9016_v53, %v1310_v29 }
 0x318   : > { %8367 = vmatmul.msk.f32.vlgmr.msra.gmra.mxu0 %vm669_vm8, %v8365_v41  ;;  %8375 = vmatmul.msk.f32.vlgmr.msra.gmra.mxu3 %vm669_vm8, %v8370_v11  ;;  %v1315_v40 = vmul.f32 %v1314_v32, %v1294_v57  ;;  %v1609_v57 = vpop.f32.mrf.mxu1 }
 0x319   : > { %8397 = vmatpush.msk.msra.mxu3 %vm673_vm7, %v9493_v33  ;;  %8388 = vmatpush.msk.msra.mxu0 %vm9629_vm9, %v11466_v10  ;;  %v8385_v33 = vld [vmem:[%s11375_s3 + $0x3c] sm:$0xf] }
 0x31a   : > { %1317 = vrot.lane.b32.xlu1 %v1315_v40, %s9160_s18 }
 0x31b   : > { %8389 = vmatpush.msk.msra.mxu0 %vm9639_vm10, %v11466_v10 }
 0x320   : > { %8378 = vmatmul.msk.f32.vlgmr.msrb.gmra.mxu0 %vm669_vm8, %v8376_v34  ;;  %8387 = vmatmul.msk.f32.vlgmr.msrb.gmra.mxu3 %vm669_vm8, %v8385_v33  ;;  %v1760_v30 = vpop.f32.mrf.mxu1 }
 0x321   : > { %8401 = vmatpush.msk.msrb.mxu0 %vm673_vm7, %v9784_v37  ;;  %8409 = vmatpush.msk.msrb.mxu3 %vm673_vm7, %v9844_v13  ;;  %v8408_v37 = vld [vmem:[%s11375_s3 + $0xc] sm:$0xf] }
 0x323   : > { %v990_v8 = vpop.permute.xlu1 %989 }
 0x324   : > { %993 = vst.msk [vmem:[#allocation3] sm:$0xf] %vm992_vm0, %v990_v8 }
 0x328   : > { %8398 = vmatmul.msk.f32.vlgmr.msra.gmra.mxu3 %vm669_vm8, %v2294_v19  ;;  %v1883_v41 = vpop.f32.mrf.mxu1 }
 0x329   : > { %8420 = vmatpush.msk.msra.mxu3 %vm9663_vm11, %v11466_v10 }
 0x32b   : > { %8421 = vmatpush.msk.msra.mxu3 %vm9685_vm12, %v11466_v10 }
 0x330   : > { %8410 = vmatmul.msk.f32.vlgmr.msrb.gmra.mxu3 %vm669_vm8, %v8408_v37  ;;  %v2034_v40 = vpop.f32.mrf.mxu1 }
 0x331   : > { %8433 = vmatpush.msk.msrb.mxu3 %vm673_vm7, %v9854_v20 }
 0x37d   : > { %v1586_v58 = vpop.f32.mrf.mxu0 }
 0x37e   : > { %v1610_v59 = vadd.f32 %v1609_v57, %v1586_v58  ;;  %v8371_v58 = vld [vmem:[%s11375_s3 + $0x34] sm:$0xf] }
 0x380   : > { %v1612_v45 = vadd.f32 %v1610_v59, %v10097_v49 }
 0x382   : > { %v1614_v53 = vmul.f32 0.2, %v1612_v45  ;;  %vm1613_vm1 = vcmp.ge.f32.partialorder %v1612_v45, 0.0 }
 0x384   : > { %v1615_v42 = vsel %vm1613_vm1, %v1612_v45, %v1614_v53  ;;  %v2155_v53 = vpop.f32.mrf.mxu1 }
 0x385   : > { %v1737_v38 = vpop.f32.mrf.mxu0  ;;  %v1616_v14 = vmul.f32 %v1615_v42, %v1615_v42 }
 0x386   : > { %v1761_v11 = vadd.f32 %v1760_v30, %v1737_v38 }
 0x387   : > { %v1617_v29 = vsel %vm960_vm15, %v1616_v14, 0.0 }
 0x388   : > { %v1618_v33 = vrot.slane %v1617_v29, 4 }
 0x38a   : > { %v1619_v32 = vadd.f32 %v1618_v33, %v1617_v29  ;;  %v8399_v29 = vld [vmem:[%s11375_s3 + $0x10] sm:$0xf] }
 0x38c   : > { %v1318_v8 = vpop.permute.xlu1 %1317  ;;  %v1620_v19 = vrot.slane %v1619_v32, 2 }
 0x38d   : > { %v1854_v0 = vpop.f32.mrf.mxu0  ;;  %1321 = vst.msk [vmem:[#allocation3] sm:$0xf] %vm1320_vm2, %v1318_v8 }
 0x38e   : > { %v1857_v63 = vadd.f32 %v1854_v0, %v1761_v11  ;;  %v1621_v57 = vadd.f32 %v1620_v19, %v1619_v32  ;;  %v8382_v0 = vld [vmem:[%s11375_s3 + $0x38] sm:$0xf] }
 0x390   : > { %v1886_v34 = vadd.f32 %v1883_v41, %v1857_v63  ;;  %v1622_v59 = vrot.slane %v1621_v57, 1  ;;  %v8394_v63 = vld [vmem:[%s11375_s3 + $0x4] sm:$0xf] }
 0x392   : > { %8360 = vmatmul.msk.f32.vlgmr.msrb.gmra.mxu2 %vm903_vm13, %v1886_v34  ;;  %v1623_v45 = vadd.f32 %v1622_v59, %v1621_v57 }
 0x393   : > { %8383 = vmatpush.msk.msrb.mxu2 %vm673_vm7, %v9758_v55 }
 0x394   : > { %v1624_v55 = vmul.f32 %v1623_v45, %v10129_v18 }
 0x395   : > { %v2009_v37 = vpop.f32.mrf.mxu0 }
 0x396   : > { %v2035_v30 = vadd.f32 %v2034_v40, %v2009_v37  ;;  %v1625_v11 = vadd.f32 1e-08, %v1624_v55  ;;  %v8405_v40 = vld [vmem:[%s11375_s3 + $0x8] sm:$0xf]  ;;  %v8423_v37 = vld [vmem:[%s11375_s3 + $0x20] sm:$0xf] }
 0x398   : > { %9017 = vrsqrt.f32 %v1625_v11  ;;  %vm1632_vm4 = vweird.f32 %v1625_v11 }
 0x39a   : > { %8373 = vmatmul.msk.f32.vlgmr.msra.gmra.mxu2 %vm669_vm8, %v8371_v58 }
 0x39b   : > { %8395 = vmatpush.msk.msra.mxu2 %vm673_vm7, %v9840_v23 }
 0x39d   : > { %v2126_v38 = vpop.f32.mrf.mxu0 }
 0x39e   : > { %v2129_v41 = vadd.f32 %v2126_v38, %v2035_v30  ;;  %v9018_v23 = vpop.eup %9017  ;;  %v1930_v30 = vpop.f32.mrf.mxu3 }
 0x39f   : > { %v1627_v34 = vmul.f32 %v9018_v23, %v1625_v11  ;;  %vm1633_vm3 = vweird.f32 %v9018_v23 }
 0x3a0   : > { %v2158_v14 = vadd.f32 %v2155_v53, %v2129_v41  ;;  %vm1634_vm5 = vmor %vm1632_vm4, %vm1633_vm3  ;;  %vm1962_vm3 = vcmask 842752   ;;  %vm1965_vm4 = vcmask 1044280  }
 0x3a1   : > { %v1628_v33 = vmul.f32 %v9018_v23, %v1627_v34 }
 0x3a2   : > { %8384 = vmatmul.msk.f32.vlgmr.msrb.gmra.mxu2 %vm669_vm8, %v8382_v0  ;;  %8393 = vmatmul.msk.f32.vlgmr.msra.gmra.mxu1 %vm903_vm13, %v2158_v14 }
 0x3a3   : > { %8406 = vmatpush.msk.msrb.mxu2 %vm673_vm7, %v9498_v36  ;;  %8415 = vmatpush.msk.msra.mxu1 %vm673_vm7, %v9850_v39  ;;  %v1629_v36 = vmul.f32 0.5, %v1628_v33 }
 0x3a5   : > { %v1630_v39 = vsub.f32 1.5, %v1629_v36 }
 0x3a6   : > { %v2086_v38 = vpop.f32.mrf.mxu3 }
 0x3a7   : > { %v1631_v32 = vmul.f32 %v9018_v23, %v1630_v39 }
 0x3a9   : > { %v1635_v8 = vsel %vm1634_vm5, %v9018_v23, %v1631_v32  ;;  %vm1966_vm5 = vcmask 56324  }
 0x3aa   : > { %8396 = vmatmul.msk.f32.vlgmr.msra.gmra.mxu2 %vm669_vm8, %v8394_v63  ;;  %8404 = vmatmul.msk.f32.vlgmr.msrb.gmra.mxu1 %vm669_vm8, %v8399_v29  ;;  %v1636_v19 = vmul.f32 %v1635_v8, %v1615_v42  ;;  %v10272_v42 = vpop.permute.xlu2 %5852 }
 0x3ab   : > { %8427 = vmatpush.msk.msrb.mxu1 %vm673_vm7, %v9507_v48  ;;  %8417 = vmatpush.msk.msra.mxu2 %vm9629_vm9, %v11466_v10  ;;  %v8414_v48 = vld [vmem:[%s11375_s3 + $0x1c] sm:$0xf] }
 0x3ac   : > { %1638 = vrot.lane.b32.xlu2 %v1636_v19, %s9161_s28 }
 0x3ad   : > { %8418 = vmatpush.msk.msra.mxu2 %vm9639_vm10, %v11466_v10 }
 0x3ae   : > { %v2209_v0 = vpop.f32.mrf.mxu3 }
 0x3b2   : > { %8407 = vmatmul.msk.f32.vlgmr.msrb.gmra.mxu2 %vm669_vm8, %v8405_v40  ;;  %8416 = vmatmul.msk.f32.vlgmr.msra.gmra.mxu1 %vm669_vm8, %v8414_v48  ;;  %v10274_v57 = vpop.permute.xlu2 %6173 }
 0x3b3   : > { %8431 = vmatpush.msk.msrb.mxu2 %vm673_vm7, %v9807_v9  ;;  %8439 = vmatpush.msk.msra.mxu1 %vm673_vm7, %v9864_v56  ;;  %v8438_v9 = vld [vmem:[%s11375_s3 + $0x2c] sm:$0xf] }
 0x3b6   : > { %v2355_v40 = vpop.f32.mrf.mxu3 }
 0x3ba   : > { %8428 = vmatmul.msk.f32.vlgmr.msrb.gmra.mxu1 %vm669_vm8, %v8423_v37  ;;  %v10276_v58 = vpop.permute.xlu2 %6373  ;;  %v8400_v37 = vld [vmem:[%s11375_s3 + $0x14] sm:$0xf] }
 0x3bb   : > { %8450 = vmatpush.msk.msrb.mxu1 %vm9663_vm11, %v11466_v10 }
 0x3bd   : > { %8451 = vmatpush.msk.msrb.mxu1 %vm9685_vm12, %v11466_v10 }
 0x3c2   : > { %8440 = vmatmul.msk.f32.vlgmr.msra.gmra.mxu1 %vm669_vm8, %v8438_v9 }
 0x3c3   : > { %8462 = vmatpush.msk.msra.mxu1 %vm673_vm7, %v9868_v35 }
 0x406   : > { %v1639_v59 = vpop.permute.xlu2 %1638 }
 0x407   : > { %1642 = vst.msk [vmem:[#allocation3] sm:$0xf] %vm1641_vm6, %v1639_v59  ;;  %vm1967_vm6 = vmor %vm1966_vm5, %vm1965_vm4  ;;  %vm2288_vm4 = vcmask 330824  }
 0x415   : > { %v1907_v45 = vpop.f32.mrf.mxu2 }
 0x416   : > { %v1931_v55 = vadd.f32 %v1930_v30, %v1907_v45 }
 0x418   : > { %v1933_v53 = vadd.f32 %v1931_v55, %v10097_v49 }
 0x41a   : > { %v1935_v11 = vmul.f32 0.2, %v1933_v53  ;;  %vm1934_vm14 = vcmp.ge.f32.partialorder %v1933_v53, 0.0 }
 0x41c   : > { %v1936_v23 = vsel %vm1934_vm14, %v1933_v53, %v1935_v11 }
 0x41d   : > { %v2063_v41 = vpop.f32.mrf.mxu2  ;;  %v1937_v29 = vmul.f32 %v1936_v23, %v1936_v23 }
 0x41e   : > { %v2087_v14 = vadd.f32 %v2086_v38, %v2063_v41  ;;  %v8411_v41 = vld [vmem:[%s11375_s3 + $0x18] sm:$0xf] }
 0x41f   : > { %v1938_v33 = vsel %vm960_vm15, %v1937_v29, 0.0 }
 0x420   : > { %v1939_v39 = vrot.slane %v1938_v33, 4 }
 0x422   : > { %v1940_v32 = vadd.f32 %v1939_v39, %v1938_v33  ;;  %v8435_v33 = vld [vmem:[%s11375_s3 + $0x28] sm:$0xf] }
 0x424   : > { %v1941_v48 = vrot.slane %v1940_v32, 2 }
 0x425   : > { %v2180_v63 = vpop.f32.mrf.mxu2 }
 0x426   : > { %v2183_v34 = vadd.f32 %v2180_v63, %v2087_v14  ;;  %v1942_v19 = vadd.f32 %v1941_v48, %v1940_v32  ;;  %v8429_v14 = vld [vmem:[%s11375_s3 + $0x30] sm:$0xf]  ;;  %v2936_v32 = vld [vmem:[%s11375_s3] sm:$0xf] }
 0x428   : > { %v2212_v36 = vadd.f32 %v2209_v0, %v2183_v34  ;;  %v1943_v9 = vrot.slane %v1942_v19, 1  ;;  %v8424_v0 = vld [vmem:[%s11375_s3 + $0x24] sm:$0xf] }
 0x42a   : > { %8390 = vmatmul.msk.f32.vlgmr.msra.gmra.mxu0 %vm903_vm13, %v2212_v36  ;;  %v1944_v30 = vadd.f32 %v1943_v9, %v1942_v19 }
 0x42b   : > { %8412 = vmatpush.msk.msra.mxu0 %vm673_vm7, %v9844_v13  ;;  %v2476_v13 = vpop.f32.mrf.mxu3 }
 0x42c   : > { %v1945_v45 = vmul.f32 %v1944_v30, %v10129_v18 }
 0x42d   : > { %v2330_v8 = vpop.f32.mrf.mxu2 }
 0x42e   : > { %v2356_v59 = vadd.f32 %v2355_v40, %v2330_v8  ;;  %v1946_v53 = vadd.f32 1e-08, %v1945_v45 }
 0x430   : > { %9019 = vrsqrt.f32 %v1946_v53  ;;  %vm1953_vm1 = vweird.f32 %v1946_v53 }
 0x432   : > { %8402 = vmatmul.msk.f32.vlgmr.msrb.gmra.mxu0 %vm669_vm8, %v8400_v37 }
 0x433   : > { %8425 = vmatpush.msk.msrb.mxu0 %vm673_vm7, %v9854_v20 }
 0x435   : > { %v2447_v55 = vpop.f32.mrf.mxu2 }
 0x436   : > { %v2450_v38 = vadd.f32 %v2447_v55, %v2356_v59  ;;  %v9020_v20 = vpop.eup %9019 }
 0x437   : > { %v1948_v63 = vmul.f32 %v9020_v20, %v1946_v53  ;;  %vm1954_vm0 = vweird.f32 %v9020_v20 }
 0x438   : > { %v2479_v11 = vadd.f32 %v2476_v13, %v2450_v38  ;;  %vm1955_vm2 = vmor %vm1953_vm1, %vm1954_vm0 }
 0x439   : > { %v1949_v29 = vmul.f32 %v9020_v20, %v1948_v63 }
 0x43a   : > { %8413 = vmatmul.msk.f32.vlgmr.msra.gmra.mxu0 %vm669_vm8, %v8411_v41  ;;  %8422 = vmatmul.msk.f32.vlgmr.msra.gmra.mxu3 %vm903_vm13, %v2479_v11 }
 0x43b   : > { %8436 = vmatpush.msk.msra.mxu0 %vm673_vm7, %v9520_v5  ;;  %8445 = vmatpush.msk.msra.mxu3 %vm673_vm7, %v9827_v54  ;;  %v1950_v5 = vmul.f32 0.5, %v1949_v29 }
 0x43d   : > { %v1951_v54 = vsub.f32 1.5, %v1950_v5 }
 0x43f   : > { %v1952_v34 = vmul.f32 %v9020_v20, %v1951_v54 }
 0x441   : > { %v1956_v36 = vsel %vm1955_vm2, %v9020_v20, %v1952_v34 }
 0x442   : > { %8426 = vmatmul.msk.f32.vlgmr.msrb.gmra.mxu0 %vm669_vm8, %v8424_v0  ;;  %8434 = vmatmul.msk.f32.vlgmr.msrb.gmra.mxu3 %vm669_vm8, %v8429_v14  ;;  %v1957_v39 = vmul.f32 %v1956_v36, %v1936_v23  ;;  %v2256_v23 = vpop.f32.mrf.mxu1 }
 0x443   : > { %8456 = vmatpush.msk.msrb.mxu3 %vm673_vm7, %v9525_v7  ;;  %8447 = vmatpush.msk.msrb.mxu0 %vm9629_vm9, %v11466_v10  ;;  %v8444_v7 = vld [vmem:[%s11375_s3 + $0x3c] sm:$0xf] }
 0x444   : > { %1959 = vrot.lane.b32.xlu2 %v1957_v39, %s9162_s20  ;;  %s9174_s20 = smov 33  }
 0x445   : > { %8448 = vmatpush.msk.msrb.mxu0 %vm9639_vm10, %v11466_v10 }
 0x44a   : > { %8437 = vmatmul.msk.f32.vlgmr.msra.gmra.mxu0 %vm669_vm8, %v8435_v33  ;;  %8446 = vmatmul.msk.f32.vlgmr.msra.gmra.mxu3 %vm669_vm8, %v8444_v7  ;;  %v2407_v9 = vpop.f32.mrf.mxu1  ;;  %v8430_v33 = vld [vmem:[%s11375_s3 + $0x34] sm:$0xf] }
 0x44b   : > { %8460 = vmatpush.msk.msra.mxu0 %vm673_vm7, %v9877_v46  ;;  %8468 = vmatpush.msk.msra.mxu3 %vm673_vm7, %v9842_v24  ;;  %v8467_v46 = vld [vmem:[%s11375_s3 + $0xc] sm:$0xf] }
 0x452   : > { %8457 = vmatmul.msk.f32.vlgmr.msrb.gmra.mxu3 %vm669_vm8, %v2936_v32  ;;  %v2530_v55 = vpop.f32.mrf.mxu1 }
 0x453   : > { %8479 = vmatpush.msk.msrb.mxu3 %vm9663_vm11, %v11466_v10 }
 0x455   : > { %8480 = vmatpush.msk.msrb.mxu3 %vm9685_vm12, %v11466_v10 }
 0x45a   : > { %8469 = vmatmul.msk.f32.vlgmr.msra.gmra.mxu3 %vm669_vm8, %v8467_v46  ;;  %v2676_v29 = vpop.f32.mrf.mxu1 }
 0x45b   : > { %8492 = vmatpush.msk.msra.mxu3 %vm673_vm7, %v9852_v60 }
 0x49e   : > { %v1960_v40 = vpop.permute.xlu2 %1959 }
 0x49f   : > { %v1961_v48 = vrot.slane %v1960_v40, 4 }
 0x4a1   : > { %v1963_v19 = vsel %vm1962_vm3, %v1961_v48, %v1960_v40  ;;  %v8441_v48 = vld [vmem:[%s11375_s3 + $0x38] sm:$0xf] }
 0x4a2   : > { %1968 = vst.msk [vmem:[#allocation3] sm:$0xff] %vm1967_vm6, %v1963_v19  ;;  %v8453_v19 = vld [vmem:[%s11375_s3 + $0x4] sm:$0xf] }
 0x4a7   : > { %v2233_v8 = vpop.f32.mrf.mxu0 }
 0x4a8   : > { %v2257_v37 = vadd.f32 %v2256_v23, %v2233_v8 }
 0x4aa   : > { %v2259_v59 = vadd.f32 %v2257_v37, %v10097_v49  ;;  %v8458_v37 = vld [vmem:[%s11375_s3 + $0x10] sm:$0xf] }
 0x4ac   : > { %v2261_v45 = vmul.f32 0.2, %v2259_v59  ;;  %vm2260_vm14 = vcmp.ge.f32.partialorder %v2259_v59, 0.0 }
 0x4ae   : > { %v2262_v38 = vsel %vm2260_vm14, %v2259_v59, %v2261_v45  ;;  %v8464_v45 = vld [vmem:[%s11375_s3 + $0x8] sm:$0xf] }
 0x4af   : > { %v2384_v30 = vpop.f32.mrf.mxu0  ;;  %v2263_v41 = vmul.f32 %v2262_v38, %v2262_v38 }
 0x4b0   : > { %v2408_v13 = vadd.f32 %v2407_v9, %v2384_v30 }
 0x4b1   : > { %v2264_v20 = vsel %vm960_vm15, %v2263_v41, 0.0 }
 0x4b2   : > { %v2265_v14 = vrot.slane %v2264_v20, 4 }
 0x4b4   : > { %v2266_v63 = vadd.f32 %v2265_v14, %v2264_v20 }
 0x4b6   : > { %v2267_v5 = vrot.slane %v2266_v63, 2 }
 0x4b7   : > { %v2501_v53 = vpop.f32.mrf.mxu0 }
 0x4b8   : > { %v2504_v11 = vadd.f32 %v2501_v53, %v2408_v13  ;;  %v2268_v34 = vadd.f32 %v2267_v5, %v2266_v63  ;;  %v8482_v53 = vld [vmem:[%s11375_s3 + $0x20] sm:$0xf] }
 0x4ba   : > { %v2533_v0 = vadd.f32 %v2530_v55, %v2504_v11  ;;  %v2269_v7 = vrot.slane %v2268_v34, 1 }
 0x4bc   : > { %8419 = vmatmul.msk.f32.vlgmr.msra.gmra.mxu2 %vm903_vm13, %v2533_v0  ;;  %v2270_v39 = vadd.f32 %v2269_v7, %v2268_v34 }
 0x4bd   : > { %8442 = vmatpush.msk.msra.mxu2 %vm673_vm7, %v9864_v56  ;;  %v2797_v56 = vpop.f32.mrf.mxu1 }
 0x4be   : > { %v2271_v32 = vmul.f32 %v2270_v39, %v10129_v18 }
 0x4bf   : > { %v2651_v54 = vpop.f32.mrf.mxu0 }
 0x4c0   : > { %v2677_v36 = vadd.f32 %v2676_v29, %v2651_v54  ;;  %v2272_v40 = vadd.f32 1e-08, %v2271_v32 }
 0x4c2   : > { %9021 = vrsqrt.f32 %v2272_v40  ;;  %vm2279_vm1 = vweird.f32 %v2272_v40 }
 0x4c4   : > { %8432 = vmatmul.msk.f32.vlgmr.msrb.gmra.mxu2 %vm669_vm8, %v8430_v33 }
 0x4c5   : > { %8454 = vmatpush.msk.msrb.mxu2 %vm673_vm7, %v9868_v35 }
 0x4c7   : > { %v2768_v46 = vpop.f32.mrf.mxu0 }
 0x4c8   : > { %v2771_v23 = vadd.f32 %v2768_v46, %v2677_v36  ;;  %v9022_v35 = vpop.eup %9021 }
 0x4c9   : > { %v2274_v9 = vmul.f32 %v9022_v35, %v2272_v40  ;;  %vm2280_vm0 = vweird.f32 %v9022_v35 }
 0x4ca   : > { %v2800_v8 = vadd.f32 %v2797_v56, %v2771_v23  ;;  %vm2281_vm2 = vmor %vm2279_vm1, %vm2280_vm0  ;;  %vm2609_vm0 = vcmask 609624  }
 0x4cb   : > { %v2275_v59 = vmul.f32 %v9022_v35, %v2274_v9 }
 0x4cc   : > { %8443 = vmatmul.msk.f32.vlgmr.msra.gmra.mxu2 %vm669_vm8, %v8441_v48  ;;  %8452 = vmatmul.msk.f32.vlgmr.msrb.gmra.mxu1 %vm903_vm13, %v2800_v8 }
 0x4cd   : > { %8465 = vmatpush.msk.msra.mxu2 %vm673_vm7, %v9534_v21  ;;  %8474 = vmatpush.msk.msrb.mxu1 %vm673_vm7, %v9881_v16  ;;  %v2276_v21 = vmul.f32 0.5, %v2275_v59 }
 0x4cf   : > { %v2277_v16 = vsub.f32 1.5, %v2276_v21 }
 0x4d1   : > { %v2278_v30 = vmul.f32 %v9022_v35, %v2277_v16 }
 0x4d3   : > { %v2282_v55 = vsel %vm2281_vm2, %v9022_v35, %v2278_v30  ;;  %v8459_v35 = vld [vmem:[%s11375_s3 + $0x14] sm:$0xf] }
 0x4d4   : > { %8455 = vmatmul.msk.f32.vlgmr.msrb.gmra.mxu2 %vm669_vm8, %v8453_v19  ;;  %8463 = vmatmul.msk.f32.vlgmr.msra.gmra.mxu1 %vm669_vm8, %v8458_v37  ;;  %v2283_v13 = vmul.f32 %v2282_v55, %v2262_v38  ;;  %v2577_v38 = vpop.f32.mrf.mxu3 }
 0x4d5   : > { %8486 = vmatpush.msk.msra.mxu1 %vm673_vm7, %v9552_v43  ;;  %8476 = vmatpush.msk.msrb.mxu2 %vm9629_vm9, %v11466_v10  ;;  %v8473_v43 = vld [vmem:[%s11375_s3 + $0x1c] sm:$0xf] }
 0x4d6   : > { %2285 = vrot.lane.b32.xlu0 %v2283_v13, %s9163_s21  ;;  %v8483_v13 = vld [vmem:[%s11375_s3 + $0x24] sm:$0xf] }
 0x4d7   : > { %8477 = vmatpush.msk.msrb.mxu2 %vm9639_vm10, %v11466_v10 }
 0x4dc   : > { %8466 = vmatmul.msk.f32.vlgmr.msra.gmra.mxu2 %vm669_vm8, %v8464_v45  ;;  %8475 = vmatmul.msk.f32.vlgmr.msrb.gmra.mxu1 %vm669_vm8, %v8473_v43  ;;  %v2728_v20 = vpop.f32.mrf.mxu3  ;;  %v8470_v45 = vld [vmem:[%s11375_s3 + $0x18] sm:$0xf] }
 0x4dd   : > { %8490 = vmatpush.msk.msra.mxu2 %vm673_vm7, %v9883_v51  ;;  %8498 = vmatpush.msk.msrb.mxu1 %vm673_vm7, %v9887_v12  ;;  %v8497_v51 = vld [vmem:[%s11375_s3 + $0x2c] sm:$0xf] }
 0x4e4   : > { %8487 = vmatmul.msk.f32.vlgmr.msra.gmra.mxu1 %vm669_vm8, %v8482_v53  ;;  %v2851_v29 = vpop.f32.mrf.mxu3  ;;  %v8488_v53 = vld [vmem:[%s11375_s3 + $0x30] sm:$0xf] }
 0x4e5   : > { %8509 = vmatpush.msk.msra.mxu1 %vm9663_vm11, %v11466_v10 }
 0x4e7   : > { %8510 = vmatpush.msk.msra.mxu1 %vm9685_vm12, %v11466_v10 }
 0x4ec   : > { %8499 = vmatmul.msk.f32.vlgmr.msrb.gmra.mxu1 %vm669_vm8, %v8497_v51  ;;  %v2997_v23 = vpop.f32.mrf.mxu3 }
 0x4ed   : > { %8521 = vmatpush.msk.msrb.mxu1 %vm673_vm7, %v9866_v15 }
 0x53f   : > { %v2554_v41 = vpop.f32.mrf.mxu2 }
 0x540   : > { %v2578_v11 = vadd.f32 %v2577_v38, %v2554_v41  ;;  %v11472_v41 = vld [vmem:[#allocation12_spill] sm:$0xff] }
 0x542   : > { %v2580_v0 = vadd.f32 %v2578_v11, %v10097_v49 }
 0x544   : > { %v2582_v63 = vmul.f32 0.2, %v2580_v0  ;;  %vm2581_vm3 = vcmp.ge.f32.partialorder %v2580_v0, 0.0 }
 0x546   : > { %v2583_v54 = vsel %vm2581_vm3, %v2580_v0, %v2582_v63  ;;  %v8494_v0 = vld [vmem:[%s11375_s3 + $0x28] sm:$0xf] }
 0x547   : > { %v2705_v14 = vpop.f32.mrf.mxu2  ;;  %v2584_v33 = vmul.f32 %v2583_v54, %v2583_v54 }
 0x548   : > { %v2729_v5 = vadd.f32 %v2728_v20, %v2705_v14  ;;  %v2286_v7 = vpop.permute.xlu0 %2285  ;;  %v8503_v14 = vld [vmem:[%s11375_s3 + $0x3c] sm:$0xf] }
 0x549   : > { %2289 = vst.msk [vmem:[#allocation3 + $0x4] sm:$0xf] %vm2288_vm4, %v2286_v7  ;;  %v2585_v39 = vsel %vm960_vm15, %v2584_v33, 0.0  ;;  %v3583_v33 = vld [vmem:[%s11375_s3] sm:$0xf]  ;;  %v11475_v7 = vld [vmem:[#allocation36_spill] sm:$0xff] }
 0x54a   : > { %v2586_v46 = vrot.slane %v2585_v39, 4 }
 0x54c   : > { %v2587_v56 = vadd.f32 %v2586_v46, %v2585_v39 }
 0x54e   : > { %v2588_v40 = vrot.slane %v2587_v56, 2 }
 0x54f   : > { %v2822_v34 = vpop.f32.mrf.mxu2 }
 0x550   : > { %v2825_v36 = vadd.f32 %v2822_v34, %v2729_v5  ;;  %v2589_v8 = vadd.f32 %v2588_v40, %v2587_v56  ;;  %v11473_v5 = vld [vmem:[#allocation32_spill] sm:$0xff]  ;;  %v11474_v34 = vld [vmem:[#allocation33_spill] sm:$0xff] }
 0x552   : > { %v2854_v32 = vadd.f32 %v2851_v29, %v2825_v36  ;;  %v2590_v19 = vrot.slane %v2589_v8, 1  ;;  %v2898_v36 = vpop.f32.mrf.mxu1 }
 0x554   : > { %8449 = vmatmul.msk.f32.vlgmr.msrb.gmra.mxu0 %vm903_vm13, %v2854_v32  ;;  %v2591_v9 = vadd.f32 %v2590_v19, %v2589_v8 }
 0x555   : > { %8471 = vmatpush.msk.msrb.mxu0 %vm673_vm7, %v9842_v24  ;;  %v3118_v24 = vpop.f32.mrf.mxu3 }
 0x556   : > { %v2592_v59 = vmul.f32 %v2591_v9, %v10129_v18 }
 0x557   : > { %v2972_v48 = vpop.f32.mrf.mxu2 }
 0x558   : > { %v2998_v37 = vadd.f32 %v2997_v23, %v2972_v48  ;;  %v2593_v30 = vadd.f32 1e-08, %v2592_v59 }
 0x55a   : > { %9023 = vrsqrt.f32 %v2593_v30  ;;  %vm2600_vm6 = vweird.f32 %v2593_v30  ;;  %v3049_v56 = vpop.f32.mrf.mxu1 }
 0x55c   : > { %8461 = vmatmul.msk.f32.vlgmr.msra.gmra.mxu0 %vm669_vm8, %v8459_v35 }
 0x55d   : > { %8484 = vmatpush.msk.msra.mxu0 %vm673_vm7, %v9852_v60  ;;  %v11471_v60 = vld [vmem:[#allocation30_spill] sm:$0xff] }
 0x55f   : > { %v3089_v21 = vpop.f32.mrf.mxu2 }
 0x560   : > { %v3092_v16 = vadd.f32 %v3089_v21, %v2998_v37  ;;  %v9024_v55 = vpop.eup %9023 }
 0x561   : > { %v2595_v51 = vmul.f32 %v9024_v55, %v2593_v30  ;;  %vm2601_vm5 = vweird.f32 %v9024_v55 }
 0x562   : > { %v3121_v43 = vadd.f32 %v3118_v24, %v3092_v16  ;;  %vm2602_vm14 = vmor %vm2600_vm6, %vm2601_vm5  ;;  %v3172_v8 = vpop.f32.mrf.mxu1  ;;  %vm2930_vm6 = vcmask 888424  }
 0x563   : > { %v2596_v38 = vmul.f32 %v9024_v55, %v2595_v51 }
 0x564   : > { %8472 = vmatmul.msk.f32.vlgmr.msrb.gmra.mxu0 %vm669_vm8, %v8470_v45  ;;  %8481 = vmatmul.msk.f32.vlgmr.msrb.gmra.mxu3 %vm903_vm13, %v3121_v43 }
 0x565   : > { %8495 = vmatpush.msk.msrb.mxu0 %vm673_vm7, %v9560_v47  ;;  %8504 = vmatpush.msk.msrb.mxu3 %vm673_vm7, %v11471_v60  ;;  %v2597_v47 = vmul.f32 0.5, %v2596_v38 }
 0x567   : > { %v2598_v11 = vsub.f32 1.5, %v2597_v47 }
 0x569   : > { %v2599_v20 = vmul.f32 %v9024_v55, %v2598_v11 }
 0x56a   : > { %v3323_v45 = vpop.f32.mrf.mxu1 }
 0x56b   : > { %v2603_v63 = vsel %vm2602_vm14, %v9024_v55, %v2599_v20 }
 0x56c   : > { %8485 = vmatmul.msk.f32.vlgmr.msra.gmra.mxu0 %vm669_vm8, %v8483_v13  ;;  %8493 = vmatmul.msk.f32.vlgmr.msra.gmra.mxu3 %vm669_vm8, %v8488_v53  ;;  %v2604_v29 = vmul.f32 %v2603_v63, %v2583_v54  ;;  %v8526_v54 = vld [vmem:[%s11375_s3 + $0xc] sm:$0xf]  ;;  %v8489_v13 = vld [vmem:[%s11375_s3 + $0x34] sm:$0xf] }
 0x56d   : > { %8515 = vmatpush.msk.msra.mxu3 %vm673_vm7, %v11472_v41  ;;  %8506 = vmatpush.msk.msra.mxu0 %vm9629_vm9, %v11466_v10  ;;  %v11476_v63 = vld [vmem:[#allocation13_spill] sm:$0xff] }
 0x56e   : > { %2606 = vrot.lane.b32.xlu2 %v2604_v29, %s9164_s26 }
 0x56f   : > { %8507 = vmatpush.msk.msra.mxu0 %vm9639_vm10, %v11466_v10 }
 0x574   : > { %8496 = vmatmul.msk.f32.vlgmr.msrb.gmra.mxu0 %vm669_vm8, %v8494_v0  ;;  %8505 = vmatmul.msk.f32.vlgmr.msrb.gmra.mxu3 %vm669_vm8, %v8503_v14  ;;  %v8500_v0 = vld [vmem:[%s11375_s3 + $0x38] sm:$0xf] }
 0x575   : > { %8519 = vmatpush.msk.msrb.mxu0 %vm673_vm7, %v11473_v5  ;;  %8527 = vmatpush.msk.msrb.mxu3 %vm673_vm7, %v11474_v34  ;;  %v8512_v5 = vld [vmem:[%s11375_s3 + $0x4] sm:$0xf] }
 0x57c   : > { %8516 = vmatmul.msk.f32.vlgmr.msra.gmra.mxu3 %vm669_vm8, %v3583_v33  ;;  %v8517_v33 = vld [vmem:[%s11375_s3 + $0x10] sm:$0xf] }
 0x57d   : > { %8538 = vmatpush.msk.msra.mxu3 %vm9663_vm11, %v11466_v10 }
 0x57f   : > { %8539 = vmatpush.msk.msra.mxu3 %vm9685_vm12, %v11466_v10 }
 0x584   : > { %8528 = vmatmul.msk.f32.vlgmr.msrb.gmra.mxu3 %vm669_vm8, %v8526_v54 }
 0x585   : > { %8551 = vmatpush.msk.msrb.mxu3 %vm673_vm7, %v11475_v7 }
 0x5c8   : > { %v2607_v39 = vpop.permute.xlu2 %2606 }
 0x5c9   : > { %2610 = vst.msk [vmem:[#allocation3 + $0x4] sm:$0xf] %vm2609_vm0, %v2607_v39  ;;  %v11478_v39 = vld [vmem:[#allocation14_spill] sm:$0xff] }
 0x5d1   : > { %v2875_v32 = vpop.f32.mrf.mxu0 }
 0x5d2   : > { %v2899_v46 = vadd.f32 %v2898_v36, %v2875_v32 }
 0x5d4   : > { %v2901_v23 = vadd.f32 %v2899_v46, %v10097_v49 }
 0x5d6   : > { %v2903_v48 = vmul.f32 0.2, %v2901_v23  ;;  %vm2902_vm1 = vcmp.ge.f32.partialorder %v2901_v23, 0.0 }
 0x5d8   : > { %v2904_v19 = vsel %vm2902_vm1, %v2901_v23, %v2903_v48  ;;  %v8523_v23 = vld [vmem:[%s11375_s3 + $0x8] sm:$0xf] }
 0x5d9   : > { %v3026_v40 = vpop.f32.mrf.mxu0  ;;  %v2905_v9 = vmul.f32 %v2904_v19, %v2904_v19 }
 0x5da   : > { %v3050_v35 = vadd.f32 %v3049_v56, %v3026_v40  ;;  %v8532_v40 = vld [vmem:[%s11375_s3 + $0x1c] sm:$0xf] }
 0x5db   : > { %v2906_v21 = vsel %vm960_vm15, %v2905_v9, 0.0  ;;  %v8541_v9 = vld [vmem:[%s11375_s3 + $0x20] sm:$0xf] }
 0x5dc   : > { %v2907_v16 = vrot.slane %v2906_v21, 4 }
 0x5de   : > { %v2908_v30 = vadd.f32 %v2907_v16, %v2906_v21 }
 0x5e0   : > { %v2909_v43 = vrot.slane %v2908_v30, 2 }
 0x5e1   : > { %v3143_v37 = vpop.f32.mrf.mxu0 }
 0x5e2   : > { %v3146_v59 = vadd.f32 %v3143_v37, %v3050_v35  ;;  %v2910_v55 = vadd.f32 %v2909_v43, %v2908_v30  ;;  %v11479_v35 = vld [vmem:[#allocation34_spill] sm:$0xff]  ;;  %v11480_v37 = vld [vmem:[#allocation29_spill] sm:$0xff] }
 0x5e4   : > { %v3175_v24 = vadd.f32 %v3172_v8, %v3146_v59  ;;  %v2911_v53 = vrot.slane %v2910_v55, 1  ;;  %v11481_v59 = vld [vmem:[#allocation39_spill] sm:$0xff] }
 0x5e6   : > { %8478 = vmatmul.msk.f32.vlgmr.msrb.gmra.mxu2 %vm903_vm13, %v3175_v24  ;;  %v2912_v38 = vadd.f32 %v2911_v53, %v2910_v55 }
 0x5e7   : > { %8501 = vmatpush.msk.msrb.mxu2 %vm673_vm7, %v9887_v12  ;;  %v3444_v12 = vpop.f32.mrf.mxu1  ;;  %v3219_v21 = vpop.f32.mrf.mxu3 }
 0x5e8   : > { %v2913_v41 = vmul.f32 %v2912_v38, %v10129_v18 }
 0x5e9   : > { %v3298_v60 = vpop.f32.mrf.mxu0 }
 0x5ea   : > { %v3324_v51 = vadd.f32 %v3323_v45, %v3298_v60  ;;  %v2914_v20 = vadd.f32 1e-08, %v2913_v41 }
 0x5ec   : > { %9025 = vrsqrt.f32 %v2914_v20  ;;  %vm2921_vm3 = vweird.f32 %v2914_v20 }
 0x5ee   : > { %8491 = vmatmul.msk.f32.vlgmr.msra.gmra.mxu2 %vm669_vm8, %v8489_v13 }
 0x5ef   : > { %8513 = vmatpush.msk.msra.mxu2 %vm673_vm7, %v9866_v15  ;;  %v11477_v15 = vld [vmem:[#allocation28_spill] sm:$0xff]  ;;  %v3375_v30 = vpop.f32.mrf.mxu3 }
 0x5f1   : > { %v3415_v47 = vpop.f32.mrf.mxu0 }
 0x5f2   : > { %v3418_v11 = vadd.f32 %v3415_v47, %v3324_v51  ;;  %v9026_v29 = vpop.eup %9025 }
 0x5f3   : > { %v2916_v54 = vmul.f32 %v9026_v29, %v2914_v20  ;;  %vm2922_vm2 = vweird.f32 %v9026_v29 }
 0x5f4   : > { %v3447_v14 = vadd.f32 %v3444_v12, %v3418_v11  ;;  %vm2923_vm4 = vmor %vm2921_vm3, %vm2922_vm2  ;;  %vm3251_vm3 = vcmask 908288  }
 0x5f5   : > { %v2917_v36 = vmul.f32 %v9026_v29, %v2916_v54 }
 0x5f6   : > { %8502 = vmatmul.msk.f32.vlgmr.msrb.gmra.mxu2 %vm669_vm8, %v8500_v0  ;;  %8511 = vmatmul.msk.f32.vlgmr.msra.gmra.mxu1 %vm903_vm13, %v3447_v14 }
 0x5f7   : > { %8524 = vmatpush.msk.msrb.mxu2 %vm673_vm7, %v11476_v63  ;;  %8533 = vmatpush.msk.msra.mxu1 %vm673_vm7, %v11477_v15  ;;  %v2918_v32 = vmul.f32 0.5, %v2917_v36  ;;  %v3498_v55 = vpop.f32.mrf.mxu3 }
 0x5f9   : > { %v2919_v46 = vsub.f32 1.5, %v2918_v32 }
 0x5fb   : > { %v2920_v56 = vmul.f32 %v9026_v29, %v2919_v46 }
 0x5fd   : > { %v2924_v48 = vsel %vm2923_vm4, %v9026_v29, %v2920_v56  ;;  %vm3254_vm4 = vcmask 1044344  }
 0x5fe   : > { %8514 = vmatmul.msk.f32.vlgmr.msra.gmra.mxu2 %vm669_vm8, %v8512_v5  ;;  %8522 = vmatmul.msk.f32.vlgmr.msrb.gmra.mxu1 %vm669_vm8, %v8517_v33  ;;  %v2925_v8 = vmul.f32 %v2924_v48, %v2904_v19  ;;  %v8556_v19 = vld [vmem:[%s11375_s3 + $0x2c] sm:$0xf]  ;;  %v8518_v5 = vld [vmem:[%s11375_s3 + $0x14] sm:$0xf]  ;;  %v11482_v48 = vld [vmem:[#allocation15_spill] sm:$0xff] }
 0x5ff   : > { %8545 = vmatpush.msk.msrb.mxu1 %vm673_vm7, %v11478_v39  ;;  %8535 = vmatpush.msk.msra.mxu2 %vm9629_vm9, %v11466_v10  ;;  %v3644_v14 = vpop.f32.mrf.mxu3 }
 0x600   : > { %2927 = vrot.lane.b32.xlu0 %v2925_v8, %s9165_s17  ;;  %s9172_s17 = smov 59  }
 0x601   : > { %8536 = vmatpush.msk.msra.mxu2 %vm9639_vm10, %v11466_v10 }
 0x606   : > { %8525 = vmatmul.msk.f32.vlgmr.msrb.gmra.mxu2 %vm669_vm8, %v8523_v23  ;;  %8534 = vmatmul.msk.f32.vlgmr.msra.gmra.mxu1 %vm669_vm8, %v8532_v40  ;;  %v8529_v23 = vld [vmem:[%s11375_s3 + $0x18] sm:$0xf] }
 0x607   : > { %8549 = vmatpush.msk.msrb.mxu2 %vm673_vm7, %v11479_v35  ;;  %8557 = vmatpush.msk.msra.mxu1 %vm673_vm7, %v11480_v37  ;;  %v8542_v35 = vld [vmem:[%s11375_s3 + $0x24] sm:$0xf] }
 0x60e   : > { %8546 = vmatmul.msk.f32.vlgmr.msrb.gmra.mxu1 %vm669_vm8, %v8541_v9  ;;  %v8547_v9 = vld [vmem:[%s11375_s3 + $0x30] sm:$0xf] }
 0x60f   : > { %8568 = vmatpush.msk.msrb.mxu1 %vm9663_vm11, %v11466_v10 }
 0x611   : > { %8569 = vmatpush.msk.msrb.mxu1 %vm9685_vm12, %v11466_v10 }
 0x616   : > { %8558 = vmatmul.msk.f32.vlgmr.msra.gmra.mxu1 %vm669_vm8, %v8556_v19 }
 0x617   : > { %8580 = vmatpush.msk.msra.mxu1 %vm673_vm7, %v11481_v59 }
 0x669   : > { %v3196_v24 = vpop.f32.mrf.mxu2 }
 0x66a   : > { %v3220_v16 = vadd.f32 %v3219_v21, %v3196_v24  ;;  %v11484_v24 = vld [vmem:[#allocation16_spill] sm:$0xff] }
 0x66c   : > { %v3222_v45 = vadd.f32 %v3220_v16, %v10097_v49 }
 0x66e   : > { %v3224_v60 = vmul.f32 0.2, %v3222_v45  ;;  %vm3223_vm5 = vcmp.ge.f32.partialorder %v3222_v45, 0.0 }
 0x670   : > { %v3225_v53 = vsel %vm3223_vm5, %v3222_v45, %v3224_v60  ;;  %v8562_v60 = vld [vmem:[%s11375_s3 + $0x3c] sm:$0xf]  ;;  %vm3255_vm5 = vcmask 121860  }
 0x671   : > { %v3352_v43 = vpop.f32.mrf.mxu2  ;;  %v3226_v38 = vmul.f32 %v3225_v53, %v3225_v53 }
 0x672   : > { %v3376_v13 = vadd.f32 %v3375_v30, %v3352_v43  ;;  %v2928_v41 = vpop.permute.xlu0 %2927  ;;  %v8553_v43 = vld [vmem:[%s11375_s3 + $0x28] sm:$0xf] }
 0x673   : > { %2931 = vst.msk [vmem:[#allocation3 + $0x4] sm:$0xf] %vm2930_vm6, %v2928_v41  ;;  %v3227_v12 = vsel %vm960_vm15, %v3226_v38, 0.0  ;;  %v11486_v38 = vld [vmem:[#allocation40_spill] sm:$0xff]  ;;  %v4225_v41 = vld [vmem:[%s11375_s3] sm:$0xf]  ;;  %vm3256_vm6 = vmor %vm3255_vm5, %vm3254_vm4 }
 0x674   : > { %v3228_v20 = vrot.slane %v3227_v12, 4 }
 0x676   : > { %v3229_v0 = vadd.f32 %v3228_v20, %v3227_v12  ;;  %v3545_v12 = vpop.f32.mrf.mxu1 }
 0x678   : > { %v3230_v63 = vrot.slane %v3229_v0, 2 }
 0x679   : > { %v3469_v51 = vpop.f32.mrf.mxu2 }
 0x67a   : > { %v3472_v47 = vadd.f32 %v3469_v51, %v3376_v13  ;;  %v3231_v29 = vadd.f32 %v3230_v63, %v3229_v0  ;;  %v11485_v51 = vld [vmem:[#allocation31_spill] sm:$0xff] }
 0x67c   : > { %v3501_v11 = vadd.f32 %v3498_v55, %v3472_v47  ;;  %v3232_v33 = vrot.slane %v3231_v29, 1  ;;  %v11487_v47 = vld [vmem:[#allocation43_spill] sm:$0xff] }
 0x67e   : > { %8508 = vmatmul.msk.f32.vlgmr.msra.gmra.mxu0 %vm903_vm13, %v3501_v11  ;;  %v3233_v36 = vadd.f32 %v3232_v33, %v3231_v29  ;;  %v3696_v0 = vpop.f32.mrf.mxu1 }
 0x67f   : > { %8530 = vmatpush.msk.msra.mxu0 %vm673_vm7, %v11474_v34  ;;  %v3765_v34 = vpop.f32.mrf.mxu3 }
 0x680   : > { %v3234_v39 = vmul.f32 %v3233_v36, %v10129_v18 }
 0x681   : > { %v3619_v15 = vpop.f32.mrf.mxu2 }
 0x682   : > { %v3645_v54 = vadd.f32 %v3644_v14, %v3619_v15  ;;  %v3235_v56 = vadd.f32 1e-08, %v3234_v39 }
 0x684   : > { %9027 = vrsqrt.f32 %v3235_v56  ;;  %vm3242_vm0 = vweird.f32 %v3235_v56 }
 0x686   : > { %8520 = vmatmul.msk.f32.vlgmr.msrb.gmra.mxu0 %vm669_vm8, %v8518_v5  ;;  %v3819_v29 = vpop.f32.mrf.mxu1 }
 0x687   : > { %8543 = vmatpush.msk.msrb.mxu0 %vm673_vm7, %v11475_v7  ;;  %v11483_v7 = vld [vmem:[#allocation37_spill] sm:$0xff] }
 0x689   : > { %v3736_v32 = vpop.f32.mrf.mxu2 }
 0x68a   : > { %v3739_v46 = vadd.f32 %v3736_v32, %v3645_v54  ;;  %v9028_v8 = vpop.eup %9027 }
 0x68b   : > { %v3237_v19 = vmul.f32 %v9028_v8, %v3235_v56  ;;  %vm3243_vm14 = vweird.f32 %v9028_v8 }
 0x68c   : > { %v3768_v40 = vadd.f32 %v3765_v34, %v3739_v46  ;;  %vm3244_vm1 = vmor %vm3242_vm0, %vm3243_vm14 }
 0x68d   : > { %v3238_v21 = vmul.f32 %v9028_v8, %v3237_v19  ;;  %v8548_v19 = vld [vmem:[%s11375_s3 + $0x34] sm:$0xf] }
 0x68e   : > { %8531 = vmatmul.msk.f32.vlgmr.msra.gmra.mxu0 %vm669_vm8, %v8529_v23  ;;  %8540 = vmatmul.msk.f32.vlgmr.msra.gmra.mxu3 %vm903_vm13, %v3768_v40  ;;  %v3965_v23 = vpop.f32.mrf.mxu1 }
 0x68f   : > { %8554 = vmatpush.msk.msra.mxu0 %vm673_vm7, %v11482_v48  ;;  %8563 = vmatpush.msk.msra.mxu3 %vm673_vm7, %v11483_v7  ;;  %v3239_v16 = vmul.f32 0.5, %v3238_v21 }
 0x691   : > { %v3240_v30 = vsub.f32 1.5, %v3239_v16 }
 0x693   : > { %v3241_v45 = vmul.f32 %v9028_v8, %v3240_v30 }
 0x695   : > { %v3245_v55 = vsel %vm3244_vm1, %v9028_v8, %v3241_v45 }
 0x696   : > { %8544 = vmatmul.msk.f32.vlgmr.msrb.gmra.mxu0 %vm669_vm8, %v8542_v35  ;;  %8552 = vmatmul.msk.f32.vlgmr.msrb.gmra.mxu3 %vm669_vm8, %v8547_v9  ;;  %v3246_v13 = vmul.f32 %v3245_v55, %v3225_v53  ;;  %v8585_v53 = vld [vmem:[%s11375_s3 + $0xc] sm:$0xf]  ;;  %v4086_v45 = vpop.f32.mrf.mxu1  ;;  %v8559_v55 = vld [vmem:[%s11375_s3 + $0x38] sm:$0xf] }
 0x697   : > { %8574 = vmatpush.msk.msrb.mxu3 %vm673_vm7, %v11484_v24  ;;  %8565 = vmatpush.msk.msrb.mxu0 %vm9629_vm9, %v11466_v10 }
 0x698   : > { %3248 = vrot.lane.b32.xlu1 %v3246_v13, %s9166_s5 }
 0x699   : > { %8566 = vmatpush.msk.msrb.mxu0 %vm9639_vm10, %v11466_v10 }
 0x69e   : > { %8555 = vmatmul.msk.f32.vlgmr.msra.gmra.mxu0 %vm669_vm8, %v8553_v43  ;;  %8564 = vmatmul.msk.f32.vlgmr.msra.gmra.mxu3 %vm669_vm8, %v8562_v60 }
 0x69f   : > { %8578 = vmatpush.msk.msra.mxu0 %vm673_vm7, %v11485_v51  ;;  %8586 = vmatpush.msk.msra.mxu3 %vm673_vm7, %v11486_v38  ;;  %v11488_v51 = vld [vmem:[#allocation17_spill] sm:$0xff] }
 0x6a6   : > { %8575 = vmatmul.msk.f32.vlgmr.msrb.gmra.mxu3 %vm669_vm8, %v4225_v41 }
 0x6a7   : > { %8597 = vmatpush.msk.msrb.mxu3 %vm9663_vm11, %v11466_v10 }
 0x6a9   : > { %8598 = vmatpush.msk.msrb.mxu3 %vm9685_vm12, %v11466_v10 }
 0x6ae   : > { %8587 = vmatmul.msk.f32.vlgmr.msra.gmra.mxu3 %vm669_vm8, %v8585_v53 }
 0x6af   : > { %8610 = vmatpush.msk.msra.mxu3 %vm673_vm7, %v11487_v47 }
 0x6fb   : > { %v3522_v11 = vpop.f32.mrf.mxu0 }
 0x6fc   : > { %v3546_v20 = vadd.f32 %v3545_v12, %v3522_v11  ;;  %v8571_v12 = vld [vmem:[%s11375_s3 + $0x4] sm:$0xf]  ;;  %v8576_v11 = vld [vmem:[%s11375_s3 + $0x10] sm:$0xf] }
 0x6fe   : > { %v3548_v14 = vadd.f32 %v3546_v20, %v10097_v49 }
 0x700   : > { %v3550_v15 = vmul.f32 0.2, %v3548_v14  ;;  %vm3549_vm2 = vcmp.ge.f32.partialorder %v3548_v14, 0.0 }
 0x702   : > { %v3551_v5 = vsel %vm3549_vm2, %v3548_v14, %v3550_v15  ;;  %v11490_v14 = vld [vmem:[#allocation18_spill] sm:$0xff] }
 0x703   : > { %v3673_v63 = vpop.f32.mrf.mxu0  ;;  %v3552_v54 = vmul.f32 %v3551_v5, %v3551_v5 }
 0x704   : > { %v3697_v33 = vadd.f32 %v3696_v0, %v3673_v63 }
 0x705   : > { %v3553_v32 = vsel %vm960_vm15, %v3552_v54, 0.0 }
 0x706   : > { %v3554_v34 = vrot.slane %v3553_v32, 4 }
 0x708   : > { %v3555_v56 = vadd.f32 %v3554_v34, %v3553_v32  ;;  %v8600_v32 = vld [vmem:[%s11375_s3 + $0x20] sm:$0xf] }
 0x70a   : > { %v3556_v40 = vrot.slane %v3555_v56, 2  ;;  %v3249_v48 = vpop.permute.xlu1 %3248 }
 0x70b   : > { %v3790_v36 = vpop.f32.mrf.mxu0  ;;  %v3250_v7 = vrot.slane %v3249_v48, 4 }
 0x70c   : > { %v3793_v39 = vadd.f32 %v3790_v36, %v3697_v33  ;;  %v3557_v35 = vadd.f32 %v3556_v40, %v3555_v56  ;;  %v8591_v33 = vld [vmem:[%s11375_s3 + $0x1c] sm:$0xf] }
 0x70d   : > { %v3252_v9 = vsel %vm3251_vm3, %v3250_v7, %v3249_v48  ;;  %vm3577_vm3 = vcmask 396424  }
 0x70e   : > { %v3822_v46 = vadd.f32 %v3819_v29, %v3793_v39  ;;  %v3558_v21 = vrot.slane %v3557_v35, 1  ;;  %3257 = vst.msk [vmem:[#allocation3 + $0x4] sm:$0xff] %vm3256_vm6, %v3252_v9  ;;  %v8582_v29 = vld [vmem:[%s11375_s3 + $0x8] sm:$0xf]  ;;  %v11491_v39 = vld [vmem:[#allocation35_spill] sm:$0xff] }
 0x710   : > { %8537 = vmatmul.msk.f32.vlgmr.msra.gmra.mxu2 %vm903_vm13, %v3822_v46  ;;  %v3559_v24 = vadd.f32 %v3558_v21, %v3557_v35 }
 0x711   : > { %8560 = vmatpush.msk.msra.mxu2 %vm673_vm7, %v11480_v37  ;;  %v3866_v34 = vpop.f32.mrf.mxu3 }
 0x712   : > { %v3560_v37 = vmul.f32 %v3559_v24, %v10129_v18 }
 0x713   : > { %v3940_v8 = vpop.f32.mrf.mxu0 }
 0x714   : > { %v3966_v16 = vadd.f32 %v3965_v23, %v3940_v8  ;;  %v3561_v43 = vadd.f32 1e-08, %v3560_v37 }
 0x716   : > { %9029 = vrsqrt.f32 %v3561_v43  ;;  %vm3568_vm0 = vweird.f32 %v3561_v43 }
 0x718   : > { %8550 = vmatmul.msk.f32.vlgmr.msrb.gmra.mxu2 %vm669_vm8, %v8548_v19 }
 0x719   : > { %8572 = vmatpush.msk.msrb.mxu2 %vm673_vm7, %v11481_v59  ;;  %v11489_v59 = vld [vmem:[#allocation42_spill] sm:$0xff]  ;;  %v4017_v23 = vpop.f32.mrf.mxu3 }
 0x71b   : > { %v4057_v30 = vpop.f32.mrf.mxu0 }
 0x71c   : > { %v4060_v60 = vadd.f32 %v4057_v30, %v3966_v16  ;;  %v9030_v41 = vpop.eup %9029 }
 0x71d   : > { %v3563_v53 = vmul.f32 %v9030_v41, %v3561_v43  ;;  %vm3569_vm14 = vweird.f32 %v9030_v41 }
 0x71e   : > { %v4089_v13 = vadd.f32 %v4086_v45, %v4060_v60  ;;  %vm3570_vm1 = vmor %vm3568_vm0, %vm3569_vm14  ;;  %vm3898_vm0 = vcmask 675224  }
 0x71f   : > { %v3564_v20 = vmul.f32 %v9030_v41, %v3563_v53 }
 0x720   : > { %8561 = vmatmul.msk.f32.vlgmr.msra.gmra.mxu2 %vm669_vm8, %v8559_v55  ;;  %8570 = vmatmul.msk.f32.vlgmr.msrb.gmra.mxu1 %vm903_vm13, %v4089_v13 }
 0x721   : > { %8583 = vmatpush.msk.msra.mxu2 %vm673_vm7, %v11488_v51  ;;  %8592 = vmatpush.msk.msrb.mxu1 %vm673_vm7, %v11489_v59  ;;  %v3565_v0 = vmul.f32 0.5, %v3564_v20  ;;  %v4140_v8 = vpop.f32.mrf.mxu3  ;;  %v8577_v59 = vld [vmem:[%s11375_s3 + $0x14] sm:$0xf] }
 0x723   : > { %v3566_v63 = vsub.f32 1.5, %v3565_v0 }
 0x725   : > { %v3567_v15 = vmul.f32 %v9030_v41, %v3566_v63  ;;  %v8588_v63 = vld [vmem:[%s11375_s3 + $0x18] sm:$0xf] }
 0x727   : > { %v3571_v54 = vsel %vm3570_vm1, %v9030_v41, %v3567_v15 }
 0x728   : > { %8573 = vmatmul.msk.f32.vlgmr.msrb.gmra.mxu2 %vm669_vm8, %v8571_v12  ;;  %8581 = vmatmul.msk.f32.vlgmr.msra.gmra.mxu1 %vm669_vm8, %v8576_v11  ;;  %v3572_v36 = vmul.f32 %v3571_v54, %v3551_v5  ;;  %v8615_v5 = vld [vmem:[%s11375_s3 + $0x2c] sm:$0xf] }
 0x729   : > { %8604 = vmatpush.msk.msra.mxu1 %vm673_vm7, %v11490_v14  ;;  %8594 = vmatpush.msk.msrb.mxu2 %vm9629_vm9, %v11466_v10  ;;  %v4286_v60 = vpop.f32.mrf.mxu3 }
 0x72a   : > { %3574 = vrot.lane.b32.xlu1 %v3572_v36, %s9167_s19  ;;  %v8601_v36 = vld [vmem:[%s11375_s3 + $0x24] sm:$0xf] }
 0x72b   : > { %8595 = vmatpush.msk.msrb.mxu2 %vm9639_vm10, %v11466_v10 }
 0x730   : > { %8584 = vmatmul.msk.f32.vlgmr.msra.gmra.mxu2 %vm669_vm8, %v8582_v29  ;;  %8593 = vmatmul.msk.f32.vlgmr.msrb.gmra.mxu1 %vm669_vm8, %v8591_v33  ;;  %v11492_v29 = vld [vmem:[#allocation19_spill] sm:$0xff] }
 0x731   : > { %8608 = vmatpush.msk.msra.mxu2 %vm673_vm7, %v11491_v39  ;;  %8616 = vmatpush.msk.msrb.mxu1 %vm673_vm7, %v9919_v2  ;;  %v8606_v39 = vld [vmem:[%s11375_s3 + $0x30] sm:$0xf] }
 0x738   : > { %8605 = vmatmul.msk.f32.vlgmr.msra.gmra.mxu1 %vm669_vm8, %v8600_v32 }
 0x739   : > { %8627 = vmatpush.msk.msra.mxu1 %vm9663_vm11, %v11466_v10 }
 0x73b   : > { %8628 = vmatpush.msk.msra.mxu1 %vm9685_vm12, %v11466_v10 }
 0x740   : > { %8617 = vmatmul.msk.f32.vlgmr.msrb.gmra.mxu1 %vm669_vm8, %v8615_v5 }
 0x741   : > { %8639 = vmatpush.msk.msrb.mxu1 %vm673_vm7, %v9921_v26 }
 0x793   : > { %v3843_v46 = vpop.f32.mrf.mxu2 }
 0x794   : > { %v3867_v56 = vadd.f32 %v3866_v34, %v3843_v46  ;;  %v11494_v34 = vld [vmem:[#allocation20_spill] sm:$0xff] }
 0x796   : > { %v3869_v40 = vadd.f32 %v3867_v56, %v10097_v49 }
 0x798   : > { %v3871_v7 = vmul.f32 0.2, %v3869_v40  ;;  %vm3870_vm2 = vcmp.ge.f32.partialorder %v3869_v40, 0.0 }
 0x79a   : > { %v3872_v35 = vsel %vm3870_vm2, %v3869_v40, %v3871_v7  ;;  %v8621_v40 = vld [vmem:[%s11375_s3 + $0x3c] sm:$0xf] }
 0x79b   : > { %v3994_v48 = vpop.f32.mrf.mxu2  ;;  %v3873_v19 = vmul.f32 %v3872_v35, %v3872_v35 }
 0x79c   : > { %v4018_v9 = vadd.f32 %v4017_v23, %v3994_v48  ;;  %v3575_v21 = vpop.permute.xlu1 %3574  ;;  %v8612_v23 = vld [vmem:[%s11375_s3 + $0x28] sm:$0xf] }
 0x79d   : > { %3578 = vst.msk [vmem:[#allocation3 + $0x8] sm:$0xf] %vm3577_vm3, %v3575_v21  ;;  %v3874_v37 = vsel %vm960_vm15, %v3873_v19, 0.0  ;;  %v4187_v19 = vpop.f32.mrf.mxu1 }
 0x79e   : > { %v3875_v30 = vrot.slane %v3874_v37, 4 }
 0x7a0   : > { %v3876_v43 = vadd.f32 %v3875_v30, %v3874_v37 }
 0x7a2   : > { %v3877_v55 = vrot.slane %v3876_v43, 2 }
 0x7a3   : > { %v4111_v24 = vpop.f32.mrf.mxu2 }
 0x7a4   : > { %v4114_v16 = vadd.f32 %v4111_v24, %v4018_v9  ;;  %v3878_v51 = vadd.f32 %v3877_v55, %v3876_v43  ;;  %v4872_v9 = vld [vmem:[%s11375_s3] sm:$0xf] }
 0x7a6   : > { %v4143_v45 = vadd.f32 %v4140_v8, %v4114_v16  ;;  %v3879_v41 = vrot.slane %v3878_v51, 1  ;;  %v11495_v8 = vld [vmem:[#allocation41_spill] sm:$0xff]  ;;  %v4338_v16 = vpop.f32.mrf.mxu1 }
 0x7a8   : > { %8567 = vmatmul.msk.f32.vlgmr.msrb.gmra.mxu0 %vm903_vm13, %v4143_v45  ;;  %v3880_v53 = vadd.f32 %v3879_v41, %v3878_v51 }
 0x7a9   : > { %8589 = vmatpush.msk.msrb.mxu0 %vm673_vm7, %v11486_v38  ;;  %v4407_v38 = vpop.f32.mrf.mxu3 }
 0x7aa   : > { %v3881_v11 = vmul.f32 %v3880_v53, %v10129_v18 }
 0x7ab   : > { %v4261_v13 = vpop.f32.mrf.mxu2 }
 0x7ac   : > { %v4287_v12 = vadd.f32 %v4286_v60, %v4261_v13  ;;  %v3882_v0 = vadd.f32 1e-08, %v3881_v11 }
 0x7ae   : > { %9031 = vrsqrt.f32 %v3882_v0  ;;  %vm3889_vm5 = vweird.f32 %v3882_v0  ;;  %v4461_v43 = vpop.f32.mrf.mxu1 }
 0x7b0   : > { %8579 = vmatmul.msk.f32.vlgmr.msra.gmra.mxu0 %vm669_vm8, %v8577_v59 }
 0x7b1   : > { %8602 = vmatpush.msk.msra.mxu0 %vm673_vm7, %v11487_v47  ;;  %v11493_v47 = vld [vmem:[#allocation38_spill] sm:$0xff] }
 0x7b3   : > { %v4378_v20 = vpop.f32.mrf.mxu2 }
 0x7b4   : > { %v4381_v14 = vadd.f32 %v4378_v20, %v4287_v12  ;;  %v9032_v33 = vpop.eup %9031 }
 0x7b5   : > { %v3884_v54 = vmul.f32 %v9032_v33, %v3882_v0  ;;  %vm3890_vm4 = vweird.f32 %v9032_v33 }
 0x7b6   : > { %v4410_v15 = vadd.f32 %v4407_v38, %v4381_v14  ;;  %vm3891_vm6 = vmor %vm3889_vm5, %vm3890_vm4  ;;  %v4612_v38 = vpop.f32.mrf.mxu1  ;;  %vm4219_vm5 = vcmask 954024  }
 0x7b7   : > { %v3885_v32 = vmul.f32 %v9032_v33, %v3884_v54 }
 0x7b8   : > { %8590 = vmatmul.msk.f32.vlgmr.msrb.gmra.mxu0 %vm669_vm8, %v8588_v63  ;;  %8599 = vmatmul.msk.f32.vlgmr.msrb.gmra.mxu3 %vm903_vm13, %v4410_v15  ;;  %v8607_v15 = vld [vmem:[%s11375_s3 + $0x34] sm:$0xf] }
 0x7b9   : > { %8613 = vmatpush.msk.msrb.mxu0 %vm673_vm7, %v11492_v29  ;;  %8622 = vmatpush.msk.msrb.mxu3 %vm673_vm7, %v11493_v47  ;;  %v3886_v5 = vmul.f32 0.5, %v3885_v32 }
 0x7bb   : > { %v3887_v46 = vsub.f32 1.5, %v3886_v5  ;;  %v8618_v5 = vld [vmem:[%s11375_s3 + $0x38] sm:$0xf] }
 0x7bd   : > { %v3888_v56 = vmul.f32 %v9032_v33, %v3887_v46  ;;  %v11497_v46 = vld [vmem:[#allocation21_spill] sm:$0xff] }
 0x7bf   : > { %v3892_v48 = vsel %vm3891_vm6, %v9032_v33, %v3888_v56 }
 0x7c0   : > { %8603 = vmatmul.msk.f32.vlgmr.msra.gmra.mxu0 %vm669_vm8, %v8601_v36  ;;  %8611 = vmatmul.msk.f32.vlgmr.msra.gmra.mxu3 %vm669_vm8, %v8606_v39  ;;  %v3893_v7 = vmul.f32 %v3892_v48, %v3872_v35  ;;  %v11496_v35 = vld [vmem:[#allocation44_spill] sm:$0xff]  ;;  %v4733_v36 = vpop.f32.mrf.mxu1 }
 0x7c1   : > { %8633 = vmatpush.msk.msra.mxu3 %vm673_vm7, %v11494_v34  ;;  %8624 = vmatpush.msk.msra.mxu0 %vm9629_vm9, %v11466_v10 }
 0x7c2   : > { %3895 = vrot.lane.b32.xlu0 %v3893_v7, %s9168_s24 }
 0x7c3   : > { %8625 = vmatpush.msk.msra.mxu0 %vm9639_vm10, %v11466_v10 }
 0x7c8   : > { %8614 = vmatmul.msk.f32.vlgmr.msrb.gmra.mxu0 %vm669_vm8, %v8612_v23  ;;  %8623 = vmatmul.msk.f32.vlgmr.msrb.gmra.mxu3 %vm669_vm8, %v8621_v40  ;;  %v8630_v23 = vld [vmem:[%s11375_s3 + $0x4] sm:$0xf]  ;;  %v8635_v40 = vld [vmem:[%s11375_s3 + $0x10] sm:$0xf] }
 0x7c9   : > { %8637 = vmatpush.msk.msrb.mxu0 %vm673_vm7, %v9928_v27  ;;  %8645 = vmatpush.msk.msrb.mxu3 %vm673_vm7, %v11495_v8  ;;  %v8644_v27 = vld [vmem:[%s11375_s3 + $0xc] sm:$0xf] }
 0x7d0   : > { %8634 = vmatmul.msk.f32.vlgmr.msra.gmra.mxu3 %vm669_vm8, %v4872_v9  ;;  %v11498_v9 = vld [vmem:[#allocation22_spill] sm:$0xff] }
 0x7d1   : > { %8656 = vmatpush.msk.msra.mxu3 %vm9663_vm11, %v11466_v10 }
 0x7d3   : > { %8657 = vmatpush.msk.msra.mxu3 %vm9685_vm12, %v11466_v10 }
 0x7d8   : > { %8646 = vmatmul.msk.f32.vlgmr.msrb.gmra.mxu3 %vm669_vm8, %v8644_v27 }
 0x7d9   : > { %8669 = vmatpush.msk.msrb.mxu3 %vm673_vm7, %v11496_v35 }
 0x825   : > { %v4164_v21 = vpop.f32.mrf.mxu0 }
 0x826   : > { %v4188_v24 = vadd.f32 %v4187_v19, %v4164_v21  ;;  %v8641_v19 = vld [vmem:[%s11375_s3 + $0x8] sm:$0xf]  ;;  %v8650_v21 = vld [vmem:[%s11375_s3 + $0x1c] sm:$0xf] }
 0x828   : > { %v4190_v37 = vadd.f32 %v4188_v24, %v10097_v49 }
 0x82a   : > { %v4192_v45 = vmul.f32 0.2, %v4190_v37  ;;  %vm4191_vm14 = vcmp.ge.f32.partialorder %v4190_v37, 0.0 }
 0x82c   : > { %v4193_v60 = vsel %vm4191_vm14, %v4190_v37, %v4192_v45  ;;  %v8659_v37 = vld [vmem:[%s11375_s3 + $0x20] sm:$0xf] }
 0x82d   : > { %v4315_v30 = vpop.f32.mrf.mxu0  ;;  %v4194_v13 = vmul.f32 %v4193_v60, %v4193_v60 }
 0x82e   : > { %v4339_v55 = vadd.f32 %v4338_v16, %v4315_v30 }
 0x82f   : > { %v4195_v41 = vsel %vm960_vm15, %v4194_v13, 0.0 }
 0x830   : > { %v4196_v53 = vrot.slane %v4195_v41, 4 }
 0x832   : > { %v4197_v11 = vadd.f32 %v4196_v53, %v4195_v41 }
 0x834   : > { %v3896_v20 = vpop.permute.xlu0 %3895  ;;  %v4198_v0 = vrot.slane %v4197_v11, 2 }
 0x835   : > { %v4432_v51 = vpop.f32.mrf.mxu0  ;;  %3899 = vst.msk [vmem:[#allocation3 + $0x8] sm:$0xf] %vm3898_vm0, %v3896_v20 }
 0x836   : > { %v4435_v59 = vadd.f32 %v4432_v51, %v4339_v55  ;;  %v4199_v63 = vadd.f32 %v4198_v0, %v4197_v11 }
 0x838   : > { %v4464_v12 = vadd.f32 %v4461_v43, %v4435_v59  ;;  %v4200_v29 = vrot.slane %v4199_v63, 1 }
 0x83a   : > { %8596 = vmatmul.msk.f32.vlgmr.msrb.gmra.mxu2 %vm903_vm13, %v4464_v12  ;;  %v4201_v47 = vadd.f32 %v4200_v29, %v4199_v63 }
 0x83b   : > { %8619 = vmatpush.msk.msrb.mxu2 %vm673_vm7, %v9919_v2  ;;  %v4508_v30 = vpop.f32.mrf.mxu3 }
 0x83c   : > { %v4202_v54 = vmul.f32 %v4201_v47, %v10129_v18 }
 0x83d   : > { %v4587_v14 = vpop.f32.mrf.mxu0 }
 0x83e   : > { %v4613_v33 = vadd.f32 %v4612_v38, %v4587_v14  ;;  %v4203_v39 = vadd.f32 1e-08, %v4202_v54 }
 0x840   : > { %9033 = vrsqrt.f32 %v4203_v39  ;;  %vm4210_vm2 = vweird.f32 %v4203_v39 }
 0x842   : > { %8609 = vmatmul.msk.f32.vlgmr.msra.gmra.mxu2 %vm669_vm8, %v8607_v15 }
 0x843   : > { %8631 = vmatpush.msk.msra.mxu2 %vm673_vm7, %v9921_v26 }
 0x845   : > { %v4704_v2 = vpop.f32.mrf.mxu0 }
 0x846   : > { %v4707_v32 = vadd.f32 %v4704_v2, %v4613_v33  ;;  %v9034_v26 = vpop.eup %9033  ;;  %v8636_v2 = vld [vmem:[%s11375_s3 + $0x14] sm:$0xf] }
 0x847   : > { %v4205_v56 = vmul.f32 %v9034_v26, %v4203_v39  ;;  %vm4211_vm1 = vweird.f32 %v9034_v26 }
 0x848   : > { %v4736_v34 = vadd.f32 %v4733_v36, %v4707_v32  ;;  %vm4212_vm3 = vmor %vm4210_vm2, %vm4211_vm1  ;;  %vm4540_vm1 = vcmask 973824   ;;  %vm4543_vm2 = vcmask 1044408  }
 0x849   : > { %v4206_v48 = vmul.f32 %v9034_v26, %v4205_v56  ;;  %v8647_v56 = vld [vmem:[%s11375_s3 + $0x18] sm:$0xf] }
 0x84a   : > { %8620 = vmatmul.msk.f32.vlgmr.msrb.gmra.mxu2 %vm669_vm8, %v8618_v5  ;;  %8629 = vmatmul.msk.f32.vlgmr.msra.gmra.mxu1 %vm903_vm13, %v4736_v34 }
 0x84b   : > { %8642 = vmatpush.msk.msrb.mxu2 %vm673_vm7, %v11497_v46  ;;  %8651 = vmatpush.msk.msra.mxu1 %vm673_vm7, %v9930_v1  ;;  %v4207_v7 = vmul.f32 0.5, %v4206_v48 }
 0x84d   : > { %v4208_v1 = vsub.f32 1.5, %v4207_v7  ;;  %v8660_v7 = vld [vmem:[%s11375_s3 + $0x24] sm:$0xf] }
 0x84f   : > { %v4209_v27 = vmul.f32 %v9034_v26, %v4208_v1 }
 0x851   : > { %v4213_v24 = vsel %vm4212_vm3, %v9034_v26, %v4209_v27  ;;  %vm4544_vm3 = vcmask 187396  }
 0x852   : > { %8632 = vmatmul.msk.f32.vlgmr.msra.gmra.mxu2 %vm669_vm8, %v8630_v23  ;;  %8640 = vmatmul.msk.f32.vlgmr.msrb.gmra.mxu1 %vm669_vm8, %v8635_v40  ;;  %v4214_v16 = vmul.f32 %v4213_v24, %v4193_v60  ;;  %v4664_v60 = vpop.f32.mrf.mxu3  ;;  %v11499_v40 = vld [vmem:[#allocation23_spill] sm:$0xff]  ;;  %v8671_v24 = vld [vmem:[%s11375_s3 + $0x28] sm:$0xf] }
 0x853   : > { %8663 = vmatpush.msk.msrb.mxu1 %vm673_vm7, %v11498_v9  ;;  %8653 = vmatpush.msk.msra.mxu2 %vm9629_vm9, %v11466_v10  ;;  %v8665_v9 = vld [vmem:[%s11375_s3 + $0x30] sm:$0xf] }
 0x854   : > { %4216 = vrot.lane.b32.xlu1 %v4214_v16, %s9169_s14  ;;  %v8680_v16 = vld [vmem:[%s11375_s3 + $0x3c] sm:$0xf] }
 0x855   : > { %8654 = vmatpush.msk.msra.mxu2 %vm9639_vm10, %v11466_v10 }
 0x85a   : > { %8643 = vmatmul.msk.f32.vlgmr.msrb.gmra.mxu2 %vm669_vm8, %v8641_v19  ;;  %8652 = vmatmul.msk.f32.vlgmr.msra.gmra.mxu1 %vm669_vm8, %v8650_v21  ;;  %v4787_v59 = vpop.f32.mrf.mxu3  ;;  %v11500_v19 = vld [vmem:[#allocation24_spill] sm:$0xff] }
 0x85b   : > { %8667 = vmatpush.msk.msrb.mxu2 %vm673_vm7, %v9946_v28  ;;  %8675 = vmatpush.msk.msra.mxu1 %vm673_vm7, %v9948_v6  ;;  %v8674_v28 = vld [vmem:[%s11375_s3 + $0x2c] sm:$0xf] }
 0x862   : > { %8664 = vmatmul.msk.f32.vlgmr.msrb.gmra.mxu1 %vm669_vm8, %v8659_v37  ;;  %v4933_v29 = vpop.f32.mrf.mxu3 }
 0x863   : > { %8686 = vmatpush.msk.msrb.mxu1 %vm9663_vm11, %v11466_v10 }
 0x865   : > { %8687 = vmatpush.msk.msrb.mxu1 %vm9685_vm12, %v11466_v10 }
 0x86a   : > { %8676 = vmatmul.msk.f32.vlgmr.msra.gmra.mxu1 %vm669_vm8, %v8674_v28 }
 0x86b   : > { %8698 = vmatpush.msk.msra.mxu1 %vm673_vm7, %v9923_v52 }
 0x8bd   : > { %v4485_v45 = vpop.f32.mrf.mxu2 }
 0x8be   : > { %v4509_v43 = vadd.f32 %v4508_v30, %v4485_v45  ;;  %v5514_v30 = vld [vmem:[%s11375_s3] sm:$0xf] }
 0x8c0   : > { %v4511_v55 = vadd.f32 %v4509_v43, %v10097_v49 }
 0x8c2   : > { %v4513_v51 = vmul.f32 0.2, %v4511_v55  ;;  %vm4512_vm4 = vcmp.ge.f32.partialorder %v4511_v55, 0.0 }
 0x8c4   : > { %v4514_v41 = vsel %vm4512_vm4, %v4511_v55, %v4513_v51  ;;  %vm4545_vm4 = vmor %vm4544_vm3, %vm4543_vm2 }
 0x8c5   : > { %v4641_v13 = vpop.f32.mrf.mxu2  ;;  %v4515_v12 = vmul.f32 %v4514_v41, %v4514_v41 }
 0x8c6   : > { %v4665_v53 = vadd.f32 %v4664_v60, %v4641_v13  ;;  %v4217_v11 = vpop.permute.xlu1 %4216 }
 0x8c7   : > { %4220 = vst.msk [vmem:[#allocation3 + $0x8] sm:$0xf] %vm4219_vm5, %v4217_v11  ;;  %v4516_v0 = vsel %vm960_vm15, %v4515_v12, 0.0  ;;  %v4834_v45 = vpop.f32.mrf.mxu1 }
 0x8c8   : > { %v4517_v14 = vrot.slane %v4516_v0, 4 }
 0x8ca   : > { %v4518_v15 = vadd.f32 %v4517_v14, %v4516_v0 }
 0x8cc   : > { %v4519_v47 = vrot.slane %v4518_v15, 2 }
 0x8cd   : > { %v4758_v20 = vpop.f32.mrf.mxu2 }
 0x8ce   : > { %v4761_v38 = vadd.f32 %v4758_v20, %v4665_v53  ;;  %v4520_v54 = vadd.f32 %v4519_v47, %v4518_v15 }
 0x8d0   : > { %v4790_v63 = vadd.f32 %v4787_v59, %v4761_v38  ;;  %v4521_v36 = vrot.slane %v4520_v54, 1  ;;  %v4985_v59 = vpop.f32.mrf.mxu1 }
 0x8d2   : > { %8626 = vmatmul.msk.f32.vlgmr.msra.gmra.mxu0 %vm903_vm13, %v4790_v63  ;;  %v4522_v39 = vadd.f32 %v4521_v36, %v4520_v54 }
 0x8d3   : > { %8648 = vmatpush.msk.msra.mxu0 %vm673_vm7, %v11495_v8  ;;  %v5054_v8 = vpop.f32.mrf.mxu3 }
 0x8d4   : > { %v4523_v5 = vmul.f32 %v4522_v39, %v10129_v18 }
 0x8d5   : > { %v4908_v33 = vpop.f32.mrf.mxu2 }
 0x8d6   : > { %v4934_v32 = vadd.f32 %v4933_v29, %v4908_v33  ;;  %v4524_v46 = vadd.f32 1e-08, %v4523_v5 }
 0x8d8   : > { %9035 = vrsqrt.f32 %v4524_v46  ;;  %vm4531_vm14 = vweird.f32 %v4524_v46  ;;  %v5108_v11 = vpop.f32.mrf.mxu1 }
 0x8da   : > { %8638 = vmatmul.msk.f32.vlgmr.msrb.gmra.mxu0 %vm669_vm8, %v8636_v2 }
 0x8db   : > { %8661 = vmatpush.msk.msrb.mxu0 %vm673_vm7, %v11496_v35 }
 0x8dd   : > { %v5025_v34 = vpop.f32.mrf.mxu2 }
 0x8de   : > { %v5028_v26 = vadd.f32 %v5025_v34, %v4934_v32  ;;  %v9036_v35 = vpop.eup %9035  ;;  %v8666_v32 = vld [vmem:[%s11375_s3 + $0x34] sm:$0xf] }
 0x8df   : > { %v4526_v48 = vmul.f32 %v9036_v35, %v4524_v46  ;;  %vm4532_vm6 = vweird.f32 %v9036_v35 }
 0x8e0   : > { %v5057_v23 = vadd.f32 %v5054_v8, %v5028_v26  ;;  %vm4533_vm0 = vmor %vm4531_vm14, %vm4532_vm6  ;;  %v5254_v54 = vpop.f32.mrf.mxu1 }
 0x8e1   : > { %v4527_v1 = vmul.f32 %v9036_v35, %v4526_v48  ;;  %v11501_v48 = vld [vmem:[#allocation25_spill] sm:$0xff] }
 0x8e2   : > { %8649 = vmatmul.msk.f32.vlgmr.msra.gmra.mxu0 %vm669_vm8, %v8647_v56  ;;  %8658 = vmatmul.msk.f32.vlgmr.msra.gmra.mxu3 %vm903_vm13, %v5057_v23 }
 0x8e3   : > { %8672 = vmatpush.msk.msra.mxu0 %vm673_vm7, %v11499_v40  ;;  %8681 = vmatpush.msk.msra.mxu3 %vm673_vm7, %v9963_v44  ;;  %v4528_v27 = vmul.f32 0.5, %v4527_v1  ;;  %v8677_v40 = vld [vmem:[%s11375_s3 + $0x38] sm:$0xf]  ;;  %v8689_v1 = vld [vmem:[%s11375_s3 + $0x4] sm:$0xf] }
 0x8e5   : > { %v4529_v44 = vsub.f32 1.5, %v4528_v27  ;;  %v8694_v27 = vld [vmem:[%s11375_s3 + $0x10] sm:$0xf] }
 0x8e7   : > { %v4530_v21 = vmul.f32 %v9036_v35, %v4529_v44 }
 0x8e9   : > { %v4534_v37 = vsel %vm4533_vm0, %v9036_v35, %v4530_v21  ;;  %v11503_v21 = vld [vmem:[#allocation26_spill] sm:$0xff] }
 0x8ea   : > { %8662 = vmatmul.msk.f32.vlgmr.msrb.gmra.mxu0 %vm669_vm8, %v8660_v7  ;;  %8670 = vmatmul.msk.f32.vlgmr.msrb.gmra.mxu3 %vm669_vm8, %v8665_v9  ;;  %v4535_v28 = vmul.f32 %v4534_v37, %v4514_v41  ;;  %v8700_v37 = vld [vmem:[%s11375_s3 + $0x8] sm:$0xf] }
 0x8eb   : > { %8692 = vmatpush.msk.msrb.mxu3 %vm673_vm7, %v11500_v19  ;;  %8683 = vmatpush.msk.msrb.mxu0 %vm9629_vm9, %v11466_v10 }
 0x8ec   : > { %4537 = vrot.lane.b32.xlu2 %v4535_v28, %s9170_s15  ;;  %v8709_v28 = vld [vmem:[%s11375_s3 + $0x1c] sm:$0xf]  ;;  %s9173_s15 = smov 93  }
 0x8ed   : > { %8684 = vmatpush.msk.msrb.mxu0 %vm9639_vm10, %v11466_v10 }
 0x8f2   : > { %8673 = vmatmul.msk.f32.vlgmr.msra.gmra.mxu0 %vm669_vm8, %v8671_v24  ;;  %8682 = vmatmul.msk.f32.vlgmr.msra.gmra.mxu3 %vm669_vm8, %v8680_v16 }
 0x8f3   : > { %8696 = vmatpush.msk.msra.mxu0 %vm673_vm7, %v9965_v4  ;;  %8704 = vmatpush.msk.msra.mxu3 %vm673_vm7, %v9987_v3  ;;  %v8703_v4 = vld [vmem:[%s11375_s3 + $0xc] sm:$0xf] }
 0x8fa   : > { %8693 = vmatmul.msk.f32.vlgmr.msrb.gmra.mxu3 %vm669_vm8, %v5514_v30 }
 0x8fb   : > { %8715 = vmatpush.msk.msrb.mxu3 %vm9663_vm11, %v11466_v10 }
 0x8fd   : > { %8716 = vmatpush.msk.msrb.mxu3 %vm9685_vm12, %v11466_v10 }
 0x902   : > { %8705 = vmatmul.msk.f32.vlgmr.msra.gmra.mxu3 %vm669_vm8, %v8703_v4 }
 0x903   : > { %8728 = vmatpush.msk.msra.mxu3 %vm673_vm7, %v10272_v42 }
 0x946   : > { %v4538_v43 = vpop.permute.xlu2 %4537 }
 0x947   : > { %v4539_v60 = vrot.slane %v4538_v43, 4 }
 0x949   : > { %v4541_v13 = vsel %vm4540_vm1, %v4539_v60, %v4538_v43  ;;  %v8718_v43 = vld [vmem:[%s11375_s3 + $0x20] sm:$0xf]  ;;  %vm4866_vm1 = vcmask 462024  }
 0x94a   : > { %4546 = vst.msk [vmem:[#allocation3 + $0x8] sm:$0xff] %vm4545_vm4, %v4541_v13 }
 0x94f   : > { %v4811_v55 = vpop.f32.mrf.mxu0 }
 0x950   : > { %v4835_v51 = vadd.f32 %v4834_v45, %v4811_v55  ;;  %v11504_v45 = vld [vmem:[#allocation47_spill] sm:$0xff] }
 0x952   : > { %v4837_v41 = vadd.f32 %v4835_v51, %v10097_v49 }
 0x954   : > { %v4839_v12 = vmul.f32 0.2, %v4837_v41  ;;  %vm4838_vm5 = vcmp.ge.f32.partialorder %v4837_v41, 0.0 }
 0x956   : > { %v4840_v20 = vsel %vm4838_vm5, %v4837_v41, %v4839_v12 }
 0x957   : > { %v4962_v53 = vpop.f32.mrf.mxu0  ;;  %v4841_v0 = vmul.f32 %v4840_v20, %v4840_v20 }
 0x958   : > { %v4986_v38 = vadd.f32 %v4985_v59, %v4962_v53 }
 0x959   : > { %v4842_v15 = vsel %vm960_vm15, %v4841_v0, 0.0 }
 0x95a   : > { %v4843_v29 = vrot.slane %v4842_v15, 4 }
 0x95c   : > { %v4844_v33 = vadd.f32 %v4843_v29, %v4842_v15 }
 0x95e   : > { %v4845_v2 = vrot.slane %v4844_v33, 2 }
 0x95f   : > { %v5079_v14 = vpop.f32.mrf.mxu0 }
 0x960   : > { %v5082_v63 = vadd.f32 %v5079_v14, %v4986_v38  ;;  %v4846_v39 = vadd.f32 %v4845_v2, %v4844_v33 }
 0x962   : > { %v5111_v47 = vadd.f32 %v5108_v11, %v5082_v63  ;;  %v4847_v5 = vrot.slane %v4846_v39, 1 }
 0x964   : > { %8655 = vmatmul.msk.f32.vlgmr.msra.gmra.mxu2 %vm903_vm13, %v5111_v47  ;;  %v4848_v34 = vadd.f32 %v4847_v5, %v4846_v39 }
 0x965   : > { %8678 = vmatpush.msk.msra.mxu2 %vm673_vm7, %v9948_v6  ;;  %v5375_v6 = vpop.f32.mrf.mxu1  ;;  %v5155_v55 = vpop.f32.mrf.mxu3 }
 0x966   : > { %v4849_v46 = vmul.f32 %v4848_v34, %v10129_v18 }
 0x967   : > { %v5229_v36 = vpop.f32.mrf.mxu0 }
 0x968   : > { %v5255_v8 = vadd.f32 %v5254_v54, %v5229_v36  ;;  %v4850_v56 = vadd.f32 1e-08, %v4849_v46 }
 0x96a   : > { %9037 = vrsqrt.f32 %v4850_v56  ;;  %vm4857_vm14 = vweird.f32 %v4850_v56 }
 0x96c   : > { %8668 = vmatmul.msk.f32.vlgmr.msrb.gmra.mxu2 %vm669_vm8, %v8666_v32  ;;  %v8695_v32 = vld [vmem:[%s11375_s3 + $0x14] sm:$0xf] }
 0x96d   : > { %8690 = vmatpush.msk.msrb.mxu2 %vm673_vm7, %v9923_v52  ;;  %v11502_v52 = vld [vmem:[#allocation45_spill] sm:$0xff]  ;;  %v5306_v59 = vpop.f32.mrf.mxu3 }
 0x96f   : > { %v5346_v26 = vpop.f32.mrf.mxu0 }
 0x970   : > { %v5349_v23 = vadd.f32 %v5346_v26, %v5255_v8  ;;  %v9038_v7 = vpop.eup %9037 }
 0x971   : > { %v4852_v9 = vmul.f32 %v9038_v7, %v4850_v56  ;;  %vm4858_vm6 = vweird.f32 %v9038_v7 }
 0x972   : > { %v5378_v35 = vadd.f32 %v5375_v6, %v5349_v23  ;;  %vm4859_vm0 = vmor %vm4857_vm14, %vm4858_vm6  ;;  %v8706_v23 = vld [vmem:[%s11375_s3 + $0x18] sm:$0xf]  ;;  %vm5187_vm14 = vcmask 740824  }
 0x973   : > { %v4853_v19 = vmul.f32 %v9038_v7, %v4852_v9 }
 0x974   : > { %8679 = vmatmul.msk.f32.vlgmr.msra.gmra.mxu2 %vm669_vm8, %v8677_v40  ;;  %8688 = vmatmul.msk.f32.vlgmr.msrb.gmra.mxu1 %vm903_vm13, %v5378_v35 }
 0x975   : > { %8701 = vmatpush.msk.msra.mxu2 %vm673_vm7, %v11501_v48  ;;  %8710 = vmatpush.msk.msrb.mxu1 %vm673_vm7, %v11502_v52  ;;  %v4854_v44 = vmul.f32 0.5, %v4853_v19  ;;  %v5429_v11 = vpop.f32.mrf.mxu3  ;;  %v8719_v52 = vld [vmem:[%s11375_s3 + $0x24] sm:$0xf] }
 0x977   : > { %v4855_v24 = vsub.f32 1.5, %v4854_v44  ;;  %v8730_v44 = vld [vmem:[%s11375_s3 + $0x28] sm:$0xf] }
 0x979   : > { %v4856_v16 = vmul.f32 %v9038_v7, %v4855_v24 }
 0x97b   : > { %v4860_v30 = vsel %vm4859_vm0, %v9038_v7, %v4856_v16  ;;  %v8724_v7 = vld [vmem:[%s11375_s3 + $0x30] sm:$0xf]  ;;  %v11507_v16 = vld [vmem:[#allocation48_spill] sm:$0xff] }
 0x97c   : > { %8691 = vmatmul.msk.f32.vlgmr.msrb.gmra.mxu2 %vm669_vm8, %v8689_v1  ;;  %8699 = vmatmul.msk.f32.vlgmr.msra.gmra.mxu1 %vm669_vm8, %v8694_v27  ;;  %v4861_v4 = vmul.f32 %v4860_v30, %v4840_v20 }
 0x97d   : > { %8722 = vmatpush.msk.msra.mxu1 %vm673_vm7, %v11503_v21  ;;  %8712 = vmatpush.msk.msrb.mxu2 %vm9629_vm9, %v11466_v10  ;;  %v5575_v54 = vpop.f32.mrf.mxu3 }
 0x97e   : > { %4863 = vrot.lane.b32.xlu2 %v4861_v4, %s9171_s16 }
 0x97f   : > { %8713 = vmatpush.msk.msrb.mxu2 %vm9639_vm10, %v11466_v10 }
 0x984   : > { %8702 = vmatmul.msk.f32.vlgmr.msra.gmra.mxu2 %vm669_vm8, %v8700_v37  ;;  %8711 = vmatmul.msk.f32.vlgmr.msrb.gmra.mxu1 %vm669_vm8, %v8709_v28  ;;  %v8739_v28 = vld [vmem:[%s11375_s3 + $0x3c] sm:$0xf] }
 0x985   : > { %8726 = vmatpush.msk.msra.mxu2 %vm673_vm7, %v10144_v17  ;;  %8734 = vmatpush.msk.msrb.mxu1 %vm673_vm7, %v11504_v45  ;;  %v8733_v17 = vld [vmem:[%s11375_s3 + $0x2c] sm:$0xf] }
 0x98c   : > { %8723 = vmatmul.msk.f32.vlgmr.msra.gmra.mxu1 %vm669_vm8, %v8718_v43 }
 0x98d   : > { %8745 = vmatpush.msk.msra.mxu1 %vm9663_vm11, %v11466_v10 }
 0x98f   : > { %8746 = vmatpush.msk.msra.mxu1 %vm9685_vm12, %v11466_v10 }
 0x994   : > { %8735 = vmatmul.msk.f32.vlgmr.msrb.gmra.mxu1 %vm669_vm8, %v8733_v17 }
 0x995   : > { %8757 = vmatpush.msk.msrb.mxu1 %vm673_vm7, %v10274_v57 }
 0x9d8   : > { %v4864_v60 = vpop.permute.xlu2 %4863 }
 0x9d9   : > { %4867 = vst.msk [vmem:[#allocation3 + $0xc] sm:$0xf] %vm4866_vm1, %v4864_v60 }
 0x9e7   : > { %v5132_v13 = vpop.f32.mrf.mxu2 }
 0x9e8   : > { %v5156_v51 = vadd.f32 %v5155_v55, %v5132_v13 }
 0x9ea   : > { %v5158_v41 = vadd.f32 %v5156_v51, %v10097_v49 }
 0x9ec   : > { %v5160_v12 = vmul.f32 0.2, %v5158_v41  ;;  %vm5159_vm2 = vcmp.ge.f32.partialorder %v5158_v41, 0.0 }
 0x9ee   : > { %v5161_v20 = vsel %vm5159_vm2, %v5158_v41, %v5160_v12 }
 0x9ef   : > { %v5283_v53 = vpop.f32.mrf.mxu2  ;;  %v5162_v0 = vmul.f32 %v5161_v20, %v5161_v20 }
 0x9f0   : > { %v5307_v38 = vadd.f32 %v5306_v59, %v5283_v53 }
 0x9f1   : > { %v5163_v15 = vsel %vm960_vm15, %v5162_v0, 0.0  ;;  %v5476_v37 = vpop.f32.mrf.mxu1 }
 0x9f2   : > { %v5164_v29 = vrot.slane %v5163_v15, 4 }
 0x9f4   : > { %v5165_v33 = vadd.f32 %v5164_v29, %v5163_v15 }
 0x9f6   : > { %v5166_v2 = vrot.slane %v5165_v33, 2 }
 0x9f7   : > { %v5400_v14 = vpop.f32.mrf.mxu2 }
 0x9f8   : > { %v5403_v63 = vadd.f32 %v5400_v14, %v5307_v38  ;;  %v5167_v39 = vadd.f32 %v5166_v2, %v5165_v33 }
 0x9f9   : > { %v5627_v17 = vpop.f32.mrf.mxu1 }
 0x9fa   : > { %v5432_v47 = vadd.f32 %v5429_v11, %v5403_v63  ;;  %v5168_v5 = vrot.slane %v5167_v39, 1 }
 0x9fc   : > { %8685 = vmatmul.msk.f32.vlgmr.msrb.gmra.mxu0 %vm903_vm13, %v5432_v47  ;;  %v5169_v34 = vadd.f32 %v5168_v5, %v5167_v39  ;;  %v8725_v39 = vld [vmem:[%s11375_s3 + $0x34] sm:$0xf] }
 0x9fd   : > { %8707 = vmatpush.msk.msrb.mxu0 %vm673_vm7, %v9987_v3  ;;  %v5696_v3 = vpop.f32.mrf.mxu3 }
 0x9fe   : > { %v5170_v46 = vmul.f32 %v5169_v34, %v10129_v18 }
 0x9ff   : > { %v5550_v36 = vpop.f32.mrf.mxu2 }
 0xa00   : > { %v5576_v8 = vadd.f32 %v5575_v54, %v5550_v36  ;;  %v5171_v6 = vadd.f32 1e-08, %v5170_v46  ;;  %v8736_v46 = vld [vmem:[%s11375_s3 + $0x38] sm:$0xf] }
 0xa01   : > { %v5750_v53 = vpop.f32.mrf.mxu1 }
 0xa02   : > { %9039 = vrsqrt.f32 %v5171_v6  ;;  %vm5178_vm4 = vweird.f32 %v5171_v6 }
 0xa04   : > { %8697 = vmatmul.msk.f32.vlgmr.msra.gmra.mxu0 %vm669_vm8, %v8695_v32 }
 0xa05   : > { %8720 = vmatpush.msk.msra.mxu0 %vm673_vm7, %v10272_v42  ;;  %v11505_v42 = vld [vmem:[#allocation46_spill] sm:$0xff] }
 0xa07   : > { %v5667_v26 = vpop.f32.mrf.mxu2 }
 0xa08   : > { %v5670_v56 = vadd.f32 %v5667_v26, %v5576_v8  ;;  %v9040_v35 = vpop.eup %9039 }
 0xa09   : > { %v5173_v48 = vmul.f32 %v9040_v35, %v5171_v6  ;;  %vm5179_vm3 = vweird.f32 %v9040_v35  ;;  %v5901_v33 = vpop.f32.mrf.mxu1 }
 0xa0a   : > { %v5699_v40 = vadd.f32 %v5696_v3, %v5670_v56  ;;  %vm5180_vm5 = vmor %vm5178_vm4, %vm5179_vm3  ;;  %v11508_v56 = vld [vmem:[#allocation49_spill] sm:$0xff]  ;;  %vm5508_vm3 = vcmask 1019624  }
 0xa0b   : > { %v5174_v9 = vmul.f32 %v9040_v35, %v5173_v48 }
 0xa0c   : > { %8708 = vmatmul.msk.f32.vlgmr.msrb.gmra.mxu0 %vm669_vm8, %v8706_v23  ;;  %8717 = vmatmul.msk.f32.vlgmr.msrb.gmra.mxu3 %vm903_vm13, %v5699_v40 }
 0xa0d   : > { %8740 = vmatpush.msk.msrb.mxu3 %vm673_vm7, %v10153_v62  ;;  %8731 = vmatpush.msk.msrb.mxu0 %vm673_vm7, %v11505_v42  ;;  %v5175_v1 = vmul.f32 0.5, %v5174_v9  ;;  %v11506_v62 = vld [vmem:[#allocation27_spill] sm:$0xff] }
 0xa0f   : > { %v5176_v27 = vsub.f32 1.5, %v5175_v1 }
 0xa11   : > { %v5177_v19 = vmul.f32 %v9040_v35, %v5176_v27  ;;  %v6022_v34 = vpop.f32.mrf.mxu1 }
 0xa13   : > { %v5181_v21 = vsel %vm5180_vm5, %v9040_v35, %v5177_v19  ;;  %vm5829_vm5 = vcmask 1039360  }
 0xa14   : > { %8721 = vmatmul.msk.f32.vlgmr.msra.gmra.mxu0 %vm669_vm8, %v8719_v52  ;;  %8729 = vmatmul.msk.f32.vlgmr.msra.gmra.mxu3 %vm669_vm8, %v8724_v7  ;;  %v5182_v24 = vmul.f32 %v5181_v21, %v5161_v20  ;;  %v8748_v52 = vld [vmem:[%s11375_s3 + $0x4] sm:$0xf]  ;;  %v8753_v7 = vld [vmem:[%s11375_s3 + $0x10] sm:$0xf] }
 0xa15   : > { %8751 = vmatpush.msk.msra.mxu3 %vm673_vm7, %v11506_v62  ;;  %8742 = vmatpush.msk.msra.mxu0 %vm9629_vm9, %v11466_v10  ;;  %v8768_v62 = vld [vmem:[%s11375_s3 + $0x1c] sm:$0xf] }
 0xa16   : > { %5184 = vrot.lane.b32.xlu1 %v5182_v24, %s9172_s17 }
 0xa17   : > { %8743 = vmatpush.msk.msra.mxu0 %vm9639_vm10, %v11466_v10 }
 0xa1c   : > { %8732 = vmatmul.msk.f32.vlgmr.msrb.gmra.mxu0 %vm669_vm8, %v8730_v44  ;;  %8741 = vmatmul.msk.f32.vlgmr.msrb.gmra.mxu3 %vm669_vm8, %v8739_v28 }
 0xa1d   : > { %8755 = vmatpush.msk.msrb.mxu0 %vm673_vm7, %v11507_v16  ;;  %8763 = vmatpush.msk.msrb.mxu3 %vm673_vm7, %v10169_v61 }
 0xa79   : > { %v5453_v30 = vpop.f32.mrf.mxu0 }
 0xa7a   : > { %v5477_v4 = vadd.f32 %v5476_v37, %v5453_v30 }
 0xa7c   : > { %v5479_v43 = vadd.f32 %v5477_v4, %v10097_v49 }
 0xa7e   : > { %vm5480_vm6 = vcmp.ge.f32.partialorder %v5479_v43, 0.0  ;;  %v5481_v60 = vmul.f32 0.2, %v5479_v43 }
 0xa80   : > { %v5482_v55 = vsel %vm5480_vm6, %v5479_v43, %v5481_v60  ;;  %vm644_vm6 = vcmask 830464  }
 0xa81   : > { %v5604_v13 = vpop.f32.mrf.mxu0  ;;  %v5483_v51 = vmul.f32 %v5482_v55, %v5482_v55 }
 0xa82   : > { %v5628_v11 = vadd.f32 %v5627_v17, %v5604_v13 }
 0xa83   : > { %v5484_v59 = vsel %vm960_vm15, %v5483_v51, 0.0 }
 0xa84   : > { %v5485_v41 = vrot.slane %v5484_v59, 4 }
 0xa86   : > { %v5486_v12 = vadd.f32 %v5485_v41, %v5484_v59 }
 0xa88   : > { %v5487_v20 = vrot.slane %v5486_v12, 2  ;;  %v5185_v47 = vpop.permute.xlu1 %5184 }
 0xa89   : > { %v5721_v38 = vpop.f32.mrf.mxu0  ;;  %5188 = vst.msk [vmem:[#allocation3 + $0xc] sm:$0xf] %vm5187_vm14, %v5185_v47  ;;  %vm5832_vm14 = vcmask 1044472  }
 0xa8a   : > { %v5724_v0 = vadd.f32 %v5721_v38, %v5628_v11  ;;  %v5488_v14 = vadd.f32 %v5487_v20, %v5486_v12  ;;  %v8765_v11 = vld [vmem:[%s11375_s3 + $0x18] sm:$0xf] }
 0xa8c   : > { %v5753_v63 = vadd.f32 %v5750_v53, %v5724_v0  ;;  %v5489_v15 = vrot.slane %v5488_v14, 1  ;;  %v8754_v53 = vld [vmem:[%s11375_s3 + $0x14] sm:$0xf] }
 0xa8e   : > { %8714 = vmatmul.msk.f32.vlgmr.msrb.gmra.mxu2 %vm903_vm13, %v5753_v63  ;;  %v5490_v29 = vadd.f32 %v5489_v15, %v5488_v14 }
 0xa8f   : > { %8737 = vmatpush.msk.msrb.mxu2 %vm673_vm7, %v11504_v45  ;;  %v5797_v50 = vpop.f32.mrf.mxu3 }
 0xa90   : > { %v5491_v54 = vmul.f32 %v5490_v29, %v10129_v18 }
 0xa91   : > { %v5876_v2 = vpop.f32.mrf.mxu0 }
 0xa92   : > { %v5492_v36 = vadd.f32 1e-08, %v5491_v54  ;;  %v5902_v32 = vadd.f32 %v5901_v33, %v5876_v2 }
 0xa94   : > { %9041 = vrsqrt.f32 %v5492_v36  ;;  %vm5499_vm1 = vweird.f32 %v5492_v36 }
 0xa96   : > { %8727 = vmatmul.msk.f32.vlgmr.msra.gmra.mxu2 %vm669_vm8, %v8725_v39 }
 0xa97   : > { %8749 = vmatpush.msk.msra.mxu2 %vm673_vm7, %v10274_v57  ;;  %v5953_v44 = vpop.f32.mrf.mxu3 }
 0xa99   : > { %v5993_v5 = vpop.f32.mrf.mxu0 }
 0xa9a   : > { %v9042_v8 = vpop.eup %9041  ;;  %v5996_v45 = vadd.f32 %v5993_v5, %v5902_v32 }
 0xa9b   : > { %v5494_v26 = vmul.f32 %v9042_v8, %v5492_v36  ;;  %vm5500_vm0 = vweird.f32 %v9042_v8 }
 0xa9c   : > { %v6025_v3 = vadd.f32 %v6022_v34, %v5996_v45  ;;  %vm5501_vm2 = vmor %vm5499_vm1, %vm5500_vm0  ;;  %vm5833_vm0 = vcmask 252932  }
 0xa9d   : > { %v5495_v6 = vmul.f32 %v9042_v8, %v5494_v26  ;;  %vm5834_vm1 = vmor %vm5833_vm0, %vm5832_vm14 }
 0xa9e   : > { %8738 = vmatmul.msk.f32.vlgmr.msrb.gmra.mxu2 %vm669_vm8, %v8736_v46  ;;  %8747 = vmatmul.msk.f32.vlgmr.msra.gmra.mxu1 %vm903_vm13, %v6025_v3 }
 0xa9f   : > { %8760 = vmatpush.msk.msrb.mxu2 %vm673_vm7, %v11508_v56  ;;  %8769 = vmatpush.msk.msra.mxu1 %vm673_vm7, %v10276_v58  ;;  %v5496_v57 = vmul.f32 0.5, %v5495_v6  ;;  %v6161_v58 = vld [vmem:[%s11375_s3] sm:$0xf]  ;;  %v6076_v43 = vpop.f32.mrf.mxu3 }
 0xaa0   : > { %8752 = vmatmul.msk.f32.vlgmr.msra.gmra.mxu3 %vm669_vm8, %v6161_v58 }
 0xaa1   : > { %v5497_v23 = vsub.f32 1.5, %v5496_v57  ;;  %8774 = vmatpush.msk.msra.mxu3 %vm9663_vm11, %v11466_v10 }
 0xaa3   : > { %v5498_v40 = vmul.f32 %v9042_v8, %v5497_v23  ;;  %8775 = vmatpush.msk.msra.mxu3 %vm9685_vm12, %v11466_v10 }
 0xaa5   : > { %v5502_v42 = vsel %vm5501_vm2, %v9042_v8, %v5498_v40 }
 0xaa6   : > { %v5503_v35 = vmul.f32 %v5502_v42, %v5482_v55  ;;  %8750 = vmatmul.msk.f32.vlgmr.msra.gmra.mxu2 %vm669_vm8, %v8748_v52  ;;  %8758 = vmatmul.msk.f32.vlgmr.msrb.gmra.mxu1 %vm669_vm8, %v8753_v7 }
 0xaa7   : > { %8771 = vmatpush.msk.msra.mxu2 %vm9629_vm9, %v11466_v10 }
 0xaa8   : > { %5505 = vrot.lane.b32.xlu2 %v5503_v35, %s9173_s15  ;;  %8764 = vmatmul.msk.f32.vlgmr.msrb.gmra.mxu3 %vm669_vm8, %v8762_v31 }
 0xaa9   : > { %8772 = vmatpush.msk.msra.mxu2 %vm9639_vm10, %v11466_v10 }
 0xaae   : > { %8761 = vmatmul.msk.f32.vlgmr.msrb.gmra.mxu2 %vm669_vm8, %v8759_v22  ;;  %8770 = vmatmul.msk.f32.vlgmr.msra.gmra.mxu1 %vm669_vm8, %v8768_v62  ;;  %v11509_v62 = vmov 0.0  }
 0xaaf   : > { %645 = vst.msk [vmem:[#allocation3 + $0x10] sm:$0xf] %vm644_vm6, %v11509_v62  ;;  %vm6476_vm6 = vcmask 806424  }
 0xb02   : > { %v5506_v48 = vpop.permute.xlu2 %5505 }
 0xb03   : > { %5509 = vst.msk [vmem:[#allocation3 + $0xc] sm:$0xf] %vm5508_vm3, %v5506_v48 }
 0xb11   : > { %v5774_v25 = vpop.f32.mrf.mxu2 }
 0xb12   : > { %v5798_v10 = vadd.f32 %v5797_v50, %v5774_v25 }
 0xb14   : > { %v5800_v9 = vadd.f32 %v5798_v10, %v10097_v49 }
 0xb16   : > { %vm5801_vm9 = vcmp.ge.f32.partialorder %v5800_v9, 0.0  ;;  %v5802_v1 = vmul.f32 0.2, %v5800_v9 }
 0xb18   : > { %v5803_v27 = vsel %vm5801_vm9, %v5800_v9, %v5802_v1 }
 0xb19   : > { %v5930_v19 = vpop.f32.mrf.mxu2  ;;  %v5804_v21 = vmul.f32 %v5803_v27, %v5803_v27 }
 0xb1a   : > { %v5954_v28 = vadd.f32 %v5953_v44, %v5930_v19 }
 0xb1b   : > { %v5805_v24 = vsel %vm960_vm15, %v5804_v21, 0.0  ;;  %v6123_v5 = vpop.f32.mrf.mxu1 }
 0xb1c   : > { %v5806_v16 = vrot.slane %v5805_v24, 4 }
 0xb1e   : > { %v5807_v37 = vadd.f32 %v5806_v16, %v5805_v24 }
 0xb20   : > { %v5808_v30 = vrot.slane %v5807_v37, 2 }
 0xb21   : > { %v6047_v4 = vpop.f32.mrf.mxu2 }
 0xb22   : > { %v6050_v17 = vadd.f32 %v6047_v4, %v5954_v28  ;;  %v5809_v60 = vadd.f32 %v5808_v30, %v5807_v37 }
 0xb23   : > { %v6222_v47 = vpop.f32.mrf.mxu3  ;;  %v6274_v3 = vpop.f32.mrf.mxu1 }
 0xb24   : > { %v6079_v55 = vadd.f32 %v6076_v43, %v6050_v17  ;;  %v5810_v13 = vrot.slane %v5809_v60, 1 }
 0xb26   : > { %8744 = vmatmul.msk.f32.vlgmr.msra.gmra.mxu0 %vm903_vm13, %v6079_v55  ;;  %v5811_v51 = vadd.f32 %v5810_v13, %v5809_v60 }
 0xb27   : > { %8766 = vmatpush.msk.msra.mxu0 %vm673_vm7, %v10169_v61 }
 0xb28   : > { %v5812_v59 = vmul.f32 %v5811_v51, %v10129_v18 }
 0xb29   : > { %v6197_v29 = vpop.f32.mrf.mxu2 }
 0xb2a   : > { %v5813_v41 = vadd.f32 1e-08, %v5812_v59  ;;  %v6223_v33 = vadd.f32 %v6222_v47, %v6197_v29 }
 0xb2b   : > { %v6343_v2 = vpop.f32.mrf.mxu3  ;;  %v6397_v48 = vpop.f32.mrf.mxu1 }
 0xb2c   : > { %9043 = vrsqrt.f32 %v5813_v41  ;;  %vm5820_vm11 = vweird.f32 %v5813_v41 }
 0xb2e   : > { %8756 = vmatmul.msk.f32.vlgmr.msrb.gmra.mxu0 %vm669_vm8, %v8754_v53 }
 0xb31   : > { %v6314_v54 = vpop.f32.mrf.mxu2 }
 0xb32   : > { %v9044_v12 = vpop.eup %9043  ;;  %v6317_v36 = vadd.f32 %v6314_v54, %v6223_v33 }
 0xb33   : > { %v5815_v20 = vmul.f32 %v9044_v12, %v5813_v41  ;;  %vm5821_vm10 = vweird.f32 %v9044_v12 }
 0xb34   : > { %vm5822_vm12 = vmor %vm5820_vm11, %vm5821_vm10  ;;  %v6346_v39 = vadd.f32 %v6343_v2, %v6317_v36  ;;  %vm6155_vm10 = vcmask 527624  }
 0xb35   : > { %v5816_v38 = vmul.f32 %v9044_v12, %v5815_v20 }
 0xb36   : > { %8767 = vmatmul.msk.f32.vlgmr.msra.gmra.mxu0 %vm669_vm8, %v8765_v11  ;;  %8776 = vmatmul.msk.f32.vlgmr.msra.gmra.mxu3 %vm903_vm13, %v6346_v39 }
 0xb37   : > { %v5817_v61 = vmul.f32 0.5, %v5816_v38 }
 0xb39   : > { %v5818_v0 = vsub.f32 1.5, %v5817_v61 }
 0xb3b   : > { %v5819_v14 = vmul.f32 %v9044_v12, %v5818_v0 }
 0xb3d   : > { %v5823_v63 = vsel %vm5822_vm12, %v9044_v12, %v5819_v14 }
 0xb3e   : > { %v5824_v15 = vmul.f32 %v5823_v63, %v5803_v27 }
 0xb40   : > { %5826 = vrot.lane.b32.xlu0 %v5824_v15, %s9156_s22 }
 0xba3   : > { %v6100_v32 = vpop.f32.mrf.mxu0 }
 0xba4   : > { %v6124_v34 = vadd.f32 %v6123_v5, %v6100_v32 }
 0xba6   : > { %v6126_v8 = vadd.f32 %v6124_v34, %v10097_v49 }
 0xba8   : > { %vm6127_vm4 = vcmp.ge.f32.partialorder %v6126_v8, 0.0  ;;  %v6128_v45 = vmul.f32 0.2, %v6126_v8 }
 0xbaa   : > { %v6129_v46 = vsel %vm6127_vm4, %v6126_v8, %v6128_v45 }
 0xbab   : > { %v6251_v26 = vpop.f32.mrf.mxu0  ;;  %v6130_v6 = vmul.f32 %v6129_v46, %v6129_v46 }
 0xbac   : > { %v6275_v40 = vadd.f32 %v6274_v3, %v6251_v26 }
 0xbad   : > { %v6131_v56 = vsel %vm960_vm15, %v6130_v6, 0.0 }
 0xbae   : > { %v6132_v57 = vrot.slane %v6131_v56, 4 }
 0xbb0   : > { %v6133_v23 = vadd.f32 %v6132_v57, %v6131_v56 }
 0xbb2   : > { %v6134_v42 = vrot.slane %v6133_v23, 2  ;;  %v5827_v7 = vpop.permute.xlu0 %5826 }
 0xbb3   : > { %v6368_v35 = vpop.f32.mrf.mxu0  ;;  %v5828_v25 = vrot.slane %v5827_v7, 4 }
 0xbb4   : > { %v6371_v52 = vadd.f32 %v6368_v35, %v6275_v40  ;;  %v6135_v58 = vadd.f32 %v6134_v42, %v6133_v23 }
 0xbb5   : > { %v5830_v9 = vsel %vm5829_vm5, %v5828_v25, %v5827_v7 }
 0xbb6   : > { %v6400_v22 = vadd.f32 %v6397_v48, %v6371_v52  ;;  %v6136_v31 = vrot.slane %v6135_v58, 1  ;;  %5835 = vst.msk [vmem:[#allocation3 + $0xc] sm:$0xff] %vm5834_vm1, %v5830_v9 }
 0xbb8   : > { %8773 = vmatmul.msk.f32.vlgmr.msra.gmra.mxu2 %vm903_vm13, %v6400_v22  ;;  %v6137_v50 = vadd.f32 %v6136_v31, %v6135_v58 }
 0xbb9   : > { %v6444_v4 = vpop.f32.mrf.mxu3 }
 0xbba   : > { %v6138_v10 = vmul.f32 %v6137_v50, %v10129_v18 }
 0xbbc   : > { %v6139_v1 = vadd.f32 1e-08, %v6138_v10 }
 0xbbe   : > { %9045 = vrsqrt.f32 %v6139_v1  ;;  %vm6146_vm2 = vweird.f32 %v6139_v1 }
 0xbc4   : > { %v9046_v27 = vpop.eup %9045 }
 0xbc5   : > { %v6141_v19 = vmul.f32 %v9046_v27, %v6139_v1  ;;  %vm6147_vm13 = vweird.f32 %v9046_v27 }
 0xbc6   : > { %vm6148_vm3 = vmor %vm6146_vm2, %vm6147_vm13 }
 0xbc7   : > { %v6142_v44 = vmul.f32 %v9046_v27, %v6141_v19 }
 0xbc9   : > { %v6143_v21 = vmul.f32 0.5, %v6142_v44 }
 0xbcb   : > { %v6144_v24 = vsub.f32 1.5, %v6143_v21 }
 0xbcd   : > { %v6145_v16 = vmul.f32 %v9046_v27, %v6144_v24 }
 0xbcf   : > { %v6149_v37 = vsel %vm6148_vm3, %v9046_v27, %v6145_v16 }
 0xbd0   : > { %v6150_v28 = vmul.f32 %v6149_v37, %v6129_v46 }
 0xbd2   : > { %6152 = vrot.lane.b32.xlu0 %v6150_v28, %s9174_s20 }
 0xc3b   : > { %v6421_v30 = vpop.f32.mrf.mxu2 }
 0xc3c   : > { %v6445_v43 = vadd.f32 %v6444_v4, %v6421_v30 }
 0xc3e   : > { %v6447_v17 = vadd.f32 %v6445_v43, %v10097_v49 }
 0xc40   : > { %vm6448_vm9 = vcmp.ge.f32.partialorder %v6447_v17, 0.0  ;;  %v6449_v60 = vmul.f32 0.2, %v6447_v17 }
 0xc42   : > { %v6450_v55 = vsel %vm6448_vm9, %v6447_v17, %v6449_v60 }
 0xc43   : > { %v6451_v13 = vmul.f32 %v6450_v55, %v6450_v55 }
 0xc44   : > { %v6153_v51 = vpop.permute.xlu0 %6152 }
 0xc45   : > { %6156 = vst.msk [vmem:[#allocation3 + $0x10] sm:$0xf] %vm6155_vm10, %v6153_v51  ;;  %v6452_v59 = vsel %vm960_vm15, %v6451_v13, 0.0 }
 0xc46   : > { %v6453_v41 = vrot.slane %v6452_v59, 4 }
 0xc48   : > { %v6454_v53 = vadd.f32 %v6453_v41, %v6452_v59 }
 0xc4a   : > { %v6455_v12 = vrot.slane %v6454_v53, 2 }
 0xc4c   : > { %v6456_v11 = vadd.f32 %v6455_v12, %v6454_v53 }
 0xc4e   : > { %v6457_v20 = vrot.slane %v6456_v11, 1 }
 0xc50   : > { %v6458_v38 = vadd.f32 %v6457_v20, %v6456_v11 }
 0xc52   : > { %v6459_v61 = vmul.f32 %v6458_v38, %v10129_v18 }
 0xc54   : > { %v6460_v0 = vadd.f32 1e-08, %v6459_v61 }
 0xc56   : > { %9047 = vrsqrt.f32 %v6460_v0  ;;  %vm6467_vm12 = vweird.f32 %v6460_v0 }
 0xc5c   : > { %v9048_v49 = vpop.eup %9047 }
 0xc5d   : > { %v6462_v14 = vmul.f32 %v9048_v49, %v6460_v0  ;;  %vm6468_vm11 = vweird.f32 %v9048_v49 }
 0xc5e   : > { %vm6469_vm4 = vmor %vm6467_vm12, %vm6468_vm11 }
 0xc5f   : > { %v6463_v63 = vmul.f32 %v9048_v49, %v6462_v14 }
 0xc61   : > { %v6464_v15 = vmul.f32 0.5, %v6463_v63 }
 0xc63   : > { %v6465_v29 = vsub.f32 1.5, %v6464_v15 }
 0xc65   : > { %v6466_v47 = vmul.f32 %v9048_v49, %v6465_v29 }
 0xc67   : > { %v6470_v33 = vsel %vm6469_vm4, %v9048_v49, %v6466_v47 }
 0xc68   : > { %v6471_v54 = vmul.f32 %v6470_v33, %v6450_v55 }
 0xc6a   : > { %6473 = vrot.lane.b32.xlu1 %v6471_v54, %s9175_s8 }
 0xcd9   : > { %6481 = sbr.rel (%p8777_p5) target bundleno = 3296 (0xce0), region = 166 }
 0xcdc   : > { %v6474_v2 = vpop.permute.xlu1 %6473 }
 0xcdd   : > { %6477 = vst.msk [vmem:[#allocation3 + $0x10] sm:$0xf] %vm6476_vm6, %v6474_v2 }
 0xcde   : > { %vm6482_vm14 = vcmask 273408   ;;  %v9176_v36 = vmov 0.0  }
 0xcdf   : > { %6483 = vst.msk [vmem:[#allocation3] sm:$0xf] %vm6482_vm14, %v9176_v36 }
 0xce0 PF: > { %p8778_p6 = scmp.ne.s32.totalorder %s9135_s30, 1 }
 0xce2   : > { %6487 = sbr.rel (%p8778_p6) target bundleno = 3305 (0xce9), region = 170 }
 0xce7   : > { %vm6488_vm0 = vcmask 814608   ;;  %v9177_v39 = vmov 0.0  }
 0xce8   : > { %6489 = vst.msk [vmem:[#allocation3 + $0x10] sm:$0xf] %vm6488_vm0, %v9177_v39 }
 0xce9 PF: > { %v11063_v32 = vld [vmem:[#allocation3] sm:$0xff]  ;;  %v11065_v5 = vld [vmem:[#allocation3 + $0x8] sm:$0xff]  ;;  %v11510_v34 = vmov 0   ;;  %s11511_s5 = sld [smem:[#allocation50_spill]]  ;;  %s9178_s16 = smov 94   ;;  %vm7229_vm1 = vcmask 760832  }
 0xcea   : > { %9049 = vset.pattern.permute.xlu1 %v11510_v34  ;;  %9050 = vset.pattern.permute.xlu0 %v11510_v34  ;;  %6497 = vst [vmem:[#allocation1] ss:$2 sm:$0xff] %v11063_v32  ;;  %s9180_s24 = smov 60   ;;  %vm7384_vm13 = vcmask 752640   ;;  %vm7539_vm2 = vcmask 490496   ;;  %vm7694_vm3 = vcmask 482304  }
 0xceb   : > { %6499 = vst [vmem:[#allocation1 + $0x10] ss:$2 sm:$0xff] %v11065_v5  ;;  %vm7849_vm9 = vcmask 474112   ;;  %s9183_s20 = smov 124   ;;  %s9184_s8 = smov 118  }
 0xcec   : > { %s9185_s30 = smov 120   ;;  %s9187_s14 = smov 114  }
 0xced   : > { %s9188_s21 = smov 112   ;;  %s9189_s18 = smov 98  }
 0xcee   : > { %s9190_s19 = smov 110   ;;  %s9191_s26 = smov 100  }
 0xcef   : > { %v11070_v8 = vld [vmem:[#allocation3 + $0x10] sm:$0xf]  ;;  %v6493_v45 = vld [vmem:[%s11511_s5] sm:$0xf]  ;;  %v8789_v57 = vld [vmem:[%s11511_s5 + $0x4] sm:$0xf] }
 0xcf0   : > { %6501 = vst [vmem:[#allocation1 + $0x20] ss:$2 sm:$0xff] %v11070_v8  ;;  %v8800_v52 = vld [vmem:[%s11511_s5 + $0x8] sm:$0xf]  ;;  %v8811_v50 = vld [vmem:[%s11511_s5 + $0xc] sm:$0xf] }
 0xcf1   : > { %v6503_v46 = vld.sshfl [vmem:[#allocation1 + $0x8] sm:$0xff pattern:$0x75316420]  ;;  %v6502_v26 = vld.sshfl [vmem:[#allocation1] sm:$0xff pattern:$0x75316420] }
 0xcf2   : > { %8781 = vmatpush.msk.msrb.mxu1 %vm673_vm7, %v6503_v46  ;;  %v6505_v3 = vld.sshfl [vmem:[#allocation1 + $0x18] sm:$0xff pattern:$0x75316420]  ;;  %v6504_v6 = vld.sshfl [vmem:[#allocation1 + $0x10] sm:$0xff pattern:$0x75316420]  ;;  %8779 = vmatpush.msk.msrb.mxu0 %vm673_vm7, %v6502_v26 }
 0xcf3   : > { %8785 = vmatpush.msk.msrb.mxu3 %vm673_vm7, %v6505_v3  ;;  %8782 = vmatmul.msk.f32.vlgmr.msrb.gmra.mxu1 %vm669_vm8, %v6493_v45  ;;  %6629 = vst [vmem:[#allocation1 + $0x10] ss:$2 sm:$0xff] %v11065_v5  ;;  %v8822_v37 = vld [vmem:[%s11511_s5 + $0x10] sm:$0xf]  ;;  %v8833_v60 = vld [vmem:[%s11511_s5 + $0x14] sm:$0xf] }
 0xcf4   : > { %8786 = vmatmul.msk.f32.vlgmr.msrb.gmra.mxu3 %vm669_vm8, %v6493_v45  ;;  %8783 = vmatpush.msk.msrb.mxu2 %vm673_vm7, %v6504_v6  ;;  %6627 = vst [vmem:[#allocation1] ss:$2 sm:$0xff] %v11063_v32  ;;  %v8844_v53 = vld [vmem:[%s11511_s5 + $0x18] sm:$0xf]  ;;  %v8855_v0 = vld [vmem:[%s11511_s5 + $0x1c] sm:$0xf] }
 0xcf5   : > { %8784 = vmatmul.msk.f32.vlgmr.msrb.gmra.mxu2 %vm669_vm8, %v6493_v45  ;;  %8780 = vmatmul.msk.f32.vlgmr.msrb.gmra.mxu0 %vm669_vm8, %v6493_v45  ;;  %v8866_v47 = vld [vmem:[%s11511_s5 + $0x20] sm:$0xf]  ;;  %s9192_s28 = smov 102  }
 0xcf7   : > { %v6506_v56 = vld.sshfl [vmem:[#allocation1 + $0x20] sm:$0xff pattern:$0x75316420] }
 0xcf8   : > { %6631 = vst [vmem:[#allocation1 + $0x20] ss:$2 sm:$0xff] %v11070_v8  ;;  %8787 = vmatpush.msk.msra.mxu0 %vm673_vm7, %v6506_v56 }
 0xcfa   : > { %v6634_v23 = vld.sshfl [vmem:[#allocation1 + $0x10] sm:$0xff pattern:$0x75316420]  ;;  %v6635_v40 = vld.sshfl [vmem:[#allocation1 + $0x18] sm:$0xff pattern:$0x75316420] }
 0xcfb   : > { %v6632_v42 = vld.sshfl [vmem:[#allocation1] sm:$0xff pattern:$0x75316420]  ;;  %8794 = vmatpush.msk.msra.mxu3 %vm673_vm7, %v6634_v23  ;;  %v6633_v35 = vld.sshfl [vmem:[#allocation1 + $0x8] sm:$0xff pattern:$0x75316420]  ;;  %8796 = vmatpush.msk.msrb.mxu0 %vm673_vm7, %v6635_v40 }
 0xcfc   : > { %8790 = vmatpush.msk.msra.mxu1 %vm673_vm7, %v6632_v42  ;;  %8795 = vmatmul.msk.f32.vlgmr.msra.gmra.mxu3 %vm669_vm8, %v8789_v57  ;;  %6781 = vst [vmem:[#allocation1] ss:$2 sm:$0xff] %v11063_v32 }
 0xcfd   : > { %8791 = vmatmul.msk.f32.vlgmr.msra.gmra.mxu1 %vm669_vm8, %v8789_v57  ;;  %8792 = vmatpush.msk.msra.mxu2 %vm673_vm7, %v6633_v35  ;;  %6783 = vst [vmem:[#allocation1 + $0x10] ss:$2 sm:$0xff] %v11065_v5 }
 0xcfe   : > { %8793 = vmatmul.msk.f32.vlgmr.msra.gmra.mxu2 %vm669_vm8, %v8789_v57  ;;  %8788 = vmatmul.msk.f32.vlgmr.msra.gmra.mxu0 %vm669_vm8, %v6493_v45 }
 0xcff   : > { %v6636_v48 = vld.sshfl [vmem:[#allocation1 + $0x20] sm:$0xff pattern:$0x75316420] }
 0xd00   : > { %6785 = vst [vmem:[#allocation1 + $0x20] ss:$2 sm:$0xff] %v11070_v8  ;;  %8798 = vmatpush.msk.msrb.mxu1 %vm673_vm7, %v6636_v48 }
 0xd03   : > { %v6786_v58 = vld.sshfl [vmem:[#allocation1] sm:$0xff pattern:$0x75316420]  ;;  %v6787_v7 = vld.sshfl [vmem:[#allocation1 + $0x8] sm:$0xff pattern:$0x75316420] }
 0xd04   : > { %8801 = vmatpush.msk.msrb.mxu2 %vm673_vm7, %v6786_v58  ;;  %8803 = vmatpush.msk.msrb.mxu3 %vm673_vm7, %v6787_v7  ;;  %6936 = vst [vmem:[#allocation1] ss:$2 sm:$0xff] %v11063_v32  ;;  %v6788_v31 = vld.sshfl [vmem:[#allocation1 + $0x10] sm:$0xff pattern:$0x75316420] }
 0xd05   : > { %8799 = vmatmul.msk.f32.vlgmr.msrb.gmra.mxu1 %vm669_vm8, %v8789_v57  ;;  %8804 = vmatmul.msk.f32.vlgmr.msrb.gmra.mxu3 %vm669_vm8, %v8800_v52  ;;  %v6789_v25 = vld.sshfl [vmem:[#allocation1 + $0x18] sm:$0xff pattern:$0x75316420] }
 0xd06   : > { %8802 = vmatmul.msk.f32.vlgmr.msrb.gmra.mxu2 %vm669_vm8, %v8800_v52  ;;  %8797 = vmatmul.msk.f32.vlgmr.msrb.gmra.mxu0 %vm669_vm8, %v8789_v57  ;;  %6938 = vst [vmem:[#allocation1 + $0x10] ss:$2 sm:$0xff] %v11065_v5 }
 0xd07   : > { %v6790_v22 = vld.sshfl [vmem:[#allocation1 + $0x20] sm:$0xff pattern:$0x75316420]  ;;  %8805 = vmatpush.msk.msra.mxu0 %vm673_vm7, %v6788_v31  ;;  %8807 = vmatpush.msk.msra.mxu1 %vm673_vm7, %v6789_v25 }
 0xd08   : > { %6940 = vst [vmem:[#allocation1 + $0x20] ss:$2 sm:$0xff] %v11070_v8  ;;  %8809 = vmatpush.msk.msra.mxu2 %vm673_vm7, %v6790_v22 }
 0xd0b   : > { %v6941_v10 = vld.sshfl [vmem:[#allocation1] sm:$0xff pattern:$0x75316420]  ;;  %v6942_v9 = vld.sshfl [vmem:[#allocation1 + $0x8] sm:$0xff pattern:$0x75316420] }
 0xd0c   : > { %8812 = vmatpush.msk.msra.mxu3 %vm673_vm7, %v6941_v10  ;;  %8814 = vmatpush.msk.msrb.mxu0 %vm673_vm7, %v6942_v9  ;;  %7091 = vst [vmem:[#allocation1] ss:$2 sm:$0xff] %v11063_v32 }
 0xd0d   : > { %8808 = vmatmul.msk.f32.vlgmr.msra.gmra.mxu1 %vm669_vm8, %v8800_v52  ;;  %8813 = vmatmul.msk.f32.vlgmr.msra.gmra.mxu3 %vm669_vm8, %v8811_v50  ;;  %v6943_v62 = vld.sshfl [vmem:[#allocation1 + $0x10] sm:$0xff pattern:$0x75316420]  ;;  %v6944_v27 = vld.sshfl [vmem:[#allocation1 + $0x18] sm:$0xff pattern:$0x75316420] }
 0xd0e   : > { %8810 = vmatmul.msk.f32.vlgmr.msra.gmra.mxu2 %vm669_vm8, %v8800_v52  ;;  %8806 = vmatmul.msk.f32.vlgmr.msra.gmra.mxu0 %vm669_vm8, %v8800_v52  ;;  %7093 = vst [vmem:[#allocation1 + $0x10] ss:$2 sm:$0xff] %v11065_v5 }
 0xd0f   : > { %v6945_v1 = vld.sshfl [vmem:[#allocation1 + $0x20] sm:$0xff pattern:$0x75316420]  ;;  %8816 = vmatpush.msk.msrb.mxu1 %vm673_vm7, %v6943_v62  ;;  %8818 = vmatpush.msk.msrb.mxu2 %vm673_vm7, %v6944_v27 }
 0xd10   : > { %7095 = vst [vmem:[#allocation1 + $0x20] ss:$2 sm:$0xff] %v11070_v8  ;;  %8820 = vmatpush.msk.msrb.mxu3 %vm673_vm7, %v6945_v1 }
 0xd13   : > { %v7096_v19 = vld.sshfl [vmem:[#allocation1] sm:$0xff pattern:$0x75316420]  ;;  %v7097_v44 = vld.sshfl [vmem:[#allocation1 + $0x8] sm:$0xff pattern:$0x75316420] }
 0xd14   : > { %8823 = vmatpush.msk.msra.mxu0 %vm673_vm7, %v7096_v19  ;;  %8825 = vmatpush.msk.msra.mxu1 %vm673_vm7, %v7097_v44  ;;  %7246 = vst [vmem:[#allocation1] ss:$2 sm:$0xff] %v11063_v32 }
 0xd15   : > { %8817 = vmatmul.msk.f32.vlgmr.msrb.gmra.mxu1 %vm669_vm8, %v8811_v50  ;;  %8821 = vmatmul.msk.f32.vlgmr.msrb.gmra.mxu3 %vm669_vm8, %v8811_v50  ;;  %v7098_v24 = vld.sshfl [vmem:[#allocation1 + $0x10] sm:$0xff pattern:$0x75316420]  ;;  %v7099_v16 = vld.sshfl [vmem:[#allocation1 + $0x18] sm:$0xff pattern:$0x75316420] }
 0xd16   : > { %8815 = vmatmul.msk.f32.vlgmr.msrb.gmra.mxu0 %vm669_vm8, %v8811_v50  ;;  %8819 = vmatmul.msk.f32.vlgmr.msrb.gmra.mxu2 %vm669_vm8, %v8811_v50  ;;  %7248 = vst [vmem:[#allocation1 + $0x10] ss:$2 sm:$0xff] %v11065_v5 }
 0xd17   : > { %v7100_v21 = vld.sshfl [vmem:[#allocation1 + $0x20] sm:$0xff pattern:$0x75316420]  ;;  %8827 = vmatpush.msk.msra.mxu2 %vm673_vm7, %v7098_v24  ;;  %8829 = vmatpush.msk.msra.mxu3 %vm673_vm7, %v7099_v16 }
 0xd18   : > { %7250 = vst [vmem:[#allocation1 + $0x20] ss:$2 sm:$0xff] %v11070_v8  ;;  %8831 = vmatpush.msk.msrb.mxu0 %vm673_vm7, %v7100_v21 }
 0xd1b   : > { %v7252_v28 = vld.sshfl [vmem:[#allocation1 + $0x8] sm:$0xff pattern:$0x75316420]  ;;  %v7251_v30 = vld.sshfl [vmem:[#allocation1] sm:$0xff pattern:$0x75316420] }
 0xd1c   : > { %8836 = vmatpush.msk.msrb.mxu2 %vm673_vm7, %v7252_v28  ;;  %8834 = vmatpush.msk.msrb.mxu1 %vm673_vm7, %v7251_v30  ;;  %7401 = vst [vmem:[#allocation1] ss:$2 sm:$0xff] %v11063_v32 }
 0xd1d   : > { %8826 = vmatmul.msk.f32.vlgmr.msra.gmra.mxu1 %vm669_vm8, %v8822_v37  ;;  %8830 = vmatmul.msk.f32.vlgmr.msra.gmra.mxu3 %vm669_vm8, %v8822_v37  ;;  %v7253_v43 = vld.sshfl [vmem:[#allocation1 + $0x10] sm:$0xff pattern:$0x75316420]  ;;  %v7254_v17 = vld.sshfl [vmem:[#allocation1 + $0x18] sm:$0xff pattern:$0x75316420] }
 0xd1e   : > { %8824 = vmatmul.msk.f32.vlgmr.msra.gmra.mxu0 %vm669_vm8, %v8822_v37  ;;  %8828 = vmatmul.msk.f32.vlgmr.msra.gmra.mxu2 %vm669_vm8, %v8822_v37  ;;  %7403 = vst [vmem:[#allocation1 + $0x10] ss:$2 sm:$0xff] %v11065_v5 }
 0xd1f   : > { %v7255_v4 = vld.sshfl [vmem:[#allocation1 + $0x20] sm:$0xff pattern:$0x75316420]  ;;  %8838 = vmatpush.msk.msrb.mxu3 %vm673_vm7, %v7253_v43  ;;  %8840 = vmatpush.msk.msra.mxu0 %vm673_vm7, %v7254_v17 }
 0xd20   : > { %7405 = vst [vmem:[#allocation1 + $0x20] ss:$2 sm:$0xff] %v11070_v8  ;;  %8842 = vmatpush.msk.msra.mxu1 %vm673_vm7, %v7255_v4 }
 0xd23   : > { %v7406_v55 = vld.sshfl [vmem:[#allocation1] sm:$0xff pattern:$0x75316420]  ;;  %v7407_v13 = vld.sshfl [vmem:[#allocation1 + $0x8] sm:$0xff pattern:$0x75316420] }
 0xd24   : > { %8845 = vmatpush.msk.msra.mxu2 %vm673_vm7, %v7406_v55  ;;  %8847 = vmatpush.msk.msra.mxu3 %vm673_vm7, %v7407_v13  ;;  %7556 = vst [vmem:[#allocation1] ss:$2 sm:$0xff] %v11063_v32  ;;  %v11512_v13 = vld [vmem:[#allocation11_spill] sm:$0xff] }
 0xd25   : > { %8835 = vmatmul.msk.f32.vlgmr.msrb.gmra.mxu1 %vm669_vm8, %v8833_v60  ;;  %8839 = vmatmul.msk.f32.vlgmr.msrb.gmra.mxu3 %vm669_vm8, %v8833_v60  ;;  %v7408_v59 = vld.sshfl [vmem:[#allocation1 + $0x10] sm:$0xff pattern:$0x75316420]  ;;  %v7409_v41 = vld.sshfl [vmem:[#allocation1 + $0x18] sm:$0xff pattern:$0x75316420] }
 0xd26   : > { %8832 = vmatmul.msk.f32.vlgmr.msrb.gmra.mxu0 %vm669_vm8, %v8822_v37  ;;  %8837 = vmatmul.msk.f32.vlgmr.msrb.gmra.mxu2 %vm669_vm8, %v8833_v60  ;;  %7558 = vst [vmem:[#allocation1 + $0x10] ss:$2 sm:$0xff] %v11065_v5 }
 0xd27   : > { %v7410_v51 = vld.sshfl [vmem:[#allocation1 + $0x20] sm:$0xff pattern:$0x75316420]  ;;  %8849 = vmatpush.msk.msrb.mxu0 %vm673_vm7, %v7408_v59  ;;  %8851 = vmatpush.msk.msrb.mxu1 %vm673_vm7, %v7409_v41 }
 0xd28   : > { %7560 = vst [vmem:[#allocation1 + $0x20] ss:$2 sm:$0xff] %v11070_v8  ;;  %8853 = vmatpush.msk.msrb.mxu2 %vm673_vm7, %v7410_v51 }
 0xd2b   : > { %v7561_v12 = vld.sshfl [vmem:[#allocation1] sm:$0xff pattern:$0x75316420]  ;;  %v7562_v11 = vld.sshfl [vmem:[#allocation1 + $0x8] sm:$0xff pattern:$0x75316420] }
 0xd2c   : > { %8856 = vmatpush.msk.msrb.mxu3 %vm673_vm7, %v7561_v12  ;;  %7711 = vst [vmem:[#allocation1] ss:$2 sm:$0xff] %v11063_v32 }
 0xd2d   : > { %8843 = vmatmul.msk.f32.vlgmr.msra.gmra.mxu1 %vm669_vm8, %v8833_v60  ;;  %8848 = vmatmul.msk.f32.vlgmr.msra.gmra.mxu3 %vm669_vm8, %v8844_v53  ;;  %v7563_v38 = vld.sshfl [vmem:[#allocation1 + $0x10] sm:$0xff pattern:$0x75316420]  ;;  %v7564_v61 = vld.sshfl [vmem:[#allocation1 + $0x18] sm:$0xff pattern:$0x75316420] }
 0xd2e   : > { %8841 = vmatmul.msk.f32.vlgmr.msra.gmra.mxu0 %vm669_vm8, %v8833_v60  ;;  %8846 = vmatmul.msk.f32.vlgmr.msra.gmra.mxu2 %vm669_vm8, %v8844_v53  ;;  %7713 = vst [vmem:[#allocation1 + $0x10] ss:$2 sm:$0xff] %v11065_v5 }
 0xd2f   : > { %v7565_v20 = vld.sshfl [vmem:[#allocation1 + $0x20] sm:$0xff pattern:$0x75316420]  ;;  %8858 = vmatpush.msk.msra.mxu0 %vm673_vm7, %v7562_v11  ;;  %8862 = vmatpush.msk.msra.mxu2 %vm673_vm7, %v7564_v61 }
 0xd30   : > { %7715 = vst [vmem:[#allocation1 + $0x20] ss:$2 sm:$0xff] %v11070_v8  ;;  %8864 = vmatpush.msk.msra.mxu3 %vm673_vm7, %v7565_v20  ;;  %8860 = vmatpush.msk.msra.mxu1 %vm673_vm7, %v7563_v38 }
 0xd33   : > { %v7716_v49 = vld.sshfl [vmem:[#allocation1] sm:$0xff pattern:$0x75316420]  ;;  %v7717_v14 = vld.sshfl [vmem:[#allocation1 + $0x8] sm:$0xff pattern:$0x75316420] }
 0xd35   : > { %8852 = vmatmul.msk.f32.vlgmr.msrb.gmra.mxu1 %vm669_vm8, %v8844_v53  ;;  %8857 = vmatmul.msk.f32.vlgmr.msrb.gmra.mxu3 %vm669_vm8, %v8855_v0  ;;  %v7718_v63 = vld.sshfl [vmem:[#allocation1 + $0x10] sm:$0xff pattern:$0x75316420]  ;;  %v7719_v15 = vld.sshfl [vmem:[#allocation1 + $0x18] sm:$0xff pattern:$0x75316420] }
 0xd36   : > { %8850 = vmatmul.msk.f32.vlgmr.msrb.gmra.mxu0 %vm669_vm8, %v8844_v53  ;;  %8854 = vmatmul.msk.f32.vlgmr.msrb.gmra.mxu2 %vm669_vm8, %v8844_v53 }
 0xd37   : > { %8871 = vmatpush.msk.msrb.mxu2 %vm673_vm7, %v7718_v63  ;;  %8873 = vmatpush.msk.msrb.mxu3 %vm673_vm7, %v7719_v15  ;;  %v7720_v29 = vld.sshfl [vmem:[#allocation1 + $0x20] sm:$0xff pattern:$0x75316420] }
 0xd38   : > { %8867 = vmatpush.msk.msrb.mxu0 %vm673_vm7, %v7716_v49  ;;  %8869 = vmatpush.msk.msrb.mxu1 %vm673_vm7, %v7717_v14 }
 0xd3d   : > { %8865 = vmatmul.msk.f32.vlgmr.msra.gmra.mxu3 %vm669_vm8, %v8855_v0  ;;  %8861 = vmatmul.msk.f32.vlgmr.msra.gmra.mxu1 %vm669_vm8, %v8855_v0 }
 0xd3e   : > { %8859 = vmatmul.msk.f32.vlgmr.msra.gmra.mxu0 %vm669_vm8, %v8855_v0  ;;  %8863 = vmatmul.msk.f32.vlgmr.msra.gmra.mxu2 %vm669_vm8, %v8855_v0 }
 0xd3f   : > { %8875 = vmatpush.msk.msra.mxu0 %vm673_vm7, %v7720_v29 }
 0xd45   : > { %8874 = vmatmul.msk.f32.vlgmr.msrb.gmra.mxu3 %vm669_vm8, %v8866_v47  ;;  %8870 = vmatmul.msk.f32.vlgmr.msrb.gmra.mxu1 %vm669_vm8, %v8866_v47 }
 0xd46   : > { %8872 = vmatmul.msk.f32.vlgmr.msrb.gmra.mxu2 %vm669_vm8, %v8866_v47  ;;  %8868 = vmatmul.msk.f32.vlgmr.msrb.gmra.mxu0 %vm669_vm8, %v8866_v47 }
 0xd4e   : > { %8876 = vmatmul.msk.f32.vlgmr.msra.gmra.mxu0 %vm669_vm8, %v8866_v47  ;;  %vm6919_vm8 = vcmask 1031168  }
 0xd70   : > { %v11215_v33 = vpop.f32.mrf.mxu1 }
 0xd72   : > { %v11217_v54 = vpop.f32.mrf.mxu0 }
 0xd77   : > { %v11219_v2 = vpop.f32.mrf.mxu3 }
 0xd78   : > { %v11221_v36 = vpop.f32.mrf.mxu2 }
 0xd7a   : > { %v6667_v39 = vpop.f32.mrf.mxu1 }
 0xd7b   : > { %6755 = vrot.lane.b32.xlu0 %v6667_v39, %s9156_s22  ;;  %v11224_v32 = vpop.f32.mrf.mxu0 }
 0xd7f   : > { %v6707_v5 = vpop.f32.mrf.mxu3 }
 0xd80   : > { %6759 = vrot.lane.b32.xlu1 %v6707_v5, %s9156_s22 }
 0xd81   : > { %v6687_v34 = vpop.f32.mrf.mxu2 }
 0xd82   : > { %v6747_v8 = vpop.f32.mrf.mxu1 }
 0xd83   : > { %6757 = vrot.lane.b32.xlu0 %v6687_v34, %s9156_s22  ;;  %6763 = vrot.lane.b32.xlu2 %v6747_v8, %s9156_s22  ;;  %v6727_v45 = vpop.f32.mrf.mxu0 }
 0xd88   : > { %6761 = vrot.lane.b32.xlu1 %v6727_v45, %s9156_s22  ;;  %v6841_v46 = vpop.f32.mrf.mxu3  ;;  %s9179_s22 = smov 92  }
 0xd89   : > { %v6821_v26 = vpop.f32.mrf.mxu2 }
 0xd8a   : > { %v6881_v6 = vpop.f32.mrf.mxu1 }
 0xd8b   : > { %6911 = vrot.lane.b32.xlu0 %v6841_v46, %s9155_s12  ;;  %6909 = vrot.lane.b32.xlu2 %v6821_v26, %s9155_s12  ;;  %v6861_v3 = vpop.f32.mrf.mxu0 }
 0xd90   : > { %6913 = vrot.lane.b32.xlu1 %v6861_v3, %s9155_s12  ;;  %v6976_v23 = vpop.f32.mrf.mxu3 }
 0xd91   : > { %v6901_v56 = vpop.f32.mrf.mxu2 }
 0xd92   : > { %v7016_v40 = vpop.f32.mrf.mxu1 }
 0xd93   : > { %6917 = vrot.lane.b32.xlu0 %v6901_v56, %s9155_s12  ;;  %6915 = vrot.lane.b32.xlu2 %v6881_v6, %s9155_s12  ;;  %v6996_v57 = vpop.f32.mrf.mxu0 }
 0xd98   : > { %7064 = vrot.lane.b32.xlu1 %v6976_v23, %s9178_s16  ;;  %v7056_v48 = vpop.f32.mrf.mxu3 }
 0xd99   : > { %v7036_v42 = vpop.f32.mrf.mxu2 }
 0xd9a   : > { %v7151_v52 = vpop.f32.mrf.mxu1 }
 0xd9b   : > { %7068 = vrot.lane.b32.xlu0 %v7016_v40, %s9178_s16  ;;  %7066 = vrot.lane.b32.xlu2 %v6996_v57, %s9178_s16  ;;  %v7131_v35 = vpop.f32.mrf.mxu0 }
 0xda0   : > { %7070 = vrot.lane.b32.xlu1 %v7036_v42, %s9178_s16  ;;  %v7191_v22 = vpop.f32.mrf.mxu3 }
 0xda1   : > { %v7171_v58 = vpop.f32.mrf.mxu2 }
 0xda2   : > { %v7286_v31 = vpop.f32.mrf.mxu1 }
 0xda3   : > { %7221 = vrot.lane.b32.xlu0 %v7151_v52, %s9173_s15  ;;  %7072 = vrot.lane.b32.xlu2 %v7056_v48, %s9178_s16  ;;  %v7211_v7 = vpop.f32.mrf.mxu0  ;;  %s9193_s16 = smov 104  }
 0xda8   : > { %7219 = vrot.lane.b32.xlu1 %v7131_v35, %s9173_s15  ;;  %v7326_v50 = vpop.f32.mrf.mxu3 }
 0xda9   : > { %v7306_v25 = vpop.f32.mrf.mxu2 }
 0xdaa   : > { %v7366_v9 = vpop.f32.mrf.mxu1 }
 0xdab   : > { %7227 = vrot.lane.b32.xlu0 %v7211_v7, %s9173_s15  ;;  %7225 = vrot.lane.b32.xlu2 %v7191_v22, %s9173_s15  ;;  %v7346_v10 = vpop.f32.mrf.mxu0 }
 0xdb0   : > { %7223 = vrot.lane.b32.xlu1 %v7171_v58, %s9173_s15  ;;  %v7461_v62 = vpop.f32.mrf.mxu3  ;;  %s9181_s15 = smov 58  }
 0xdb1   : > { %v7441_v1 = vpop.f32.mrf.mxu2 }
 0xdb2   : > { %v7501_v19 = vpop.f32.mrf.mxu1 }
 0xdb3   : > { %7374 = vrot.lane.b32.xlu0 %v7286_v31, %s9179_s22  ;;  %7376 = vrot.lane.b32.xlu2 %v7306_v25, %s9179_s22  ;;  %v7481_v27 = vpop.f32.mrf.mxu0 }
 0xdb8   : > { %7380 = vrot.lane.b32.xlu1 %v7346_v10, %s9179_s22  ;;  %v7596_v21 = vpop.f32.mrf.mxu3 }
 0xdb9   : > { %v7521_v44 = vpop.f32.mrf.mxu2 }
 0xdba   : > { %v7636_v28 = vpop.f32.mrf.mxu1 }
 0xdbb   : > { %7378 = vrot.lane.b32.xlu0 %v7326_v50, %s9179_s22  ;;  %7382 = vrot.lane.b32.xlu2 %v7366_v9, %s9179_s22  ;;  %v7616_v24 = vpop.f32.mrf.mxu0  ;;  %s9194_s22 = smov 106  }
 0xdc0   : > { %7531 = vrot.lane.b32.xlu1 %v7461_v62, %s9180_s24  ;;  %v7676_v37 = vpop.f32.mrf.mxu3 }
 0xdc1   : > { %v7656_v16 = vpop.f32.mrf.mxu2 }
 0xdc2   : > { %v7771_v43 = vpop.f32.mrf.mxu1 }
 0xdc3   : > { %7535 = vrot.lane.b32.xlu0 %v7501_v19, %s9180_s24  ;;  %7529 = vrot.lane.b32.xlu2 %v7441_v1, %s9180_s24  ;;  %v7751_v30 = vpop.f32.mrf.mxu0 }
 0xdc8   : > { %7537 = vrot.lane.b32.xlu1 %v7521_v44, %s9180_s24  ;;  %v7811_v17 = vpop.f32.mrf.mxu3 }
 0xdc9   : > { %v7791_v4 = vpop.f32.mrf.mxu2 }
 0xdcb   : > { %7686 = vrot.lane.b32.xlu0 %v7616_v24, %s9172_s17  ;;  %7533 = vrot.lane.b32.xlu2 %v7481_v27, %s9180_s24  ;;  %v7831_v55 = vpop.f32.mrf.mxu0  ;;  %s9195_s24 = smov 108  }
 0xdd0   : > { %7684 = vrot.lane.b32.xlu1 %v7596_v21, %s9172_s17 }
 0xdd3   : > { %7692 = vrot.lane.b32.xlu0 %v7676_v37, %s9172_s17  ;;  %7690 = vrot.lane.b32.xlu2 %v7656_v16, %s9172_s17 }
 0xdd8   : > { %7688 = vrot.lane.b32.xlu1 %v7636_v28, %s9172_s17  ;;  %s9182_s17 = smov 122  }
 0xddb   : > { %7843 = vrot.lane.b32.xlu0 %v7791_v4, %s9181_s15  ;;  %7841 = vrot.lane.b32.xlu2 %v7771_v43, %s9181_s15 }
 0xddd   : > { %v6764_v60 = vpop.permute.xlu2 %6763 }
 0xdde   : > { %v6778_v45 = vadd.f32 %v6764_v60, %v11224_v32 }
 0xde0   : > { %7845 = vrot.lane.b32.xlu1 %v7811_v17, %s9181_s15 }
 0xde3   : > { %7839 = vrot.lane.b32.xlu0 %v7751_v30, %s9181_s15  ;;  %7847 = vrot.lane.b32.xlu2 %v7831_v55, %s9181_s15 }
 0xde5   : > { %v6910_v51 = vpop.permute.xlu2 %6909 }
 0xde8   : > { %7866 = vperm.xlu1 %9049, %v11512_v13  }
 0xded   : > { %v6756_v59 = vpop.permute.xlu0 %6755  ;;  %v6916_v53 = vpop.permute.xlu2 %6915 }
 0xdf2   : > { %v6760_v41 = vpop.permute.xlu1 %6759 }
 0xdf5   : > { %v6758_v12 = vpop.permute.xlu0 %6757  ;;  %v7067_v14 = vpop.permute.xlu2 %7066 }
 0xdf6   : > { %v6765_v11 = vsel %vm5829_vm5, %v6756_v59, %v6758_v12  ;;  %v6766_v20 = vsel %vm5829_vm5, %v6758_v12, %v6760_v41 }
 0xdf7   : > { %v6774_v49 = vadd.f32 %v6765_v11, %v11217_v54  ;;  %v6775_v47 = vadd.f32 %v6766_v20, %v11215_v33 }
 0xdfa   : > { %v6762_v38 = vpop.permute.xlu1 %6761 }
 0xdfb   : > { %v6767_v61 = vsel %vm5829_vm5, %v6760_v41, %v6762_v38  ;;  %v6768_v0 = vsel %vm5829_vm5, %v6762_v38, %v6764_v60  ;;  %vm7074_vm5 = vcmask 769024  }
 0xdfc   : > { %v6776_v39 = vadd.f32 %v6767_v61, %v11221_v36  ;;  %v6777_v54 = vadd.f32 %v6768_v0, %v11219_v2 }
 0xdfd   : > { %v6912_v63 = vpop.permute.xlu0 %6911  ;;  %v7073_v57 = vpop.permute.xlu2 %7072 }
 0xdfe   : > { %v6920_v15 = vsel %vm6919_vm8, %v6910_v51, %v6912_v63 }
 0xdff   : > { %v6929_v29 = vadd.f32 %v6920_v15, %v6774_v49 }
 0xe02   : > { %v6914_v5 = vpop.permute.xlu1 %6913 }
 0xe03   : > { %v6921_v34 = vsel %vm6919_vm8, %v6912_v63, %v6914_v5  ;;  %v6922_v8 = vsel %vm6919_vm8, %v6914_v5, %v6916_v53 }
 0xe04   : > { %v6930_v46 = vadd.f32 %v6921_v34, %v6775_v47  ;;  %v6931_v26 = vadd.f32 %v6922_v8, %v6776_v39 }
 0xe05   : > { %v6918_v3 = vpop.permute.xlu0 %6917  ;;  %v7226_v32 = vpop.permute.xlu2 %7225 }
 0xe06   : > { %v6923_v6 = vsel %vm6919_vm8, %v6916_v53, %v6918_v3  ;;  %v6933_v56 = vadd.f32 %v6918_v3, %v6778_v45 }
 0xe07   : > { %v6932_v23 = vadd.f32 %v6923_v6, %v6777_v54 }
 0xe08   : > { %v7088_v33 = vadd.f32 %v7073_v57, %v6933_v56 }
 0xe0a   : > { %v7065_v36 = vpop.permute.xlu1 %7064 }
 0xe0b   : > { %v7075_v40 = vsel %vm7074_vm5, %v7065_v36, %v7067_v14 }
 0xe0c   : > { %v7084_v42 = vadd.f32 %v7075_v40, %v6929_v29 }
 0xe0d   : > { %v7069_v35 = vpop.permute.xlu0 %7068  ;;  %v7377_v10 = vpop.permute.xlu2 %7376 }
 0xe0e   : > { %v7076_v48 = vsel %vm7074_vm5, %v7067_v14, %v7069_v35 }
 0xe0f   : > { %v7085_v52 = vadd.f32 %v7076_v48, %v6930_v46 }
 0xe12   : > { %v7071_v58 = vpop.permute.xlu1 %7070 }
 0xe13   : > { %v7077_v7 = vsel %vm7074_vm5, %v7069_v35, %v7071_v58  ;;  %v7078_v22 = vsel %vm7074_vm5, %v7071_v58, %v7073_v57 }
 0xe14   : > { %v7086_v31 = vadd.f32 %v7077_v7, %v6931_v26  ;;  %v7087_v2 = vadd.f32 %v7078_v22, %v6932_v23 }
 0xe15   : > { %v7222_v25 = vpop.permute.xlu0 %7221  ;;  %v7383_v16 = vpop.permute.xlu2 %7382 }
 0xe1a   : > { %v7220_v50 = vpop.permute.xlu1 %7219 }
 0xe1b   : > { %v7230_v20 = vsel %vm7229_vm1, %v7220_v50, %v7222_v25 }
 0xe1c   : > { %v7239_v14 = vadd.f32 %v7230_v20, %v7084_v42 }
 0xe1d   : > { %v7228_v9 = vpop.permute.xlu0 %7227  ;;  %v7530_v43 = vpop.permute.xlu2 %7529 }
 0xe1e   : > { %v7233_v1 = vsel %vm7229_vm1, %v7226_v32, %v7228_v9  ;;  %v7243_v62 = vadd.f32 %v7228_v9, %v7088_v33 }
 0xe1f   : > { %v7242_v27 = vadd.f32 %v7233_v1, %v7087_v2 }
 0xe20   : > { %v7398_v5 = vadd.f32 %v7383_v16, %v7243_v62 }
 0xe22   : > { %v7224_v19 = vpop.permute.xlu1 %7223 }
 0xe23   : > { %v7231_v44 = vsel %vm7229_vm1, %v7222_v25, %v7224_v19  ;;  %v7232_v61 = vsel %vm7229_vm1, %v7224_v19, %v7226_v32 }
 0xe24   : > { %v7240_v21 = vadd.f32 %v7231_v44, %v7085_v52  ;;  %v7241_v29 = vadd.f32 %v7232_v61, %v7086_v31 }
 0xe25   : > { %v7375_v24 = vpop.permute.xlu0 %7374  ;;  %v7534_v13 = vpop.permute.xlu2 %7533 }
 0xe26   : > { %v7385_v49 = vsel %vm7384_vm13, %v7375_v24, %v7377_v10 }
 0xe27   : > { %v7394_v34 = vadd.f32 %v7385_v49, %v7239_v14 }
 0xe2a   : > { %v7381_v37 = vpop.permute.xlu1 %7380 }
 0xe2b   : > { %v7388_v28 = vsel %vm7384_vm13, %v7381_v37, %v7383_v16 }
 0xe2c   : > { %v7397_v30 = vadd.f32 %v7388_v28, %v7242_v27 }
 0xe2d   : > { %v7379_v4 = vpop.permute.xlu0 %7378  ;;  %v7691_v41 = vpop.permute.xlu2 %7690 }
 0xe2e   : > { %v7386_v0 = vsel %vm7384_vm13, %v7377_v10, %v7379_v4  ;;  %v7387_v63 = vsel %vm7384_vm13, %v7379_v4, %v7381_v37 }
 0xe2f   : > { %v7395_v47 = vadd.f32 %v7386_v0, %v7240_v21  ;;  %v7396_v54 = vadd.f32 %v7387_v63, %v7241_v29 }
 0xe32   : > { %v7532_v17 = vpop.permute.xlu1 %7531 }
 0xe33   : > { %v7541_v15 = vsel %vm7539_vm2, %v7532_v17, %v7534_v13  ;;  %v7540_v39 = vsel %vm7539_vm2, %v7530_v43, %v7532_v17 }
 0xe34   : > { %v7550_v3 = vadd.f32 %v7541_v15, %v7395_v47  ;;  %v7549_v56 = vadd.f32 %v7540_v39, %v7394_v34 }
 0xe35   : > { %v7536_v60 = vpop.permute.xlu0 %7535  ;;  %v7842_v11 = vpop.permute.xlu2 %7841 }
 0xe36   : > { %v7542_v8 = vsel %vm7539_vm2, %v7534_v13, %v7536_v60 }
 0xe37   : > { %v7551_v36 = vadd.f32 %v7542_v8, %v7396_v54 }
 0xe3a   : > { %v7538_v55 = vpop.permute.xlu1 %7537 }
 0xe3b   : > { %v7543_v45 = vsel %vm7539_vm2, %v7536_v60, %v7538_v55  ;;  %v7553_v6 = vadd.f32 %v7538_v55, %v7398_v5 }
 0xe3c   : > { %v7552_v40 = vadd.f32 %v7543_v45, %v7397_v30 }
 0xe3d   : > { %v7687_v51 = vpop.permute.xlu0 %7686  ;;  %v7848_v35 = vpop.permute.xlu2 %7847 }
 0xe42   : > { %v7685_v59 = vpop.permute.xlu1 %7684 }
 0xe43   : > { %v7695_v57 = vsel %vm7694_vm3, %v7685_v59, %v7687_v51 }
 0xe44   : > { %v7704_v31 = vadd.f32 %v7695_v57, %v7549_v56 }
 0xe45   : > { %v7693_v53 = vpop.permute.xlu0 %7692 }
 0xe46   : > { %v7698_v23 = vsel %vm7694_vm3, %v7691_v41, %v7693_v53  ;;  %v7708_v42 = vadd.f32 %v7693_v53, %v7553_v6 }
 0xe47   : > { %v7707_v2 = vadd.f32 %v7698_v23, %v7552_v40 }
 0xe48   : > { %v7863_v62 = vadd.f32 %v7848_v35, %v7708_v42 }
 0xe4a   : > { %v7689_v12 = vpop.permute.xlu1 %7688 }
 0xe4b   : > { %v7696_v46 = vsel %vm7694_vm3, %v7687_v51, %v7689_v12  ;;  %v7697_v33 = vsel %vm7694_vm3, %v7689_v12, %v7691_v41 }
 0xe4c   : > { %v7705_v48 = vadd.f32 %v7696_v46, %v7550_v3  ;;  %v7706_v25 = vadd.f32 %v7697_v33, %v7551_v36 }
 0xe4d   : > { %v7844_v38 = vpop.permute.xlu0 %7843 }
 0xe4e   : > { %v7851_v58 = vsel %vm7849_vm9, %v7842_v11, %v7844_v38 }
 0xe4f   : > { %v7860_v50 = vadd.f32 %v7851_v58, %v7705_v48 }
 0xe52   : > { %v7846_v26 = vpop.permute.xlu1 %7845 }
 0xe53   : > { %v7852_v32 = vsel %vm7849_vm9, %v7844_v38, %v7846_v26  ;;  %v7853_v7 = vsel %vm7849_vm9, %v7846_v26, %v7848_v35 }
 0xe54   : > { %v7861_v10 = vadd.f32 %v7852_v32, %v7706_v25  ;;  %v7862_v9 = vadd.f32 %v7853_v7, %v7707_v2 }
 0xe55   : > { %v7840_v52 = vpop.permute.xlu0 %7839 }
 0xe56   : > { %v7850_v22 = vsel %vm7849_vm9, %v7840_v52, %v7842_v11 }
 0xe57   : > { %v7859_v1 = vadd.f32 %v7850_v22, %v7704_v31 }
 0xe5a   : > { %v7867_v27 = vpop.permute.xlu1 %7866 }
 0xe5b   : > { %v7869_v19 = vadd.f32 %v7867_v27, %v7859_v1  ;;  %v7870_v44 = vadd.f32 %v7867_v27, %v7860_v50  ;;  %v7871_v21 = vadd.f32 %v7867_v27, %v7861_v10  ;;  %v7872_v24 = vadd.f32 %v7867_v27, %v7862_v9 }
 0xe5c   : > { %v7873_v16 = vadd.f32 %v7867_v27, %v7863_v62 }
 0xe5d   : > { %vm7875_vm10 = vcmp.ge.f32.partialorder %v7870_v44, 0.0  ;;  %vm7876_vm11 = vcmp.ge.f32.partialorder %v7871_v21, 0.0  ;;  %vm7877_vm12 = vcmp.ge.f32.partialorder %v7872_v24, 0.0  ;;  %v7880_v37 = vmul.f32 0.2, %v7870_v44 }
 0xe5e   : > { %v7881_v28 = vmul.f32 0.2, %v7871_v21  ;;  %v7882_v30 = vmul.f32 0.2, %v7872_v24  ;;  %vm7874_vm4 = vcmp.ge.f32.partialorder %v7869_v19, 0.0  ;;  %vm7878_vm6 = vcmp.ge.f32.partialorder %v7873_v16, 0.0 }
 0xe5f   : > { %v7879_v4 = vmul.f32 0.2, %v7869_v19  ;;  %v11271_v43 = vsel %vm7875_vm10, %v7870_v44, %v7880_v37  ;;  %v7883_v17 = vmul.f32 0.2, %v7873_v16 }
 0xe60   : > { %v7890_v60 = vmul.f32 %v11271_v43, %v11271_v43  ;;  %v11275_v55 = vsel %vm7876_vm11, %v7871_v21, %v7881_v28  ;;  %v11277_v13 = vsel %vm7877_vm12, %v7872_v24, %v7882_v30 }
 0xe61   : > { %v11279_v51 = vsel %vm7874_vm4, %v7869_v19, %v7879_v4  ;;  %v7891_v59 = vmul.f32 %v11275_v55, %v11275_v55  ;;  %v11283_v41 = vsel %vm7878_vm6, %v7873_v16, %v7883_v17  ;;  %v7892_v53 = vmul.f32 %v11277_v13, %v11277_v13 }
 0xe62   : > { %v7889_v12 = vmul.f32 %v11279_v51, %v11279_v51  ;;  %v7901_v11 = vsel %vm673_vm7, %v7890_v60, 0.0  ;;  %v7893_v20 = vmul.f32 %v11283_v41, %v11283_v41 }
 0xe63   : > { %v7902_v38 = vrot.slane %v7901_v11, 4  ;;  %v7908_v61 = vsel %vm673_vm7, %v7891_v59, 0.0  ;;  %v7915_v0 = vsel %vm673_vm7, %v7892_v53, 0.0 }
 0xe64   : > { %v7894_v49 = vsel %vm673_vm7, %v7889_v12, 0.0  ;;  %v7909_v14 = vrot.slane %v7908_v61, 4  ;;  %v7922_v63 = vsel %vm960_vm15, %v7893_v20, 0.0  ;;  %v7916_v5 = vrot.slane %v7915_v0, 4 }
 0xe65   : > { %v7895_v15 = vrot.slane %v7894_v49, 4  ;;  %v7903_v29 = vadd.f32 %v7902_v38, %v7901_v11  ;;  %v7923_v47 = vrot.slane %v7922_v63, 4 }
 0xe66   : > { %v7910_v39 = vadd.f32 %v7909_v14, %v7908_v61  ;;  %v7917_v56 = vadd.f32 %v7916_v5, %v7915_v0 }
 0xe67   : > { %v7896_v34 = vadd.f32 %v7895_v15, %v7894_v49  ;;  %v7904_v8 = vrot.slane %v7903_v29, 2  ;;  %v7924_v45 = vadd.f32 %v7923_v47, %v7922_v63 }
 0xe68   : > { %v7911_v46 = vrot.slane %v7910_v39, 2  ;;  %v7918_v48 = vrot.slane %v7917_v56, 2 }
 0xe69   : > { %v7897_v26 = vrot.slane %v7896_v34, 2  ;;  %v7905_v54 = vadd.f32 %v7904_v8, %v7903_v29  ;;  %v7925_v3 = vrot.slane %v7924_v45, 2 }
 0xe6a   : > { %v7912_v6 = vadd.f32 %v7911_v46, %v7910_v39  ;;  %v7919_v2 = vadd.f32 %v7918_v48, %v7917_v56 }
 0xe6b   : > { %v7898_v57 = vadd.f32 %v7897_v26, %v7896_v34  ;;  %v7906_v23 = vrot.slane %v7905_v54, 1  ;;  %v7926_v33 = vadd.f32 %v7925_v3, %v7924_v45 }
 0xe6c   : > { %v7913_v36 = vrot.slane %v7912_v6, 1  ;;  %v7920_v1 = vrot.slane %v7919_v2, 1 }
 0xe6d   : > { %v7899_v40 = vrot.slane %v7898_v57, 1  ;;  %v7907_v42 = vadd.f32 %v7906_v23, %v7905_v54  ;;  %v7927_v32 = vrot.slane %v7926_v33, 1 }
 0xe6e   : > { %v7914_v35 = vadd.f32 %v7913_v36, %v7912_v6  ;;  %v7921_v21 = vadd.f32 %v7920_v1, %v7919_v2 }
 0xe6f   : > { %v7900_v52 = vadd.f32 %v7899_v40, %v7898_v57  ;;  %v7930_v58 = vmul.f32 %v7907_v42, %v10129_v18  ;;  %v7928_v10 = vadd.f32 %v7927_v32, %v7926_v33 }
 0xe70   : > { %v7931_v7 = vmul.f32 %v7914_v35, %v10129_v18  ;;  %v7932_v30 = vmul.f32 %v7921_v21, %v10129_v18 }
 0xe71   : > { %v7929_v22 = vmul.f32 %v7900_v52, %v10129_v18  ;;  %v7935_v31 = vadd.f32 1e-08, %v7930_v58  ;;  %v7933_v9 = vmul.f32 %v7928_v10, %v10129_v18 }
 0xe72   : > { %v7936_v50 = vadd.f32 1e-08, %v7931_v7  ;;  %v11304_v53 = vadd.f32 1e-08, %v7932_v30 }
 0xe73   : > { %v7934_v25 = vadd.f32 1e-08, %v7929_v22  ;;  %9051 = vrsqrt.f32 %v7935_v31  ;;  %v11300_v44 = vadd.f32 1e-08, %v7933_v9  ;;  %vm7955_vm5 = vweird.f32 %v7935_v31 }
 0xe74   : > { %vm7965_vm2 = vweird.f32 %v7936_v50  ;;  %vm7975_vm4 = vweird.f32 %v11304_v53 }
 0xe75   : > { %9053 = vrsqrt.f32 %v7934_v25  ;;  %vm7945_vm14 = vweird.f32 %v7934_v25  ;;  %vm7985_vm10 = vweird.f32 %v11300_v44 }
 0xe76   : > { %9055 = vrsqrt.f32 %v7936_v50 }
 0xe77   : > { %9057 = vrsqrt.f32 %v11300_v44 }
 0xe78   : > { %9059 = vrsqrt.f32 %v11304_v53 }
 0xe79   : > { %v9052_v62 = vpop.eup %9051 }
 0xe7a   : > { %v7950_v27 = vmul.f32 %v9052_v62, %v7935_v31  ;;  %vm7956_vm8 = vweird.f32 %v9052_v62 }
 0xe7b   : > { %v9054_v19 = vpop.eup %9053  ;;  %vm7957_vm1 = vmor %vm7955_vm5, %vm7956_vm8  ;;  %vm8023_vm8 = vcmask 932864   ;;  %vm8064_vm5 = vcmask 785408  }
 0xe7c   : > { %v7940_v24 = vmul.f32 %v9054_v19, %v7934_v25  ;;  %v7951_v16 = vmul.f32 %v9052_v62, %v7950_v27  ;;  %v9056_v37 = vpop.eup %9055  ;;  %vm7946_vm15 = vweird.f32 %v9054_v19 }
 0xe7d   : > { %v7960_v60 = vmul.f32 %v9056_v37, %v7936_v50  ;;  %v9058_v38 = vpop.eup %9057  ;;  %vm7947_vm0 = vmor %vm7945_vm14, %vm7946_vm15  ;;  %vm7966_vm13 = vweird.f32 %v9056_v37  ;;  %vm8060_vm15 = vcmask 261120   ;;  %vm8006_vm14 = vcmask 998400  }
 0xe7e   : > { %v7941_v28 = vmul.f32 %v9054_v19, %v7940_v24  ;;  %v7952_v17 = vmul.f32 0.5, %v7951_v16  ;;  %v7980_v14 = vmul.f32 %v9058_v38, %v11300_v44  ;;  %v9060_v29 = vpop.eup %9059  ;;  %vm7967_vm3 = vmor %vm7965_vm2, %vm7966_vm13  ;;  %vm7986_vm9 = vweird.f32 %v9058_v38 }
 0xe7f   : > { %v7961_v20 = vmul.f32 %v9056_v37, %v7960_v60  ;;  %v7970_v34 = vmul.f32 %v9060_v29, %v11304_v53  ;;  %vm7987_vm11 = vmor %vm7985_vm10, %vm7986_vm9  ;;  %vm7976_vm12 = vweird.f32 %v9060_v29  ;;  %vm8040_vm13 = vcmask 867328  }
 0xe80   : > { %v7942_v4 = vmul.f32 0.5, %v7941_v28  ;;  %v7953_v11 = vsub.f32 1.5, %v7952_v17  ;;  %v7981_v15 = vmul.f32 %v9058_v38, %v7980_v14  ;;  %vm7977_vm6 = vmor %vm7975_vm4, %vm7976_vm12 }
 0xe81   : > { %v7962_v49 = vmul.f32 0.5, %v7961_v20  ;;  %v7971_v46 = vmul.f32 %v9060_v29, %v7970_v34 }
 0xe82   : > { %v7943_v59 = vsub.f32 1.5, %v7942_v4  ;;  %v7954_v18 = vmul.f32 %v9052_v62, %v7953_v11  ;;  %v7982_v5 = vmul.f32 0.5, %v7981_v15 }
 0xe83   : > { %v7963_v63 = vsub.f32 1.5, %v7962_v49 }
 0xe84   : > { %v7944_v12 = vmul.f32 %v9054_v19, %v7943_v59  ;;  %v7983_v45 = vsub.f32 1.5, %v7982_v5 }
 0xe85   : > { %v7964_v39 = vmul.f32 %v9056_v37, %v7963_v63 }
 0xe86   : > { %v7948_v61 = vsel %vm7947_vm0, %v9054_v19, %v7944_v12  ;;  %v7984_v54 = vmul.f32 %v9058_v38, %v7983_v45  ;;  %vm8062_vm0 = vcmask 523264  }
 0xe87   : > { %v11307_v0 = vmul.f32 %v7948_v61, %v11279_v51  ;;  %v7958_v51 = vsel %vm7957_vm1, %v9052_v62, %v7954_v18  ;;  %v7968_v8 = vsel %vm7967_vm3, %v9056_v37, %v7964_v39  ;;  %vm8057_vm1 = vcmask 801792  }
 0xe88   : > { %v7990_v47 = vmul.f32 %v7958_v51, %v11271_v43  ;;  %v7991_v26 = vmul.f32 %v7968_v8, %v11275_v55  ;;  %v7972_v43 = vmul.f32 0.5, %v7971_v46  ;;  %v7988_v3 = vsel %vm7987_vm11, %v9058_v38, %v7984_v54 }
 0xe89   : > { %8002 = vrot.lane.b32.xlu1 %v11307_v0, %s9182_s17  ;;  %7998 = vrot.lane.b32.xlu0 %v11307_v0, %s9183_s20  ;;  %v7993_v56 = vmul.f32 %v7988_v3, %v11283_v41 }
 0xe8a   : > { %7995 = vrot.lane.b32.xlu2 %v11307_v0, %s9155_s12  ;;  %s9186_s12 = smov 116   ;;  %v7973_v6 = vsub.f32 1.5, %v7972_v43 }
 0xe8c   : > { %v7974_v57 = vmul.f32 %v9060_v29, %v7973_v6 }
 0xe8e   : > { %v7978_v55 = vsel %vm7977_vm6, %v9060_v29, %v7974_v57 }
 0xe8f   : > { %v7992_v23 = vmul.f32 %v7978_v55, %v11277_v13 }
 0xe91   : > { %8012 = vrot.lane.b32.xlu1 %v7990_v47, %s9184_s8  ;;  %8009 = vrot.lane.b32.xlu0 %v7990_v47, %s9185_s30 }
 0xe92   : > { %8004 = vrot.lane.b32.xlu2 %v7990_v47, %s9182_s17 }
 0xe99   : > { %8015 = vrot.lane.b32.xlu1 %v7990_v47, %s9186_s12  ;;  %8021 = vrot.lane.b32.xlu0 %v7991_v26, %s9187_s14 }
 0xe9a   : > { %8019 = vrot.lane.b32.xlu2 %v7990_v47, %s9187_s14 }
 0xea1   : > { %8026 = vrot.lane.b32.xlu1 %v7991_v26, %s9188_s21  ;;  %8055 = vrot.lane.b32.xlu0 %v7993_v56, %s9189_s18 }
 0xea2   : > { %8029 = vrot.lane.b32.xlu2 %v7991_v26, %s9190_s19 }
 0xea9   : > { %8049 = vrot.lane.b32.xlu1 %v7992_v23, %s9191_s26  ;;  %8046 = vrot.lane.b32.xlu0 %v7992_v23, %s9192_s28 }
 0xeaa   : > { %8043 = vrot.lane.b32.xlu2 %v7992_v23, %s9193_s16 }
 0xeb1   : > { %8036 = vrot.lane.b32.xlu1 %v7991_v26, %s9194_s22  ;;  %8032 = vrot.lane.b32.xlu0 %v7991_v26, %s9195_s24 }
 0xeb2   : > { %8053 = vrot.lane.b32.xlu2 %v7992_v23, %s9189_s18 }
 0xeba   : > { %8038 = vrot.lane.b32.xlu2 %v7992_v23, %s9194_s22 }
 0xee4   : > { %v7996_v41 = vpop.permute.xlu2 %7995 }
 0xee5   : > { %v8061_v52 = vsel %vm8060_vm15, %v11307_v0, %v7996_v41 }
 0xeec   : > { %v8005_v33 = vpop.permute.xlu2 %8004 }
 0xef4   : > { %v8020_v36 = vpop.permute.xlu2 %8019 }
 0xefb   : > { %v8003_v40 = vpop.permute.xlu1 %8002  ;;  %v7999_v42 = vpop.permute.xlu0 %7998 }
 0xefc   : > { %v8030_v13 = vpop.permute.xlu2 %8029  ;;  %v8007_v22 = vsel %vm8006_vm14, %v8003_v40, %v8005_v33  ;;  %v8063_v31 = vsel %vm8062_vm0, %v8061_v52, %v7999_v42 }
 0xefd   : > { %v8065_v1 = vsel %vm8064_vm5, %v8063_v31, %v8007_v22 }
 0xf03   : > { %v8013_v35 = vpop.permute.xlu1 %8012  ;;  %v8010_v48 = vpop.permute.xlu0 %8009 }
 0xf04   : > { %v8066_v58 = vsel %vm8060_vm15, %v8010_v48, %v8013_v35  ;;  %v8044_v10 = vpop.permute.xlu2 %8043 }
 0xf0b   : > { %v8016_v32 = vpop.permute.xlu1 %8015  ;;  %v8022_v7 = vpop.permute.xlu0 %8021 }
 0xf0c   : > { %v8067_v2 = vsel %vm8062_vm0, %v8066_v58, %v8016_v32  ;;  %v8024_v25 = vsel %vm8023_vm8, %v8020_v36, %v8022_v7  ;;  %v8054_v44 = vpop.permute.xlu2 %8053 }
 0xf0d   : > { %v8068_v50 = vsel %vm8064_vm5, %v8067_v2, %v8024_v25 }
 0xf0e   : > { %v8079_v9 = vrot.slane %v8068_v50, 4 }
 0xf10   : > { %v8081_v62 = vsel %vm673_vm7, %v8065_v1, %v8079_v9 }
 0xf11   : > { %8085 = vst [vmem:[%s9401_s23] sm:$0xff] %v8081_v62 }
 0xf13   : > { %v8027_v27 = vpop.permute.xlu1 %8026  ;;  %v8056_v19 = vpop.permute.xlu0 %8055 }
 0xf14   : > { %v8058_v28 = vsel %vm8057_vm1, %v8054_v44, %v8056_v19  ;;  %v8039_v4 = vpop.permute.xlu2 %8038  ;;  %v8069_v17 = vsel %vm8060_vm15, %v8027_v27, %v8030_v13 }
 0xf1b   : > { %v8050_v21 = vpop.permute.xlu1 %8049  ;;  %v8047_v24 = vpop.permute.xlu0 %8046 }
 0xf1c   : > { %v8072_v16 = vsel %vm8060_vm15, %v8044_v10, %v8047_v24 }
 0xf1d   : > { %v8073_v37 = vsel %vm8062_vm0, %v8072_v16, %v8050_v21 }
 0xf1e   : > { %v8074_v30 = vsel %vm8064_vm5, %v8073_v37, %v8058_v28 }
 0xf1f   : > { %v8080_v53 = vrot.slane %v8074_v30, 4 }
 0xf23   : > { %v8037_v60 = vpop.permute.xlu1 %8036  ;;  %v8033_v59 = vpop.permute.xlu0 %8032 }
 0xf24   : > { %v8041_v12 = vsel %vm8040_vm13, %v8037_v60, %v8039_v4  ;;  %v8070_v11 = vsel %vm8062_vm0, %v8069_v17, %v8033_v59 }
 0xf25   : > { %v8071_v20 = vsel %vm8064_vm5, %v8070_v11, %v8041_v12 }
 0xf26   : > { %v8082_v38 = vsel %vm673_vm7, %v8071_v20, %v8080_v53 }
 0xf27   : > { %8086 = vst [vmem:[%s9401_s23 + $0x8] sm:$0xff] %v8082_v38 }
 0xf28 PF: > { %s17_s11 = sadd.s32 1, %s9151_s11   ;;  %s11513_s15 = sld [smem:[#allocation10_spill]] }
 0xf29   : > { %p14_p7 = scmp.ge.s32.totalorder %s17_s11, 6   ;;  %s11514_s17 = sld [smem:[#allocation9_spill]] }
 0xf2a   : > { %s11515_s20 = sld [smem:[#allocation7_spill]]  ;;  %s11517_s24 = smov %s9115_s25 }
 0xf2b   : > { %s11516_s12 = sld [smem:[#allocation8_spill]]  ;;  %s11518_s25 = smov %s9337_s13 }
 0xf2c   : > { %s11519_s26 = smov %s9123_s27  ;;  %s11521_s28 = smov %s9131_s29 }
 0xf2d   : > { %s11523_s30 = smov %s9143_s9  ;;  %s11524_s8 = smov %s9147_s10 }
 0xf2e   : > { %s11520_s27 = smov %s11513_s15  ;;  %16 = sbr.rel (!%p14_p7) target bundleno = 8 (0x8), region = 262 }
 0xf2f   : > { %s11522_s29 = smov %s11514_s17 }
 0xf30   : > { %s11525_s9 = smov %s11515_s20 }
 0xf31   : > { %s11526_s10 = smov %s11516_s12 }

</bundles_post_ra>
